<compile_context>
chip_gen: v7x
topology: tpu7x:2x2x1
jax: 0.10.0
libtpu: 0.0.40
codegen_flags: <defaults>
</compile_context>

<pallas_src>
import math

import numpy as np

import jax
import jax.numpy as jnp
from jax.experimental import pallas as pl
from jax.experimental.pallas import tpu as pltpu

OUT_DIMS = [5000, 1000, 500, 200, 10]  # self.out_dims


# ----------------------------------------------------------------------------
# Host-side adaptive-window tables (static, numpy)
# ----------------------------------------------------------------------------
def _adaptive_window_bounds(length, out_size):
    i = np.arange(out_size, dtype=np.int64)
    starts = (i * length) // out_size
    ends = ((i + 1) * length + out_size - 1) // out_size  # ceil((i+1)*L/O)
    return starts, ends


def _window_onehot(length, out_size):
    """One-hot gather matrix G (length, K*out_size), K = max window length.

    Column k*out_size + w is one-hot at row min(start_w + k, end_w - 1); the
    clamp repeats the window's first element for short windows, which is
    max-invariant (valid only because pool_out == 'max')."""
    starts, ends = _adaptive_window_bounds(length, out_size)
    k_max = int((ends - starts).max())
    g = np.zeros((length, k_max * out_size), dtype=np.float32)
    cols = np.arange(out_size, dtype=np.int64)
    for k in range(k_max):
        rows = np.minimum(starts + k, ends - 1)
        g[rows, k * out_size + cols] = 1.0
    return k_max, jnp.asarray(g)


# ----------------------------------------------------------------------------
# Fused channel-max + adaptive-window-max kernel (big activations)
# ----------------------------------------------------------------------------
def _make_pool_kernel(k_max, wp):
    def kernel(x_ref, g_ref, o_ref):
        # x_ref: (1, C, nper, per_lanes); g_ref: (per_lanes, k_max*wp)
        # o_ref: (1, nper, wp)
        xm = jnp.max(x_ref[0], axis=0)                      # channel max: (nper, per_lanes)
        # one-hot matmul == gather of the K candidate lanes of every window
        t = jnp.dot(xm, g_ref[...],
                    preferred_element_type=jnp.float32)     # (nper, k_max*wp)
        r = t[:, :wp]
        for k in range(1, k_max):
            r = jnp.maximum(r, t[:, k * wp:(k + 1) * wp])   # window max
        o_ref[0] = r
    return kernel


def adaptive_channel_max(x, out_size):
    """AdaptiveMaxPool1d(out_size)(x.view(B, C, -1)).max(dim=1) -> (B, out_size)."""
    b, c = int(x.shape[0]), int(x.shape[1])
    length = int(np.prod(x.shape[2:]))
    d = math.gcd(length, out_size)
    n_periods, per_lanes, per_windows = d, length // d, out_size // d
    k_max, g = _window_onehot(per_lanes, per_windows)

    # Periods per block: a multiple of 8 (sublane rule) dividing n_periods,
    # sized for <= ~4 MiB input blocks (good HBM pipelining on v5e/v6e/v7x and
    # >= 8 parallel grid steps for v7x's 2 TCs); fall back to the full extent.
    itemsize = jnp.dtype(x.dtype).itemsize
    nper = n_periods
    for cand in range(8, n_periods + 1, 8):
        if n_periods % cand == 0 and c * cand * per_lanes * itemsize <= (4 << 20):
            nper = cand

    xr = x.reshape(b, c, n_periods, per_lanes)
    out = pl.pallas_call(
        _make_pool_kernel(k_max, per_windows),
        out_shape=jax.ShapeDtypeStruct((b, n_periods, per_windows), jnp.float32),
        grid=(b, n_periods // nper),
        in_specs=[
            pl.BlockSpec((1, c, nper, per_lanes), lambda bi, pi: (bi, 0, pi, 0)),
            # small one-hot matrix: constant block index -> stays resident in VMEM
            pl.BlockSpec((per_lanes, k_max * per_windows), lambda bi, pi: (0, 0)),
        ],
        out_specs=pl.BlockSpec((1, nper, per_windows), lambda bi, pi: (bi, pi, 0)),
        compiler_params=pltpu.CompilerParams(
            dimension_semantics=("parallel", "parallel")),
    )(xr, g)
    return out.reshape(b, out_size)


# ----------------------------------------------------------------------------
# Fused tail kernel: x3 pooling + x4 pooling + avg_pool2d/Linear head
# ----------------------------------------------------------------------------
def _make_tail_kernel(k3, o3, k4, o4):
    def kernel(x3_ref, g3_ref, x4_ref, g4_ref, w_ref, b_ref,
               o3_ref, o4_ref, o5_ref):
        # feature 3: AdaptiveMaxPool1d(o3) + channel max
        m3 = jnp.max(x3_ref[...], axis=1)                              # (B, 64)
        t3 = jnp.dot(m3, g3_ref[...], preferred_element_type=jnp.float32)
        r3 = t3[:, :o3]
        for k in range(1, k3):
            r3 = jnp.maximum(r3, t3[:, k * o3:(k + 1) * o3])
        o3_ref[...] = r3
        # feature 4
        m4 = jnp.max(x4_ref[...], axis=1)                              # (B, 16)
        t4 = jnp.dot(m4, g4_ref[...], preferred_element_type=jnp.float32)
        r4 = t4[:, :o4]
        for k in range(1, k4):
            r4 = jnp.maximum(r4, t4[:, k * o4:(k + 1) * o4])
        o4_ref[...] = r4
        # head: avg_pool2d(x4, 4) -> view(B, 512) -> Linear(512, 10)
        pooled = jnp.mean(x4_ref[...], axis=-1)                        # (B, 512)
        o5_ref[...] = (
            jnp.dot(pooled, w_ref[...], preferred_element_type=jnp.float32)
            + b_ref[...])
    return kernel


def tail_features(x3, x4, w_t, bias, out3, out4):
    b = int(x3.shape[0])
    x3f = x3.reshape(b, int(x3.shape[1]), -1)          # (B, 256, 64)
    x4f = x4.reshape(b, int(x4.shape[1]), -1)          # (B, 512, 16)
    k3, g3 = _window_onehot(int(x3f.shape[-1]), out3)
    k4, g4 = _window_onehot(int(x4f.shape[-1]), out4)
    n_cls = int(w_t.shape[1])

    def full(shape):
        shape = tuple(int(s) for s in shape)
        return pl.BlockSpec(shape, lambda i: (0,) * len(shape))

    f3, f4, f5 = pl.pallas_call(
        _make_tail_kernel(k3, out3, k4, out4),
        out_shape=(
            jax.ShapeDtypeStruct((b, out3), jnp.float32),
            jax.ShapeDtypeStruct((b, out4), jnp.float32),
            jax.ShapeDtypeStruct((b, n_cls), jnp.float32),
        ),
        grid=(1,),
        in_specs=[
            full(x3f.shape), full(g3.shape),
            full(x4f.shape), full(g4.shape),
            full(w_t.shape), full(bias.shape),
        ],
        out_specs=(full((b, out3)), full((b, out4)), full((b, n_cls))),
        compiler_params=pltpu.CompilerParams(dimension_semantics=("arbitrary",)),
    )(x3f, g3, x4f, g4, w_t, bias)
    return f3, f4, f5


# ----------------------------------------------------------------------------
# Model
# ----------------------------------------------------------------------------
def init_params(key):
    # nn.Linear(512, 10) default init: W, b ~ U(-1/sqrt(512), 1/sqrt(512)).
    bound = 1.0 / math.sqrt(512.0)
    kw, kb = jax.random.split(key)
    w = jax.random.uniform(kw, (10, 512), jnp.float32, -bound, bound)
    b = jax.random.uniform(kb, (10,), jnp.float32, -bound, bound)
    return {"w_t": jnp.transpose(w), "b": b.reshape(1, 10)}  # (512, 10), (1, 10)


def synth_activations(act_key):
    # The torch forward draws fresh activations with torch.randn; reproduce
    # deterministically from `act_key` (kept in f32 to preserve the reference
    # numerics; bf16 would halve HBM traffic if approximation were acceptable).
    k1, k2, k3, k4 = jax.random.split(act_key, 4)
    x1 = jax.random.normal(k1, (3, 128, 10, 64, 22), jnp.float32)
    x2 = jax.random.normal(k2, (3, 128, 10, 64, 22), jnp.float32)
    x3 = jax.random.normal(k3, (3, 256, 8, 8), jnp.float32)
    x4 = jax.random.normal(k4, (3, 512, 4, 4), jnp.float32)
    return x1, x2, x3, x4


def resnet_forward(x, params, act_key):
    del x  # the torch forward ignores its input
    x1, x2, x3, x4 = synth_activations(act_key)
    f1 = adaptive_channel_max(x1, OUT_DIMS[0])                       # (3, 5000)
    f2 = adaptive_channel_max(x2, OUT_DIMS[1])                       # (3, 1000)
    f3, f4, f5 = tail_features(x3, x4, params["w_t"], params["b"],
                               OUT_DIMS[2], OUT_DIMS[3])             # (3,500),(3,200),(3,10)
    return [f1, f2, f3, f4, f5]


# ----------------------------------------------------------------------------
# Pure-JAX reference (for the numerical self-check)
# ----------------------------------------------------------------------------
def _ref_adaptive_channel_max(x, out_size):
    b, c = int(x.shape[0]), int(x.shape[1])
    xf = x.reshape(b, c, -1)
    length = int(xf.shape[-1])
    starts, ends = _adaptive_window_bounds(length, out_size)
    k_max = int((ends - starts).max())
    idx = np.minimum(starts[None, :] + np.arange(k_max)[:, None], ends[None, :] - 1)
    m = jnp.max(xf, axis=1)                                          # (B, L)
    return jnp.max(jnp.take(m, jnp.asarray(idx), axis=1), axis=1)    # (B, O)


def _ref_forward(params, act_key):
    x1, x2, x3, x4 = synth_activations(act_key)
    f1 = _ref_adaptive_channel_max(x1, OUT_DIMS[0])
    f2 = _ref_adaptive_channel_max(x2, OUT_DIMS[1])
    f3 = _ref_adaptive_channel_max(x3, OUT_DIMS[2])
    f4 = _ref_adaptive_channel_max(x4, OUT_DIMS[3])
    pooled = jnp.mean(x4.reshape(x4.shape[0], x4.shape[1], -1), axis=-1)
    f5 = pooled @ params["w_t"] + params["b"]
    return [f1, f2, f3, f4, f5]


# ----------------------------------------------------------------------------
if __name__ == "__main__":
    root = jax.random.PRNGKey(0)
    k_param, k_x, k_act = jax.random.split(root, 3)

    params = init_params(k_param)
    x = jax.random.normal(k_x, (3, 4, 3), jnp.float32)   # torch.randn(3, 4, 3)

    fwd = jax.jit(resnet_forward)
    feats = jax.block_until_ready(fwd(x, params, k_act))

    expected = [(3, 5000), (3, 1000), (3, 500), (3, 200), (3, 10)]
    got = [tuple(map(int, f.shape)) for f in feats]
    assert got == expected, (got, expected)
    assert all(f.dtype == jnp.float32 for f in feats)
    assert all(bool(jnp.all(jnp.isfinite(f))) for f in feats)

    # numerical self-check against a plain-XLA reference of the same math
    refs = _ref_forward(params, k_act)
    for i, (a, r) in enumerate(zip(feats, refs)):
        assert bool(jnp.allclose(a, r, rtol=1e-2, atol=5e-2)), f"feature {i} mismatch"

    print("KERNEL_OK")
</pallas_src>

<mosaic_0001>
module attributes {stable_mosaic.version = 11 : i64} {
  func.func @kernel(%arg0: i32, %arg1: i32, %arg2: memref<1x128x8x352xf32, #tpu.memory_space<vmem>>, %arg3: memref<352x500xf32, #tpu.memory_space<vmem>>, %arg4: memref<1x8x125xf32, #tpu.memory_space<vmem>>) attributes {dimension_semantics = [#tpu.dimension_semantics<parallel>, #tpu.dimension_semantics<parallel>], iteration_bounds = array<i64: 3, 5>, scalar_prefetch = 0 : i64, scratch_operands = 0 : i64, tpu.core_type = #tpu.core_type<tc>, window_params = [{transform_indices = @transform_0, window_bounds = array<i64: 1, 128, 8, 352>}, {pipeline_mode = #tpu.pipeline_mode<synchronous>, transform_indices = @transform_1, window_bounds = array<i64: 352, 500>}, {transform_indices = @transform_2, window_bounds = array<i64: 1, 8, 125>}]} {
    %c0 = arith.constant 0 : index
    %c0_0 = arith.constant 0 : index
    %c0_1 = arith.constant 0 : index
    %c0_2 = arith.constant 0 : index
    %0 = vector.load %arg2[%c0, %c0_0, %c0_1, %c0_2] : memref<1x128x8x352xf32, #tpu.memory_space<vmem>>, vector<1x128x8x352xf32>
    %1 = vector.shape_cast %0 : vector<1x128x8x352xf32> to vector<128x8x352xf32>
    %cst = arith.constant dense<0xFF800000> : vector<8x352xf32>
    %2 = vector.multi_reduction <maximumf>, %1, %cst [0] : vector<128x8x352xf32> to vector<8x352xf32>
    %c0_3 = arith.constant 0 : index
    %c0_4 = arith.constant 0 : index
    %3 = vector.load %arg3[%c0_3, %c0_4] : memref<352x500xf32, #tpu.memory_space<vmem>>, vector<352x500xf32>
    %cst_5 = arith.constant dense<0.000000e+00> : vector<8x500xf32>
    %4 = tpu.matmul %2, %3, %cst_5 {dimension_numbers = #tpu.dot_dimension_numbers<[1], [0], [0], [1], [0, 0, 1, 1], [], []>} : vector<8x352xf32>, vector<352x500xf32>, vector<8x500xf32> -> vector<8x500xf32>
    %5 = vector.extract_strided_slice %4 {offsets = [0, 0], sizes = [8, 125], strides = [1, 1]} : vector<8x500xf32> to vector<8x125xf32>
    %6 = vector.extract_strided_slice %4 {offsets = [0, 125], sizes = [8, 125], strides = [1, 1]} : vector<8x500xf32> to vector<8x125xf32>
    %7 = arith.maximumf %5, %6 : vector<8x125xf32>
    %8 = vector.extract_strided_slice %4 {offsets = [0, 250], sizes = [8, 125], strides = [1, 1]} : vector<8x500xf32> to vector<8x125xf32>
    %9 = arith.maximumf %7, %8 : vector<8x125xf32>
    %10 = vector.extract_strided_slice %4 {offsets = [0, 375], sizes = [8, 125], strides = [1, 1]} : vector<8x500xf32> to vector<8x125xf32>
    %11 = arith.maximumf %9, %10 : vector<8x125xf32>
    %c0_6 = arith.constant 0 : index
    %c0_7 = arith.constant 0 : index
    %c0_8 = arith.constant 0 : index
    %12 = vector.load %arg4[%c0_6, %c0_7, %c0_8] : memref<1x8x125xf32, #tpu.memory_space<vmem>>, vector<1x8x125xf32>
    %13 = vector.shape_cast %12 : vector<1x8x125xf32> to vector<8x125xf32>
    %14 = vector.shape_cast %11 : vector<8x125xf32> to vector<1x8x125xf32>
    tpu.vector_store %arg4[%c0_6, %c0_7, %c0_8], %14 {strides = array<i32>} : memref<1x8x125xf32, #tpu.memory_space<vmem>>, vector<1x8x125xf32>,
    return
  }
  func.func @transform_0(%arg0: i32, %arg1: i32) -> (i32, i32, i32, i32) {
    %c0_i32 = arith.constant 0 : i32
    %c0_i32_0 = arith.constant 0 : i32
    %c0_i32_1 = arith.constant 0 : i32
    return %arg0, %c0_i32, %arg1, %c0_i32_0 : i32, i32, i32, i32
  }
  func.func @transform_1(%arg0: i32, %arg1: i32) -> (i32, i32) {
    %c0_i32 = arith.constant 0 : i32
    %c0_i32_0 = arith.constant 0 : i32
    %c0_i32_1 = arith.constant 0 : i32
    return %c0_i32, %c0_i32_0 : i32, i32
  }
  func.func @transform_2(%arg0: i32, %arg1: i32) -> (i32, i32, i32) {
    %c0_i32 = arith.constant 0 : i32
    %c0_i32_0 = arith.constant 0 : i32
    return %arg0, %arg1, %c0_i32 : i32, i32, i32
  }
}

module attributes {stable_mosaic.version = 11 : i64} {
  func.func @kernel(%arg0: i32, %arg1: i32, %arg2: memref<1x128x8x352xf32, #tpu.memory_space<vmem>>, %arg3: memref<352x400xf32, #tpu.memory_space<vmem>>, %arg4: memref<1x8x25xf32, #tpu.memory_space<vmem>>) attributes {dimension_semantics = [#tpu.dimension_semantics<parallel>, #tpu.dimension_semantics<parallel>], iteration_bounds = array<i64: 3, 5>, scalar_prefetch = 0 : i64, scratch_operands = 0 : i64, tpu.core_type = #tpu.core_type<tc>, window_params = [{transform_indices = @transform_0, window_bounds = array<i64: 1, 128, 8, 352>}, {pipeline_mode = #tpu.pipeline_mode<synchronous>, transform_indices = @transform_1, window_bounds = array<i64: 352, 400>}, {transform_indices = @transform_2, window_bounds = array<i64: 1, 8, 25>}]} {
    %c0 = arith.constant 0 : index
    %c0_0 = arith.constant 0 : index
    %c0_1 = arith.constant 0 : index
    %c0_2 = arith.constant 0 : index
    %0 = vector.load %arg2[%c0, %c0_0, %c0_1, %c0_2] : memref<1x128x8x352xf32, #tpu.memory_space<vmem>>, vector<1x128x8x352xf32>
    %1 = vector.shape_cast %0 : vector<1x128x8x352xf32> to vector<128x8x352xf32>
    %cst = arith.constant dense<0xFF800000> : vector<8x352xf32>
    %2 = vector.multi_reduction <maximumf>, %1, %cst [0] : vector<128x8x352xf32> to vector<8x352xf32>
    %c0_3 = arith.constant 0 : index
    %c0_4 = arith.constant 0 : index
    %3 = vector.load %arg3[%c0_3, %c0_4] : memref<352x400xf32, #tpu.memory_space<vmem>>, vector<352x400xf32>
    %cst_5 = arith.constant dense<0.000000e+00> : vector<8x400xf32>
    %4 = tpu.matmul %2, %3, %cst_5 {dimension_numbers = #tpu.dot_dimension_numbers<[1], [0], [0], [1], [0, 0, 1, 1], [], []>} : vector<8x352xf32>, vector<352x400xf32>, vector<8x400xf32> -> vector<8x400xf32>
    %5 = vector.extract_strided_slice %4 {offsets = [0, 0], sizes = [8, 25], strides = [1, 1]} : vector<8x400xf32> to vector<8x25xf32>
    %6 = vector.extract_strided_slice %4 {offsets = [0, 25], sizes = [8, 25], strides = [1, 1]} : vector<8x400xf32> to vector<8x25xf32>
    %7 = arith.maximumf %5, %6 : vector<8x25xf32>
    %8 = vector.extract_strided_slice %4 {offsets = [0, 50], sizes = [8, 25], strides = [1, 1]} : vector<8x400xf32> to vector<8x25xf32>
    %9 = arith.maximumf %7, %8 : vector<8x25xf32>
    %10 = vector.extract_strided_slice %4 {offsets = [0, 75], sizes = [8, 25], strides = [1, 1]} : vector<8x400xf32> to vector<8x25xf32>
    %11 = arith.maximumf %9, %10 : vector<8x25xf32>
    %12 = vector.extract_strided_slice %4 {offsets = [0, 100], sizes = [8, 25], strides = [1, 1]} : vector<8x400xf32> to vector<8x25xf32>
    %13 = arith.maximumf %11, %12 : vector<8x25xf32>
    %14 = vector.extract_strided_slice %4 {offsets = [0, 125], sizes = [8, 25], strides = [1, 1]} : vector<8x400xf32> to vector<8x25xf32>
    %15 = arith.maximumf %13, %14 : vector<8x25xf32>
    %16 = vector.extract_strided_slice %4 {offsets = [0, 150], sizes = [8, 25], strides = [1, 1]} : vector<8x400xf32> to vector<8x25xf32>
    %17 = arith.maximumf %15, %16 : vector<8x25xf32>
    %18 = vector.extract_strided_slice %4 {offsets = [0, 175], sizes = [8, 25], strides = [1, 1]} : vector<8x400xf32> to vector<8x25xf32>
    %19 = arith.maximumf %17, %18 : vector<8x25xf32>
    %20 = vector.extract_strided_slice %4 {offsets = [0, 200], sizes = [8, 25], strides = [1, 1]} : vector<8x400xf32> to vector<8x25xf32>
    %21 = arith.maximumf %19, %20 : vector<8x25xf32>
    %22 = vector.extract_strided_slice %4 {offsets = [0, 225], sizes = [8, 25], strides = [1, 1]} : vector<8x400xf32> to vector<8x25xf32>
    %23 = arith.maximumf %21, %22 : vector<8x25xf32>
    %24 = vector.extract_strided_slice %4 {offsets = [0, 250], sizes = [8, 25], strides = [1, 1]} : vector<8x400xf32> to vector<8x25xf32>
    %25 = arith.maximumf %23, %24 : vector<8x25xf32>
    %26 = vector.extract_strided_slice %4 {offsets = [0, 275], sizes = [8, 25], strides = [1, 1]} : vector<8x400xf32> to vector<8x25xf32>
    %27 = arith.maximumf %25, %26 : vector<8x25xf32>
    %28 = vector.extract_strided_slice %4 {offsets = [0, 300], sizes = [8, 25], strides = [1, 1]} : vector<8x400xf32> to vector<8x25xf32>
    %29 = arith.maximumf %27, %28 : vector<8x25xf32>
    %30 = vector.extract_strided_slice %4 {offsets = [0, 325], sizes = [8, 25], strides = [1, 1]} : vector<8x400xf32> to vector<8x25xf32>
    %31 = arith.maximumf %29, %30 : vector<8x25xf32>
    %32 = vector.extract_strided_slice %4 {offsets = [0, 350], sizes = [8, 25], strides = [1, 1]} : vector<8x400xf32> to vector<8x25xf32>
    %33 = arith.maximumf %31, %32 : vector<8x25xf32>
    %34 = vector.extract_strided_slice %4 {offsets = [0, 375], sizes = [8, 25], strides = [1, 1]} : vector<8x400xf32> to vector<8x25xf32>
    %35 = arith.maximumf %33, %34 : vector<8x25xf32>
    %c0_6 = arith.constant 0 : index
    %c0_7 = arith.constant 0 : index
    %c0_8 = arith.constant 0 : index
    %36 = vector.load %arg4[%c0_6, %c0_7, %c0_8] : memref<1x8x25xf32, #tpu.memory_space<vmem>>, vector<1x8x25xf32>
    %37 = vector.shape_cast %36 : vector<1x8x25xf32> to vector<8x25xf32>
    %38 = vector.shape_cast %35 : vector<8x25xf32> to vector<1x8x25xf32>
    tpu.vector_store %arg4[%c0_6, %c0_7, %c0_8], %38 {strides = array<i32>} : memref<1x8x25xf32, #tpu.memory_space<vmem>>, vector<1x8x25xf32>,
    return
  }
  func.func @transform_0(%arg0: i32, %arg1: i32) -> (i32, i32, i32, i32) {
    %c0_i32 = arith.constant 0 : i32
    %c0_i32_0 = arith.constant 0 : i32
    %c0_i32_1 = arith.constant 0 : i32
    return %arg0, %c0_i32, %arg1, %c0_i32_0 : i32, i32, i32, i32
  }
  func.func @transform_1(%arg0: i32, %arg1: i32) -> (i32, i32) {
    %c0_i32 = arith.constant 0 : i32
    %c0_i32_0 = arith.constant 0 : i32
    %c0_i32_1 = arith.constant 0 : i32
    return %c0_i32, %c0_i32_0 : i32, i32
  }
  func.func @transform_2(%arg0: i32, %arg1: i32) -> (i32, i32, i32) {
    %c0_i32 = arith.constant 0 : i32
    %c0_i32_0 = arith.constant 0 : i32
    return %arg0, %arg1, %c0_i32 : i32, i32, i32
  }
}

module attributes {stable_mosaic.version = 11 : i64} {
  func.func @kernel(%arg0: i32, %arg1: memref<3x256x64xf32, #tpu.memory_space<vmem>>, %arg2: memref<64x1000xf32, #tpu.memory_space<vmem>>, %arg3: memref<3x512x16xf32, #tpu.memory_space<vmem>>, %arg4: memref<16x400xf32, #tpu.memory_space<vmem>>, %arg5: memref<512x10xf32, #tpu.memory_space<vmem>>, %arg6: memref<1x10xf32, #tpu.memory_space<vmem>>, %arg7: memref<3x500xf32, #tpu.memory_space<vmem>>, %arg8: memref<3x200xf32, #tpu.memory_space<vmem>>, %arg9: memref<3x10xf32, #tpu.memory_space<vmem>>) attributes {dimension_semantics = [#tpu.dimension_semantics<arbitrary>], iteration_bounds = array<i64: 1>, scalar_prefetch = 0 : i64, scratch_operands = 0 : i64, tpu.core_type = #tpu.core_type<tc>, window_params = [{pipeline_mode = #tpu.pipeline_mode<synchronous>, transform_indices = @transform_0, window_bounds = array<i64: 3, 256, 64>}, {pipeline_mode = #tpu.pipeline_mode<synchronous>, transform_indices = @transform_1, window_bounds = array<i64: 64, 1000>}, {pipeline_mode = #tpu.pipeline_mode<synchronous>, transform_indices = @transform_2, window_bounds = array<i64: 3, 512, 16>}, {pipeline_mode = #tpu.pipeline_mode<synchronous>, transform_indices = @transform_3, window_bounds = array<i64: 16, 400>}, {pipeline_mode = #tpu.pipeline_mode<synchronous>, transform_indices = @transform_4, window_bounds = array<i64: 512, 10>}, {pipeline_mode = #tpu.pipeline_mode<synchronous>, transform_indices = @transform_5, window_bounds = array<i64: 1, 10>}, {pipeline_mode = #tpu.pipeline_mode<synchronous>, transform_indices = @transform_6, window_bounds = array<i64: 3, 500>}, {pipeline_mode = #tpu.pipeline_mode<synchronous>, transform_indices = @transform_7, window_bounds = array<i64: 3, 200>}, {pipeline_mode = #tpu.pipeline_mode<synchronous>, transform_indices = @transform_8, window_bounds = array<i64: 3, 10>}]} {
    %c0 = arith.constant 0 : index
    %c0_0 = arith.constant 0 : index
    %c0_1 = arith.constant 0 : index
    %0 = vector.load %arg1[%c0, %c0_0, %c0_1] : memref<3x256x64xf32, #tpu.memory_space<vmem>>, vector<3x256x64xf32>
    %cst = arith.constant dense<0xFF800000> : vector<3x64xf32>
    %1 = vector.multi_reduction <maximumf>, %0, %cst [1] : vector<3x256x64xf32> to vector<3x64xf32>
    %c0_2 = arith.constant 0 : index
    %c0_3 = arith.constant 0 : index
    %2 = vector.load %arg2[%c0_2, %c0_3] : memref<64x1000xf32, #tpu.memory_space<vmem>>, vector<64x1000xf32>
    %cst_4 = arith.constant dense<0.000000e+00> : vector<3x1000xf32>
    %3 = tpu.matmul %1, %2, %cst_4 {dimension_numbers = #tpu.dot_dimension_numbers<[1], [0], [0], [1], [0, 0, 1, 1], [], []>} : vector<3x64xf32>, vector<64x1000xf32>, vector<3x1000xf32> -> vector<3x1000xf32>
    %4 = vector.extract_strided_slice %3 {offsets = [0, 0], sizes = [3, 500], strides = [1, 1]} : vector<3x1000xf32> to vector<3x500xf32>
    %5 = vector.extract_strided_slice %3 {offsets = [0, 500], sizes = [3, 500], strides = [1, 1]} : vector<3x1000xf32> to vector<3x500xf32>
    %6 = arith.maximumf %4, %5 : vector<3x500xf32>
    %c0_5 = arith.constant 0 : index
    %c0_6 = arith.constant 0 : index
    %7 = vector.load %arg7[%c0_5, %c0_6] : memref<3x500xf32, #tpu.memory_space<vmem>>, vector<3x500xf32>
    tpu.vector_store %arg7[%c0_5, %c0_6], %6 {strides = array<i32>} : memref<3x500xf32, #tpu.memory_space<vmem>>, vector<3x500xf32>,
    %c0_7 = arith.constant 0 : index
    %c0_8 = arith.constant 0 : index
    %c0_9 = arith.constant 0 : index
    %8 = vector.load %arg3[%c0_7, %c0_8, %c0_9] : memref<3x512x16xf32, #tpu.memory_space<vmem>>, vector<3x512x16xf32>
    %cst_10 = arith.constant dense<0xFF800000> : vector<3x16xf32>
    %9 = vector.multi_reduction <maximumf>, %8, %cst_10 [1] : vector<3x512x16xf32> to vector<3x16xf32>
    %c0_11 = arith.constant 0 : index
    %c0_12 = arith.constant 0 : index
    %10 = vector.load %arg4[%c0_11, %c0_12] : memref<16x400xf32, #tpu.memory_space<vmem>>, vector<16x400xf32>
    %cst_13 = arith.constant dense<0.000000e+00> : vector<3x400xf32>
    %11 = tpu.matmul %9, %10, %cst_13 {dimension_numbers = #tpu.dot_dimension_numbers<[1], [0], [0], [1], [0, 0, 1, 1], [], []>} : vector<3x16xf32>, vector<16x400xf32>, vector<3x400xf32> -> vector<3x400xf32>
    %12 = vector.extract_strided_slice %11 {offsets = [0, 0], sizes = [3, 200], strides = [1, 1]} : vector<3x400xf32> to vector<3x200xf32>
    %13 = vector.extract_strided_slice %11 {offsets = [0, 200], sizes = [3, 200], strides = [1, 1]} : vector<3x400xf32> to vector<3x200xf32>
    %14 = arith.maximumf %12, %13 : vector<3x200xf32>
    %c0_14 = arith.constant 0 : index
    %c0_15 = arith.constant 0 : index
    %15 = vector.load %arg8[%c0_14, %c0_15] : memref<3x200xf32, #tpu.memory_space<vmem>>, vector<3x200xf32>
    tpu.vector_store %arg8[%c0_14, %c0_15], %14 {strides = array<i32>} : memref<3x200xf32, #tpu.memory_space<vmem>>, vector<3x200xf32>,
    %c0_16 = arith.constant 0 : index
    %c0_17 = arith.constant 0 : index
    %c0_18 = arith.constant 0 : index
    %16 = vector.load %arg3[%c0_16, %c0_17, %c0_18] : memref<3x512x16xf32, #tpu.memory_space<vmem>>, vector<3x512x16xf32>
    %cst_19 = arith.constant dense<0.000000e+00> : vector<3x512xf32>
    %17 = vector.multi_reduction <add>, %16, %cst_19 [2] : vector<3x512x16xf32> to vector<3x512xf32>
    %cst_20 = arith.constant 1.600000e+01 : f32
    %18 = vector.broadcast %cst_20 : f32 to vector<3x512xf32>
    %19 = arith.divf %17, %18 : vector<3x512xf32>
    %c0_21 = arith.constant 0 : index
    %c0_22 = arith.constant 0 : index
    %20 = vector.load %arg5[%c0_21, %c0_22] : memref<512x10xf32, #tpu.memory_space<vmem>>, vector<512x10xf32>
    %cst_23 = arith.constant dense<0.000000e+00> : vector<3x10xf32>
    %21 = tpu.matmul %19, %20, %cst_23 {dimension_numbers = #tpu.dot_dimension_numbers<[1], [0], [0], [1], [0, 0, 1, 1], [], []>} : vector<3x512xf32>, vector<512x10xf32>, vector<3x10xf32> -> vector<3x10xf32>
    %c0_24 = arith.constant 0 : index
    %c0_25 = arith.constant 0 : index
    %22 = vector.load %arg6[%c0_24, %c0_25] : memref<1x10xf32, #tpu.memory_space<vmem>>, vector<1x10xf32>
    %23 = vector.broadcast %22 : vector<1x10xf32> to vector<3x10xf32>
    %24 = arith.addf %21, %23 : vector<3x10xf32>
    %c0_26 = arith.constant 0 : index
    %c0_27 = arith.constant 0 : index
    %25 = vector.load %arg9[%c0_26, %c0_27] : memref<3x10xf32, #tpu.memory_space<vmem>>, vector<3x10xf32>
    tpu.vector_store %arg9[%c0_26, %c0_27], %24 {strides = array<i32>} : memref<3x10xf32, #tpu.memory_space<vmem>>, vector<3x10xf32>,
    return
  }
  func.func @transform_0(%arg0: i32) -> (i32, i32, i32) {
    %c0_i32 = arith.constant 0 : i32
    %c0_i32_0 = arith.constant 0 : i32
    %c0_i32_1 = arith.constant 0 : i32
    %c0_i32_2 = arith.constant 0 : i32
    return %c0_i32, %c0_i32_0, %c0_i32_1 : i32, i32, i32
  }
  func.func @transform_1(%arg0: i32) -> (i32, i32) {
    %c0_i32 = arith.constant 0 : i32
    %c0_i32_0 = arith.constant 0 : i32
    %c0_i32_1 = arith.constant 0 : i32
    return %c0_i32, %c0_i32_0 : i32, i32
  }
  func.func @transform_2(%arg0: i32) -> (i32, i32, i32) {
    %c0_i32 = arith.constant 0 : i32
    %c0_i32_0 = arith.constant 0 : i32
    %c0_i32_1 = arith.constant 0 : i32
    %c0_i32_2 = arith.constant 0 : i32
    return %c0_i32, %c0_i32_0, %c0_i32_1 : i32, i32, i32
  }
  func.func @transform_3(%arg0: i32) -> (i32, i32) {
    %c0_i32 = arith.constant 0 : i32
    %c0_i32_0 = arith.constant 0 : i32
    %c0_i32_1 = arith.constant 0 : i32
    return %c0_i32, %c0_i32_0 : i32, i32
  }
  func.func @transform_4(%arg0: i32) -> (i32, i32) {
    %c0_i32 = arith.constant 0 : i32
    %c0_i32_0 = arith.constant 0 : i32
    %c0_i32_1 = arith.constant 0 : i32
    return %c0_i32, %c0_i32_0 : i32, i32
  }
  func.func @transform_5(%arg0: i32) -> (i32, i32) {
    %c0_i32 = arith.constant 0 : i32
    %c0_i32_0 = arith.constant 0 : i32
    %c0_i32_1 = arith.constant 0 : i32
    return %c0_i32, %c0_i32_0 : i32, i32
  }
  func.func @transform_6(%arg0: i32) -> (i32, i32) {
    %c0_i32 = arith.constant 0 : i32
    %c0_i32_0 = arith.constant 0 : i32
    %c0_i32_1 = arith.constant 0 : i32
    return %c0_i32, %c0_i32_0 : i32, i32
  }
  func.func @transform_7(%arg0: i32) -> (i32, i32) {
    %c0_i32 = arith.constant 0 : i32
    %c0_i32_0 = arith.constant 0 : i32
    %c0_i32_1 = arith.constant 0 : i32
    return %c0_i32, %c0_i32_0 : i32, i32
  }
  func.func @transform_8(%arg0: i32) -> (i32, i32) {
    %c0_i32 = arith.constant 0 : i32
    %c0_i32_0 = arith.constant 0 : i32
    %c0_i32_1 = arith.constant 0 : i32
    return %c0_i32, %c0_i32_0 : i32, i32
  }
}

</mosaic_0001>

<bundles_post_ra>
// kernel: resnet_forward.3
= control target key start
LH: loop header
LB: loop body
LE: loop exit
PB: predicated region body
PF: predicated region fallthrough
CT: control target
= control target key end

     0   :  { %7 = vsyncpa [#allocation3], 0  ;;  %s3252_s0 = inlined_call_operand.hbm [shape: f32[3,128,40,352], index: 0, kind: input, shape index: {}]   ;;  %s3253_s1 = inlined_call_operand.vmem [shape: f32[352,500], index: 1, kind: input, shape index: {}]   ;;  %s3254_s2 = inlined_call_operand.vmem [shape: f32[3,40,125], index: 2, kind: output, shape index: {}]  }
   0x1   :  { %9 = vsyncpa [#allocation3 + $0x1], 0  ;;  %s2065_s9 = smov 0   ;;  %s2067_s10 = smov 0  }
   0x2   :  { %s2069_s11 = smov 0   ;;  %s2071_s12 = smov 0  }
   0x3   :  { %s2073_s13 = smov 0   ;;  %s2075_s14 = smov 0  }
   0x4   :  { %s2077_s15 = smov 0   ;;  %s2079_s16 = smov 0  }
   0x5 LB: > { %s1670_s17 = sadd.s32 4294967295, %s2040_s16   ;;  %s24_s18 = sadd.s32 1, %s2032_s14  ;;  %s2040_s16 = sphi %s2079_s16, %s15_s16   ;;  %s2036_s15 = sphi %s2077_s15, %s3263_s15   ;;  %s2032_s14 = sphi %s2075_s14, %s3262_s14   ;;  %s2028_s13 = sphi %s2073_s13, %s3261_s13   ;;  %s2024_s12 = sphi %s2071_s12, %s3260_s12   ;;  %s2020_s11 = sphi %s2069_s11, %s3259_s11   ;;  %s2016_s10 = sphi %s2067_s10, %s3258_s10   ;;  %s2012_s9 = sphi %s2065_s9, %s3257_s9  }
   0x6   : > { %p25_p0 = scmp.ge.s32.totalorder %s24_s18, 5  ;;  %s27_s19 = sadd.s32 1, %s2036_s15 }
   0x7   : > { %s36_s20 = sadd.s32 1, %s2020_s11  ;;  %p43_p1 = scmp.ne.s32.totalorder %s2020_s11, %s2016_s10 }
   0x8   : > { %s3265_s18 = smov (%p25_p0, %s24_s18), 0  ;;  %s3267_s19 = smov (!%p25_p0, %s27_s19), %s2036_s15 }
   0x9   : > { %s32_s21 = ssub.s32 %s2032_s14, %s3265_s18  ;;  %p44_p2 = scmp.eq.s32.totalorder %s2040_s16, 0 }
   0xa   : > { %p29_p3 = scmp.ge.s32.totalorder %s3267_s19, 3  ;;  %p49_p4 = scmp.ne.s32.totalorder %s2016_s10, %s2012_s9 }
   0xb   : > { %p45_p5 = por %p44_p2, %p43_p1  ;;  %p50_p6 = scmp.eq.s32.totalorder %s1670_s17, 0 }
   0xc   : > { %s3269_s19 = smov (%p29_p3, %s3267_s19), 0  ;;  %p1872_p8 = scmp.lt.s32.totalorder %s2040_s16, 15 }
   0xd   : > { %p2118_p7 = por %p50_p6, %p49_p4  ;;  %s31_s23 = ssub.s32 %s2036_s15, %s3269_s19 }
   0xe   : > { %s33_s24 = sor.u32 %s32_s21, %s31_s23  ;;  %s125_s25 = sand.u32 1, %s2020_s11  }
   0xf   : > { %p34_p9 = scmp.eq.s32.totalorder %s33_s24, 0  ;;  %s1861_s26 = smul.u32 3072, %s125_s25 }
  0x10   : > { %p2126_p10 = pnand %p1872_p8, %p45_p5  ;;  %s1862_s29 = smul.u32 3, %s2032_s14 }
  0x11   : > { %s2131_s28 = scalar_select %p34_p9, %s2020_s11, %s36_s20  }
  0x12   : > { %s1863_s30 = smul.u32 1920, %s2036_s15  ;;  %s129_s3 = scalar_lea.vmem [#allocation2], %s1861_s26 }
  0x13   : > { %s138_s4 = sshll.u32 %s129_s3, 4  ;;  %s2142_s17 = scalar_lea.sflag [#allocation3], %s125_s25  ;;  %s2135_s4 = int_to_ptr.vmem [resolvable:$true] %s138_s4 }
  0x14   : > { %s135_s5 = sadd.s32 %s1863_s30, %s1862_s29  ;;  %p1946_p12 = pneg %p2126_p10 }
  0x15   : > { %s1674_s6 = sshll.u32 %s135_s5, 7  ;;  %s1949_s24 = scalar_lea.hbm %s3252_s0, 737280 }
  0x16   : > { %s2140_s9 = scalar_lea.hbm %s3252_s0, %s1674_s6 }
  0x17   : > { %s1944_s20 = scalar_lea.hbm %s2140_s9, 49152  ;;  %p1950_p1 = scmp.lt.u32.totalorder %s2140_s9, %s3252_s0 }
  0x18   : > { %p1945_p11 = scmp.ne.s32.totalorder %s2140_s9, %s1944_s20  ;;  %p1951_p2 = scmp.lt.u32.totalorder %s1949_s24, %s1944_s20 }
  0x19   : > { %p1953_p4 = scmp.lt.u32.totalorder %s1944_s20, %s2140_s9 }
  0x1a   : > { %p1947_p13 = pnand %p1946_p12, %p1945_p11  ;;  %p1952_p3 = por %p1951_p2, %p1950_p1 }
  0x1c   : > { %p1948_p0 = pneg %p1947_p13  ;;  %p1954_p5 = por %p1953_p4, %p1952_p3 }
  0x1e   : > { %p1955_p6 = pnand %p1954_p5, %p1948_p0 }
  0x20   : > { %1958 = shalt.err (!%p1955_p6)
}
  0x21   : > { %s1959_s25 = scalar_lea.vmem %s2135_s4, 49152  ;;  %s2042_s30 = smov [#allocation2]  }
  0x22   : > { %p1960_p8 = scmp.ne.s32.totalorder %s2135_s4, %s1959_s25  ;;  %s1964_s3 = sshll.u32 %s2042_s30, 4  ;;  %s1965_s3 = int_to_ptr.vmem [resolvable:$false] %s1964_s3 }
  0x23   : > { %s1966_s5 = scalar_lea.vmem %s1965_s3, 98304  ;;  %p1967_p13 = scmp.lt.s32.totalorder %s2135_s4, %s1965_s3 }
  0x24   : > { %p1962_p9 = pnand %p1960_p8, %p1946_p12  ;;  %p1968_p1 = scmp.lt.s32.totalorder %s1966_s5, %s1959_s25 }
  0x26   : > { %p1963_p11 = pneg %p1962_p9  ;;  %p1969_p2 = por %p1968_p1, %p1967_p13 }
  0x28   : > { %p1970_p3 = pnand %p1969_p2, %p1963_p11 }
  0x2a   : > { %1973 = shalt.err (!%p1970_p3)
}
  0x2b   : > { %s2043_s6 = smov 1920   ;;  %s2044_s7 = smov 384  }
  0x2c   : > { %s2045_s8 = smov 24   ;;  %p1675_p12 = scmp.ge.s32.totalorder %s2040_s16, 1 }
  0x2d   : > { %1871 = dma.hbm_to_vmem [thread:$0]  (!%p2126_p10), %s2140_s9, 49152, %s2135_s4, %s2142_s17, %s2043_s6, %s2044_s7, %s2045_s8  }
  0x2e   : > { %p146_p0 = scmp.lt.s32.totalorder %s2040_s16, 16 }
  0x30   : > { %p147_p4 = pnand %p1675_p12, %p146_p0 }
  0x31   : > { %s152_s20 = sand.u32 (!%p147_p4), 1, %s2016_s10  }
  0x32   : > { %150 = sbr.rel (%p147_p4) target bundleno = 723 (0x2d3), region = 28  ;;  %s153_s23 = scalar_lea.sflag (!%p147_p4), [#allocation3], %s152_s20 }
  0x33   : > { %s1864_s21 = smul.u32 (!%p147_p4), 3072, %s152_s20 }
  0x35   : > { %s2173_s24 = scalar_lea.vmem (!%p147_p4), [#allocation2], %s1864_s21 }
  0x39   : > { %2007 = dma.done.wait (%p2118_p7), %s153_s23, 49152  }
  0x3a   : > { %2009 = vsyncadd (%p2118_p7), %s153_s23, 4294918144  ;;  %v1083_v0 = vld [vmem:[%s3253_s1 + $0x8] sm:$0xff]  ;;  %v1085_v2 = vld [vmem:[%s3253_s1 + $0x18] sm:$0xff]  ;;  %vm826_vm0 = vcmask 785408   ;;  %s2047_s6 = smov 6   ;;  %s2048_s7 = smov 3  }
  0x3b   : > { %v1087_v1 = vld [vmem:[%s3253_s1 + $0x28] sm:$0xff]  ;;  %v1089_v4 = vld [vmem:[%s3253_s1 + $0x38] sm:$0xff]  ;;  %v1082_v5 = vld [vmem:[%s3253_s1] sm:$0xff]  ;;  %s2049_s8 = smov 9   ;;  %p180_p7 = scmp.lt.s32.totalorder %s2028_s13, 2  ;;  %vm1551_vm1 = vcmask 23552  }
  0x3c   : > { %v1681_v3 = vpack.c.bf16 %v1087_v1, %v1083_v0  ;;  %v1086_v6 = vld [vmem:[%s3253_s1 + $0x20] sm:$0xff]  ;;  %v1769_v7 = vpack.c.bf16 %v1089_v4, %v1085_v2  ;;  %v1084_v9 = vld [vmem:[%s3253_s1 + $0x10] sm:$0xff]  ;;  %v1091_v11 = vld [vmem:[%s3253_s1 + $0x48] sm:$0xff]  ;;  %p182_p10 = scmp.lt.s32.totalorder %s2024_s12, 4  ;;  %vm1560_vm2 = vcmask 48128   ;;  %vm1569_vm3 = vcmask 72704  }
  0x3d   : > { %v1683_v8 = vpack.c.bf16 %v1086_v6, %v1082_v5  ;;  %v1088_v10 = vld [vmem:[%s3253_s1 + $0x30] sm:$0xff]  ;;  %v1095_v13 = vld [vmem:[%s3253_s1 + $0x68] sm:$0xff]  ;;  %v1093_v14 = vld [vmem:[%s3253_s1 + $0x58] sm:$0xff]  ;;  %s3271_s13 = smov (!%p180_p7, %s2028_s13), 2  ;;  %vm1573_vm4 = vcmask 1022976  }
  0x3e   : > { %1682 = vmatprep.subr.bf16.mxu0 %v1681_v3  ;;  %v1771_v12 = vpack.c.bf16 %v1088_v10, %v1084_v9  ;;  %v1097_v15 = vld [vmem:[%s3253_s1 + $0x78] sm:$0xff]  ;;  %1770 = vmatprep.subr.bf16.mxu1 %v1769_v7  ;;  %v1685_v16 = vpack.c.bf16 %v1095_v13, %v1091_v11  ;;  %v1090_v18 = vld [vmem:[%s3253_s1 + $0x40] sm:$0xff]  ;;  %v1092_v20 = vld [vmem:[%s3253_s1 + $0x50] sm:$0xff]  ;;  %s1865_s20 = smul.u32 5, %s3271_s13  ;;  %s3273_s12 = smov (!%p182_p10, %s2024_s12), 4 }
  0x3f   : > { %1684 = vmatpush1.bf16.msra.mxu0 %v1683_v8  ;;  %v1773_v17 = vpack.c.bf16 %v1097_v15, %v1093_v14  ;;  %v1094_v19 = vld [vmem:[%s3253_s1 + $0x60] sm:$0xff]  ;;  %v1096_v22 = vld [vmem:[%s3253_s1 + $0x70] sm:$0xff]  ;;  %v1099_v23 = vld [vmem:[%s3253_s1 + $0x88] sm:$0xff] }
  0x40   : > { %1772 = vmatpush1.bf16.msra.mxu1 %v1771_v12  ;;  %v1687_v21 = vpack.c.bf16 %v1094_v19, %v1090_v18  ;;  %v1103_v24 = vld [vmem:[%s3253_s1 + $0xa8] sm:$0xff]  ;;  %1686 = vmatprep.subr.bf16.mxu0 %v1685_v16  ;;  %v1775_v25 = vpack.c.bf16 %v1096_v22, %v1092_v20  ;;  %v1101_v27 = vld [vmem:[%s3253_s1 + $0x98] sm:$0xff]  ;;  %v1098_v29 = vld [vmem:[%s3253_s1 + $0x80] sm:$0xff]  ;;  %s185_s21 = sadd.s32 %s1865_s20, %s3273_s12 }
  0x41   : > { %1774 = vmatprep.subr.bf16.mxu1 %v1773_v17  ;;  %v1689_v26 = vpack.c.bf16 %v1103_v24, %v1099_v23  ;;  %v1105_v28 = vld [vmem:[%s3253_s1 + $0xb8] sm:$0xff]  ;;  %v1102_v31 = vld [vmem:[%s3253_s1 + $0xa0] sm:$0xff]  ;;  %v1100_v32 = vld [vmem:[%s3253_s1 + $0x90] sm:$0xff]  ;;  %s1676_s23 = sshll.u32 %s185_s21, 3 }
  0x42   : > { %v1777_v30 = vpack.c.bf16 %v1105_v28, %v1101_v27  ;;  %v1104_v33 = vld [vmem:[%s3253_s1 + $0xb0] sm:$0xff]  ;;  %v1691_v34 = vpack.c.bf16 %v1102_v31, %v1098_v29  ;;  %v1107_v35 = vld [vmem:[%s3253_s1 + $0xc8] sm:$0xff]  ;;  %v1109_v37 = vld [vmem:[%s3253_s1 + $0xd8] sm:$0xff]  ;;  %s187_s13 = scalar_lea.vmem %s3254_s2, %s1676_s23 }
  0x43   : > { %1688 = vmatpush1.bf16.msra.mxu0 %v1687_v21  ;;  %v1111_v36 = vld [vmem:[%s3253_s1 + $0xe8] sm:$0xff]  ;;  %v1779_v38 = vpack.c.bf16 %v1104_v33, %v1100_v32  ;;  %v1113_v40 = vld [vmem:[%s3253_s1 + $0xf8] sm:$0xff]  ;;  %v1106_v41 = vld [vmem:[%s3253_s1 + $0xc0] sm:$0xff] }
  0x44   : > { %1776 = vmatpush1.bf16.msra.mxu1 %v1775_v25  ;;  %1690 = vmatprep.subr.bf16.mxu0 %v1689_v26  ;;  %v1693_v39 = vpack.c.bf16 %v1111_v36, %v1107_v35  ;;  %v1110_v42 = vld [vmem:[%s3253_s1 + $0xe0] sm:$0xff]  ;;  %v1781_v43 = vpack.c.bf16 %v1113_v40, %v1109_v37  ;;  %v1108_v44 = vld [vmem:[%s3253_s1 + $0xd0] sm:$0xff]  ;;  %v1115_v46 = vld [vmem:[%s3253_s1 + $0x108] sm:$0xff] }
  0x45   : > { %1778 = vmatprep.subr.bf16.mxu1 %v1777_v30  ;;  %v1112_v45 = vld [vmem:[%s3253_s1 + $0xf0] sm:$0xff]  ;;  %v1119_v47 = vld [vmem:[%s3253_s1 + $0x128] sm:$0xff]  ;;  %v1117_v48 = vld [vmem:[%s3253_s1 + $0x118] sm:$0xff]  ;;  %v1695_v50 = vpack.c.bf16 %v1110_v42, %v1106_v41 }
  0x46   : > { %v1121_v49 = vld [vmem:[%s3253_s1 + $0x138] sm:$0xff]  ;;  %v1783_v51 = vpack.c.bf16 %v1112_v45, %v1108_v44  ;;  %v1697_v52 = vpack.c.bf16 %v1119_v47, %v1115_v46  ;;  %v1114_v53 = vld [vmem:[%s3253_s1 + $0x100] sm:$0xff]  ;;  %v1116_v55 = vld [vmem:[%s3253_s1 + $0x110] sm:$0xff] }
  0x47   : > { %1692 = vmatpush1.bf16.msra.mxu0 %v1691_v34  ;;  %v1118_v54 = vld [vmem:[%s3253_s1 + $0x120] sm:$0xff]  ;;  %v1785_v56 = vpack.c.bf16 %v1121_v49, %v1117_v48  ;;  %v1120_v57 = vld [vmem:[%s3253_s1 + $0x130] sm:$0xff]  ;;  %v1123_v58 = vld [vmem:[%s3253_s1 + $0x148] sm:$0xff] }
  0x48   : > { %1780 = vmatpush1.bf16.msra.mxu1 %v1779_v38  ;;  %1694 = vmatprep.subr.bf16.mxu0 %v1693_v39  ;;  %v1127_v59 = vld [vmem:[%s3253_s1 + $0x168] sm:$0xff]  ;;  %v1125_v60 = vld [vmem:[%s3253_s1 + $0x158] sm:$0xff]  ;;  %v1699_v62 = vpack.c.bf16 %v1118_v54, %v1114_v53  ;;  %v1787_v63 = vpack.c.bf16 %v1120_v57, %v1116_v55  ;;  %v1122_v1 = vld [vmem:[%s3253_s1 + $0x140] sm:$0xff] }
  0x49   : > { %1782 = vmatprep.subr.bf16.mxu1 %v1781_v43  ;;  %v1129_v61 = vld [vmem:[%s3253_s1 + $0x178] sm:$0xff]  ;;  %v1701_v0 = vpack.c.bf16 %v1127_v59, %v1123_v58  ;;  %v1126_v2 = vld [vmem:[%s3253_s1 + $0x160] sm:$0xff]  ;;  %v1124_v3 = vld [vmem:[%s3253_s1 + $0x150] sm:$0xff] }
  0x4a   : > { %v1789_v4 = vpack.c.bf16 %v1129_v61, %v1125_v60  ;;  %v1128_v5 = vld [vmem:[%s3253_s1 + $0x170] sm:$0xff]  ;;  %v1131_v6 = vld [vmem:[%s3253_s1 + $0x188] sm:$0xff]  ;;  %v1133_v8 = vld [vmem:[%s3253_s1 + $0x198] sm:$0xff]  ;;  %v1703_v10 = vpack.c.bf16 %v1126_v2, %v1122_v1 }
  0x4b   : > { %1696 = vmatpush1.bf16.msra.mxu0 %v1695_v50  ;;  %v1135_v7 = vld [vmem:[%s3253_s1 + $0x1a8] sm:$0xff]  ;;  %v1137_v9 = vld [vmem:[%s3253_s1 + $0x1b8] sm:$0xff]  ;;  %v1791_v11 = vpack.c.bf16 %v1128_v5, %v1124_v3  ;;  %v1130_v13 = vld [vmem:[%s3253_s1 + $0x180] sm:$0xff] }
  0x4c   : > { %1784 = vmatpush1.bf16.msra.mxu1 %v1783_v51  ;;  %1698 = vmatprep.subr.bf16.mxu0 %v1697_v52  ;;  %v1705_v12 = vpack.c.bf16 %v1135_v7, %v1131_v6  ;;  %v1134_v14 = vld [vmem:[%s3253_s1 + $0x1a0] sm:$0xff]  ;;  %v1132_v15 = vld [vmem:[%s3253_s1 + $0x190] sm:$0xff]  ;;  %v1793_v16 = vpack.c.bf16 %v1137_v9, %v1133_v8  ;;  %v1139_v18 = vld [vmem:[%s3253_s1 + $0x1c8] sm:$0xff] }
  0x4d   : > { %1786 = vmatprep.subr.bf16.mxu1 %v1785_v56  ;;  %v1136_v17 = vld [vmem:[%s3253_s1 + $0x1b0] sm:$0xff]  ;;  %v1143_v19 = vld [vmem:[%s3253_s1 + $0x1e8] sm:$0xff]  ;;  %v1141_v20 = vld [vmem:[%s3253_s1 + $0x1d8] sm:$0xff]  ;;  %v1707_v22 = vpack.c.bf16 %v1134_v14, %v1130_v13 }
  0x4e   : > { %v1145_v21 = vld [vmem:[%s3253_s1 + $0x1f8] sm:$0xff]  ;;  %v1795_v23 = vpack.c.bf16 %v1136_v17, %v1132_v15  ;;  %v1709_v24 = vpack.c.bf16 %v1143_v19, %v1139_v18  ;;  %v1138_v25 = vld [vmem:[%s3253_s1 + $0x1c0] sm:$0xff]  ;;  %v1140_v27 = vld [vmem:[%s3253_s1 + $0x1d0] sm:$0xff] }
  0x4f   : > { %1700 = vmatpush1.bf16.msra.mxu0 %v1699_v62  ;;  %v1142_v26 = vld [vmem:[%s3253_s1 + $0x1e0] sm:$0xff]  ;;  %v1797_v28 = vpack.c.bf16 %v1145_v21, %v1141_v20  ;;  %v1144_v29 = vld [vmem:[%s3253_s1 + $0x1f0] sm:$0xff]  ;;  %v1147_v30 = vld [vmem:[%s3253_s1 + $0x208] sm:$0xff] }
  0x50   : > { %1788 = vmatpush1.bf16.msra.mxu1 %v1787_v63  ;;  %1702 = vmatprep.subr.bf16.mxu0 %v1701_v0  ;;  %v1151_v31 = vld [vmem:[%s3253_s1 + $0x228] sm:$0xff]  ;;  %v1149_v32 = vld [vmem:[%s3253_s1 + $0x218] sm:$0xff]  ;;  %v1711_v34 = vpack.c.bf16 %v1142_v26, %v1138_v25  ;;  %v1799_v35 = vpack.c.bf16 %v1144_v29, %v1140_v27  ;;  %v1146_v37 = vld [vmem:[%s3253_s1 + $0x200] sm:$0xff] }
  0x51   : > { %1790 = vmatprep.subr.bf16.mxu1 %v1789_v4  ;;  %v1153_v33 = vld [vmem:[%s3253_s1 + $0x238] sm:$0xff]  ;;  %v1713_v36 = vpack.c.bf16 %v1151_v31, %v1147_v30  ;;  %v1150_v38 = vld [vmem:[%s3253_s1 + $0x220] sm:$0xff]  ;;  %v1148_v39 = vld [vmem:[%s3253_s1 + $0x210] sm:$0xff] }
  0x52   : > { %v1801_v40 = vpack.c.bf16 %v1153_v33, %v1149_v32  ;;  %v1152_v41 = vld [vmem:[%s3253_s1 + $0x230] sm:$0xff]  ;;  %v1155_v42 = vld [vmem:[%s3253_s1 + $0x248] sm:$0xff]  ;;  %v1157_v44 = vld [vmem:[%s3253_s1 + $0x258] sm:$0xff]  ;;  %v1715_v46 = vpack.c.bf16 %v1150_v38, %v1146_v37 }
  0x53   : > { %1704 = vmatpush1.bf16.msra.mxu0 %v1703_v10  ;;  %v1159_v43 = vld [vmem:[%s3253_s1 + $0x268] sm:$0xff]  ;;  %v1161_v45 = vld [vmem:[%s3253_s1 + $0x278] sm:$0xff]  ;;  %v1803_v47 = vpack.c.bf16 %v1152_v41, %v1148_v39  ;;  %v1154_v49 = vld [vmem:[%s3253_s1 + $0x240] sm:$0xff] }
  0x54   : > { %1792 = vmatpush1.bf16.msra.mxu1 %v1791_v11  ;;  %1706 = vmatprep.subr.bf16.mxu0 %v1705_v12  ;;  %v1717_v48 = vpack.c.bf16 %v1159_v43, %v1155_v42  ;;  %v1158_v50 = vld [vmem:[%s3253_s1 + $0x260] sm:$0xff]  ;;  %v1156_v51 = vld [vmem:[%s3253_s1 + $0x250] sm:$0xff]  ;;  %v1805_v52 = vpack.c.bf16 %v1161_v45, %v1157_v44  ;;  %v1163_v54 = vld [vmem:[%s3253_s1 + $0x288] sm:$0xff] }
  0x55   : > { %1794 = vmatprep.subr.bf16.mxu1 %v1793_v16  ;;  %v1160_v53 = vld [vmem:[%s3253_s1 + $0x270] sm:$0xff]  ;;  %v1167_v55 = vld [vmem:[%s3253_s1 + $0x2a8] sm:$0xff]  ;;  %v1165_v56 = vld [vmem:[%s3253_s1 + $0x298] sm:$0xff]  ;;  %v1719_v58 = vpack.c.bf16 %v1158_v50, %v1154_v49 }
  0x56   : > { %v1169_v57 = vld [vmem:[%s3253_s1 + $0x2b8] sm:$0xff]  ;;  %v1807_v59 = vpack.c.bf16 %v1160_v53, %v1156_v51  ;;  %v1721_v60 = vpack.c.bf16 %v1167_v55, %v1163_v54  ;;  %v1162_v61 = vld [vmem:[%s3253_s1 + $0x280] sm:$0xff]  ;;  %v1164_v63 = vld [vmem:[%s3253_s1 + $0x290] sm:$0xff] }
  0x57   : > { %1708 = vmatpush1.bf16.msra.mxu0 %v1707_v22  ;;  %v1166_v62 = vld [vmem:[%s3253_s1 + $0x2a0] sm:$0xff]  ;;  %v1809_v0 = vpack.c.bf16 %v1169_v57, %v1165_v56  ;;  %v1168_v1 = vld [vmem:[%s3253_s1 + $0x2b0] sm:$0xff]  ;;  %v1171_v2 = vld [vmem:[%s3253_s1 + $0x2c8] sm:$0xff] }
  0x58   : > { %1796 = vmatpush1.bf16.msra.mxu1 %v1795_v23  ;;  %1710 = vmatprep.subr.bf16.mxu0 %v1709_v24  ;;  %v1175_v3 = vld [vmem:[%s3253_s1 + $0x2e8] sm:$0xff]  ;;  %v1173_v4 = vld [vmem:[%s3253_s1 + $0x2d8] sm:$0xff]  ;;  %v1723_v6 = vpack.c.bf16 %v1166_v62, %v1162_v61  ;;  %v1811_v7 = vpack.c.bf16 %v1168_v1, %v1164_v63  ;;  %v1170_v9 = vld [vmem:[%s3253_s1 + $0x2c0] sm:$0xff] }
  0x59   : > { %1798 = vmatprep.subr.bf16.mxu1 %v1797_v28  ;;  %v1177_v5 = vld [vmem:[%s3253_s1 + $0x2f8] sm:$0xff]  ;;  %v1725_v8 = vpack.c.bf16 %v1175_v3, %v1171_v2  ;;  %v1174_v10 = vld [vmem:[%s3253_s1 + $0x2e0] sm:$0xff]  ;;  %v1172_v11 = vld [vmem:[%s3253_s1 + $0x2d0] sm:$0xff] }
  0x5a   : > { %v1813_v12 = vpack.c.bf16 %v1177_v5, %v1173_v4  ;;  %v1176_v13 = vld [vmem:[%s3253_s1 + $0x2f0] sm:$0xff]  ;;  %v1179_v14 = vld [vmem:[%s3253_s1 + $0x308] sm:$0xff]  ;;  %v1181_v16 = vld [vmem:[%s3253_s1 + $0x318] sm:$0xff]  ;;  %v1727_v19 = vpack.c.bf16 %v1174_v10, %v1170_v9 }
  0x5b   : > { %1712 = vmatpush1.bf16.msra.mxu0 %v1711_v34  ;;  %v1183_v15 = vld [vmem:[%s3253_s1 + $0x328] sm:$0xff]  ;;  %v1185_v17 = vld [vmem:[%s3253_s1 + $0x338] sm:$0xff]  ;;  %v1178_v18 = vld [vmem:[%s3253_s1 + $0x300] sm:$0xff]  ;;  %v1815_v23 = vpack.c.bf16 %v1176_v13, %v1172_v11 }
  0x5c   : > { %1800 = vmatpush1.bf16.msra.mxu1 %v1799_v35  ;;  %1714 = vmatprep.subr.bf16.mxu0 %v1713_v36  ;;  %v201_v20 = vld [vmem:[%s2173_s24 + $0x68] sm:$0xff]  ;;  %v204_v21 = vld [vmem:[%s2173_s24 + $0x80] sm:$0xff]  ;;  %v207_v22 = vld [vmem:[%s2173_s24 + $0x98] sm:$0xff]  ;;  %v1729_v24 = vpack.c.bf16 %v1183_v15, %v1179_v14  ;;  %v1817_v29 = vpack.c.bf16 %v1185_v17, %v1181_v16 }
  0x5d   : > { %1802 = vmatprep.subr.bf16.mxu1 %v1801_v40  ;;  %v1182_v25 = vld [vmem:[%s3253_s1 + $0x320] sm:$0xff]  ;;  %v1180_v26 = vld [vmem:[%s3253_s1 + $0x310] sm:$0xff]  ;;  %v701_v28 = vmax.f32 %v204_v21, %v201_v20  ;;  %v1187_v30 = vld [vmem:[%s3253_s1 + $0x348] sm:$0xff] }
  0x5e   : > { %v1184_v27 = vld [vmem:[%s3253_s1 + $0x330] sm:$0xff]  ;;  %v1191_v31 = vld [vmem:[%s3253_s1 + $0x368] sm:$0xff]  ;;  %v1189_v33 = vld [vmem:[%s3253_s1 + $0x358] sm:$0xff]  ;;  %v1731_v36 = vpack.c.bf16 %v1182_v25, %v1178_v18 }
  0x5f   : > { %1716 = vmatpush1.bf16.msra.mxu0 %v1715_v46  ;;  %v210_v32 = vld [vmem:[%s2173_s24 + $0xb0] sm:$0xff]  ;;  %v1193_v34 = vld [vmem:[%s3253_s1 + $0x378] sm:$0xff]  ;;  %v702_v35 = vmax.f32 %v207_v22, %v701_v28  ;;  %v1186_v37 = vld [vmem:[%s3253_s1 + $0x340] sm:$0xff]  ;;  %v1819_v39 = vpack.c.bf16 %v1184_v27, %v1180_v26  ;;  %v1733_v40 = vpack.c.bf16 %v1191_v31, %v1187_v30 }
  0x60   : > { %1804 = vmatpush1.bf16.msra.mxu1 %v1803_v47  ;;  %1718 = vmatprep.subr.bf16.mxu0 %v1717_v48  ;;  %v213_v38 = vld [vmem:[%s2173_s24 + $0xc8] sm:$0xff]  ;;  %v1190_v41 = vld [vmem:[%s3253_s1 + $0x360] sm:$0xff]  ;;  %v1188_v42 = vld [vmem:[%s3253_s1 + $0x350] sm:$0xff]  ;;  %v1821_v45 = vpack.c.bf16 %v1193_v34, %v1189_v33 }
  0x61   : > { %1806 = vmatprep.subr.bf16.mxu1 %v1805_v52  ;;  %v1192_v43 = vld [vmem:[%s3253_s1 + $0x370] sm:$0xff]  ;;  %v703_v44 = vmax.f32 %v210_v32, %v702_v35  ;;  %v1195_v46 = vld [vmem:[%s3253_s1 + $0x388] sm:$0xff]  ;;  %v216_v48 = vld [vmem:[%s2173_s24 + $0xe0] sm:$0xff]  ;;  %v1735_v52 = vpack.c.bf16 %v1190_v41, %v1186_v37 }
  0x62   : > { %v1199_v47 = vld [vmem:[%s3253_s1 + $0x3a8] sm:$0xff]  ;;  %v1197_v49 = vld [vmem:[%s3253_s1 + $0x398] sm:$0xff]  ;;  %v1194_v53 = vld [vmem:[%s3253_s1 + $0x380] sm:$0xff]  ;;  %v1823_v55 = vpack.c.bf16 %v1192_v43, %v1188_v42 }
  0x63   : > { %1720 = vmatpush1.bf16.msra.mxu0 %v1719_v58  ;;  %v1201_v50 = vld [vmem:[%s3253_s1 + $0x3b8] sm:$0xff]  ;;  %v704_v51 = vmax.f32 %v213_v38, %v703_v44  ;;  %v1737_v56 = vpack.c.bf16 %v1199_v47, %v1195_v46  ;;  %v1198_v57 = vld [vmem:[%s3253_s1 + $0x3a0] sm:$0xff]  ;;  %v1196_v58 = vld [vmem:[%s3253_s1 + $0x390] sm:$0xff] }
  0x64   : > { %1808 = vmatpush1.bf16.msra.mxu1 %v1807_v59  ;;  %1722 = vmatprep.subr.bf16.mxu0 %v1721_v60  ;;  %v219_v54 = vld [vmem:[%s2173_s24 + $0xf8] sm:$0xff]  ;;  %v1200_v59 = vld [vmem:[%s3253_s1 + $0x3b0] sm:$0xff]  ;;  %v1825_v61 = vpack.c.bf16 %v1201_v50, %v1197_v49  ;;  %v1203_v62 = vld [vmem:[%s3253_s1 + $0x3c8] sm:$0xff]  ;;  %v1739_v4 = vpack.c.bf16 %v1198_v57, %v1194_v53 }
  0x65   : > { %1810 = vmatprep.subr.bf16.mxu1 %v1809_v0  ;;  %v705_v60 = vmax.f32 %v216_v48, %v704_v51  ;;  %v1207_v63 = vld [vmem:[%s3253_s1 + $0x3e8] sm:$0xff]  ;;  %v222_v0 = vld [vmem:[%s2173_s24 + $0x110] sm:$0xff]  ;;  %v1205_v1 = vld [vmem:[%s3253_s1 + $0x3d8] sm:$0xff] }
  0x66   : > { %v1209_v2 = vld [vmem:[%s3253_s1 + $0x3f8] sm:$0xff]  ;;  %v225_v5 = vld [vmem:[%s2173_s24 + $0x128] sm:$0xff]  ;;  %v1206_v9 = vld [vmem:[%s3253_s1 + $0x3e0] sm:$0xff] }
  0x67   : > { %1724 = vmatpush1.bf16.msra.mxu0 %v1723_v6  ;;  %v706_v3 = vmax.f32 %v219_v54, %v705_v60  ;;  %v1827_v6 = vpack.c.bf16 %v1200_v59, %v1196_v58  ;;  %v1829_v11 = vpack.c.bf16 %v1209_v2, %v1205_v1  ;;  %v1208_v13 = vld [vmem:[%s3253_s1 + $0x3f0] sm:$0xff]  ;;  %v228_v14 = vld [vmem:[%s2173_s24 + $0x140] sm:$0xff]  ;;  %v231_v17 = vld [vmem:[%s2173_s24 + $0x158] sm:$0xff] }
  0x68   : > { %1812 = vmatpush1.bf16.msra.mxu1 %v1811_v7  ;;  %1726 = vmatprep.subr.bf16.mxu0 %v1725_v8  ;;  %v1741_v7 = vpack.c.bf16 %v1207_v63, %v1203_v62  ;;  %v1202_v8 = vld [vmem:[%s3253_s1 + $0x3c0] sm:$0xff]  ;;  %v234_v20 = vld [vmem:[%s2173_s24 + $0x170] sm:$0xff]  ;;  %v237_v22 = vld [vmem:[%s2173_s24 + $0x188] sm:$0xff] }
  0x69   : > { %1814 = vmatprep.subr.bf16.mxu1 %v1813_v12  ;;  %v707_v10 = vmax.f32 %v222_v0, %v706_v3  ;;  %v1204_v12 = vld [vmem:[%s3253_s1 + $0x3d0] sm:$0xff]  ;;  %v1743_v16 = vpack.c.bf16 %v1206_v9, %v1202_v8  ;;  %v243_v26 = vld [vmem:[%s2173_s24 + $0x1b8] sm:$0xff]  ;;  %v249_v34 = vld [vmem:[%s2173_s24 + $0x1e8] sm:$0xff] }
  0x6a   : > { %v1831_v18 = vpack.c.bf16 %v1208_v13, %v1204_v12  ;;  %v246_v28 = vld [vmem:[%s2173_s24 + $0x1d0] sm:$0xff]  ;;  %v203_v30 = vld [vmem:[%s2173_s24 + $0x78] sm:$0xff]  ;;  %v209_v35 = vld [vmem:[%s2173_s24 + $0xa8] sm:$0xff] }
  0x6b   : > { %1728 = vmatpush1.bf16.msra.mxu0 %v1727_v19  ;;  %v708_v15 = vmax.f32 %v225_v5, %v707_v10  ;;  %v206_v33 = vld [vmem:[%s2173_s24 + $0x90] sm:$0xff]  ;;  %v252_v38 = vld [vmem:[%s2173_s24 + $0x200] sm:$0xff]  ;;  %v255_v42 = vld [vmem:[%s2173_s24 + $0x218] sm:$0xff] }
  0x6c   : > { %1816 = vmatpush1.bf16.msra.mxu1 %v1815_v23  ;;  %1730 = vmatprep.subr.bf16.mxu0 %v1729_v24  ;;  %v240_v24 = vld [vmem:[%s2173_s24 + $0x1a0] sm:$0xff]  ;;  %v215_v43 = vld [vmem:[%s2173_s24 + $0xd8] sm:$0xff]  ;;  %v258_v46 = vld [vmem:[%s2173_s24 + $0x230] sm:$0xff] }
  0x6d   : > { %1818 = vmatprep.subr.bf16.mxu1 %v1817_v29  ;;  %v709_v19 = vmax.f32 %v228_v14, %v708_v15  ;;  %v200_v29 = vld [vmem:[%s2173_s24 + $0x60] sm:$0xff]  ;;  %v218_v47 = vld [vmem:[%s2173_s24 + $0xf0] sm:$0xff]  ;;  %v261_v50 = vld [vmem:[%s2173_s24 + $0x248] sm:$0xff] }
  0x6e   : > { %v574_v32 = vmax.f32 %v203_v30, %v200_v29  ;;  %v221_v51 = vld [vmem:[%s2173_s24 + $0x108] sm:$0xff]  ;;  %v264_v54 = vld [vmem:[%s2173_s24 + $0x260] sm:$0xff]  ;;  %v267_v58 = vld [vmem:[%s2173_s24 + $0x278] sm:$0xff] }
  0x6f   : > { %1732 = vmatpush1.bf16.msra.mxu0 %v1731_v36  ;;  %v710_v21 = vmax.f32 %v231_v17, %v709_v19  ;;  %v227_v59 = vld [vmem:[%s2173_s24 + $0x138] sm:$0xff]  ;;  %v270_v62 = vld [vmem:[%s2173_s24 + $0x290] sm:$0xff]  ;;  %v273_v2 = vld [vmem:[%s2173_s24 + $0x2a8] sm:$0xff] }
  0x70   : > { %1820 = vmatpush1.bf16.msra.mxu1 %v1819_v39  ;;  %1734 = vmatprep.subr.bf16.mxu0 %v1733_v40  ;;  %v575_v37 = vmax.f32 %v206_v33, %v574_v32  ;;  %v212_v39 = vld [vmem:[%s2173_s24 + $0xc0] sm:$0xff]  ;;  %v230_v63 = vld [vmem:[%s2173_s24 + $0x150] sm:$0xff]  ;;  %v233_v3 = vld [vmem:[%s2173_s24 + $0x168] sm:$0xff] }
  0x71   : > { %1822 = vmatprep.subr.bf16.mxu1 %v1821_v45  ;;  %v711_v23 = vmax.f32 %v234_v20, %v710_v21  ;;  %v279_v10 = vld [vmem:[%s2173_s24 + $0x2d8] sm:$0xff]  ;;  %v282_v14 = vld [vmem:[%s2173_s24 + $0x2f0] sm:$0xff]  ;;  %v245_v19 = vld [vmem:[%s2173_s24 + $0x1c8] sm:$0xff] }
  0x72   : > { %v576_v41 = vmax.f32 %v209_v35, %v575_v37  ;;  %v242_v15 = vld [vmem:[%s2173_s24 + $0x1b0] sm:$0xff]  ;;  %v297_v33 = vld [vmem:[%s2173_s24 + $0x368] sm:$0xff] }
  0x73   : > { %1736 = vmatpush1.bf16.msra.mxu0 %v1735_v52  ;;  %v712_v25 = vmax.f32 %v237_v22, %v711_v23  ;;  %v288_v22 = vld [vmem:[%s2173_s24 + $0x320] sm:$0xff]  ;;  %v294_v30 = vld [vmem:[%s2173_s24 + $0x350] sm:$0xff]  ;;  %v257_v37 = vld [vmem:[%s2173_s24 + $0x228] sm:$0xff] }
  0x74   : > { %1824 = vmatpush1.bf16.msra.mxu1 %v1823_v55  ;;  %1738 = vmatprep.subr.bf16.mxu0 %v1737_v56  ;;  %v577_v45 = vmax.f32 %v212_v39, %v576_v41  ;;  %v224_v55 = vld [vmem:[%s2173_s24 + $0x120] sm:$0xff]  ;;  %v190_v35 = vld [vmem:[%s2173_s24 + $0x10] sm:$0xff]  ;;  %v199_v39 = vld [vmem:[%s2173_s24 + $0x58] sm:$0xff] }
  0x75   : > { %1826 = vmatprep.subr.bf16.mxu1 %v1825_v61  ;;  %v713_v27 = vmax.f32 %v240_v24, %v712_v25  ;;  %v248_v23 = vld [vmem:[%s2173_s24 + $0x1e0] sm:$0xff] }
  0x76   : > { %v578_v49 = vmax.f32 %v215_v43, %v577_v45  ;;  %v300_v43 = vld [vmem:[%s2173_s24 + $0x380] sm:$0xff]  ;;  %v202_v45 = vld [vmem:[%s2173_s24 + $0x70] sm:$0xff] }
  0x77   : > { %1740 = vmatpush1.bf16.msra.mxu0 %v1739_v4  ;;  %v714_v31 = vmax.f32 %v243_v26, %v713_v27  ;;  %v291_v26 = vld [vmem:[%s2173_s24 + $0x338] sm:$0xff] }
  0x78   : > { %1828 = vmatpush1.bf16.msra.mxu1 %v1827_v6  ;;  %1742 = vmatprep.subr.bf16.mxu0 %v1741_v7  ;;  %v579_v53 = vmax.f32 %v218_v47, %v578_v49  ;;  %v276_v6 = vld [vmem:[%s2173_s24 + $0x2c0] sm:$0xff]  ;;  %v251_v27 = vld [vmem:[%s2173_s24 + $0x1f8] sm:$0xff] }
  0x79   : > { %1830 = vmatprep.subr.bf16.mxu1 %v1829_v11  ;;  %v715_v36 = vmax.f32 %v246_v28, %v714_v31  ;;  %v236_v7 = vld [vmem:[%s2173_s24 + $0x180] sm:$0xff]  ;;  %v239_v11 = vld [vmem:[%s2173_s24 + $0x198] sm:$0xff]  ;;  %v254_v31 = vld [vmem:[%s2173_s24 + $0x210] sm:$0xff] }
  0x7a   : > { %v580_v57 = vmax.f32 %v221_v51, %v579_v53  ;;  %v260_v49 = vld [vmem:[%s2173_s24 + $0x240] sm:$0xff]  ;;  %v211_v51 = vld [vmem:[%s2173_s24 + $0xb8] sm:$0xff] }
  0x7b   : > { %1744 = vmatpush1.bf16.msra.mxu0 %v1743_v16  ;;  %v716_v40 = vmax.f32 %v249_v34, %v715_v36  ;;  %v193_v36 = vld [vmem:[%s2173_s24 + $0x28] sm:$0xff] }
  0x7c   : > { %1832 = vmatpush1.bf16.msra.mxu1 %v1831_v18  ;;  %v581_v61 = vmax.f32 %v224_v55, %v580_v57  ;;  %v285_v18 = vld [vmem:[%s2173_s24 + $0x308] sm:$0xff]  ;;  %v828_v41 = vsel %vm826_vm0, %v193_v36, -inf  ;;  %v303_v57 = vld [vmem:[%s2173_s24 + $0x398] sm:$0xff] }
  0x7d   : > { %v717_v44 = vmax.f32 %v252_v38, %v716_v40  ;;  %v196_v38 = vld [vmem:[%s2173_s24 + $0x40] sm:$0xff]  ;;  %v827_v40 = vsel %vm826_vm0, %v190_v35, -inf  ;;  %v315_v35 = vld [vmem:[%s2173_s24 + $0x3f8] sm:$0xff] }
  0x7e   : > { %v582_v1 = vmax.f32 %v227_v59, %v581_v61  ;;  %v829_v47 = vsel %vm826_vm0, %v196_v38, -inf  ;;  %v214_v59 = vld [vmem:[%s2173_s24 + $0xd0] sm:$0xff] }
  0x7f   : > { %v718_v48 = vmax.f32 %v255_v42, %v717_v44 }
  0x80   : > { %v583_v5 = vmax.f32 %v230_v63, %v582_v1  ;;  %v263_v63 = vld [vmem:[%s2173_s24 + $0x258] sm:$0xff] }
  0x81   : > { %v719_v52 = vmax.f32 %v258_v46, %v718_v48  ;;  %v205_v46 = vld [vmem:[%s2173_s24 + $0x88] sm:$0xff]  ;;  %v831_v48 = vsel %vm826_vm0, %v199_v39, -inf  ;;  %v223_v1 = vld [vmem:[%s2173_s24 + $0x118] sm:$0xff] }
  0x82   : > { %v584_v9 = vmax.f32 %v233_v3, %v583_v5  ;;  %v832_v53 = vmax.f32 %v828_v41, %v831_v48  ;;  %v835_v55 = vsel %vm826_vm0, %v205_v46, -inf  ;;  %v306_v5 = vld [vmem:[%s2173_s24 + $0x3b0] sm:$0xff]  ;;  %v275_v39 = vld [vmem:[%s2173_s24 + $0x2b8] sm:$0xff] }
  0x83   : > { %v720_v56 = vmax.f32 %v261_v50, %v719_v52  ;;  %v208_v50 = vld [vmem:[%s2173_s24 + $0xa0] sm:$0xff]  ;;  %v830_v52 = vmax.f32 %v827_v40, %v829_v47  ;;  %v247_v41 = vld [vmem:[%s2173_s24 + $0x1d8] sm:$0xff]  ;;  %v318_v48 = vld [vmem:[%s2173_s24 + $0x410] sm:$0xff] }
  0x84   : > { %v585_v13 = vmax.f32 %v236_v7, %v584_v9  ;;  %v837_v61 = vsel %vm826_vm0, %v208_v50, -inf  ;;  %v836_v3 = vmax.f32 %v832_v53, %v835_v55  ;;  %v841_v7 = vsel %vm826_vm0, %v214_v59, -inf  ;;  %v266_v9 = vld [vmem:[%s2173_s24 + $0x270] sm:$0xff]  ;;  %v244_v40 = vld [vmem:[%s2173_s24 + $0x1c0] sm:$0xff]  ;;  %v253_v55 = vld [vmem:[%s2173_s24 + $0x208] sm:$0xff] }
  0x85   : > { %v721_v60 = vmax.f32 %v264_v54, %v720_v56  ;;  %v833_v54 = vsel %vm826_vm0, %v202_v45, -inf  ;;  %v250_v50 = vld [vmem:[%s2173_s24 + $0x1f0] sm:$0xff]  ;;  %v281_v59 = vld [vmem:[%s2173_s24 + $0x2e8] sm:$0xff] }
  0x86   : > { %v586_v17 = vmax.f32 %v239_v11, %v585_v13  ;;  %v229_v11 = vld [vmem:[%s2173_s24 + $0x148] sm:$0xff] }
  0x87   : > { %v722_v0 = vmax.f32 %v267_v58, %v721_v60  ;;  %v217_v60 = vld [vmem:[%s2173_s24 + $0xe8] sm:$0xff] }
  0x88   : > { %v587_v21 = vmax.f32 %v242_v15, %v586_v17  ;;  %v309_v15 = vld [vmem:[%s2173_s24 + $0x3c8] sm:$0xff] }
  0x89   : > { %v723_v4 = vmax.f32 %v270_v62, %v722_v0  ;;  %v839_v62 = vsel %vm826_vm0, %v211_v51, -inf  ;;  %v220_v0 = vld [vmem:[%s2173_s24 + $0x100] sm:$0xff] }
  0x8a   : > { %v588_v25 = vmax.f32 %v245_v19, %v587_v21  ;;  %v840_v13 = vmax.f32 %v836_v3, %v839_v62  ;;  %v845_v17 = vsel %vm826_vm0, %v220_v0, -inf  ;;  %v269_v19 = vld [vmem:[%s2173_s24 + $0x288] sm:$0xff]  ;;  %v235_v21 = vld [vmem:[%s2173_s24 + $0x178] sm:$0xff]  ;;  %v865_v0 = vsel %vm826_vm0, %v250_v50, -inf  ;;  %v256_v3 = vld [vmem:[%s2173_s24 + $0x220] sm:$0xff] }
  0x8b   : > { %v724_v8 = vmax.f32 %v273_v2, %v723_v4  ;;  %v834_v2 = vmax.f32 %v830_v52, %v833_v54  ;;  %v855_v38 = vsel %vm826_vm0, %v235_v21, -inf }
  0x8c   : > { %v589_v29 = vmax.f32 %v248_v23, %v588_v25  ;;  %v312_v25 = vld [vmem:[%s2173_s24 + $0x3e0] sm:$0xff] }
  0x8d   : > { %v725_v12 = vmax.f32 %v276_v6, %v724_v8  ;;  %v843_v8 = vsel %vm826_vm0, %v217_v60, -inf }
  0x8e   : > { %v590_v34 = vmax.f32 %v251_v27, %v589_v29  ;;  %v844_v23 = vmax.f32 %v840_v13, %v843_v8  ;;  %v272_v29 = vld [vmem:[%s2173_s24 + $0x2a0] sm:$0xff] }
  0x8f   : > { %v726_v16 = vmax.f32 %v279_v10, %v725_v12  ;;  %v226_v10 = vld [vmem:[%s2173_s24 + $0x130] sm:$0xff]  ;;  %v838_v12 = vmax.f32 %v834_v2, %v837_v61  ;;  %v284_v2 = vld [vmem:[%s2173_s24 + $0x300] sm:$0xff] }
  0x90   : > { %v591_v44 = vmax.f32 %v254_v31, %v590_v34  ;;  %v849_v27 = vsel %vm826_vm0, %v226_v10, -inf  ;;  %v241_v31 = vld [vmem:[%s2173_s24 + $0x1a8] sm:$0xff]  ;;  %v327_v10 = vld [vmem:[%s2173_s24 + $0x458] sm:$0xff] }
  0x91   : > { %v727_v20 = vmax.f32 %v282_v14, %v726_v16  ;;  %v859_v47 = vsel %vm826_vm0, %v241_v31, -inf  ;;  %v336_v31 = vld [vmem:[%s2173_s24 + $0x4a0] sm:$0xff] }
  0x92   : > { %v592_v58 = vmax.f32 %v257_v37, %v591_v44 }
  0x93   : > { %v728_v24 = vmax.f32 %v285_v18, %v727_v20  ;;  %v847_v18 = vsel %vm826_vm0, %v223_v1, -inf  ;;  %v232_v20 = vld [vmem:[%s2173_s24 + $0x160] sm:$0xff] }
  0x94   : > { %v593_v6 = vmax.f32 %v260_v49, %v592_v58  ;;  %v853_v37 = vsel %vm826_vm0, %v232_v20, -inf  ;;  %v278_v49 = vld [vmem:[%s2173_s24 + $0x2d0] sm:$0xff]  ;;  %v321_v58 = vld [vmem:[%s2173_s24 + $0x428] sm:$0xff]  ;;  %v324_v1 = vld [vmem:[%s2173_s24 + $0x440] sm:$0xff] }
  0x95   : > { %v729_v28 = vmax.f32 %v288_v22, %v728_v24  ;;  %v842_v22 = vmax.f32 %v838_v12, %v841_v7 }
  0x96   : > { %v594_v16 = vmax.f32 %v263_v63, %v593_v6  ;;  %v867_v6 = vsel %vm826_vm0, %v253_v55, -inf }
  0x97   : > { %v730_v32 = vmax.f32 %v291_v26, %v729_v28  ;;  %v851_v28 = vsel %vm826_vm0, %v229_v11, -inf  ;;  %v287_v11 = vld [vmem:[%s2173_s24 + $0x318] sm:$0xff] }
  0x98   : > { %v595_v26 = vmax.f32 %v266_v9, %v594_v16  ;;  %v259_v9 = vld [vmem:[%s2173_s24 + $0x238] sm:$0xff]  ;;  %v869_v16 = vsel %vm826_vm0, %v256_v3, -inf }
  0x99   : > { %v731_v42 = vmax.f32 %v294_v30, %v730_v32  ;;  %v238_v30 = vld [vmem:[%s2173_s24 + $0x190] sm:$0xff]  ;;  %v846_v32 = vmax.f32 %v842_v22, %v845_v17  ;;  %v871_v20 = vsel %vm826_vm0, %v259_v9, -inf  ;;  %v311_v3 = vld [vmem:[%s2173_s24 + $0x3d8] sm:$0xff] }
  0x9a   : > { %v596_v36 = vmax.f32 %v269_v19, %v595_v26  ;;  %v857_v46 = vsel %vm826_vm0, %v238_v30, -inf  ;;  %v330_v17 = vld [vmem:[%s2173_s24 + $0x470] sm:$0xff] }
  0x9b   : > { %v732_v56 = vmax.f32 %v297_v33, %v731_v42  ;;  %v848_v33 = vmax.f32 %v844_v23, %v847_v18  ;;  %v850_v42 = vmax.f32 %v846_v32, %v849_v27  ;;  %v290_v18 = vld [vmem:[%s2173_s24 + $0x330] sm:$0xff]  ;;  %v265_v23 = vld [vmem:[%s2173_s24 + $0x268] sm:$0xff]  ;;  %v296_v32 = vld [vmem:[%s2173_s24 + $0x360] sm:$0xff] }
  0x9c   : > { %v597_v45 = vmax.f32 %v272_v29, %v596_v36  ;;  %v262_v19 = vld [vmem:[%s2173_s24 + $0x250] sm:$0xff] }
  0x9d   : > { %v733_v4 = vmax.f32 %v300_v43, %v732_v56  ;;  %v852_v43 = vmax.f32 %v848_v33, %v851_v28  ;;  %v854_v51 = vmax.f32 %v850_v42, %v853_v37  ;;  %v861_v56 = vsel %vm826_vm0, %v244_v40, -inf  ;;  %v268_v33 = vld [vmem:[%s2173_s24 + $0x280] sm:$0xff]  ;;  %v271_v37 = vld [vmem:[%s2173_s24 + $0x298] sm:$0xff]  ;;  %v354_v9 = vld [vmem:[%s2173_s24 + $0x530] sm:$0xff] }
  0x9e   : > { %v598_v54 = vmax.f32 %v275_v39, %v597_v45  ;;  %v873_v30 = vsel %vm826_vm0, %v262_v19, -inf  ;;  %v299_v39 = vld [vmem:[%s2173_s24 + $0x378] sm:$0xff]  ;;  %v342_v45 = vld [vmem:[%s2173_s24 + $0x4d0] sm:$0xff] }
  0x9f   : > { %v734_v14 = vmax.f32 %v303_v57, %v733_v4  ;;  %v856_v52 = vmax.f32 %v852_v43, %v855_v38  ;;  %v863_v57 = vsel %vm826_vm0, %v247_v41, -inf  ;;  %v858_v60 = vmax.f32 %v854_v51, %v857_v46  ;;  %v339_v38 = vld [vmem:[%s2173_s24 + $0x4b8] sm:$0xff]  ;;  %v302_v46 = vld [vmem:[%s2173_s24 + $0x390] sm:$0xff]  ;;  %v277_v51 = vld [vmem:[%s2173_s24 + $0x2c8] sm:$0xff] }
  0xa0   : > { %v599_v63 = vmax.f32 %v278_v49, %v598_v54 }
  0xa1   : > { %v735_v24 = vmax.f32 %v306_v5, %v734_v14  ;;  %v860_v61 = vmax.f32 %v856_v52, %v859_v47  ;;  %v862_v4 = vmax.f32 %v858_v60, %v861_v56  ;;  %v274_v47 = vld [vmem:[%s2173_s24 + $0x2b0] sm:$0xff]  ;;  %v345_v52 = vld [vmem:[%s2173_s24 + $0x4e8] sm:$0xff]  ;;  %v308_v60 = vld [vmem:[%s2173_s24 + $0x3c0] sm:$0xff] }
  0xa2   : > { %v600_v8 = vmax.f32 %v281_v59, %v599_v63  ;;  %v348_v59 = vld [vmem:[%s2173_s24 + $0x500] sm:$0xff] }
  0xa3   : > { %v736_v34 = vmax.f32 %v309_v15, %v735_v24  ;;  %v864_v5 = vmax.f32 %v860_v61, %v863_v57  ;;  %v866_v12 = vmax.f32 %v862_v4, %v865_v0  ;;  %v333_v24 = vld [vmem:[%s2173_s24 + $0x488] sm:$0xff]  ;;  %v280_v61 = vld [vmem:[%s2173_s24 + $0x2e0] sm:$0xff] }
  0xa4   : > { %v601_v14 = vmax.f32 %v284_v2, %v600_v8  ;;  %v351_v2 = vld [vmem:[%s2173_s24 + $0x518] sm:$0xff]  ;;  %v885_v8 = vsel %vm826_vm0, %v280_v61, -inf }
  0xa5   : > { %v737_v44 = vmax.f32 %v312_v25, %v736_v34  ;;  %v868_v15 = vmax.f32 %v864_v5, %v867_v6  ;;  %v293_v25 = vld [vmem:[%s2173_s24 + $0x348] sm:$0xff]  ;;  %v870_v26 = vmax.f32 %v866_v12, %v869_v16  ;;  %v875_v34 = vsel %vm826_vm0, %v265_v23, -inf  ;;  %v360_v23 = vld [vmem:[%s2173_s24 + $0x560] sm:$0xff] }
  0xa6   : > { %v602_v22 = vmax.f32 %v287_v11, %v601_v14  ;;  %v286_v11 = vld [vmem:[%s2173_s24 + $0x310] sm:$0xff]  ;;  %v357_v16 = vld [vmem:[%s2173_s24 + $0x548] sm:$0xff] }
  0xa7   : > { %v738_v53 = vmax.f32 %v315_v35, %v737_v44  ;;  %v872_v29 = vmax.f32 %v868_v15, %v871_v20  ;;  %v874_v40 = vmax.f32 %v870_v26, %v873_v30  ;;  %v877_v44 = vsel %vm826_vm0, %v268_v33, -inf  ;;  %v289_v15 = vld [vmem:[%s2173_s24 + $0x328] sm:$0xff]  ;;  %v363_v30 = vld [vmem:[%s2173_s24 + $0x578] sm:$0xff] }
  0xa8   : > { %v603_v28 = vmax.f32 %v290_v18, %v602_v22  ;;  %v889_v22 = vsel %vm826_vm0, %v286_v11, -inf  ;;  %v891_v26 = vsel %vm826_vm0, %v289_v15, -inf  ;;  %v384_v15 = vld [vmem:[%s2173_s24 + $0x620] sm:$0xff] }
  0xa9   : > { %v739_v62 = vmax.f32 %v318_v48, %v738_v53  ;;  %v876_v43 = vmax.f32 %v872_v29, %v875_v34  ;;  %v879_v48 = vsel %vm826_vm0, %v271_v37, -inf  ;;  %v305_v53 = vld [vmem:[%s2173_s24 + $0x3a8] sm:$0xff]  ;;  %v878_v54 = vmax.f32 %v874_v40, %v877_v44  ;;  %v295_v29 = vld [vmem:[%s2173_s24 + $0x358] sm:$0xff]  ;;  %v366_v37 = vld [vmem:[%s2173_s24 + $0x590] sm:$0xff] }
  0xaa   : > { %v604_v36 = vmax.f32 %v293_v25, %v603_v28  ;;  %v292_v25 = vld [vmem:[%s2173_s24 + $0x340] sm:$0xff]  ;;  %v895_v40 = vsel %vm826_vm0, %v295_v29, -inf  ;;  %v369_v44 = vld [vmem:[%s2173_s24 + $0x5a8] sm:$0xff] }
  0xab   : > { %v740_v7 = vmax.f32 %v321_v58, %v739_v62  ;;  %v880_v57 = vmax.f32 %v876_v43, %v879_v48  ;;  %v881_v58 = vsel %vm826_vm0, %v274_v47, -inf  ;;  %v883_v62 = vsel %vm826_vm0, %v277_v51, -inf  ;;  %v301_v43 = vld [vmem:[%s2173_s24 + $0x388] sm:$0xff]  ;;  %v372_v51 = vld [vmem:[%s2173_s24 + $0x5c0] sm:$0xff] }
  0xac   : > { %v605_v42 = vmax.f32 %v296_v32, %v604_v36  ;;  %v882_v4 = vmax.f32 %v878_v54, %v881_v58  ;;  %v893_v36 = vsel %vm826_vm0, %v292_v25, -inf  ;;  %v899_v54 = vsel %vm826_vm0, %v301_v43, -inf  ;;  %v375_v58 = vld [vmem:[%s2173_s24 + $0x5d8] sm:$0xff]  ;;  %v1215_v25 = vld [vmem:[%s3253_s1 + $0x428] sm:$0xff] }
  0xad   : > { %v741_v13 = vmax.f32 %v324_v1, %v740_v7  ;;  %v283_v1 = vld [vmem:[%s2173_s24 + $0x2f8] sm:$0xff]  ;;  %v884_v7 = vmax.f32 %v880_v57, %v883_v62  ;;  %v353_v43 = vld [vmem:[%s2173_s24 + $0x528] sm:$0xff] }
  0xae   : > { %v606_v50 = vmax.f32 %v299_v39, %v605_v42  ;;  %v887_v12 = vsel %vm826_vm0, %v283_v1, -inf  ;;  %v886_v18 = vmax.f32 %v882_v4, %v885_v8  ;;  %v298_v39 = vld [vmem:[%s2173_s24 + $0x370] sm:$0xff]  ;;  %v307_v57 = vld [vmem:[%s2173_s24 + $0x3b8] sm:$0xff]  ;;  %v381_v8 = vld [vmem:[%s2173_s24 + $0x608] sm:$0xff] }
  0xaf   : > { %v742_v21 = vmax.f32 %v327_v10, %v741_v13  ;;  %v314_v10 = vld [vmem:[%s2173_s24 + $0x3f0] sm:$0xff]  ;;  %v903_v4 = vsel %vm826_vm0, %v307_v57, -inf  ;;  %v359_v57 = vld [vmem:[%s2173_s24 + $0x558] sm:$0xff] }
  0xb0   : > { %v607_v56 = vmax.f32 %v302_v46, %v606_v50  ;;  %v890_v32 = vmax.f32 %v886_v18, %v889_v22  ;;  %v897_v50 = vsel %vm826_vm0, %v298_v39, -inf  ;;  %v378_v1 = vld [vmem:[%s2173_s24 + $0x5f0] sm:$0xff]  ;;  %v316_v22 = vld [vmem:[%s2173_s24 + $0x400] sm:$0xff] }
  0xb1   : > { %v743_v27 = vmax.f32 %v330_v17, %v742_v21  ;;  %v317_v17 = vld [vmem:[%s2173_s24 + $0x408] sm:$0xff]  ;;  %v888_v21 = vmax.f32 %v884_v7, %v887_v12 }
  0xb2   : > { %v608_v0 = vmax.f32 %v305_v53, %v607_v56  ;;  %v894_v46 = vmax.f32 %v890_v32, %v893_v36  ;;  %v304_v53 = vld [vmem:[%s2173_s24 + $0x3a0] sm:$0xff]  ;;  %v313_v7 = vld [vmem:[%s2173_s24 + $0x3e8] sm:$0xff]  ;;  %v909_v36 = vsel %vm826_vm0, %v316_v22, -inf }
  0xb3   : > { %v744_v35 = vmax.f32 %v333_v24, %v743_v27  ;;  %v320_v24 = vld [vmem:[%s2173_s24 + $0x420] sm:$0xff]  ;;  %v907_v18 = vsel %vm826_vm0, %v313_v7, -inf  ;;  %v365_v7 = vld [vmem:[%s2173_s24 + $0x588] sm:$0xff] }
  0xb4   : > { %v609_v6 = vmax.f32 %v308_v60, %v608_v0  ;;  %v898_v60 = vmax.f32 %v894_v46, %v897_v50  ;;  %v901_v0 = vsel %vm826_vm0, %v304_v53, -inf }
  0xb5   : > { %v745_v41 = vmax.f32 %v336_v31, %v744_v35  ;;  %v323_v31 = vld [vmem:[%s2173_s24 + $0x438] sm:$0xff]  ;;  %v892_v35 = vmax.f32 %v888_v21, %v891_v26 }
  0xb6   : > { %v610_v14 = vmax.f32 %v311_v3, %v609_v6  ;;  %v310_v3 = vld [vmem:[%s2173_s24 + $0x3d0] sm:$0xff]  ;;  %v347_v21 = vld [vmem:[%s2173_s24 + $0x4f8] sm:$0xff] }
  0xb7   : > { %v746_v49 = vmax.f32 %v339_v38, %v745_v41  ;;  %v326_v38 = vld [vmem:[%s2173_s24 + $0x450] sm:$0xff]  ;;  %v1213_v26 = vld [vmem:[%s3253_s1 + $0x418] sm:$0xff] }
  0xb8   : > { %v611_v20 = vmax.f32 %v314_v10, %v610_v14  ;;  %v902_v10 = vmax.f32 %v898_v60, %v901_v0  ;;  %v905_v14 = vsel %vm826_vm0, %v310_v3, -inf }
  0xb9   : > { %v747_v55 = vmax.f32 %v342_v45, %v746_v49  ;;  %v329_v45 = vld [vmem:[%s2173_s24 + $0x468] sm:$0xff]  ;;  %v896_v49 = vmax.f32 %v892_v35, %v895_v40  ;;  %v350_v35 = vld [vmem:[%s2173_s24 + $0x510] sm:$0xff] }
  0xba   : > { %v612_v28 = vmax.f32 %v317_v17, %v611_v20  ;;  %v344_v17 = vld [vmem:[%s2173_s24 + $0x4e0] sm:$0xff]  ;;  %v322_v40 = vld [vmem:[%s2173_s24 + $0x430] sm:$0xff] }
  0xbb   : > { %v748_v63 = vmax.f32 %v345_v52, %v747_v55  ;;  %v332_v52 = vld [vmem:[%s2173_s24 + $0x480] sm:$0xff]  ;;  %v913_v50 = vsel %vm826_vm0, %v322_v40, -inf }
  0xbc   : > { %v613_v34 = vmax.f32 %v320_v24, %v612_v28  ;;  %v1211_v24 = vld [vmem:[%s3253_s1 + $0x408] sm:$0xff]  ;;  %v420_v40 = vld [vmem:[%s2173_s24 + $0x740] sm:$0xff] }
  0xbd   : > { %v749_v5 = vmax.f32 %v348_v59, %v748_v63  ;;  %v335_v59 = vld [vmem:[%s2173_s24 + $0x498] sm:$0xff]  ;;  %v900_v63 = vmax.f32 %v896_v49, %v899_v54  ;;  %v1745_v29 = vpack.c.bf16 %v1215_v25, %v1211_v24  ;;  %v356_v49 = vld [vmem:[%s2173_s24 + $0x540] sm:$0xff] }
  0xbe   : > { %v614_v42 = vmax.f32 %v323_v31, %v613_v34  ;;  %v328_v54 = vld [vmem:[%s2173_s24 + $0x460] sm:$0xff] }
  0xbf   : > { %v750_v13 = vmax.f32 %v351_v2, %v749_v5  ;;  %v338_v2 = vld [vmem:[%s2173_s24 + $0x4b0] sm:$0xff]  ;;  %1746 = vmatprep.subr.bf16.mxu0 %v1745_v29  ;;  %v917_v0 = vsel %vm826_vm0, %v328_v54, -inf }
  0xc0   : > { %v615_v48 = vmax.f32 %v326_v38, %v614_v42  ;;  %v393_v42 = vld [vmem:[%s2173_s24 + $0x668] sm:$0xff]  ;;  %v426_v54 = vld [vmem:[%s2173_s24 + $0x770] sm:$0xff] }
  0xc1   : > { %v751_v19 = vmax.f32 %v354_v9, %v750_v13  ;;  %v341_v9 = vld [vmem:[%s2173_s24 + $0x4c8] sm:$0xff]  ;;  %v904_v13 = vmax.f32 %v900_v63, %v903_v4  ;;  %v362_v63 = vld [vmem:[%s2173_s24 + $0x570] sm:$0xff] }
  0xc2   : > { %v616_v56 = vmax.f32 %v329_v45, %v615_v48  ;;  %v396_v48 = vld [vmem:[%s2173_s24 + $0x680] sm:$0xff]  ;;  %v334_v4 = vld [vmem:[%s2173_s24 + $0x490] sm:$0xff] }
  0xc3   : > { %v752_v27 = vmax.f32 %v357_v16, %v751_v19  ;;  %v387_v16 = vld [vmem:[%s2173_s24 + $0x638] sm:$0xff]  ;;  %v908_v32 = vmax.f32 %v904_v13, %v907_v18  ;;  %v368_v13 = vld [vmem:[%s2173_s24 + $0x5a0] sm:$0xff] }
  0xc4   : > { %v617_v62 = vmax.f32 %v332_v52, %v616_v56  ;;  %v399_v56 = vld [vmem:[%s2173_s24 + $0x698] sm:$0xff]  ;;  %v340_v18 = vld [vmem:[%s2173_s24 + $0x4c0] sm:$0xff] }
  0xc5   : > { %v753_v33 = vmax.f32 %v360_v23, %v752_v27  ;;  %v319_v23 = vld [vmem:[%s2173_s24 + $0x418] sm:$0xff]  ;;  %v906_v27 = vmax.f32 %v902_v10, %v905_v14  ;;  %v921_v14 = vsel %vm826_vm0, %v334_v4, -inf  ;;  %v432_v4 = vld [vmem:[%s2173_s24 + $0x7a0] sm:$0xff] }
  0xc6   : > { %v618_v6 = vmax.f32 %v335_v59, %v617_v62  ;;  %v402_v62 = vld [vmem:[%s2173_s24 + $0x6b0] sm:$0xff] }
  0xc7   : > { %v754_v41 = vmax.f32 %v363_v30, %v753_v33  ;;  %v1217_v30 = vld [vmem:[%s3253_s1 + $0x438] sm:$0xff]  ;;  %v390_v33 = vld [vmem:[%s2173_s24 + $0x650] sm:$0xff]  ;;  %v910_v46 = vmax.f32 %v906_v27, %v909_v36 }
  0xc8   : > { %v619_v12 = vmax.f32 %v338_v2, %v618_v6  ;;  %v1833_v34 = vpack.c.bf16 %v1217_v30, %v1213_v26  ;;  %v405_v6 = vld [vmem:[%s2173_s24 + $0x6c8] sm:$0xff]  ;;  %v414_v26 = vld [vmem:[%s2173_s24 + $0x710] sm:$0xff] }
  0xc9   : > { %v755_v47 = vmax.f32 %v366_v37, %v754_v41  ;;  %v911_v37 = vsel %vm826_vm0, %v319_v23, -inf  ;;  %v325_v41 = vld [vmem:[%s2173_s24 + $0x448] sm:$0xff]  ;;  %v914_v60 = vmax.f32 %v910_v46, %v913_v50  ;;  %v374_v27 = vld [vmem:[%s2173_s24 + $0x5d0] sm:$0xff]  ;;  %v352_v46 = vld [vmem:[%s2173_s24 + $0x520] sm:$0xff] }
  0xca   : > { %v620_v20 = vmax.f32 %v341_v9, %v619_v12  ;;  %1834 = vmatprep.subr.bf16.mxu1 %v1833_v34  ;;  %v408_v12 = vld [vmem:[%s2173_s24 + $0x6e0] sm:$0xff]  ;;  %v417_v34 = vld [vmem:[%s2173_s24 + $0x728] sm:$0xff] }
  0xcb   : > { %v756_v55 = vmax.f32 %v369_v44, %v755_v47  ;;  %v912_v47 = vmax.f32 %v908_v32, %v911_v37  ;;  %v918_v10 = vmax.f32 %v914_v60, %v917_v0  ;;  %v346_v32 = vld [vmem:[%s2173_s24 + $0x4f0] sm:$0xff] }
  0xcc   : > { %v621_v31 = vmax.f32 %v344_v17, %v620_v20  ;;  %v411_v20 = vld [vmem:[%s2173_s24 + $0x6f8] sm:$0xff]  ;;  %v358_v60 = vld [vmem:[%s2173_s24 + $0x550] sm:$0xff] }
  0xcd   : > { %v757_v61 = vmax.f32 %v372_v51, %v756_v55  ;;  %v915_v51 = vsel %vm826_vm0, %v325_v41, -inf  ;;  %v331_v55 = vld [vmem:[%s2173_s24 + $0x478] sm:$0xff]  ;;  %v922_v24 = vmax.f32 %v918_v10, %v921_v14  ;;  %v380_v41 = vld [vmem:[%s2173_s24 + $0x600] sm:$0xff] }
  0xce   : > { %v622_v39 = vmax.f32 %v347_v21, %v621_v31  ;;  %v371_v21 = vld [vmem:[%s2173_s24 + $0x5b8] sm:$0xff]  ;;  %v364_v10 = vld [vmem:[%s2173_s24 + $0x580] sm:$0xff] }
  0xcf   : > { %v758_v5 = vmax.f32 %v375_v58, %v757_v61  ;;  %v916_v61 = vmax.f32 %v912_v47, %v915_v51  ;;  %v355_v47 = vld [vmem:[%s2173_s24 + $0x538] sm:$0xff] }
  0xd0   : > { %v623_v45 = vmax.f32 %v350_v35, %v622_v39  ;;  %v377_v35 = vld [vmem:[%s2173_s24 + $0x5e8] sm:$0xff] }
  0xd1   : > { %v759_v11 = vmax.f32 %v378_v1, %v758_v5  ;;  %v919_v1 = vsel %vm826_vm0, %v331_v55, -inf  ;;  %v337_v5 = vld [vmem:[%s2173_s24 + $0x4a8] sm:$0xff]  ;;  %v386_v55 = vld [vmem:[%s2173_s24 + $0x630] sm:$0xff] }
  0xd2   : > { %v624_v53 = vmax.f32 %v353_v43, %v623_v45 }
  0xd3   : > { %v760_v19 = vmax.f32 %v381_v8, %v759_v11  ;;  %v920_v11 = vmax.f32 %v916_v61, %v919_v1  ;;  %v361_v61 = vld [vmem:[%s2173_s24 + $0x568] sm:$0xff] }
  0xd4   : > { %v625_v59 = vmax.f32 %v356_v49, %v624_v53  ;;  %v383_v49 = vld [vmem:[%s2173_s24 + $0x618] sm:$0xff] }
  0xd5   : > { %v761_v28 = vmax.f32 %v384_v15, %v760_v19  ;;  %v923_v15 = vsel %vm826_vm0, %v337_v5, -inf  ;;  %v343_v19 = vld [vmem:[%s2173_s24 + $0x4d8] sm:$0xff]  ;;  %v392_v5 = vld [vmem:[%s2173_s24 + $0x660] sm:$0xff] }
  0xd6   : > { %v626_v3 = vmax.f32 %v359_v57, %v625_v59  ;;  %v924_v25 = vmax.f32 %v920_v11, %v923_v15  ;;  %v927_v29 = vsel %vm826_vm0, %v343_v19, -inf  ;;  %v935_v57 = vsel %vm826_vm0, %v355_v47, -inf  ;;  %v367_v11 = vld [vmem:[%s2173_s24 + $0x598] sm:$0xff]  ;;  %v398_v19 = vld [vmem:[%s2173_s24 + $0x690] sm:$0xff] }
  0xd7   : > { %v762_v38 = vmax.f32 %v387_v16, %v761_v28  ;;  %v925_v28 = vsel %vm826_vm0, %v340_v18, -inf  ;;  %v438_v18 = vld [vmem:[%s2173_s24 + $0x7d0] sm:$0xff] }
  0xd8   : > { %v627_v9 = vmax.f32 %v362_v63, %v626_v3  ;;  %v928_v39 = vmax.f32 %v924_v25, %v927_v29  ;;  %v389_v63 = vld [vmem:[%s2173_s24 + $0x648] sm:$0xff]  ;;  %v410_v47 = vld [vmem:[%s2173_s24 + $0x6f0] sm:$0xff] }
  0xd9   : > { %v763_v44 = vmax.f32 %v390_v33, %v762_v38  ;;  %v349_v33 = vld [vmem:[%s2173_s24 + $0x508] sm:$0xff]  ;;  %v926_v38 = vmax.f32 %v922_v24, %v925_v28  ;;  %v370_v24 = vld [vmem:[%s2173_s24 + $0x5b0] sm:$0xff] }
  0xda   : > { %v628_v17 = vmax.f32 %v365_v7, %v627_v9  ;;  %v931_v43 = vsel %vm826_vm0, %v349_v33, -inf  ;;  %v939_v7 = vsel %vm826_vm0, %v361_v61, -inf  ;;  %v373_v25 = vld [vmem:[%s2173_s24 + $0x5c8] sm:$0xff]  ;;  %v404_v33 = vld [vmem:[%s2173_s24 + $0x6c0] sm:$0xff] }
  0xdb   : > { %v764_v52 = vmax.f32 %v393_v42, %v763_v44  ;;  %v929_v42 = vsel %vm826_vm0, %v346_v32, -inf  ;;  %v932_v53 = vmax.f32 %v928_v39, %v931_v43  ;;  %v444_v32 = vld [vmem:[%s2173_s24 + $0x800] sm:$0xff]  ;;  %v379_v39 = vld [vmem:[%s2173_s24 + $0x5f8] sm:$0xff] }
  0xdc   : > { %v629_v23 = vmax.f32 %v368_v13, %v628_v17  ;;  %v395_v13 = vld [vmem:[%s2173_s24 + $0x678] sm:$0xff]  ;;  %v416_v61 = vld [vmem:[%s2173_s24 + $0x720] sm:$0xff] }
  0xdd   : > { %v765_v58 = vmax.f32 %v396_v48, %v764_v52  ;;  %v423_v48 = vld [vmem:[%s2173_s24 + $0x758] sm:$0xff]  ;;  %v930_v52 = vmax.f32 %v926_v38, %v929_v42  ;;  %v936_v3 = vmax.f32 %v932_v53, %v935_v57  ;;  %v376_v38 = vld [vmem:[%s2173_s24 + $0x5e0] sm:$0xff]  ;;  %v385_v53 = vld [vmem:[%s2173_s24 + $0x628] sm:$0xff] }
  0xde   : > { %v630_v31 = vmax.f32 %v371_v21, %v629_v23  ;;  %v943_v21 = vsel %vm826_vm0, %v367_v11, -inf  ;;  %v422_v11 = vld [vmem:[%s2173_s24 + $0x750] sm:$0xff] }
  0xdf   : > { %v766_v2 = vmax.f32 %v399_v56, %v765_v58  ;;  %v933_v56 = vsel %vm826_vm0, %v352_v46, -inf  ;;  %v940_v17 = vmax.f32 %v936_v3, %v939_v7  ;;  %v450_v46 = vld [vmem:[%s2173_s24 + $0x830] sm:$0xff]  ;;  %v391_v3 = vld [vmem:[%s2173_s24 + $0x658] sm:$0xff] }
  0xe0   : > { %v631_v37 = vmax.f32 %v374_v27, %v630_v31  ;;  %v401_v27 = vld [vmem:[%s2173_s24 + $0x6a8] sm:$0xff] }
  0xe1   : > { %v767_v8 = vmax.f32 %v402_v62, %v766_v2  ;;  %v429_v62 = vld [vmem:[%s2173_s24 + $0x788] sm:$0xff]  ;;  %v934_v2 = vmax.f32 %v930_v52, %v933_v56  ;;  %v944_v31 = vmax.f32 %v940_v17, %v943_v21  ;;  %v382_v52 = vld [vmem:[%s2173_s24 + $0x610] sm:$0xff] }
  0xe2   : > { %v632_v45 = vmax.f32 %v377_v35, %v631_v37  ;;  %v947_v35 = vsel %vm826_vm0, %v373_v25, -inf  ;;  %v397_v17 = vld [vmem:[%s2173_s24 + $0x688] sm:$0xff]  ;;  %v428_v25 = vld [vmem:[%s2173_s24 + $0x780] sm:$0xff] }
  0xe3   : > { %v768_v16 = vmax.f32 %v405_v6, %v767_v8  ;;  %v937_v6 = vsel %vm826_vm0, %v358_v60, -inf  ;;  %v456_v60 = vld [vmem:[%s2173_s24 + $0x860] sm:$0xff] }
  0xe4   : > { %v633_v51 = vmax.f32 %v380_v41, %v632_v45  ;;  %v407_v41 = vld [vmem:[%s2173_s24 + $0x6d8] sm:$0xff]  ;;  %v948_v45 = vmax.f32 %v944_v31, %v947_v35 }
  0xe5   : > { %v769_v22 = vmax.f32 %v408_v12, %v768_v16  ;;  %v435_v12 = vld [vmem:[%s2173_s24 + $0x7b8] sm:$0xff]  ;;  %v938_v16 = vmax.f32 %v934_v2, %v937_v6  ;;  %v388_v2 = vld [vmem:[%s2173_s24 + $0x640] sm:$0xff] }
  0xe6   : > { %v634_v59 = vmax.f32 %v383_v49, %v633_v51  ;;  %v951_v49 = vsel %vm826_vm0, %v379_v39, -inf  ;;  %v403_v31 = vld [vmem:[%s2173_s24 + $0x6b8] sm:$0xff]  ;;  %v434_v39 = vld [vmem:[%s2173_s24 + $0x7b0] sm:$0xff] }
  0xe7   : > { %v770_v30 = vmax.f32 %v411_v20, %v769_v22  ;;  %v941_v20 = vsel %vm826_vm0, %v364_v10, -inf  ;;  %v462_v10 = vld [vmem:[%s2173_s24 + $0x890] sm:$0xff] }
  0xe8   : > { %v635_v1 = vmax.f32 %v386_v55, %v634_v59  ;;  %v413_v55 = vld [vmem:[%s2173_s24 + $0x708] sm:$0xff]  ;;  %v952_v59 = vmax.f32 %v948_v45, %v951_v49 }
  0xe9   : > { %v771_v36 = vmax.f32 %v414_v26, %v770_v30  ;;  %v441_v26 = vld [vmem:[%s2173_s24 + $0x7e8] sm:$0xff]  ;;  %v942_v30 = vmax.f32 %v938_v16, %v941_v20  ;;  %v394_v16 = vld [vmem:[%s2173_s24 + $0x670] sm:$0xff] }
  0xea   : > { %v636_v9 = vmax.f32 %v389_v63, %v635_v1  ;;  %v955_v63 = vsel %vm826_vm0, %v385_v53, -inf  ;;  %v409_v45 = vld [vmem:[%s2173_s24 + $0x6e8] sm:$0xff]  ;;  %v440_v53 = vld [vmem:[%s2173_s24 + $0x7e0] sm:$0xff] }
  0xeb   : > { %v772_v44 = vmax.f32 %v417_v34, %v771_v36  ;;  %v945_v34 = vsel %vm826_vm0, %v370_v24, -inf  ;;  %v468_v24 = vld [vmem:[%s2173_s24 + $0x8c0] sm:$0xff] }
  0xec   : > { %v637_v15 = vmax.f32 %v392_v5, %v636_v9  ;;  %v419_v5 = vld [vmem:[%s2173_s24 + $0x738] sm:$0xff]  ;;  %v956_v9 = vmax.f32 %v952_v59, %v955_v63 }
  0xed   : > { %v773_v50 = vmax.f32 %v420_v40, %v772_v44  ;;  %v447_v40 = vld [vmem:[%s2173_s24 + $0x818] sm:$0xff]  ;;  %v946_v44 = vmax.f32 %v942_v30, %v945_v34  ;;  %v400_v30 = vld [vmem:[%s2173_s24 + $0x6a0] sm:$0xff] }
  0xee   : > { %v638_v23 = vmax.f32 %v395_v13, %v637_v15  ;;  %v959_v13 = vsel %vm826_vm0, %v391_v3, -inf  ;;  %v415_v59 = vld [vmem:[%s2173_s24 + $0x718] sm:$0xff]  ;;  %v446_v3 = vld [vmem:[%s2173_s24 + $0x810] sm:$0xff] }
  0xef   : > { %v774_v58 = vmax.f32 %v423_v48, %v773_v50  ;;  %v949_v48 = vsel %vm826_vm0, %v376_v38, -inf  ;;  %v474_v38 = vld [vmem:[%s2173_s24 + $0x8f0] sm:$0xff] }
  0xf0   : > { %v639_v29 = vmax.f32 %v398_v19, %v638_v23  ;;  %v425_v19 = vld [vmem:[%s2173_s24 + $0x768] sm:$0xff]  ;;  %v960_v23 = vmax.f32 %v956_v9, %v959_v13 }
  0xf1   : > { %v775_v0 = vmax.f32 %v426_v54, %v774_v58  ;;  %v453_v54 = vld [vmem:[%s2173_s24 + $0x848] sm:$0xff]  ;;  %v950_v58 = vmax.f32 %v946_v44, %v949_v48  ;;  %v406_v44 = vld [vmem:[%s2173_s24 + $0x6d0] sm:$0xff] }
  0xf2   : > { %v640_v37 = vmax.f32 %v401_v27, %v639_v29  ;;  %v963_v27 = vsel %vm826_vm0, %v397_v17, -inf  ;;  %v421_v9 = vld [vmem:[%s2173_s24 + $0x748] sm:$0xff]  ;;  %v452_v17 = vld [vmem:[%s2173_s24 + $0x840] sm:$0xff] }
  0xf3   : > { %v776_v8 = vmax.f32 %v429_v62, %v775_v0  ;;  %v953_v62 = vsel %vm826_vm0, %v382_v52, -inf  ;;  %v480_v52 = vld [vmem:[%s2173_s24 + $0x920] sm:$0xff] }
  0xf4   : > { %v641_v43 = vmax.f32 %v404_v33, %v640_v37  ;;  %v431_v33 = vld [vmem:[%s2173_s24 + $0x798] sm:$0xff]  ;;  %v964_v37 = vmax.f32 %v960_v23, %v963_v27 }
  0xf5   : > { %v777_v14 = vmax.f32 %v432_v4, %v776_v8  ;;  %v459_v4 = vld [vmem:[%s2173_s24 + $0x878] sm:$0xff]  ;;  %v954_v8 = vmax.f32 %v950_v58, %v953_v62  ;;  %v412_v58 = vld [vmem:[%s2173_s24 + $0x700] sm:$0xff] }
  0xf6   : > { %v642_v51 = vmax.f32 %v407_v41, %v641_v43  ;;  %v967_v41 = vsel %vm826_vm0, %v403_v31, -inf  ;;  %v427_v23 = vld [vmem:[%s2173_s24 + $0x778] sm:$0xff]  ;;  %v458_v31 = vld [vmem:[%s2173_s24 + $0x870] sm:$0xff] }
  0xf7   : > { %v778_v22 = vmax.f32 %v435_v12, %v777_v14  ;;  %v957_v12 = vsel %vm826_vm0, %v388_v2, -inf  ;;  %v486_v2 = vld [vmem:[%s2173_s24 + $0x950] sm:$0xff] }
  0xf8   : > { %v643_v57 = vmax.f32 %v410_v47, %v642_v51  ;;  %v437_v47 = vld [vmem:[%s2173_s24 + $0x7c8] sm:$0xff]  ;;  %v968_v51 = vmax.f32 %v964_v37, %v967_v41 }
  0xf9   : > { %v779_v28 = vmax.f32 %v438_v18, %v778_v22  ;;  %v465_v18 = vld [vmem:[%s2173_s24 + $0x8a8] sm:$0xff]  ;;  %v958_v22 = vmax.f32 %v954_v8, %v957_v12  ;;  %v418_v8 = vld [vmem:[%s2173_s24 + $0x730] sm:$0xff] }
  0xfa   : > { %v644_v1 = vmax.f32 %v413_v55, %v643_v57  ;;  %v971_v55 = vsel %vm826_vm0, %v409_v45, -inf  ;;  %v433_v37 = vld [vmem:[%s2173_s24 + $0x7a8] sm:$0xff]  ;;  %v464_v45 = vld [vmem:[%s2173_s24 + $0x8a0] sm:$0xff] }
  0xfb   : > { %v780_v36 = vmax.f32 %v441_v26, %v779_v28  ;;  %v961_v26 = vsel %vm826_vm0, %v394_v16, -inf  ;;  %v492_v16 = vld [vmem:[%s2173_s24 + $0x980] sm:$0xff] }
  0xfc   : > { %v645_v7 = vmax.f32 %v416_v61, %v644_v1  ;;  %v443_v61 = vld [vmem:[%s2173_s24 + $0x7f8] sm:$0xff]  ;;  %v972_v1 = vmax.f32 %v968_v51, %v971_v55 }
  0xfd   : > { %v781_v42 = vmax.f32 %v444_v32, %v780_v36  ;;  %v471_v32 = vld [vmem:[%s2173_s24 + $0x8d8] sm:$0xff]  ;;  %v962_v36 = vmax.f32 %v958_v22, %v961_v26  ;;  %v424_v22 = vld [vmem:[%s2173_s24 + $0x760] sm:$0xff] }
  0xfe   : > { %v646_v15 = vmax.f32 %v419_v5, %v645_v7  ;;  %v975_v5 = vsel %vm826_vm0, %v415_v59, -inf  ;;  %v439_v51 = vld [vmem:[%s2173_s24 + $0x7d8] sm:$0xff]  ;;  %v470_v59 = vld [vmem:[%s2173_s24 + $0x8d0] sm:$0xff] }
  0xff   : > { %v782_v50 = vmax.f32 %v447_v40, %v781_v42  ;;  %v965_v40 = vsel %vm826_vm0, %v400_v30, -inf  ;;  %v498_v30 = vld [vmem:[%s2173_s24 + $0x9b0] sm:$0xff] }
 0x100   : > { %v647_v21 = vmax.f32 %v422_v11, %v646_v15  ;;  %v449_v11 = vld [vmem:[%s2173_s24 + $0x828] sm:$0xff]  ;;  %v976_v15 = vmax.f32 %v972_v1, %v975_v5 }
 0x101   : > { %v783_v56 = vmax.f32 %v450_v46, %v782_v50  ;;  %v477_v46 = vld [vmem:[%s2173_s24 + $0x908] sm:$0xff]  ;;  %v966_v50 = vmax.f32 %v962_v36, %v965_v40  ;;  %v430_v36 = vld [vmem:[%s2173_s24 + $0x790] sm:$0xff] }
 0x102   : > { %v648_v29 = vmax.f32 %v425_v19, %v647_v21  ;;  %v979_v19 = vsel %vm826_vm0, %v421_v9, -inf  ;;  %v445_v1 = vld [vmem:[%s2173_s24 + $0x808] sm:$0xff]  ;;  %v476_v9 = vld [vmem:[%s2173_s24 + $0x900] sm:$0xff] }
 0x103   : > { %v784_v0 = vmax.f32 %v453_v54, %v783_v56  ;;  %v969_v54 = vsel %vm826_vm0, %v406_v44, -inf  ;;  %v504_v44 = vld [vmem:[%s2173_s24 + $0x9e0] sm:$0xff] }
 0x104   : > { %v649_v35 = vmax.f32 %v428_v25, %v648_v29  ;;  %v455_v25 = vld [vmem:[%s2173_s24 + $0x858] sm:$0xff]  ;;  %v980_v29 = vmax.f32 %v976_v15, %v979_v19 }
 0x105   : > { %v785_v6 = vmax.f32 %v456_v60, %v784_v0  ;;  %v483_v60 = vld [vmem:[%s2173_s24 + $0x938] sm:$0xff]  ;;  %v970_v0 = vmax.f32 %v966_v50, %v969_v54  ;;  %v436_v50 = vld [vmem:[%s2173_s24 + $0x7c0] sm:$0xff] }
 0x106   : > { %v650_v43 = vmax.f32 %v431_v33, %v649_v35  ;;  %v983_v33 = vsel %vm826_vm0, %v427_v23, -inf  ;;  %v451_v15 = vld [vmem:[%s2173_s24 + $0x838] sm:$0xff]  ;;  %v482_v23 = vld [vmem:[%s2173_s24 + $0x930] sm:$0xff] }
 0x107   : > { %v786_v14 = vmax.f32 %v459_v4, %v785_v6  ;;  %v973_v4 = vsel %vm826_vm0, %v412_v58, -inf  ;;  %v510_v58 = vld [vmem:[%s2173_s24 + $0xa10] sm:$0xff] }
 0x108   : > { %v651_v49 = vmax.f32 %v434_v39, %v650_v43  ;;  %v461_v39 = vld [vmem:[%s2173_s24 + $0x888] sm:$0xff]  ;;  %v984_v43 = vmax.f32 %v980_v29, %v983_v33 }
 0x109   : > { %v787_v20 = vmax.f32 %v462_v10, %v786_v14  ;;  %v489_v10 = vld [vmem:[%s2173_s24 + $0x968] sm:$0xff]  ;;  %v974_v14 = vmax.f32 %v970_v0, %v973_v4  ;;  %v442_v0 = vld [vmem:[%s2173_s24 + $0x7f0] sm:$0xff] }
 0x10a   : > { %v652_v57 = vmax.f32 %v437_v47, %v651_v49  ;;  %v987_v47 = vsel %vm826_vm0, %v433_v37, -inf  ;;  %v457_v29 = vld [vmem:[%s2173_s24 + $0x868] sm:$0xff]  ;;  %v488_v37 = vld [vmem:[%s2173_s24 + $0x960] sm:$0xff] }
 0x10b   : > { %v788_v28 = vmax.f32 %v465_v18, %v787_v20  ;;  %v977_v18 = vsel %vm826_vm0, %v418_v8, -inf  ;;  %v516_v8 = vld [vmem:[%s2173_s24 + $0xa40] sm:$0xff] }
 0x10c   : > { %v653_v63 = vmax.f32 %v440_v53, %v652_v57  ;;  %v467_v53 = vld [vmem:[%s2173_s24 + $0x8b8] sm:$0xff]  ;;  %v988_v57 = vmax.f32 %v984_v43, %v987_v47 }
 0x10d   : > { %v789_v34 = vmax.f32 %v468_v24, %v788_v28  ;;  %v495_v24 = vld [vmem:[%s2173_s24 + $0x998] sm:$0xff]  ;;  %v978_v28 = vmax.f32 %v974_v14, %v977_v18  ;;  %v448_v14 = vld [vmem:[%s2173_s24 + $0x820] sm:$0xff] }
 0x10e   : > { %v654_v7 = vmax.f32 %v443_v61, %v653_v63  ;;  %v991_v61 = vsel %vm826_vm0, %v439_v51, -inf  ;;  %v463_v43 = vld [vmem:[%s2173_s24 + $0x898] sm:$0xff]  ;;  %v494_v51 = vld [vmem:[%s2173_s24 + $0x990] sm:$0xff] }
 0x10f   : > { %v790_v42 = vmax.f32 %v471_v32, %v789_v34  ;;  %v981_v32 = vsel %vm826_vm0, %v424_v22, -inf  ;;  %v522_v22 = vld [vmem:[%s2173_s24 + $0xa70] sm:$0xff] }
 0x110   : > { %v655_v13 = vmax.f32 %v446_v3, %v654_v7  ;;  %v473_v3 = vld [vmem:[%s2173_s24 + $0x8e8] sm:$0xff]  ;;  %v992_v7 = vmax.f32 %v988_v57, %v991_v61 }
 0x111   : > { %v791_v48 = vmax.f32 %v474_v38, %v790_v42  ;;  %v501_v38 = vld [vmem:[%s2173_s24 + $0x9c8] sm:$0xff]  ;;  %v982_v42 = vmax.f32 %v978_v28, %v981_v32  ;;  %v454_v28 = vld [vmem:[%s2173_s24 + $0x850] sm:$0xff] }
 0x112   : > { %v656_v21 = vmax.f32 %v449_v11, %v655_v13  ;;  %v995_v11 = vsel %vm826_vm0, %v445_v1, -inf  ;;  %v469_v57 = vld [vmem:[%s2173_s24 + $0x8c8] sm:$0xff]  ;;  %v500_v1 = vld [vmem:[%s2173_s24 + $0x9c0] sm:$0xff] }
 0x113   : > { %v792_v56 = vmax.f32 %v477_v46, %v791_v48  ;;  %v985_v46 = vsel %vm826_vm0, %v430_v36, -inf  ;;  %v528_v36 = vld [vmem:[%s2173_s24 + $0xaa0] sm:$0xff] }
 0x114   : > { %v657_v27 = vmax.f32 %v452_v17, %v656_v21  ;;  %v479_v17 = vld [vmem:[%s2173_s24 + $0x918] sm:$0xff]  ;;  %v996_v21 = vmax.f32 %v992_v7, %v995_v11 }
 0x115   : > { %v793_v62 = vmax.f32 %v480_v52, %v792_v56  ;;  %v507_v52 = vld [vmem:[%s2173_s24 + $0x9f8] sm:$0xff]  ;;  %v986_v56 = vmax.f32 %v982_v42, %v985_v46  ;;  %v460_v42 = vld [vmem:[%s2173_s24 + $0x880] sm:$0xff] }
 0x116   : > { %v658_v35 = vmax.f32 %v455_v25, %v657_v27  ;;  %v999_v25 = vsel %vm826_vm0, %v451_v15, -inf  ;;  %v475_v7 = vld [vmem:[%s2173_s24 + $0x8f8] sm:$0xff]  ;;  %v506_v15 = vld [vmem:[%s2173_s24 + $0x9f0] sm:$0xff] }
 0x117   : > { %v794_v6 = vmax.f32 %v483_v60, %v793_v62  ;;  %v989_v60 = vsel %vm826_vm0, %v436_v50, -inf  ;;  %v534_v50 = vld [vmem:[%s2173_s24 + $0xad0] sm:$0xff] }
 0x118   : > { %v659_v41 = vmax.f32 %v458_v31, %v658_v35  ;;  %v485_v31 = vld [vmem:[%s2173_s24 + $0x948] sm:$0xff]  ;;  %v1000_v35 = vmax.f32 %v996_v21, %v999_v25 }
 0x119   : > { %v795_v12 = vmax.f32 %v486_v2, %v794_v6  ;;  %v513_v2 = vld [vmem:[%s2173_s24 + $0xa28] sm:$0xff]  ;;  %v990_v6 = vmax.f32 %v986_v56, %v989_v60  ;;  %v466_v56 = vld [vmem:[%s2173_s24 + $0x8b0] sm:$0xff] }
 0x11a   : > { %v660_v49 = vmax.f32 %v461_v39, %v659_v41  ;;  %v1003_v39 = vsel %vm826_vm0, %v457_v29, -inf  ;;  %v481_v21 = vld [vmem:[%s2173_s24 + $0x928] sm:$0xff]  ;;  %v512_v29 = vld [vmem:[%s2173_s24 + $0xa20] sm:$0xff] }
 0x11b   : > { %v796_v20 = vmax.f32 %v489_v10, %v795_v12  ;;  %v993_v10 = vsel %vm826_vm0, %v442_v0, -inf  ;;  %v540_v0 = vld [vmem:[%s2173_s24 + $0xb00] sm:$0xff] }
 0x11c   : > { %v661_v55 = vmax.f32 %v464_v45, %v660_v49  ;;  %v491_v45 = vld [vmem:[%s2173_s24 + $0x978] sm:$0xff]  ;;  %v1004_v49 = vmax.f32 %v1000_v35, %v1003_v39 }
 0x11d   : > { %v797_v26 = vmax.f32 %v492_v16, %v796_v20  ;;  %v519_v16 = vld [vmem:[%s2173_s24 + $0xa58] sm:$0xff]  ;;  %v994_v20 = vmax.f32 %v990_v6, %v993_v10  ;;  %v472_v6 = vld [vmem:[%s2173_s24 + $0x8e0] sm:$0xff] }
 0x11e   : > { %v662_v63 = vmax.f32 %v467_v53, %v661_v55  ;;  %v1007_v53 = vsel %vm826_vm0, %v463_v43, -inf  ;;  %v487_v35 = vld [vmem:[%s2173_s24 + $0x958] sm:$0xff]  ;;  %v518_v43 = vld [vmem:[%s2173_s24 + $0xa50] sm:$0xff] }
 0x11f   : > { %v798_v34 = vmax.f32 %v495_v24, %v797_v26  ;;  %v997_v24 = vsel %vm826_vm0, %v448_v14, -inf  ;;  %v546_v14 = vld [vmem:[%s2173_s24 + $0xb30] sm:$0xff] }
 0x120   : > { %v663_v5 = vmax.f32 %v470_v59, %v662_v63  ;;  %v497_v59 = vld [vmem:[%s2173_s24 + $0x9a8] sm:$0xff]  ;;  %v1008_v63 = vmax.f32 %v1004_v49, %v1007_v53 }
 0x121   : > { %v799_v40 = vmax.f32 %v498_v30, %v798_v34  ;;  %v525_v30 = vld [vmem:[%s2173_s24 + $0xa88] sm:$0xff]  ;;  %v998_v34 = vmax.f32 %v994_v20, %v997_v24  ;;  %v478_v20 = vld [vmem:[%s2173_s24 + $0x910] sm:$0xff] }
 0x122   : > { %v664_v13 = vmax.f32 %v473_v3, %v663_v5  ;;  %v1011_v3 = vsel %vm826_vm0, %v469_v57, -inf  ;;  %v493_v49 = vld [vmem:[%s2173_s24 + $0x988] sm:$0xff]  ;;  %v524_v57 = vld [vmem:[%s2173_s24 + $0xa80] sm:$0xff] }
 0x123   : > { %v800_v48 = vmax.f32 %v501_v38, %v799_v40  ;;  %v1001_v38 = vsel %vm826_vm0, %v454_v28, -inf  ;;  %v552_v28 = vld [vmem:[%s2173_s24 + $0xb60] sm:$0xff] }
 0x124   : > { %v665_v19 = vmax.f32 %v476_v9, %v664_v13  ;;  %v503_v9 = vld [vmem:[%s2173_s24 + $0x9d8] sm:$0xff]  ;;  %v1012_v13 = vmax.f32 %v1008_v63, %v1011_v3  ;;  %v496_v63 = vld [vmem:[%s2173_s24 + $0x9a0] sm:$0xff] }
 0x125   : > { %v801_v54 = vmax.f32 %v504_v44, %v800_v48  ;;  %v531_v44 = vld [vmem:[%s2173_s24 + $0xab8] sm:$0xff]  ;;  %v1002_v48 = vmax.f32 %v998_v34, %v1001_v38  ;;  %v484_v34 = vld [vmem:[%s2173_s24 + $0x940] sm:$0xff] }
 0x126   : > { %v666_v27 = vmax.f32 %v479_v17, %v665_v19  ;;  %v1015_v17 = vsel %vm826_vm0, %v475_v7, -inf  ;;  %v527_v3 = vld [vmem:[%s2173_s24 + $0xa98] sm:$0xff] }
 0x127   : > { %v802_v62 = vmax.f32 %v507_v52, %v801_v54  ;;  %v1005_v52 = vsel %vm826_vm0, %v460_v42, -inf  ;;  %v558_v42 = vld [vmem:[%s2173_s24 + $0xb90] sm:$0xff] }
 0x128   : > { %v667_v33 = vmax.f32 %v482_v23, %v666_v27  ;;  %v509_v23 = vld [vmem:[%s2173_s24 + $0xa08] sm:$0xff]  ;;  %v1016_v27 = vmax.f32 %v1012_v13, %v1015_v17  ;;  %v502_v17 = vld [vmem:[%s2173_s24 + $0x9d0] sm:$0xff] }
 0x129   : > { %v803_v4 = vmax.f32 %v510_v58, %v802_v62  ;;  %v537_v58 = vld [vmem:[%s2173_s24 + $0xae8] sm:$0xff]  ;;  %v1006_v62 = vmax.f32 %v1002_v48, %v1005_v52  ;;  %v490_v48 = vld [vmem:[%s2173_s24 + $0x970] sm:$0xff] }
 0x12a   : > { %v668_v41 = vmax.f32 %v485_v31, %v667_v33  ;;  %v1019_v31 = vsel %vm826_vm0, %v481_v21, -inf }
 0x12b   : > { %v804_v12 = vmax.f32 %v513_v2, %v803_v4  ;;  %v1009_v2 = vsel %vm826_vm0, %v466_v56, -inf  ;;  %v564_v56 = vld [vmem:[%s2173_s24 + $0xbc0] sm:$0xff] }
 0x12c   : > { %v669_v47 = vmax.f32 %v488_v37, %v668_v41  ;;  %v515_v37 = vld [vmem:[%s2173_s24 + $0xa38] sm:$0xff]  ;;  %v1020_v41 = vmax.f32 %v1016_v27, %v1019_v31 }
 0x12d   : > { %v805_v18 = vmax.f32 %v516_v8, %v804_v12  ;;  %v543_v8 = vld [vmem:[%s2173_s24 + $0xb18] sm:$0xff]  ;;  %v1010_v12 = vmax.f32 %v1006_v62, %v1009_v2 }
 0x12e   : > { %v670_v55 = vmax.f32 %v491_v45, %v669_v47  ;;  %v1023_v45 = vsel %vm826_vm0, %v487_v35, -inf  ;;  %v567_v2 = vld [vmem:[%s2173_s24 + $0xbd8] sm:$0xff] }
 0x12f   : > { %v806_v26 = vmax.f32 %v519_v16, %v805_v18  ;;  %v1013_v16 = vsel %vm826_vm0, %v472_v6, -inf  ;;  %v511_v31 = vld [vmem:[%s2173_s24 + $0xa18] sm:$0xff] }
 0x130   : > { %v671_v61 = vmax.f32 %v494_v51, %v670_v55  ;;  %v521_v51 = vld [vmem:[%s2173_s24 + $0xa68] sm:$0xff]  ;;  %v1024_v55 = vmax.f32 %v1020_v41, %v1023_v45  ;;  %v514_v41 = vld [vmem:[%s2173_s24 + $0xa30] sm:$0xff] }
 0x131   : > { %v807_v32 = vmax.f32 %v522_v22, %v806_v26  ;;  %v549_v22 = vld [vmem:[%s2173_s24 + $0xb48] sm:$0xff]  ;;  %v1014_v26 = vmax.f32 %v1010_v12, %v1013_v16  ;;  %v1029_v12 = vsel %vm826_vm0, %v496_v63, -inf }
 0x132   : > { %v672_v5 = vmax.f32 %v497_v59, %v671_v61  ;;  %v1027_v59 = vsel %vm826_vm0, %v493_v49, -inf  ;;  %v557_v63 = vld [vmem:[%s2173_s24 + $0xb88] sm:$0xff] }
 0x133   : > { %v808_v40 = vmax.f32 %v525_v30, %v807_v32  ;;  %v1017_v30 = vsel %vm826_vm0, %v478_v20, -inf  ;;  %v533_v20 = vld [vmem:[%s2173_s24 + $0xac8] sm:$0xff] }
 0x134   : > { %v673_v11 = vmax.f32 %v500_v1, %v672_v5  ;;  %v195_v1 = vld [vmem:[%s2173_s24 + $0x38] sm:$0xff]  ;;  %v198_v5 = vld [vmem:[%s2173_s24 + $0x50] sm:$0xff] }
 0x135   : > { %v809_v46 = vmax.f32 %v528_v36, %v808_v40  ;;  %v555_v36 = vld [vmem:[%s2173_s24 + $0xb78] sm:$0xff]  ;;  %v1018_v40 = vmax.f32 %v1014_v26, %v1017_v30  ;;  %v1033_v26 = vsel %vm826_vm0, %v502_v17, -inf  ;;  %v508_v30 = vld [vmem:[%s2173_s24 + $0xa00] sm:$0xff] }
 0x136   : > { %v674_v19 = vmax.f32 %v503_v9, %v673_v11  ;;  %v1028_v9 = vmax.f32 %v1024_v55, %v1027_v59  ;;  %v530_v11 = vld [vmem:[%s2173_s24 + $0xab0] sm:$0xff] }
 0x137   : > { %v810_v54 = vmax.f32 %v531_v44, %v809_v46  ;;  %v1021_v44 = vsel %vm826_vm0, %v484_v34, -inf }
 0x138   : > { %v675_v25 = vmax.f32 %v506_v15, %v674_v19 }
 0x139   : > { %v811_v60 = vmax.f32 %v534_v50, %v810_v54  ;;  %v561_v50 = vld [vmem:[%s2173_s24 + $0xba8] sm:$0xff]  ;;  %v1022_v54 = vmax.f32 %v1018_v40, %v1021_v44 }
 0x13a   : > { %v676_v33 = vmax.f32 %v509_v23, %v675_v25  ;;  %v536_v25 = vld [vmem:[%s2173_s24 + $0xae0] sm:$0xff] }
 0x13b   : > { %v812_v4 = vmax.f32 %v537_v58, %v811_v60  ;;  %v1025_v58 = vsel %vm826_vm0, %v490_v48, -inf  ;;  %v189_v60 = vld [vmem:[%s2173_s24 + $0x8] sm:$0xff]  ;;  %v1041_v48 = vsel %vm826_vm0, %v514_v41, -inf  ;;  %v1225_v41 = vld [vmem:[%s3253_s1 + $0x478] sm:$0xff] }
 0x13c   : > { %v677_v39 = vmax.f32 %v512_v29, %v676_v33  ;;  %v699_v15 = vmax.f32 %v189_v60, %v195_v1 }
 0x13d   : > { %v813_v10 = vmax.f32 %v540_v0, %v812_v4  ;;  %v499_v0 = vld [vmem:[%s2173_s24 + $0x9b8] sm:$0xff]  ;;  %v192_v4 = vld [vmem:[%s2173_s24 + $0x20] sm:$0xff] }
 0x13e   : > { %v678_v47 = vmax.f32 %v515_v37, %v677_v39  ;;  %v1031_v13 = vsel %vm826_vm0, %v499_v0, -inf  ;;  %v700_v19 = vmax.f32 %v192_v4, %v198_v5  ;;  %v542_v37 = vld [vmem:[%s2173_s24 + $0xb10] sm:$0xff]  ;;  %v1039_v39 = vsel %vm826_vm0, %v511_v31, -inf }
 0x13f   : > { %v814_v18 = vmax.f32 %v543_v8, %v813_v10  ;;  %v1026_v8 = vmax.f32 %v1022_v54, %v1025_v58  ;;  %v570_v10 = vld [vmem:[%s2173_s24 + $0xbf0] sm:$0xff] }
 0x140   : > { %v679_v53 = vmax.f32 %v518_v43, %v678_v47  ;;  %v545_v43 = vld [vmem:[%s2173_s24 + $0xb28] sm:$0xff]  ;;  %v548_v47 = vld [vmem:[%s2173_s24 + $0xb40] sm:$0xff]  ;;  %v1216_v31 = vld [vmem:[%s3253_s1 + $0x430] sm:$0xff] }
 0x141   : > { %v815_v24 = vmax.f32 %v546_v14, %v814_v18  ;;  %v505_v18 = vld [vmem:[%s2173_s24 + $0x9e8] sm:$0xff]  ;;  %v1030_v23 = vmax.f32 %v1026_v8, %v1029_v12  ;;  %v535_v8 = vld [vmem:[%s2173_s24 + $0xad8] sm:$0xff] }
 0x142   : > { %v680_v62 = vmax.f32 %v521_v51, %v679_v53  ;;  %v1035_v27 = vsel %vm826_vm0, %v505_v18, -inf  ;;  %v520_v51 = vld [vmem:[%s2173_s24 + $0xa60] sm:$0xff]  ;;  %v551_v53 = vld [vmem:[%s2173_s24 + $0xb58] sm:$0xff]  ;;  %v1055_v17 = vsel %vm826_vm0, %v535_v8, -inf }
 0x143   : > { %v816_v32 = vmax.f32 %v549_v22, %v815_v24  ;;  %v1032_v24 = vmax.f32 %v1028_v9, %v1031_v13  ;;  %v1034_v35 = vmax.f32 %v1030_v23, %v1033_v26  ;;  %v1045_v58 = vsel %vm826_vm0, %v520_v51, -inf  ;;  %v563_v9 = vld [vmem:[%s2173_s24 + $0xbb8] sm:$0xff]  ;;  %v188_v13 = vld [vmem:[%s2173_s24] sm:$0xff]  ;;  %v569_v23 = vld [vmem:[%s2173_s24 + $0xbe8] sm:$0xff] }
 0x144   : > { %v681_v7 = vmax.f32 %v524_v57, %v680_v62  ;;  %v554_v57 = vld [vmem:[%s2173_s24 + $0xb70] sm:$0xff]  ;;  %v529_v62 = vld [vmem:[%s2173_s24 + $0xaa8] sm:$0xff]  ;;  %v1210_v26 = vld [vmem:[%s3253_s1 + $0x400] sm:$0xff] }
 0x145   : > { %v817_v38 = vmax.f32 %v552_v28, %v816_v32  ;;  %v539_v32 = vld [vmem:[%s2173_s24 + $0xaf8] sm:$0xff]  ;;  %v1051_v5 = vsel %vm826_vm0, %v529_v62, -inf  ;;  %v1226_v62 = vld [vmem:[%s3253_s1 + $0x480] sm:$0xff] }
 0x146   : > { %v682_v16 = vmax.f32 %v527_v3, %v681_v7  ;;  %v560_v3 = vld [vmem:[%s2173_s24 + $0xba0] sm:$0xff] }
 0x147   : > { %v818_v46 = vmax.f32 %v555_v36, %v817_v38  ;;  %v1036_v36 = vmax.f32 %v1032_v24, %v1035_v27  ;;  %v1037_v38 = vsel %vm826_vm0, %v508_v30, -inf  ;;  %v532_v7 = vld [vmem:[%s2173_s24 + $0xac0] sm:$0xff]  ;;  %v1212_v30 = vld [vmem:[%s3253_s1 + $0x410] sm:$0xff] }
 0x148   : > { %v683_v22 = vmax.f32 %v530_v11, %v682_v16  ;;  %v1038_v45 = vmax.f32 %v1034_v35, %v1037_v38  ;;  %v1053_v16 = vsel %vm826_vm0, %v532_v7, -inf  ;;  %v547_v38 = vld [vmem:[%s2173_s24 + $0xb38] sm:$0xff] }
 0x149   : > { %v819_v52 = vmax.f32 %v558_v42, %v818_v46  ;;  %v517_v42 = vld [vmem:[%s2173_s24 + $0xa48] sm:$0xff]  ;;  %v1040_v46 = vmax.f32 %v1036_v36, %v1039_v39 }
 0x14a   : > { %v684_v29 = vmax.f32 %v533_v20, %v683_v22  ;;  %v1043_v49 = vsel %vm826_vm0, %v517_v42, -inf  ;;  %v1042_v55 = vmax.f32 %v1038_v45, %v1041_v48  ;;  %v541_v20 = vld [vmem:[%s2173_s24 + $0xb08] sm:$0xff]  ;;  %v1222_v48 = vld [vmem:[%s3253_s1 + $0x460] sm:$0xff] }
 0x14b   : > { %v820_v61 = vmax.f32 %v561_v50, %v819_v52  ;;  %v523_v52 = vld [vmem:[%s2173_s24 + $0xa78] sm:$0xff]  ;;  %v197_v22 = vld [vmem:[%s2173_s24 + $0x48] sm:$0xff] }
 0x14c   : > { %v685_v34 = vmax.f32 %v536_v25, %v684_v29  ;;  %v1047_v59 = vsel %vm826_vm0, %v523_v52, -inf  ;;  %v1046_v1 = vmax.f32 %v1042_v55, %v1045_v58  ;;  %v1214_v29 = vld [vmem:[%s3253_s1 + $0x420] sm:$0xff]  ;;  %v1219_v36 = vld [vmem:[%s3253_s1 + $0x448] sm:$0xff]  ;;  %v1063_v52 = vsel %vm826_vm0, %v547_v38, -inf }
 0x14d   : > { %v821_v6 = vmax.f32 %v564_v56, %v820_v61  ;;  %v1044_v56 = vmax.f32 %v1040_v46, %v1043_v49  ;;  %v526_v61 = vld [vmem:[%s2173_s24 + $0xa90] sm:$0xff]  ;;  %v1223_v39 = vld [vmem:[%s3253_s1 + $0x468] sm:$0xff]  ;;  %v1747_v46 = vpack.c.bf16 %v1214_v29, %v1210_v26 }
 0x14e   : > { %v686_v40 = vmax.f32 %v539_v32, %v685_v34  ;;  %v1049_v4 = vsel %vm826_vm0, %v526_v61, -inf  ;;  %v1220_v49 = vld [vmem:[%s3253_s1 + $0x450] sm:$0xff]  ;;  %v553_v58 = vld [vmem:[%s2173_s24 + $0xb68] sm:$0xff]  ;;  %v1233_v61 = vld [vmem:[%s3253_s1 + $0x4b8] sm:$0xff] }
 0x14f   : > { %v822_v14 = vmax.f32 %v567_v2, %v821_v6  ;;  %v1048_v2 = vmax.f32 %v1044_v56, %v1047_v59  ;;  %v1050_v11 = vmax.f32 %v1046_v1, %v1049_v4  ;;  %v1227_v56 = vld [vmem:[%s3253_s1 + $0x488] sm:$0xff]  ;;  %v1228_v4 = vld [vmem:[%s3253_s1 + $0x490] sm:$0xff]  ;;  %v1067_v7 = vsel %vm826_vm0, %v553_v58, -inf }
 0x150   : > { %v687_v44 = vmax.f32 %v542_v37, %v686_v40  ;;  %v544_v37 = vld [vmem:[%s2173_s24 + $0xb20] sm:$0xff]  ;;  %v1221_v40 = vld [vmem:[%s3253_s1 + $0x458] sm:$0xff]  ;;  %v1231_v59 = vld [vmem:[%s3253_s1 + $0x4a8] sm:$0xff] }
 0x151   : > { %v823_v21 = vmax.f32 %v570_v10, %v822_v14  ;;  %v1052_v12 = vmax.f32 %v1048_v2, %v1051_v5  ;;  %v194_v14 = vld [vmem:[%s2173_s24 + $0x30] sm:$0xff]  ;;  %v1054_v27 = vmax.f32 %v1050_v11, %v1053_v16  ;;  %v1061_v51 = vsel %vm826_vm0, %v544_v37, -inf  ;;  %v556_v11 = vld [vmem:[%s2173_s24 + $0xb80] sm:$0xff]  ;;  %v1243_v29 = vld [vmem:[%s3253_s1 + $0x508] sm:$0xff] }
 0x152   : > { %v688_v50 = vmax.f32 %v545_v43, %v687_v44  ;;  %v572_v25 = vmax.f32 %v188_v13, %v194_v14  ;;  %v1218_v43 = vld [vmem:[%s3253_s1 + $0x440] sm:$0xff]  ;;  %v1837_v55 = vpack.c.bf16 %v1225_v41, %v1221_v40  ;;  %v1232_v5 = vld [vmem:[%s3253_s1 + $0x4b0] sm:$0xff]  ;;  %v1753_v8 = vpack.c.bf16 %v1231_v59, %v1227_v56  ;;  %v1239_v13 = vld [vmem:[%s3253_s1 + $0x4e8] sm:$0xff] }
 0x153   : > { %v824_v28 = vmax.f32 %v699_v15, %v823_v21  ;;  %v566_v15 = vld [vmem:[%s2173_s24 + $0xbd0] sm:$0xff]  ;;  %v191_v21 = vld [vmem:[%s2173_s24 + $0x18] sm:$0xff]  ;;  %v1751_v1 = vpack.c.bf16 %v1222_v48, %v1218_v43  ;;  %v2046_v16 = vmov 0.0   ;;  %v1246_v40 = vld [vmem:[%s3253_s1 + $0x520] sm:$0xff] }
 0x154   : > { %v689_v54 = vmax.f32 %v548_v47, %v688_v50  ;;  %v573_v35 = vmax.f32 %v191_v21, %v197_v22  ;;  %v1835_v47 = vpack.c.bf16 %v1216_v31, %v1212_v30  ;;  %v1224_v50 = vld [vmem:[%s3253_s1 + $0x470] sm:$0xff]  ;;  %v1237_v14 = vld [vmem:[%s3253_s1 + $0x4d8] sm:$0xff]  ;;  %v1843_v21 = vpack.c.bf16 %v1232_v5, %v1228_v4  ;;  %v1238_v22 = vld [vmem:[%s3253_s1 + $0x4e0] sm:$0xff] }
 0x155   : > { %v825_v33 = vmax.f32 %v700_v19, %v824_v28  ;;  %v538_v19 = vld [vmem:[%s2173_s24 + $0xaf0] sm:$0xff]  ;;  %v1056_v28 = vmax.f32 %v1052_v12, %v1055_v17  ;;  %v1839_v2 = vpack.c.bf16 %v1224_v50, %v1220_v49  ;;  %v559_v12 = vld [vmem:[%s2173_s24 + $0xb98] sm:$0xff]  ;;  %v1234_v17 = vld [vmem:[%s3253_s1 + $0x4c0] sm:$0xff] }
 0x156   : > { %v690_v60 = vmax.f32 %v551_v53, %v689_v54  ;;  %v1057_v32 = vsel %vm826_vm0, %v538_v19, -inf  ;;  %v1749_v54 = vpack.c.bf16 %v1223_v39, %v1219_v36  ;;  %v1071_v26 = vsel %vm826_vm0, %v559_v12, -inf  ;;  %v562_v30 = vld [vmem:[%s2173_s24 + $0xbb0] sm:$0xff]  ;;  %v565_v31 = vld [vmem:[%s2173_s24 + $0xbc8] sm:$0xff]  ;;  %v568_v48 = vld [vmem:[%s2173_s24 + $0xbe0] sm:$0xff] }
 0x157   : > { %1325 = vmatprep.mubr.f32.mxu0 %v825_v33  ;;  %1467 = vmatprep.mubr.f32.mxu1 %v825_v33  ;;  %v1059_v33 = vsel %vm826_vm0, %v541_v20, -inf  ;;  %v1058_v44 = vmax.f32 %v1054_v27, %v1057_v32  ;;  %v1247_v32 = vld [vmem:[%s3253_s1 + $0x528] sm:$0xff]  ;;  %v1759_v38 = vpack.c.bf16 %v1238_v22, %v1234_v17  ;;  %v1244_v41 = vld [vmem:[%s3253_s1 + $0x510] sm:$0xff]  ;;  %v1073_v43 = vsel %vm826_vm0, %v562_v30, -inf  ;;  %v571_v49 = vld [vmem:[%s2173_s24 + $0xbf8] sm:$0xff] }
 0x158   : > { %v691_v0 = vmax.f32 %v554_v57, %v690_v60  ;;  %v1060_v45 = vmax.f32 %v1056_v28, %v1059_v33  ;;  %v550_v57 = vld [vmem:[%s2173_s24 + $0xb50] sm:$0xff]  ;;  %v1229_v60 = vld [vmem:[%s3253_s1 + $0x498] sm:$0xff]  ;;  %v1255_v50 = vld [vmem:[%s3253_s1 + $0x568] sm:$0xff]  ;;  %v1077_v58 = vsel %vm826_vm0, %v568_v48, -inf  ;;  %v1079_v59 = vsel %vm826_vm0, %v571_v49, -inf }
 0x159   : > { %v1245_v33 = vld [vmem:[%s3253_s1 + $0x518] sm:$0xff] }
 0x15a   : > { %v692_v6 = vmax.f32 %v557_v63, %v691_v0  ;;  %v1062_v63 = vmax.f32 %v1058_v44, %v1061_v51  ;;  %v1064_v0 = vmax.f32 %v1060_v45, %v1063_v52  ;;  %v1075_v44 = vsel %vm826_vm0, %v565_v31, -inf  ;;  %v1253_v51 = vld [vmem:[%s3253_s1 + $0x558] sm:$0xff] }
 0x15b   : > { %v1761_v45 = vpack.c.bf16 %v1247_v32, %v1243_v29  ;;  %v1257_v52 = vld [vmem:[%s3253_s1 + $0x578] sm:$0xff] }
 0x15c   : > { %v693_v10 = vmax.f32 %v560_v3, %v692_v6  ;;  %v1230_v3 = vld [vmem:[%s3253_s1 + $0x4a0] sm:$0xff]  ;;  %v1065_v6 = vsel %vm826_vm0, %v550_v57, -inf  ;;  %v1068_v19 = vmax.f32 %v1064_v0, %v1067_v7  ;;  %v1256_v0 = vld [vmem:[%s3253_s1 + $0x570] sm:$0xff] }
 0x15d   : > { %v1755_v20 = vpack.c.bf16 %v1230_v3, %v1226_v62  ;;  %v1250_v57 = vld [vmem:[%s3253_s1 + $0x540] sm:$0xff] }
 0x15e   : > { %v694_v18 = vmax.f32 %v563_v9, %v693_v10  ;;  %v1841_v9 = vpack.c.bf16 %v1233_v61, %v1229_v60  ;;  %v1235_v10 = vld [vmem:[%s3253_s1 + $0x4c8] sm:$0xff]  ;;  %v1072_v37 = vmax.f32 %v1068_v19, %v1071_v26  ;;  %v1853_v61 = vpack.c.bf16 %v1257_v52, %v1253_v51  ;;  %v1254_v62 = vld [vmem:[%s3253_s1 + $0x560] sm:$0xff] }
 0x15f   : > { %v1757_v27 = vpack.c.bf16 %v1239_v13, %v1235_v10  ;;  %v1767_v3 = vpack.c.bf16 %v1254_v62, %v1250_v57 }
 0x160   : > { %v695_v24 = vmax.f32 %v566_v15, %v694_v18  ;;  %v1241_v15 = vld [vmem:[%s3253_s1 + $0x4f8] sm:$0xff]  ;;  %v1066_v18 = vmax.f32 %v1062_v63, %v1065_v6  ;;  %v1252_v63 = vld [vmem:[%s3253_s1 + $0x550] sm:$0xff] }
 0x161   : > { %v1845_v28 = vpack.c.bf16 %v1241_v15, %v1237_v14  ;;  %v1855_v4 = vpack.c.bf16 %v1256_v0, %v1252_v63 }
 0x162   : > { %v696_v34 = vmax.f32 %v569_v23, %v695_v24  ;;  %v1236_v23 = vld [vmem:[%s3253_s1 + $0x4d0] sm:$0xff] }
 0x163   : > { %v1240_v24 = vld [vmem:[%s3253_s1 + $0x4f0] sm:$0xff] }
 0x164   : > { %v697_v42 = vmax.f32 %v572_v25, %v696_v34  ;;  %v1069_v25 = vsel %vm826_vm0, %v556_v11, -inf  ;;  %v1249_v34 = vld [vmem:[%s3253_s1 + $0x538] sm:$0xff]  ;;  %v1847_v39 = vpack.c.bf16 %v1240_v24, %v1236_v23 }
 0x165   : > { %v1070_v36 = vmax.f32 %v1066_v18, %v1069_v25 }
 0x166   : > { %v698_v53 = vmax.f32 %v573_v35, %v697_v42  ;;  %v1242_v35 = vld [vmem:[%s3253_s1 + $0x500] sm:$0xff]  ;;  %v1248_v42 = vld [vmem:[%s3253_s1 + $0x530] sm:$0xff] }
 0x167   : > { %v1851_v56 = vpack.c.bf16 %v1248_v42, %v1244_v41 }
 0x168   : > { %1326 = vmatmul.mubr.f32.vlgmr.msra.gmra.mrb[0].mxu0 %v698_v53  ;;  %1468 = vmatmul.mubr.f32.vlgmr.msra.gmra.mrb[0].mxu1 %v698_v53  ;;  %v1074_v53 = vmax.f32 %v1070_v36, %v1073_v43 }
 0x169   : > { %1748 = vmatpush1.bf16.msra.mxu0 %v1747_v46  ;;  %1836 = vmatpush1.bf16.msra.mxu1 %v1835_v47  ;;  %v1849_v46 = vpack.c.bf16 %v1249_v34, %v1245_v33  ;;  %v1251_v47 = vld [vmem:[%s3253_s1 + $0x548] sm:$0xff] }
 0x16a   : > { %1750 = vmatprep.subr.bf16.mxu0 %v1749_v54  ;;  %1838 = vmatprep.subr.bf16.mxu1 %v1837_v55  ;;  %v1076_v54 = vmax.f32 %v1072_v37, %v1075_v44  ;;  %v1763_v55 = vpack.c.bf16 %v1246_v40, %v1242_v35  ;;  %v1765_v60 = vpack.c.bf16 %v1255_v50, %v1251_v47 }
 0x16b   : > { %1396 = vmatprep.mubr.f32.mxu0 %v2046_v16  ;;  %1538 = vmatprep.mubr.f32.mxu1 %v2046_v16 }
 0x16d   : > { %1752 = vmatpush1.bf16.msra.mxu0 %v1751_v1  ;;  %1840 = vmatpush1.bf16.msra.mxu1 %v1839_v2  ;;  %v1078_v1 = vmax.f32 %v1074_v53, %v1077_v58  ;;  %v1080_v2 = vmax.f32 %v1076_v54, %v1079_v59 }
 0x16e   : > { %1754 = vmatprep.subr.bf16.mxu0 %v1753_v8  ;;  %1842 = vmatprep.subr.bf16.mxu1 %v1841_v9 }
 0x16f   : > { %v1081_v5 = vmax.f32 %v1078_v1, %v1080_v2 }
 0x171   : > { %1756 = vmatpush1.bf16.msra.mxu0 %v1755_v20  ;;  %1844 = vmatpush1.bf16.msra.mxu1 %v1843_v21 }
 0x172   : > { %1758 = vmatprep.subr.bf16.mxu0 %v1757_v27  ;;  %1846 = vmatprep.subr.bf16.mxu1 %v1845_v28 }
 0x175   : > { %1760 = vmatpush1.bf16.msra.mxu0 %v1759_v38  ;;  %1848 = vmatpush1.bf16.msra.mxu1 %v1847_v39 }
 0x176   : > { %1762 = vmatprep.subr.bf16.mxu0 %v1761_v45  ;;  %1850 = vmatprep.subr.bf16.mxu1 %v1849_v46 }
 0x179   : > { %1764 = vmatpush1.bf16.msra.mxu0 %v1763_v55  ;;  %1852 = vmatpush1.bf16.msra.mxu1 %v1851_v56 }
 0x17a   : > { %1766 = vmatprep.subr.bf16.mxu0 %v1765_v60  ;;  %1854 = vmatprep.subr.bf16.mxu1 %v1853_v61 }
 0x17d   : > { %1768 = vmatpush1.bf16.msra.mxu0 %v1767_v3  ;;  %1856 = vmatpush1.bf16.msra.mxu1 %v1855_v4 }
 0x180   : > { %1677 = vmatmul.mubr.msk.f32.vlgmr.msra.gmra.mrb[0].mxu0 %vm826_vm0, %v1081_v5  ;;  %1678 = vmatmul.mubr.msk.f32.vlgmr.msra.gmra.mrb[0].mxu1 %vm826_vm0, %v1081_v5 }
 0x253   : > { %v1398_v6 = vpop.f32.mrb[0].mxu0  ;;  %v1540_v7 = vpop.f32.mrb[0].mxu1 }
 0x254   : > { %1558 = vrot.lane.b32.xlu1 %v1540_v7, %s2047_s6  ;;  %v1542_v8 = vpop.f32.mrb[1].mxu1  ;;  %1547 = vrot.lane.b32.xlu0 %v1398_v6, %s2048_s7  ;;  %v1400_v9 = vpop.f32.mrb[1].mxu0 }
 0x258   : > { %1556 = vrot.lane.b32.xlu1 %v1400_v9, %s2047_s6  ;;  %1549 = vrot.lane.b32.xlu0 %v1400_v9, %s2048_s7 }
 0x25c   : > { %1567 = vrot.lane.b32.xlu1 %v1542_v8, %s2049_s8  ;;  %1565 = vrot.lane.b32.xlu0 %v1540_v7, %s2049_s8 }
 0x2c6   : > { %v1559_v10 = vpop.permute.xlu1 %1558  ;;  %v1548_v11 = vpop.permute.xlu0 %1547 }
 0x2ca   : > { %v1557_v12 = vpop.permute.xlu1 %1556  ;;  %v1550_v13 = vpop.permute.xlu0 %1549 }
 0x2cb   : > { %v1552_v14 = vsel %vm1551_vm1, %v1548_v11, %v1550_v13  ;;  %v1561_v16 = vsel %vm1560_vm2, %v1557_v12, %v1559_v10 }
 0x2cc   : > { %v1554_v15 = vmax.f32 %v1398_v6, %v1552_v14 }
 0x2ce   : > { %v1568_v17 = vpop.permute.xlu1 %1567  ;;  %v1563_v18 = vmax.f32 %v1554_v15, %v1561_v16  ;;  %v1566_v19 = vpop.permute.xlu0 %1565 }
 0x2cf   : > { %v1570_v20 = vsel %vm1569_vm3, %v1566_v19, %v1568_v17 }
 0x2d0   : > { %v1572_v21 = vmax.f32 %v1563_v18, %v1570_v20 }
 0x2d2   : > { %1574 = vst.msk [vmem:[%s187_s13] sm:$0xff] %vm1573_vm4, %v1572_v21 }
 0x2d3 PF: > { %s15_s16 = sadd.s32 1, %s2040_s16   ;;  %s3257_s9 = smov %s2016_s10 }
 0x2d4   : > { %p12_p5 = scmp.ge.s32.totalorder %s15_s16, 17   ;;  %s3258_s10 = smov %s2020_s11 }
 0x2d5   : > { %s3259_s11 = smov %s2131_s28  ;;  %s3260_s12 = smov %s2032_s14 }
 0x2d6   : > { %s3261_s13 = smov %s2036_s15  ;;  %s3262_s14 = smov %s3265_s18 }
 0x2d7   : > { %s3263_s15 = smov %s3269_s19  ;;  %14 = sbr.rel (!%p12_p5) target bundleno = 5 (0x5), region = 68 }
 0x2de   :  { %1602 = vsyncpa [#allocation3], 1 }
 0x2df   :  { %1604 = vsyncpa [#allocation3 + $0x1], 1 }

// kernel: resnet_forward.4
= control target key start
LH: loop header
LB: loop body
LE: loop exit
PB: predicated region body
PF: predicated region fallthrough
CT: control target
= control target key end

     0   :  { %s2833_s9 = smov 0   ;;  %s2835_s10 = smov 0   ;;  %s4740_s0 = inlined_call_operand.vmem [shape: f32[3,128,40,352], index: 0, kind: input, shape index: {}]   ;;  %s4741_s1 = inlined_call_operand.vmem [shape: f32[352,400], index: 1, kind: input, shape index: {}]   ;;  %s4742_s2 = inlined_call_operand.vmem [shape: f32[3,40,25], index: 2, kind: output, shape index: {}]  }
   0x1   :  { %s2837_s11 = smov 0   ;;  %s2839_s12 = smov 0  }
   0x2   :  { %s2841_s13 = smov 0   ;;  %s2843_s14 = smov 0  }
   0x3   :  { %s2845_s15 = smov 0  }
   0x4 LB: > { %s21_s16 = sadd.s32 1, %s2792_s13  ;;  %s24_s17 = sadd.s32 1, %s2796_s14  ;;  %s2800_s15 = sphi %s2845_s15, %s12_s15   ;;  %s2796_s14 = sphi %s2843_s14, %s4748_s14   ;;  %s2792_s13 = sphi %s2841_s13, %s4747_s13   ;;  %s2788_s12 = sphi %s2839_s12, %s4746_s12   ;;  %s2784_s11 = sphi %s2837_s11, %s4745_s11   ;;  %s2780_s10 = sphi %s2835_s10, %s4744_s10   ;;  %s2776_s9 = sphi %s2833_s9, %s4743_s9  }
   0x5   : > { %p22_p0 = scmp.ge.s32.totalorder %s21_s16, 5  ;;  %p40_p1 = scmp.ne.s32.totalorder %s2780_s10, %s2776_s9 }
   0x6   : > { %p41_p2 = scmp.eq.s32.totalorder %s2800_s15, 0  ;;  %s33_s21 = sadd.s32 1, %s2780_s10 }
   0x7   : > { %s4750_s16 = smov (%p22_p0, %s21_s16), 0  ;;  %s4752_s17 = smov (!%p22_p0, %s24_s17), %s2796_s14 }
   0x8   : > { %p42_p3 = por %p41_p2, %p40_p1  ;;  %p26_p4 = scmp.ge.s32.totalorder %s4752_s17, 3 }
   0x9   : > { %s29_s18 = ssub.s32 %s2792_s13, %s4750_s16  ;;  %p2481_p6 = scmp.ge.s32.totalorder %s2800_s15, 15 }
   0xa   : > { %s4754_s17 = smov (%p26_p4, %s4752_s17), 0 }
   0xb   : > { %s28_s19 = ssub.s32 %s2796_s14, %s4754_s17  ;;  %118 = sbr.rel (%p2481_p6) target bundleno = 219 (0xdb), region = 20 }
   0xc   : > { %s30_s20 = sor.u32 %s29_s18, %s28_s19 }
   0xd   : > { %p31_p5 = scmp.eq.s32.totalorder %s30_s20, 0 }
   0xf   : > { %s2884_s22 = scalar_select %p31_p5, %s2780_s10, %s33_s21  }
  0x12   : > { %121 = sbr.rel (!%p42_p3) target bundleno = 219 (0xdb), region = 24  ;;  %s123_s23 = sand.u32 (%p42_p3), 1, %s2780_s10  }
  0x13   : > { %s2670_s24 = smul.u32 (%p42_p3), 3, %s2792_s13 }
  0x14   : > { %s2669_s25 = smul.u32 (%p42_p3), 3072, %s123_s23 }
  0x15   : > { %s2671_s26 = smul.u32 (%p42_p3), 1920, %s2796_s14 }
  0x16   : > { %s2898_s4 = scalar_lea.vmem (%p42_p3), [#allocation2], %s2669_s25 }
  0x17   : > { %s128_s27 = sadd.s32 (%p42_p3), %s2671_s26, %s2670_s24 }
  0x18   : > { %s2482_s28 = sshll.u32 (%p42_p3), %s128_s27, 3 }
  0x19   : > { %s2893_s3 = scalar_lea.vmem %s4740_s0, %s2482_s28 }
  0x1a   : > { %v143_v0 = vld [vmem:[%s2893_s3] sm:$0xff]  ;;  %v145_v1 = vld [vmem:[%s2893_s3 + $0x8] sm:$0xff]  ;;  %v147_v2 = vld [vmem:[%s2893_s3 + $0x10] sm:$0xff] }
  0x1b   : > { %144 = vst [vmem:[%s2898_s4] sm:$0xff] %v143_v0  ;;  %146 = vst [vmem:[%s2898_s4 + $0x8] sm:$0xff] %v145_v1  ;;  %v149_v3 = vld [vmem:[%s2893_s3 + $0x78] sm:$0xff]  ;;  %v151_v4 = vld [vmem:[%s2893_s3 + $0x80] sm:$0xff] }
  0x1c   : > { %148 = vst [vmem:[%s2898_s4 + $0x10] sm:$0xff] %v147_v2  ;;  %v153_v5 = vld [vmem:[%s2893_s3 + $0x88] sm:$0xff]  ;;  %150 = vst [vmem:[%s2898_s4 + $0x18] sm:$0xff] %v149_v3  ;;  %v155_v6 = vld [vmem:[%s2893_s3 + $0xf0] sm:$0xff] }
  0x1d   : > { %152 = vst [vmem:[%s2898_s4 + $0x20] sm:$0xff] %v151_v4  ;;  %154 = vst [vmem:[%s2898_s4 + $0x28] sm:$0xff] %v153_v5  ;;  %v157_v7 = vld [vmem:[%s2893_s3 + $0xf8] sm:$0xff]  ;;  %v159_v8 = vld [vmem:[%s2893_s3 + $0x100] sm:$0xff] }
  0x1e   : > { %156 = vst [vmem:[%s2898_s4 + $0x30] sm:$0xff] %v155_v6  ;;  %158 = vst [vmem:[%s2898_s4 + $0x38] sm:$0xff] %v157_v7  ;;  %v161_v9 = vld [vmem:[%s2893_s3 + $0x168] sm:$0xff]  ;;  %v163_v10 = vld [vmem:[%s2893_s3 + $0x170] sm:$0xff] }
  0x1f   : > { %160 = vst [vmem:[%s2898_s4 + $0x40] sm:$0xff] %v159_v8  ;;  %v165_v11 = vld [vmem:[%s2893_s3 + $0x178] sm:$0xff]  ;;  %162 = vst [vmem:[%s2898_s4 + $0x48] sm:$0xff] %v161_v9  ;;  %v167_v12 = vld [vmem:[%s2893_s3 + $0x1e0] sm:$0xff] }
  0x20   : > { %164 = vst [vmem:[%s2898_s4 + $0x50] sm:$0xff] %v163_v10  ;;  %166 = vst [vmem:[%s2898_s4 + $0x58] sm:$0xff] %v165_v11  ;;  %v169_v13 = vld [vmem:[%s2893_s3 + $0x1e8] sm:$0xff]  ;;  %v171_v14 = vld [vmem:[%s2893_s3 + $0x1f0] sm:$0xff] }
  0x21   : > { %168 = vst [vmem:[%s2898_s4 + $0x60] sm:$0xff] %v167_v12  ;;  %170 = vst [vmem:[%s2898_s4 + $0x68] sm:$0xff] %v169_v13  ;;  %v173_v15 = vld [vmem:[%s2893_s3 + $0x258] sm:$0xff]  ;;  %v175_v16 = vld [vmem:[%s2893_s3 + $0x260] sm:$0xff] }
  0x22   : > { %172 = vst [vmem:[%s2898_s4 + $0x70] sm:$0xff] %v171_v14  ;;  %v177_v17 = vld [vmem:[%s2893_s3 + $0x268] sm:$0xff]  ;;  %174 = vst [vmem:[%s2898_s4 + $0x78] sm:$0xff] %v173_v15  ;;  %v179_v18 = vld [vmem:[%s2893_s3 + $0x2d0] sm:$0xff] }
  0x23   : > { %176 = vst [vmem:[%s2898_s4 + $0x80] sm:$0xff] %v175_v16  ;;  %178 = vst [vmem:[%s2898_s4 + $0x88] sm:$0xff] %v177_v17  ;;  %v181_v19 = vld [vmem:[%s2893_s3 + $0x2d8] sm:$0xff]  ;;  %v183_v20 = vld [vmem:[%s2893_s3 + $0x2e0] sm:$0xff] }
  0x24   : > { %180 = vst [vmem:[%s2898_s4 + $0x90] sm:$0xff] %v179_v18  ;;  %182 = vst [vmem:[%s2898_s4 + $0x98] sm:$0xff] %v181_v19  ;;  %v185_v21 = vld [vmem:[%s2893_s3 + $0x348] sm:$0xff]  ;;  %v187_v22 = vld [vmem:[%s2893_s3 + $0x350] sm:$0xff] }
  0x25   : > { %184 = vst [vmem:[%s2898_s4 + $0xa0] sm:$0xff] %v183_v20  ;;  %v189_v23 = vld [vmem:[%s2893_s3 + $0x358] sm:$0xff]  ;;  %186 = vst [vmem:[%s2898_s4 + $0xa8] sm:$0xff] %v185_v21  ;;  %v191_v24 = vld [vmem:[%s2893_s3 + $0x3c0] sm:$0xff] }
  0x26   : > { %188 = vst [vmem:[%s2898_s4 + $0xb0] sm:$0xff] %v187_v22  ;;  %190 = vst [vmem:[%s2898_s4 + $0xb8] sm:$0xff] %v189_v23  ;;  %v193_v25 = vld [vmem:[%s2893_s3 + $0x3c8] sm:$0xff]  ;;  %v195_v26 = vld [vmem:[%s2893_s3 + $0x3d0] sm:$0xff] }
  0x27   : > { %192 = vst [vmem:[%s2898_s4 + $0xc0] sm:$0xff] %v191_v24  ;;  %194 = vst [vmem:[%s2898_s4 + $0xc8] sm:$0xff] %v193_v25  ;;  %v197_v27 = vld [vmem:[%s2893_s3 + $0x438] sm:$0xff]  ;;  %v199_v28 = vld [vmem:[%s2893_s3 + $0x440] sm:$0xff] }
  0x28   : > { %196 = vst [vmem:[%s2898_s4 + $0xd0] sm:$0xff] %v195_v26  ;;  %v201_v29 = vld [vmem:[%s2893_s3 + $0x448] sm:$0xff]  ;;  %198 = vst [vmem:[%s2898_s4 + $0xd8] sm:$0xff] %v197_v27  ;;  %v203_v30 = vld [vmem:[%s2893_s3 + $0x4b0] sm:$0xff] }
  0x29   : > { %200 = vst [vmem:[%s2898_s4 + $0xe0] sm:$0xff] %v199_v28  ;;  %202 = vst [vmem:[%s2898_s4 + $0xe8] sm:$0xff] %v201_v29  ;;  %v205_v31 = vld [vmem:[%s2893_s3 + $0x4b8] sm:$0xff]  ;;  %v207_v32 = vld [vmem:[%s2893_s3 + $0x4c0] sm:$0xff] }
  0x2a   : > { %204 = vst [vmem:[%s2898_s4 + $0xf0] sm:$0xff] %v203_v30  ;;  %206 = vst [vmem:[%s2898_s4 + $0xf8] sm:$0xff] %v205_v31  ;;  %v209_v33 = vld [vmem:[%s2893_s3 + $0x528] sm:$0xff]  ;;  %v211_v34 = vld [vmem:[%s2893_s3 + $0x530] sm:$0xff] }
  0x2b   : > { %208 = vst [vmem:[%s2898_s4 + $0x100] sm:$0xff] %v207_v32  ;;  %v213_v35 = vld [vmem:[%s2893_s3 + $0x538] sm:$0xff]  ;;  %210 = vst [vmem:[%s2898_s4 + $0x108] sm:$0xff] %v209_v33  ;;  %v215_v36 = vld [vmem:[%s2893_s3 + $0x5a0] sm:$0xff] }
  0x2c   : > { %212 = vst [vmem:[%s2898_s4 + $0x110] sm:$0xff] %v211_v34  ;;  %214 = vst [vmem:[%s2898_s4 + $0x118] sm:$0xff] %v213_v35  ;;  %v217_v37 = vld [vmem:[%s2893_s3 + $0x5a8] sm:$0xff]  ;;  %v219_v38 = vld [vmem:[%s2893_s3 + $0x5b0] sm:$0xff] }
  0x2d   : > { %216 = vst [vmem:[%s2898_s4 + $0x120] sm:$0xff] %v215_v36  ;;  %218 = vst [vmem:[%s2898_s4 + $0x128] sm:$0xff] %v217_v37  ;;  %v221_v39 = vld [vmem:[%s2893_s3 + $0x618] sm:$0xff]  ;;  %v223_v40 = vld [vmem:[%s2893_s3 + $0x620] sm:$0xff] }
  0x2e   : > { %220 = vst [vmem:[%s2898_s4 + $0x130] sm:$0xff] %v219_v38  ;;  %v225_v41 = vld [vmem:[%s2893_s3 + $0x628] sm:$0xff]  ;;  %222 = vst [vmem:[%s2898_s4 + $0x138] sm:$0xff] %v221_v39  ;;  %v227_v42 = vld [vmem:[%s2893_s3 + $0x690] sm:$0xff] }
  0x2f   : > { %224 = vst [vmem:[%s2898_s4 + $0x140] sm:$0xff] %v223_v40  ;;  %226 = vst [vmem:[%s2898_s4 + $0x148] sm:$0xff] %v225_v41  ;;  %v229_v43 = vld [vmem:[%s2893_s3 + $0x698] sm:$0xff]  ;;  %v231_v44 = vld [vmem:[%s2893_s3 + $0x6a0] sm:$0xff] }
  0x30   : > { %228 = vst [vmem:[%s2898_s4 + $0x150] sm:$0xff] %v227_v42  ;;  %230 = vst [vmem:[%s2898_s4 + $0x158] sm:$0xff] %v229_v43  ;;  %v233_v45 = vld [vmem:[%s2893_s3 + $0x708] sm:$0xff]  ;;  %v235_v46 = vld [vmem:[%s2893_s3 + $0x710] sm:$0xff] }
  0x31   : > { %232 = vst [vmem:[%s2898_s4 + $0x160] sm:$0xff] %v231_v44  ;;  %v237_v47 = vld [vmem:[%s2893_s3 + $0x718] sm:$0xff]  ;;  %234 = vst [vmem:[%s2898_s4 + $0x168] sm:$0xff] %v233_v45  ;;  %v239_v48 = vld [vmem:[%s2893_s3 + $0x780] sm:$0xff] }
  0x32   : > { %236 = vst [vmem:[%s2898_s4 + $0x170] sm:$0xff] %v235_v46  ;;  %238 = vst [vmem:[%s2898_s4 + $0x178] sm:$0xff] %v237_v47  ;;  %v241_v49 = vld [vmem:[%s2893_s3 + $0x788] sm:$0xff]  ;;  %v243_v50 = vld [vmem:[%s2893_s3 + $0x790] sm:$0xff] }
  0x33   : > { %240 = vst [vmem:[%s2898_s4 + $0x180] sm:$0xff] %v239_v48  ;;  %242 = vst [vmem:[%s2898_s4 + $0x188] sm:$0xff] %v241_v49  ;;  %v245_v51 = vld [vmem:[%s2893_s3 + $0x7f8] sm:$0xff]  ;;  %v247_v52 = vld [vmem:[%s2893_s3 + $0x800] sm:$0xff] }
  0x34   : > { %244 = vst [vmem:[%s2898_s4 + $0x190] sm:$0xff] %v243_v50  ;;  %v249_v53 = vld [vmem:[%s2893_s3 + $0x808] sm:$0xff]  ;;  %246 = vst [vmem:[%s2898_s4 + $0x198] sm:$0xff] %v245_v51  ;;  %v251_v54 = vld [vmem:[%s2893_s3 + $0x870] sm:$0xff] }
  0x35   : > { %248 = vst [vmem:[%s2898_s4 + $0x1a0] sm:$0xff] %v247_v52  ;;  %250 = vst [vmem:[%s2898_s4 + $0x1a8] sm:$0xff] %v249_v53  ;;  %v253_v55 = vld [vmem:[%s2893_s3 + $0x878] sm:$0xff]  ;;  %v255_v56 = vld [vmem:[%s2893_s3 + $0x880] sm:$0xff] }
  0x36   : > { %252 = vst [vmem:[%s2898_s4 + $0x1b0] sm:$0xff] %v251_v54  ;;  %254 = vst [vmem:[%s2898_s4 + $0x1b8] sm:$0xff] %v253_v55  ;;  %v257_v57 = vld [vmem:[%s2893_s3 + $0x8e8] sm:$0xff]  ;;  %v259_v58 = vld [vmem:[%s2893_s3 + $0x8f0] sm:$0xff] }
  0x37   : > { %256 = vst [vmem:[%s2898_s4 + $0x1c0] sm:$0xff] %v255_v56  ;;  %v261_v59 = vld [vmem:[%s2893_s3 + $0x8f8] sm:$0xff]  ;;  %258 = vst [vmem:[%s2898_s4 + $0x1c8] sm:$0xff] %v257_v57  ;;  %v263_v60 = vld [vmem:[%s2893_s3 + $0x960] sm:$0xff] }
  0x38   : > { %260 = vst [vmem:[%s2898_s4 + $0x1d0] sm:$0xff] %v259_v58  ;;  %262 = vst [vmem:[%s2898_s4 + $0x1d8] sm:$0xff] %v261_v59  ;;  %v265_v61 = vld [vmem:[%s2893_s3 + $0x968] sm:$0xff]  ;;  %v267_v62 = vld [vmem:[%s2893_s3 + $0x970] sm:$0xff] }
  0x39   : > { %264 = vst [vmem:[%s2898_s4 + $0x1e0] sm:$0xff] %v263_v60  ;;  %266 = vst [vmem:[%s2898_s4 + $0x1e8] sm:$0xff] %v265_v61  ;;  %v269_v63 = vld [vmem:[%s2893_s3 + $0x9d8] sm:$0xff]  ;;  %v271_v0 = vld [vmem:[%s2893_s3 + $0x9e0] sm:$0xff] }
  0x3a   : > { %268 = vst [vmem:[%s2898_s4 + $0x1f0] sm:$0xff] %v267_v62  ;;  %v273_v1 = vld [vmem:[%s2893_s3 + $0x9e8] sm:$0xff]  ;;  %270 = vst [vmem:[%s2898_s4 + $0x1f8] sm:$0xff] %v269_v63  ;;  %v275_v2 = vld [vmem:[%s2893_s3 + $0xa50] sm:$0xff] }
  0x3b   : > { %272 = vst [vmem:[%s2898_s4 + $0x200] sm:$0xff] %v271_v0  ;;  %274 = vst [vmem:[%s2898_s4 + $0x208] sm:$0xff] %v273_v1  ;;  %v277_v3 = vld [vmem:[%s2893_s3 + $0xa58] sm:$0xff]  ;;  %v279_v4 = vld [vmem:[%s2893_s3 + $0xa60] sm:$0xff] }
  0x3c   : > { %276 = vst [vmem:[%s2898_s4 + $0x210] sm:$0xff] %v275_v2  ;;  %278 = vst [vmem:[%s2898_s4 + $0x218] sm:$0xff] %v277_v3  ;;  %v281_v5 = vld [vmem:[%s2893_s3 + $0xac8] sm:$0xff]  ;;  %v283_v6 = vld [vmem:[%s2893_s3 + $0xad0] sm:$0xff] }
  0x3d   : > { %280 = vst [vmem:[%s2898_s4 + $0x220] sm:$0xff] %v279_v4  ;;  %v285_v7 = vld [vmem:[%s2893_s3 + $0xad8] sm:$0xff]  ;;  %282 = vst [vmem:[%s2898_s4 + $0x228] sm:$0xff] %v281_v5  ;;  %v287_v8 = vld [vmem:[%s2893_s3 + $0xb40] sm:$0xff] }
  0x3e   : > { %284 = vst [vmem:[%s2898_s4 + $0x230] sm:$0xff] %v283_v6  ;;  %286 = vst [vmem:[%s2898_s4 + $0x238] sm:$0xff] %v285_v7  ;;  %v289_v9 = vld [vmem:[%s2893_s3 + $0xb48] sm:$0xff]  ;;  %v291_v10 = vld [vmem:[%s2893_s3 + $0xb50] sm:$0xff] }
  0x3f   : > { %288 = vst [vmem:[%s2898_s4 + $0x240] sm:$0xff] %v287_v8  ;;  %290 = vst [vmem:[%s2898_s4 + $0x248] sm:$0xff] %v289_v9  ;;  %v293_v11 = vld [vmem:[%s2893_s3 + $0xbb8] sm:$0xff]  ;;  %v295_v12 = vld [vmem:[%s2893_s3 + $0xbc0] sm:$0xff] }
  0x40   : > { %292 = vst [vmem:[%s2898_s4 + $0x250] sm:$0xff] %v291_v10  ;;  %v297_v13 = vld [vmem:[%s2893_s3 + $0xbc8] sm:$0xff]  ;;  %294 = vst [vmem:[%s2898_s4 + $0x258] sm:$0xff] %v293_v11  ;;  %v299_v14 = vld [vmem:[%s2893_s3 + $0xc30] sm:$0xff] }
  0x41   : > { %296 = vst [vmem:[%s2898_s4 + $0x260] sm:$0xff] %v295_v12  ;;  %298 = vst [vmem:[%s2898_s4 + $0x268] sm:$0xff] %v297_v13  ;;  %v301_v15 = vld [vmem:[%s2893_s3 + $0xc38] sm:$0xff]  ;;  %v303_v16 = vld [vmem:[%s2893_s3 + $0xc40] sm:$0xff] }
  0x42   : > { %300 = vst [vmem:[%s2898_s4 + $0x270] sm:$0xff] %v299_v14  ;;  %302 = vst [vmem:[%s2898_s4 + $0x278] sm:$0xff] %v301_v15  ;;  %v305_v17 = vld [vmem:[%s2893_s3 + $0xca8] sm:$0xff]  ;;  %v307_v18 = vld [vmem:[%s2893_s3 + $0xcb0] sm:$0xff] }
  0x43   : > { %304 = vst [vmem:[%s2898_s4 + $0x280] sm:$0xff] %v303_v16  ;;  %v309_v19 = vld [vmem:[%s2893_s3 + $0xcb8] sm:$0xff]  ;;  %306 = vst [vmem:[%s2898_s4 + $0x288] sm:$0xff] %v305_v17  ;;  %v311_v20 = vld [vmem:[%s2893_s3 + $0xd20] sm:$0xff] }
  0x44   : > { %308 = vst [vmem:[%s2898_s4 + $0x290] sm:$0xff] %v307_v18  ;;  %310 = vst [vmem:[%s2898_s4 + $0x298] sm:$0xff] %v309_v19  ;;  %v313_v21 = vld [vmem:[%s2893_s3 + $0xd28] sm:$0xff]  ;;  %v315_v22 = vld [vmem:[%s2893_s3 + $0xd30] sm:$0xff] }
  0x45   : > { %312 = vst [vmem:[%s2898_s4 + $0x2a0] sm:$0xff] %v311_v20  ;;  %314 = vst [vmem:[%s2898_s4 + $0x2a8] sm:$0xff] %v313_v21  ;;  %v317_v23 = vld [vmem:[%s2893_s3 + $0xd98] sm:$0xff]  ;;  %v319_v24 = vld [vmem:[%s2893_s3 + $0xda0] sm:$0xff] }
  0x46   : > { %316 = vst [vmem:[%s2898_s4 + $0x2b0] sm:$0xff] %v315_v22  ;;  %v321_v25 = vld [vmem:[%s2893_s3 + $0xda8] sm:$0xff]  ;;  %318 = vst [vmem:[%s2898_s4 + $0x2b8] sm:$0xff] %v317_v23  ;;  %v323_v26 = vld [vmem:[%s2893_s3 + $0xe10] sm:$0xff] }
  0x47   : > { %320 = vst [vmem:[%s2898_s4 + $0x2c0] sm:$0xff] %v319_v24  ;;  %322 = vst [vmem:[%s2898_s4 + $0x2c8] sm:$0xff] %v321_v25  ;;  %v325_v27 = vld [vmem:[%s2893_s3 + $0xe18] sm:$0xff]  ;;  %v327_v28 = vld [vmem:[%s2893_s3 + $0xe20] sm:$0xff] }
  0x48   : > { %324 = vst [vmem:[%s2898_s4 + $0x2d0] sm:$0xff] %v323_v26  ;;  %326 = vst [vmem:[%s2898_s4 + $0x2d8] sm:$0xff] %v325_v27  ;;  %v329_v29 = vld [vmem:[%s2893_s3 + $0xe88] sm:$0xff]  ;;  %v331_v30 = vld [vmem:[%s2893_s3 + $0xe90] sm:$0xff] }
  0x49   : > { %328 = vst [vmem:[%s2898_s4 + $0x2e0] sm:$0xff] %v327_v28  ;;  %v333_v31 = vld [vmem:[%s2893_s3 + $0xe98] sm:$0xff]  ;;  %330 = vst [vmem:[%s2898_s4 + $0x2e8] sm:$0xff] %v329_v29  ;;  %v335_v32 = vld [vmem:[%s2893_s3 + $0xf00] sm:$0xff] }
  0x4a   : > { %332 = vst [vmem:[%s2898_s4 + $0x2f0] sm:$0xff] %v331_v30  ;;  %334 = vst [vmem:[%s2898_s4 + $0x2f8] sm:$0xff] %v333_v31  ;;  %v337_v33 = vld [vmem:[%s2893_s3 + $0xf08] sm:$0xff]  ;;  %v339_v34 = vld [vmem:[%s2893_s3 + $0xf10] sm:$0xff] }
  0x4b   : > { %336 = vst [vmem:[%s2898_s4 + $0x300] sm:$0xff] %v335_v32  ;;  %338 = vst [vmem:[%s2898_s4 + $0x308] sm:$0xff] %v337_v33  ;;  %v341_v35 = vld [vmem:[%s2893_s3 + $0xf78] sm:$0xff]  ;;  %v343_v36 = vld [vmem:[%s2893_s3 + $0xf80] sm:$0xff] }
  0x4c   : > { %340 = vst [vmem:[%s2898_s4 + $0x310] sm:$0xff] %v339_v34  ;;  %v345_v37 = vld [vmem:[%s2893_s3 + $0xf88] sm:$0xff]  ;;  %342 = vst [vmem:[%s2898_s4 + $0x318] sm:$0xff] %v341_v35  ;;  %v347_v38 = vld [vmem:[%s2893_s3 + $0xff0] sm:$0xff] }
  0x4d   : > { %344 = vst [vmem:[%s2898_s4 + $0x320] sm:$0xff] %v343_v36  ;;  %346 = vst [vmem:[%s2898_s4 + $0x328] sm:$0xff] %v345_v37  ;;  %v349_v39 = vld [vmem:[%s2893_s3 + $0xff8] sm:$0xff]  ;;  %v351_v40 = vld [vmem:[%s2893_s3 + $0x1000] sm:$0xff] }
  0x4e   : > { %348 = vst [vmem:[%s2898_s4 + $0x330] sm:$0xff] %v347_v38  ;;  %350 = vst [vmem:[%s2898_s4 + $0x338] sm:$0xff] %v349_v39  ;;  %v353_v41 = vld [vmem:[%s2893_s3 + $0x1068] sm:$0xff]  ;;  %v355_v42 = vld [vmem:[%s2893_s3 + $0x1070] sm:$0xff] }
  0x4f   : > { %352 = vst [vmem:[%s2898_s4 + $0x340] sm:$0xff] %v351_v40  ;;  %v357_v43 = vld [vmem:[%s2893_s3 + $0x1078] sm:$0xff]  ;;  %354 = vst [vmem:[%s2898_s4 + $0x348] sm:$0xff] %v353_v41  ;;  %v359_v44 = vld [vmem:[%s2893_s3 + $0x10e0] sm:$0xff] }
  0x50   : > { %356 = vst [vmem:[%s2898_s4 + $0x350] sm:$0xff] %v355_v42  ;;  %358 = vst [vmem:[%s2898_s4 + $0x358] sm:$0xff] %v357_v43  ;;  %v361_v45 = vld [vmem:[%s2893_s3 + $0x10e8] sm:$0xff]  ;;  %v363_v46 = vld [vmem:[%s2893_s3 + $0x10f0] sm:$0xff] }
  0x51   : > { %360 = vst [vmem:[%s2898_s4 + $0x360] sm:$0xff] %v359_v44  ;;  %362 = vst [vmem:[%s2898_s4 + $0x368] sm:$0xff] %v361_v45  ;;  %v365_v47 = vld [vmem:[%s2893_s3 + $0x1158] sm:$0xff]  ;;  %v367_v48 = vld [vmem:[%s2893_s3 + $0x1160] sm:$0xff] }
  0x52   : > { %364 = vst [vmem:[%s2898_s4 + $0x370] sm:$0xff] %v363_v46  ;;  %v369_v49 = vld [vmem:[%s2893_s3 + $0x1168] sm:$0xff]  ;;  %366 = vst [vmem:[%s2898_s4 + $0x378] sm:$0xff] %v365_v47  ;;  %v371_v50 = vld [vmem:[%s2893_s3 + $0x11d0] sm:$0xff] }
  0x53   : > { %368 = vst [vmem:[%s2898_s4 + $0x380] sm:$0xff] %v367_v48  ;;  %370 = vst [vmem:[%s2898_s4 + $0x388] sm:$0xff] %v369_v49  ;;  %v373_v51 = vld [vmem:[%s2893_s3 + $0x11d8] sm:$0xff]  ;;  %v375_v52 = vld [vmem:[%s2893_s3 + $0x11e0] sm:$0xff] }
  0x54   : > { %372 = vst [vmem:[%s2898_s4 + $0x390] sm:$0xff] %v371_v50  ;;  %374 = vst [vmem:[%s2898_s4 + $0x398] sm:$0xff] %v373_v51  ;;  %v377_v53 = vld [vmem:[%s2893_s3 + $0x1248] sm:$0xff]  ;;  %v379_v54 = vld [vmem:[%s2893_s3 + $0x1250] sm:$0xff] }
  0x55   : > { %376 = vst [vmem:[%s2898_s4 + $0x3a0] sm:$0xff] %v375_v52  ;;  %v381_v55 = vld [vmem:[%s2893_s3 + $0x1258] sm:$0xff]  ;;  %378 = vst [vmem:[%s2898_s4 + $0x3a8] sm:$0xff] %v377_v53  ;;  %v383_v56 = vld [vmem:[%s2893_s3 + $0x12c0] sm:$0xff] }
  0x56   : > { %380 = vst [vmem:[%s2898_s4 + $0x3b0] sm:$0xff] %v379_v54  ;;  %382 = vst [vmem:[%s2898_s4 + $0x3b8] sm:$0xff] %v381_v55  ;;  %v385_v57 = vld [vmem:[%s2893_s3 + $0x12c8] sm:$0xff]  ;;  %v387_v58 = vld [vmem:[%s2893_s3 + $0x12d0] sm:$0xff] }
  0x57   : > { %384 = vst [vmem:[%s2898_s4 + $0x3c0] sm:$0xff] %v383_v56  ;;  %386 = vst [vmem:[%s2898_s4 + $0x3c8] sm:$0xff] %v385_v57  ;;  %v389_v59 = vld [vmem:[%s2893_s3 + $0x1338] sm:$0xff]  ;;  %v391_v60 = vld [vmem:[%s2893_s3 + $0x1340] sm:$0xff] }
  0x58   : > { %388 = vst [vmem:[%s2898_s4 + $0x3d0] sm:$0xff] %v387_v58  ;;  %v393_v61 = vld [vmem:[%s2893_s3 + $0x1348] sm:$0xff]  ;;  %390 = vst [vmem:[%s2898_s4 + $0x3d8] sm:$0xff] %v389_v59  ;;  %v395_v62 = vld [vmem:[%s2893_s3 + $0x13b0] sm:$0xff] }
  0x59   : > { %392 = vst [vmem:[%s2898_s4 + $0x3e0] sm:$0xff] %v391_v60  ;;  %394 = vst [vmem:[%s2898_s4 + $0x3e8] sm:$0xff] %v393_v61  ;;  %v397_v63 = vld [vmem:[%s2893_s3 + $0x13b8] sm:$0xff]  ;;  %v399_v0 = vld [vmem:[%s2893_s3 + $0x13c0] sm:$0xff] }
  0x5a   : > { %396 = vst [vmem:[%s2898_s4 + $0x3f0] sm:$0xff] %v395_v62  ;;  %398 = vst [vmem:[%s2898_s4 + $0x3f8] sm:$0xff] %v397_v63  ;;  %v401_v1 = vld [vmem:[%s2893_s3 + $0x1428] sm:$0xff]  ;;  %v403_v2 = vld [vmem:[%s2893_s3 + $0x1430] sm:$0xff] }
  0x5b   : > { %400 = vst [vmem:[%s2898_s4 + $0x400] sm:$0xff] %v399_v0  ;;  %v405_v3 = vld [vmem:[%s2893_s3 + $0x1438] sm:$0xff]  ;;  %402 = vst [vmem:[%s2898_s4 + $0x408] sm:$0xff] %v401_v1  ;;  %v407_v4 = vld [vmem:[%s2893_s3 + $0x14a0] sm:$0xff] }
  0x5c   : > { %404 = vst [vmem:[%s2898_s4 + $0x410] sm:$0xff] %v403_v2  ;;  %406 = vst [vmem:[%s2898_s4 + $0x418] sm:$0xff] %v405_v3  ;;  %v409_v5 = vld [vmem:[%s2893_s3 + $0x14a8] sm:$0xff]  ;;  %v411_v6 = vld [vmem:[%s2893_s3 + $0x14b0] sm:$0xff] }
  0x5d   : > { %408 = vst [vmem:[%s2898_s4 + $0x420] sm:$0xff] %v407_v4  ;;  %410 = vst [vmem:[%s2898_s4 + $0x428] sm:$0xff] %v409_v5  ;;  %v413_v7 = vld [vmem:[%s2893_s3 + $0x1518] sm:$0xff]  ;;  %v415_v8 = vld [vmem:[%s2893_s3 + $0x1520] sm:$0xff] }
  0x5e   : > { %412 = vst [vmem:[%s2898_s4 + $0x430] sm:$0xff] %v411_v6  ;;  %v417_v9 = vld [vmem:[%s2893_s3 + $0x1528] sm:$0xff]  ;;  %414 = vst [vmem:[%s2898_s4 + $0x438] sm:$0xff] %v413_v7  ;;  %v419_v10 = vld [vmem:[%s2893_s3 + $0x1590] sm:$0xff] }
  0x5f   : > { %416 = vst [vmem:[%s2898_s4 + $0x440] sm:$0xff] %v415_v8  ;;  %418 = vst [vmem:[%s2898_s4 + $0x448] sm:$0xff] %v417_v9  ;;  %v421_v11 = vld [vmem:[%s2893_s3 + $0x1598] sm:$0xff]  ;;  %v423_v12 = vld [vmem:[%s2893_s3 + $0x15a0] sm:$0xff] }
  0x60   : > { %420 = vst [vmem:[%s2898_s4 + $0x450] sm:$0xff] %v419_v10  ;;  %422 = vst [vmem:[%s2898_s4 + $0x458] sm:$0xff] %v421_v11  ;;  %v425_v13 = vld [vmem:[%s2893_s3 + $0x1608] sm:$0xff]  ;;  %v427_v14 = vld [vmem:[%s2893_s3 + $0x1610] sm:$0xff] }
  0x61   : > { %424 = vst [vmem:[%s2898_s4 + $0x460] sm:$0xff] %v423_v12  ;;  %v429_v15 = vld [vmem:[%s2893_s3 + $0x1618] sm:$0xff]  ;;  %426 = vst [vmem:[%s2898_s4 + $0x468] sm:$0xff] %v425_v13  ;;  %v431_v16 = vld [vmem:[%s2893_s3 + $0x1680] sm:$0xff] }
  0x62   : > { %428 = vst [vmem:[%s2898_s4 + $0x470] sm:$0xff] %v427_v14  ;;  %430 = vst [vmem:[%s2898_s4 + $0x478] sm:$0xff] %v429_v15  ;;  %v433_v17 = vld [vmem:[%s2893_s3 + $0x1688] sm:$0xff]  ;;  %v435_v18 = vld [vmem:[%s2893_s3 + $0x1690] sm:$0xff] }
  0x63   : > { %432 = vst [vmem:[%s2898_s4 + $0x480] sm:$0xff] %v431_v16  ;;  %434 = vst [vmem:[%s2898_s4 + $0x488] sm:$0xff] %v433_v17  ;;  %v437_v19 = vld [vmem:[%s2893_s3 + $0x16f8] sm:$0xff]  ;;  %v439_v20 = vld [vmem:[%s2893_s3 + $0x1700] sm:$0xff] }
  0x64   : > { %436 = vst [vmem:[%s2898_s4 + $0x490] sm:$0xff] %v435_v18  ;;  %v441_v21 = vld [vmem:[%s2893_s3 + $0x1708] sm:$0xff]  ;;  %438 = vst [vmem:[%s2898_s4 + $0x498] sm:$0xff] %v437_v19  ;;  %v443_v22 = vld [vmem:[%s2893_s3 + $0x1770] sm:$0xff] }
  0x65   : > { %440 = vst [vmem:[%s2898_s4 + $0x4a0] sm:$0xff] %v439_v20  ;;  %442 = vst [vmem:[%s2898_s4 + $0x4a8] sm:$0xff] %v441_v21  ;;  %v445_v23 = vld [vmem:[%s2893_s3 + $0x1778] sm:$0xff]  ;;  %v447_v24 = vld [vmem:[%s2893_s3 + $0x1780] sm:$0xff] }
  0x66   : > { %444 = vst [vmem:[%s2898_s4 + $0x4b0] sm:$0xff] %v443_v22  ;;  %446 = vst [vmem:[%s2898_s4 + $0x4b8] sm:$0xff] %v445_v23  ;;  %v449_v25 = vld [vmem:[%s2893_s3 + $0x17e8] sm:$0xff]  ;;  %v451_v26 = vld [vmem:[%s2893_s3 + $0x17f0] sm:$0xff] }
  0x67   : > { %448 = vst [vmem:[%s2898_s4 + $0x4c0] sm:$0xff] %v447_v24  ;;  %v453_v27 = vld [vmem:[%s2893_s3 + $0x17f8] sm:$0xff]  ;;  %450 = vst [vmem:[%s2898_s4 + $0x4c8] sm:$0xff] %v449_v25  ;;  %v455_v28 = vld [vmem:[%s2893_s3 + $0x1860] sm:$0xff] }
  0x68   : > { %452 = vst [vmem:[%s2898_s4 + $0x4d0] sm:$0xff] %v451_v26  ;;  %454 = vst [vmem:[%s2898_s4 + $0x4d8] sm:$0xff] %v453_v27  ;;  %v457_v29 = vld [vmem:[%s2893_s3 + $0x1868] sm:$0xff]  ;;  %v459_v30 = vld [vmem:[%s2893_s3 + $0x1870] sm:$0xff] }
  0x69   : > { %456 = vst [vmem:[%s2898_s4 + $0x4e0] sm:$0xff] %v455_v28  ;;  %458 = vst [vmem:[%s2898_s4 + $0x4e8] sm:$0xff] %v457_v29  ;;  %v461_v31 = vld [vmem:[%s2893_s3 + $0x18d8] sm:$0xff]  ;;  %v463_v32 = vld [vmem:[%s2893_s3 + $0x18e0] sm:$0xff] }
  0x6a   : > { %460 = vst [vmem:[%s2898_s4 + $0x4f0] sm:$0xff] %v459_v30  ;;  %v465_v33 = vld [vmem:[%s2893_s3 + $0x18e8] sm:$0xff]  ;;  %462 = vst [vmem:[%s2898_s4 + $0x4f8] sm:$0xff] %v461_v31  ;;  %v467_v34 = vld [vmem:[%s2893_s3 + $0x1950] sm:$0xff] }
  0x6b   : > { %464 = vst [vmem:[%s2898_s4 + $0x500] sm:$0xff] %v463_v32  ;;  %466 = vst [vmem:[%s2898_s4 + $0x508] sm:$0xff] %v465_v33  ;;  %v469_v35 = vld [vmem:[%s2893_s3 + $0x1958] sm:$0xff]  ;;  %v471_v36 = vld [vmem:[%s2893_s3 + $0x1960] sm:$0xff] }
  0x6c   : > { %468 = vst [vmem:[%s2898_s4 + $0x510] sm:$0xff] %v467_v34  ;;  %470 = vst [vmem:[%s2898_s4 + $0x518] sm:$0xff] %v469_v35  ;;  %v473_v37 = vld [vmem:[%s2893_s3 + $0x19c8] sm:$0xff]  ;;  %v475_v38 = vld [vmem:[%s2893_s3 + $0x19d0] sm:$0xff] }
  0x6d   : > { %472 = vst [vmem:[%s2898_s4 + $0x520] sm:$0xff] %v471_v36  ;;  %v477_v39 = vld [vmem:[%s2893_s3 + $0x19d8] sm:$0xff]  ;;  %474 = vst [vmem:[%s2898_s4 + $0x528] sm:$0xff] %v473_v37  ;;  %v479_v40 = vld [vmem:[%s2893_s3 + $0x1a40] sm:$0xff] }
  0x6e   : > { %476 = vst [vmem:[%s2898_s4 + $0x530] sm:$0xff] %v475_v38  ;;  %478 = vst [vmem:[%s2898_s4 + $0x538] sm:$0xff] %v477_v39  ;;  %v481_v41 = vld [vmem:[%s2893_s3 + $0x1a48] sm:$0xff]  ;;  %v483_v42 = vld [vmem:[%s2893_s3 + $0x1a50] sm:$0xff] }
  0x6f   : > { %480 = vst [vmem:[%s2898_s4 + $0x540] sm:$0xff] %v479_v40  ;;  %482 = vst [vmem:[%s2898_s4 + $0x548] sm:$0xff] %v481_v41  ;;  %v485_v43 = vld [vmem:[%s2893_s3 + $0x1ab8] sm:$0xff]  ;;  %v487_v44 = vld [vmem:[%s2893_s3 + $0x1ac0] sm:$0xff] }
  0x70   : > { %484 = vst [vmem:[%s2898_s4 + $0x550] sm:$0xff] %v483_v42  ;;  %v489_v45 = vld [vmem:[%s2893_s3 + $0x1ac8] sm:$0xff]  ;;  %486 = vst [vmem:[%s2898_s4 + $0x558] sm:$0xff] %v485_v43  ;;  %v491_v46 = vld [vmem:[%s2893_s3 + $0x1b30] sm:$0xff] }
  0x71   : > { %488 = vst [vmem:[%s2898_s4 + $0x560] sm:$0xff] %v487_v44  ;;  %490 = vst [vmem:[%s2898_s4 + $0x568] sm:$0xff] %v489_v45  ;;  %v493_v47 = vld [vmem:[%s2893_s3 + $0x1b38] sm:$0xff]  ;;  %v495_v48 = vld [vmem:[%s2893_s3 + $0x1b40] sm:$0xff] }
  0x72   : > { %492 = vst [vmem:[%s2898_s4 + $0x570] sm:$0xff] %v491_v46  ;;  %494 = vst [vmem:[%s2898_s4 + $0x578] sm:$0xff] %v493_v47  ;;  %v497_v49 = vld [vmem:[%s2893_s3 + $0x1ba8] sm:$0xff]  ;;  %v499_v50 = vld [vmem:[%s2893_s3 + $0x1bb0] sm:$0xff] }
  0x73   : > { %496 = vst [vmem:[%s2898_s4 + $0x580] sm:$0xff] %v495_v48  ;;  %v501_v51 = vld [vmem:[%s2893_s3 + $0x1bb8] sm:$0xff]  ;;  %498 = vst [vmem:[%s2898_s4 + $0x588] sm:$0xff] %v497_v49  ;;  %v503_v52 = vld [vmem:[%s2893_s3 + $0x1c20] sm:$0xff] }
  0x74   : > { %500 = vst [vmem:[%s2898_s4 + $0x590] sm:$0xff] %v499_v50  ;;  %502 = vst [vmem:[%s2898_s4 + $0x598] sm:$0xff] %v501_v51  ;;  %v505_v53 = vld [vmem:[%s2893_s3 + $0x1c28] sm:$0xff]  ;;  %v507_v54 = vld [vmem:[%s2893_s3 + $0x1c30] sm:$0xff] }
  0x75   : > { %504 = vst [vmem:[%s2898_s4 + $0x5a0] sm:$0xff] %v503_v52  ;;  %506 = vst [vmem:[%s2898_s4 + $0x5a8] sm:$0xff] %v505_v53  ;;  %v509_v55 = vld [vmem:[%s2893_s3 + $0x1c98] sm:$0xff]  ;;  %v511_v56 = vld [vmem:[%s2893_s3 + $0x1ca0] sm:$0xff] }
  0x76   : > { %508 = vst [vmem:[%s2898_s4 + $0x5b0] sm:$0xff] %v507_v54  ;;  %v513_v57 = vld [vmem:[%s2893_s3 + $0x1ca8] sm:$0xff]  ;;  %510 = vst [vmem:[%s2898_s4 + $0x5b8] sm:$0xff] %v509_v55  ;;  %v515_v58 = vld [vmem:[%s2893_s3 + $0x1d10] sm:$0xff] }
  0x77   : > { %512 = vst [vmem:[%s2898_s4 + $0x5c0] sm:$0xff] %v511_v56  ;;  %514 = vst [vmem:[%s2898_s4 + $0x5c8] sm:$0xff] %v513_v57  ;;  %v517_v59 = vld [vmem:[%s2893_s3 + $0x1d18] sm:$0xff]  ;;  %v519_v60 = vld [vmem:[%s2893_s3 + $0x1d20] sm:$0xff] }
  0x78   : > { %516 = vst [vmem:[%s2898_s4 + $0x5d0] sm:$0xff] %v515_v58  ;;  %518 = vst [vmem:[%s2898_s4 + $0x5d8] sm:$0xff] %v517_v59  ;;  %v521_v61 = vld [vmem:[%s2893_s3 + $0x1d88] sm:$0xff]  ;;  %v523_v62 = vld [vmem:[%s2893_s3 + $0x1d90] sm:$0xff] }
  0x79   : > { %520 = vst [vmem:[%s2898_s4 + $0x5e0] sm:$0xff] %v519_v60  ;;  %v525_v63 = vld [vmem:[%s2893_s3 + $0x1d98] sm:$0xff]  ;;  %522 = vst [vmem:[%s2898_s4 + $0x5e8] sm:$0xff] %v521_v61  ;;  %v527_v0 = vld [vmem:[%s2893_s3 + $0x1e00] sm:$0xff] }
  0x7a   : > { %524 = vst [vmem:[%s2898_s4 + $0x5f0] sm:$0xff] %v523_v62  ;;  %526 = vst [vmem:[%s2898_s4 + $0x5f8] sm:$0xff] %v525_v63  ;;  %v529_v1 = vld [vmem:[%s2893_s3 + $0x1e08] sm:$0xff]  ;;  %v531_v2 = vld [vmem:[%s2893_s3 + $0x1e10] sm:$0xff] }
  0x7b   : > { %528 = vst [vmem:[%s2898_s4 + $0x600] sm:$0xff] %v527_v0  ;;  %530 = vst [vmem:[%s2898_s4 + $0x608] sm:$0xff] %v529_v1  ;;  %v533_v3 = vld [vmem:[%s2893_s3 + $0x1e78] sm:$0xff]  ;;  %v535_v4 = vld [vmem:[%s2893_s3 + $0x1e80] sm:$0xff] }
  0x7c   : > { %532 = vst [vmem:[%s2898_s4 + $0x610] sm:$0xff] %v531_v2  ;;  %v537_v5 = vld [vmem:[%s2893_s3 + $0x1e88] sm:$0xff]  ;;  %534 = vst [vmem:[%s2898_s4 + $0x618] sm:$0xff] %v533_v3  ;;  %v539_v6 = vld [vmem:[%s2893_s3 + $0x1ef0] sm:$0xff] }
  0x7d   : > { %536 = vst [vmem:[%s2898_s4 + $0x620] sm:$0xff] %v535_v4  ;;  %538 = vst [vmem:[%s2898_s4 + $0x628] sm:$0xff] %v537_v5  ;;  %v541_v7 = vld [vmem:[%s2893_s3 + $0x1ef8] sm:$0xff]  ;;  %v543_v8 = vld [vmem:[%s2893_s3 + $0x1f00] sm:$0xff] }
  0x7e   : > { %540 = vst [vmem:[%s2898_s4 + $0x630] sm:$0xff] %v539_v6  ;;  %542 = vst [vmem:[%s2898_s4 + $0x638] sm:$0xff] %v541_v7  ;;  %v545_v9 = vld [vmem:[%s2893_s3 + $0x1f68] sm:$0xff]  ;;  %v547_v10 = vld [vmem:[%s2893_s3 + $0x1f70] sm:$0xff] }
  0x7f   : > { %544 = vst [vmem:[%s2898_s4 + $0x640] sm:$0xff] %v543_v8  ;;  %v549_v11 = vld [vmem:[%s2893_s3 + $0x1f78] sm:$0xff]  ;;  %546 = vst [vmem:[%s2898_s4 + $0x648] sm:$0xff] %v545_v9  ;;  %v551_v12 = vld [vmem:[%s2893_s3 + $0x1fe0] sm:$0xff] }
  0x80   : > { %548 = vst [vmem:[%s2898_s4 + $0x650] sm:$0xff] %v547_v10  ;;  %550 = vst [vmem:[%s2898_s4 + $0x658] sm:$0xff] %v549_v11  ;;  %v553_v13 = vld [vmem:[%s2893_s3 + $0x1fe8] sm:$0xff]  ;;  %v555_v14 = vld [vmem:[%s2893_s3 + $0x1ff0] sm:$0xff] }
  0x81   : > { %552 = vst [vmem:[%s2898_s4 + $0x660] sm:$0xff] %v551_v12  ;;  %554 = vst [vmem:[%s2898_s4 + $0x668] sm:$0xff] %v553_v13  ;;  %v557_v15 = vld [vmem:[%s2893_s3 + $0x2058] sm:$0xff]  ;;  %v559_v16 = vld [vmem:[%s2893_s3 + $0x2060] sm:$0xff] }
  0x82   : > { %556 = vst [vmem:[%s2898_s4 + $0x670] sm:$0xff] %v555_v14  ;;  %v561_v17 = vld [vmem:[%s2893_s3 + $0x2068] sm:$0xff]  ;;  %558 = vst [vmem:[%s2898_s4 + $0x678] sm:$0xff] %v557_v15  ;;  %v563_v18 = vld [vmem:[%s2893_s3 + $0x20d0] sm:$0xff] }
  0x83   : > { %560 = vst [vmem:[%s2898_s4 + $0x680] sm:$0xff] %v559_v16  ;;  %562 = vst [vmem:[%s2898_s4 + $0x688] sm:$0xff] %v561_v17  ;;  %v565_v19 = vld [vmem:[%s2893_s3 + $0x20d8] sm:$0xff]  ;;  %v567_v20 = vld [vmem:[%s2893_s3 + $0x20e0] sm:$0xff] }
  0x84   : > { %564 = vst [vmem:[%s2898_s4 + $0x690] sm:$0xff] %v563_v18  ;;  %566 = vst [vmem:[%s2898_s4 + $0x698] sm:$0xff] %v565_v19  ;;  %v569_v21 = vld [vmem:[%s2893_s3 + $0x2148] sm:$0xff]  ;;  %v571_v22 = vld [vmem:[%s2893_s3 + $0x2150] sm:$0xff] }
  0x85   : > { %568 = vst [vmem:[%s2898_s4 + $0x6a0] sm:$0xff] %v567_v20  ;;  %v573_v23 = vld [vmem:[%s2893_s3 + $0x2158] sm:$0xff]  ;;  %570 = vst [vmem:[%s2898_s4 + $0x6a8] sm:$0xff] %v569_v21  ;;  %v575_v24 = vld [vmem:[%s2893_s3 + $0x21c0] sm:$0xff] }
  0x86   : > { %572 = vst [vmem:[%s2898_s4 + $0x6b0] sm:$0xff] %v571_v22  ;;  %574 = vst [vmem:[%s2898_s4 + $0x6b8] sm:$0xff] %v573_v23  ;;  %v577_v25 = vld [vmem:[%s2893_s3 + $0x21c8] sm:$0xff]  ;;  %v579_v26 = vld [vmem:[%s2893_s3 + $0x21d0] sm:$0xff] }
  0x87   : > { %576 = vst [vmem:[%s2898_s4 + $0x6c0] sm:$0xff] %v575_v24  ;;  %578 = vst [vmem:[%s2898_s4 + $0x6c8] sm:$0xff] %v577_v25  ;;  %v581_v27 = vld [vmem:[%s2893_s3 + $0x2238] sm:$0xff]  ;;  %v583_v28 = vld [vmem:[%s2893_s3 + $0x2240] sm:$0xff] }
  0x88   : > { %580 = vst [vmem:[%s2898_s4 + $0x6d0] sm:$0xff] %v579_v26  ;;  %v585_v29 = vld [vmem:[%s2893_s3 + $0x2248] sm:$0xff]  ;;  %582 = vst [vmem:[%s2898_s4 + $0x6d8] sm:$0xff] %v581_v27  ;;  %v587_v30 = vld [vmem:[%s2893_s3 + $0x22b0] sm:$0xff] }
  0x89   : > { %584 = vst [vmem:[%s2898_s4 + $0x6e0] sm:$0xff] %v583_v28  ;;  %586 = vst [vmem:[%s2898_s4 + $0x6e8] sm:$0xff] %v585_v29  ;;  %v589_v31 = vld [vmem:[%s2893_s3 + $0x22b8] sm:$0xff]  ;;  %v591_v32 = vld [vmem:[%s2893_s3 + $0x22c0] sm:$0xff] }
  0x8a   : > { %588 = vst [vmem:[%s2898_s4 + $0x6f0] sm:$0xff] %v587_v30  ;;  %590 = vst [vmem:[%s2898_s4 + $0x6f8] sm:$0xff] %v589_v31  ;;  %v593_v33 = vld [vmem:[%s2893_s3 + $0x2328] sm:$0xff]  ;;  %v595_v34 = vld [vmem:[%s2893_s3 + $0x2330] sm:$0xff] }
  0x8b   : > { %592 = vst [vmem:[%s2898_s4 + $0x700] sm:$0xff] %v591_v32  ;;  %v597_v35 = vld [vmem:[%s2893_s3 + $0x2338] sm:$0xff]  ;;  %594 = vst [vmem:[%s2898_s4 + $0x708] sm:$0xff] %v593_v33  ;;  %v599_v36 = vld [vmem:[%s2893_s3 + $0x23a0] sm:$0xff] }
  0x8c   : > { %596 = vst [vmem:[%s2898_s4 + $0x710] sm:$0xff] %v595_v34  ;;  %598 = vst [vmem:[%s2898_s4 + $0x718] sm:$0xff] %v597_v35  ;;  %v601_v37 = vld [vmem:[%s2893_s3 + $0x23a8] sm:$0xff]  ;;  %v603_v38 = vld [vmem:[%s2893_s3 + $0x23b0] sm:$0xff] }
  0x8d   : > { %600 = vst [vmem:[%s2898_s4 + $0x720] sm:$0xff] %v599_v36  ;;  %602 = vst [vmem:[%s2898_s4 + $0x728] sm:$0xff] %v601_v37  ;;  %v605_v39 = vld [vmem:[%s2893_s3 + $0x2418] sm:$0xff]  ;;  %v607_v40 = vld [vmem:[%s2893_s3 + $0x2420] sm:$0xff] }
  0x8e   : > { %604 = vst [vmem:[%s2898_s4 + $0x730] sm:$0xff] %v603_v38  ;;  %v609_v41 = vld [vmem:[%s2893_s3 + $0x2428] sm:$0xff]  ;;  %606 = vst [vmem:[%s2898_s4 + $0x738] sm:$0xff] %v605_v39  ;;  %v611_v42 = vld [vmem:[%s2893_s3 + $0x2490] sm:$0xff] }
  0x8f   : > { %608 = vst [vmem:[%s2898_s4 + $0x740] sm:$0xff] %v607_v40  ;;  %610 = vst [vmem:[%s2898_s4 + $0x748] sm:$0xff] %v609_v41  ;;  %v613_v43 = vld [vmem:[%s2893_s3 + $0x2498] sm:$0xff]  ;;  %v615_v44 = vld [vmem:[%s2893_s3 + $0x24a0] sm:$0xff] }
  0x90   : > { %612 = vst [vmem:[%s2898_s4 + $0x750] sm:$0xff] %v611_v42  ;;  %614 = vst [vmem:[%s2898_s4 + $0x758] sm:$0xff] %v613_v43  ;;  %v617_v45 = vld [vmem:[%s2893_s3 + $0x2508] sm:$0xff]  ;;  %v619_v46 = vld [vmem:[%s2893_s3 + $0x2510] sm:$0xff] }
  0x91   : > { %616 = vst [vmem:[%s2898_s4 + $0x760] sm:$0xff] %v615_v44  ;;  %v621_v47 = vld [vmem:[%s2893_s3 + $0x2518] sm:$0xff]  ;;  %618 = vst [vmem:[%s2898_s4 + $0x768] sm:$0xff] %v617_v45  ;;  %v623_v48 = vld [vmem:[%s2893_s3 + $0x2580] sm:$0xff] }
  0x92   : > { %620 = vst [vmem:[%s2898_s4 + $0x770] sm:$0xff] %v619_v46  ;;  %622 = vst [vmem:[%s2898_s4 + $0x778] sm:$0xff] %v621_v47  ;;  %v625_v49 = vld [vmem:[%s2893_s3 + $0x2588] sm:$0xff]  ;;  %v627_v50 = vld [vmem:[%s2893_s3 + $0x2590] sm:$0xff] }
  0x93   : > { %624 = vst [vmem:[%s2898_s4 + $0x780] sm:$0xff] %v623_v48  ;;  %626 = vst [vmem:[%s2898_s4 + $0x788] sm:$0xff] %v625_v49  ;;  %v629_v51 = vld [vmem:[%s2893_s3 + $0x25f8] sm:$0xff]  ;;  %v631_v52 = vld [vmem:[%s2893_s3 + $0x2600] sm:$0xff] }
  0x94   : > { %628 = vst [vmem:[%s2898_s4 + $0x790] sm:$0xff] %v627_v50  ;;  %v633_v53 = vld [vmem:[%s2893_s3 + $0x2608] sm:$0xff]  ;;  %630 = vst [vmem:[%s2898_s4 + $0x798] sm:$0xff] %v629_v51  ;;  %v635_v54 = vld [vmem:[%s2893_s3 + $0x2670] sm:$0xff] }
  0x95   : > { %632 = vst [vmem:[%s2898_s4 + $0x7a0] sm:$0xff] %v631_v52  ;;  %634 = vst [vmem:[%s2898_s4 + $0x7a8] sm:$0xff] %v633_v53  ;;  %v637_v55 = vld [vmem:[%s2893_s3 + $0x2678] sm:$0xff]  ;;  %v639_v56 = vld [vmem:[%s2893_s3 + $0x2680] sm:$0xff] }
  0x96   : > { %636 = vst [vmem:[%s2898_s4 + $0x7b0] sm:$0xff] %v635_v54  ;;  %638 = vst [vmem:[%s2898_s4 + $0x7b8] sm:$0xff] %v637_v55  ;;  %v641_v57 = vld [vmem:[%s2893_s3 + $0x26e8] sm:$0xff]  ;;  %v643_v58 = vld [vmem:[%s2893_s3 + $0x26f0] sm:$0xff] }
  0x97   : > { %640 = vst [vmem:[%s2898_s4 + $0x7c0] sm:$0xff] %v639_v56  ;;  %v645_v59 = vld [vmem:[%s2893_s3 + $0x26f8] sm:$0xff]  ;;  %642 = vst [vmem:[%s2898_s4 + $0x7c8] sm:$0xff] %v641_v57  ;;  %v647_v60 = vld [vmem:[%s2893_s3 + $0x2760] sm:$0xff] }
  0x98   : > { %644 = vst [vmem:[%s2898_s4 + $0x7d0] sm:$0xff] %v643_v58  ;;  %646 = vst [vmem:[%s2898_s4 + $0x7d8] sm:$0xff] %v645_v59  ;;  %v649_v61 = vld [vmem:[%s2893_s3 + $0x2768] sm:$0xff]  ;;  %v651_v62 = vld [vmem:[%s2893_s3 + $0x2770] sm:$0xff] }
  0x99   : > { %648 = vst [vmem:[%s2898_s4 + $0x7e0] sm:$0xff] %v647_v60  ;;  %650 = vst [vmem:[%s2898_s4 + $0x7e8] sm:$0xff] %v649_v61  ;;  %v653_v63 = vld [vmem:[%s2893_s3 + $0x27d8] sm:$0xff]  ;;  %v655_v0 = vld [vmem:[%s2893_s3 + $0x27e0] sm:$0xff] }
  0x9a   : > { %652 = vst [vmem:[%s2898_s4 + $0x7f0] sm:$0xff] %v651_v62  ;;  %v657_v1 = vld [vmem:[%s2893_s3 + $0x27e8] sm:$0xff]  ;;  %654 = vst [vmem:[%s2898_s4 + $0x7f8] sm:$0xff] %v653_v63  ;;  %v659_v2 = vld [vmem:[%s2893_s3 + $0x2850] sm:$0xff] }
  0x9b   : > { %656 = vst [vmem:[%s2898_s4 + $0x800] sm:$0xff] %v655_v0  ;;  %658 = vst [vmem:[%s2898_s4 + $0x808] sm:$0xff] %v657_v1  ;;  %v661_v3 = vld [vmem:[%s2893_s3 + $0x2858] sm:$0xff]  ;;  %v663_v4 = vld [vmem:[%s2893_s3 + $0x2860] sm:$0xff] }
  0x9c   : > { %660 = vst [vmem:[%s2898_s4 + $0x810] sm:$0xff] %v659_v2  ;;  %662 = vst [vmem:[%s2898_s4 + $0x818] sm:$0xff] %v661_v3  ;;  %v665_v5 = vld [vmem:[%s2893_s3 + $0x28c8] sm:$0xff]  ;;  %v667_v6 = vld [vmem:[%s2893_s3 + $0x28d0] sm:$0xff] }
  0x9d   : > { %664 = vst [vmem:[%s2898_s4 + $0x820] sm:$0xff] %v663_v4  ;;  %v669_v7 = vld [vmem:[%s2893_s3 + $0x28d8] sm:$0xff]  ;;  %666 = vst [vmem:[%s2898_s4 + $0x828] sm:$0xff] %v665_v5  ;;  %v671_v8 = vld [vmem:[%s2893_s3 + $0x2940] sm:$0xff] }
  0x9e   : > { %668 = vst [vmem:[%s2898_s4 + $0x830] sm:$0xff] %v667_v6  ;;  %670 = vst [vmem:[%s2898_s4 + $0x838] sm:$0xff] %v669_v7  ;;  %v673_v9 = vld [vmem:[%s2893_s3 + $0x2948] sm:$0xff]  ;;  %v675_v10 = vld [vmem:[%s2893_s3 + $0x2950] sm:$0xff] }
  0x9f   : > { %672 = vst [vmem:[%s2898_s4 + $0x840] sm:$0xff] %v671_v8  ;;  %674 = vst [vmem:[%s2898_s4 + $0x848] sm:$0xff] %v673_v9  ;;  %v677_v11 = vld [vmem:[%s2893_s3 + $0x29b8] sm:$0xff]  ;;  %v679_v12 = vld [vmem:[%s2893_s3 + $0x29c0] sm:$0xff] }
  0xa0   : > { %676 = vst [vmem:[%s2898_s4 + $0x850] sm:$0xff] %v675_v10  ;;  %v681_v13 = vld [vmem:[%s2893_s3 + $0x29c8] sm:$0xff]  ;;  %678 = vst [vmem:[%s2898_s4 + $0x858] sm:$0xff] %v677_v11  ;;  %v683_v14 = vld [vmem:[%s2893_s3 + $0x2a30] sm:$0xff] }
  0xa1   : > { %680 = vst [vmem:[%s2898_s4 + $0x860] sm:$0xff] %v679_v12  ;;  %682 = vst [vmem:[%s2898_s4 + $0x868] sm:$0xff] %v681_v13  ;;  %v685_v15 = vld [vmem:[%s2893_s3 + $0x2a38] sm:$0xff]  ;;  %v687_v16 = vld [vmem:[%s2893_s3 + $0x2a40] sm:$0xff] }
  0xa2   : > { %684 = vst [vmem:[%s2898_s4 + $0x870] sm:$0xff] %v683_v14  ;;  %686 = vst [vmem:[%s2898_s4 + $0x878] sm:$0xff] %v685_v15  ;;  %v689_v17 = vld [vmem:[%s2893_s3 + $0x2aa8] sm:$0xff]  ;;  %v691_v18 = vld [vmem:[%s2893_s3 + $0x2ab0] sm:$0xff] }
  0xa3   : > { %688 = vst [vmem:[%s2898_s4 + $0x880] sm:$0xff] %v687_v16  ;;  %v693_v19 = vld [vmem:[%s2893_s3 + $0x2ab8] sm:$0xff]  ;;  %690 = vst [vmem:[%s2898_s4 + $0x888] sm:$0xff] %v689_v17  ;;  %v695_v20 = vld [vmem:[%s2893_s3 + $0x2b20] sm:$0xff] }
  0xa4   : > { %692 = vst [vmem:[%s2898_s4 + $0x890] sm:$0xff] %v691_v18  ;;  %694 = vst [vmem:[%s2898_s4 + $0x898] sm:$0xff] %v693_v19  ;;  %v697_v21 = vld [vmem:[%s2893_s3 + $0x2b28] sm:$0xff]  ;;  %v699_v22 = vld [vmem:[%s2893_s3 + $0x2b30] sm:$0xff] }
  0xa5   : > { %696 = vst [vmem:[%s2898_s4 + $0x8a0] sm:$0xff] %v695_v20  ;;  %698 = vst [vmem:[%s2898_s4 + $0x8a8] sm:$0xff] %v697_v21  ;;  %v701_v23 = vld [vmem:[%s2893_s3 + $0x2b98] sm:$0xff]  ;;  %v703_v24 = vld [vmem:[%s2893_s3 + $0x2ba0] sm:$0xff] }
  0xa6   : > { %700 = vst [vmem:[%s2898_s4 + $0x8b0] sm:$0xff] %v699_v22  ;;  %v705_v25 = vld [vmem:[%s2893_s3 + $0x2ba8] sm:$0xff]  ;;  %702 = vst [vmem:[%s2898_s4 + $0x8b8] sm:$0xff] %v701_v23  ;;  %v707_v26 = vld [vmem:[%s2893_s3 + $0x2c10] sm:$0xff] }
  0xa7   : > { %704 = vst [vmem:[%s2898_s4 + $0x8c0] sm:$0xff] %v703_v24  ;;  %706 = vst [vmem:[%s2898_s4 + $0x8c8] sm:$0xff] %v705_v25  ;;  %v709_v27 = vld [vmem:[%s2893_s3 + $0x2c18] sm:$0xff]  ;;  %v711_v28 = vld [vmem:[%s2893_s3 + $0x2c20] sm:$0xff] }
  0xa8   : > { %708 = vst [vmem:[%s2898_s4 + $0x8d0] sm:$0xff] %v707_v26  ;;  %710 = vst [vmem:[%s2898_s4 + $0x8d8] sm:$0xff] %v709_v27  ;;  %v713_v29 = vld [vmem:[%s2893_s3 + $0x2c88] sm:$0xff]  ;;  %v715_v30 = vld [vmem:[%s2893_s3 + $0x2c90] sm:$0xff] }
  0xa9   : > { %712 = vst [vmem:[%s2898_s4 + $0x8e0] sm:$0xff] %v711_v28  ;;  %v717_v31 = vld [vmem:[%s2893_s3 + $0x2c98] sm:$0xff]  ;;  %714 = vst [vmem:[%s2898_s4 + $0x8e8] sm:$0xff] %v713_v29  ;;  %v719_v32 = vld [vmem:[%s2893_s3 + $0x2d00] sm:$0xff] }
  0xaa   : > { %716 = vst [vmem:[%s2898_s4 + $0x8f0] sm:$0xff] %v715_v30  ;;  %718 = vst [vmem:[%s2898_s4 + $0x8f8] sm:$0xff] %v717_v31  ;;  %v721_v33 = vld [vmem:[%s2893_s3 + $0x2d08] sm:$0xff]  ;;  %v723_v34 = vld [vmem:[%s2893_s3 + $0x2d10] sm:$0xff] }
  0xab   : > { %720 = vst [vmem:[%s2898_s4 + $0x900] sm:$0xff] %v719_v32  ;;  %722 = vst [vmem:[%s2898_s4 + $0x908] sm:$0xff] %v721_v33  ;;  %v725_v35 = vld [vmem:[%s2893_s3 + $0x2d78] sm:$0xff]  ;;  %v727_v36 = vld [vmem:[%s2893_s3 + $0x2d80] sm:$0xff] }
  0xac   : > { %724 = vst [vmem:[%s2898_s4 + $0x910] sm:$0xff] %v723_v34  ;;  %v729_v37 = vld [vmem:[%s2893_s3 + $0x2d88] sm:$0xff]  ;;  %726 = vst [vmem:[%s2898_s4 + $0x918] sm:$0xff] %v725_v35  ;;  %v731_v38 = vld [vmem:[%s2893_s3 + $0x2df0] sm:$0xff] }
  0xad   : > { %728 = vst [vmem:[%s2898_s4 + $0x920] sm:$0xff] %v727_v36  ;;  %730 = vst [vmem:[%s2898_s4 + $0x928] sm:$0xff] %v729_v37  ;;  %v733_v39 = vld [vmem:[%s2893_s3 + $0x2df8] sm:$0xff]  ;;  %v735_v40 = vld [vmem:[%s2893_s3 + $0x2e00] sm:$0xff] }
  0xae   : > { %732 = vst [vmem:[%s2898_s4 + $0x930] sm:$0xff] %v731_v38  ;;  %734 = vst [vmem:[%s2898_s4 + $0x938] sm:$0xff] %v733_v39  ;;  %v737_v41 = vld [vmem:[%s2893_s3 + $0x2e68] sm:$0xff]  ;;  %v739_v42 = vld [vmem:[%s2893_s3 + $0x2e70] sm:$0xff] }
  0xaf   : > { %736 = vst [vmem:[%s2898_s4 + $0x940] sm:$0xff] %v735_v40  ;;  %v741_v43 = vld [vmem:[%s2893_s3 + $0x2e78] sm:$0xff]  ;;  %738 = vst [vmem:[%s2898_s4 + $0x948] sm:$0xff] %v737_v41  ;;  %v743_v44 = vld [vmem:[%s2893_s3 + $0x2ee0] sm:$0xff] }
  0xb0   : > { %740 = vst [vmem:[%s2898_s4 + $0x950] sm:$0xff] %v739_v42  ;;  %742 = vst [vmem:[%s2898_s4 + $0x958] sm:$0xff] %v741_v43  ;;  %v745_v45 = vld [vmem:[%s2893_s3 + $0x2ee8] sm:$0xff]  ;;  %v747_v46 = vld [vmem:[%s2893_s3 + $0x2ef0] sm:$0xff] }
  0xb1   : > { %744 = vst [vmem:[%s2898_s4 + $0x960] sm:$0xff] %v743_v44  ;;  %746 = vst [vmem:[%s2898_s4 + $0x968] sm:$0xff] %v745_v45  ;;  %v749_v47 = vld [vmem:[%s2893_s3 + $0x2f58] sm:$0xff]  ;;  %v751_v48 = vld [vmem:[%s2893_s3 + $0x2f60] sm:$0xff] }
  0xb2   : > { %748 = vst [vmem:[%s2898_s4 + $0x970] sm:$0xff] %v747_v46  ;;  %v753_v49 = vld [vmem:[%s2893_s3 + $0x2f68] sm:$0xff]  ;;  %750 = vst [vmem:[%s2898_s4 + $0x978] sm:$0xff] %v749_v47  ;;  %v755_v50 = vld [vmem:[%s2893_s3 + $0x2fd0] sm:$0xff] }
  0xb3   : > { %752 = vst [vmem:[%s2898_s4 + $0x980] sm:$0xff] %v751_v48  ;;  %754 = vst [vmem:[%s2898_s4 + $0x988] sm:$0xff] %v753_v49  ;;  %v757_v51 = vld [vmem:[%s2893_s3 + $0x2fd8] sm:$0xff]  ;;  %v759_v52 = vld [vmem:[%s2893_s3 + $0x2fe0] sm:$0xff] }
  0xb4   : > { %756 = vst [vmem:[%s2898_s4 + $0x990] sm:$0xff] %v755_v50  ;;  %758 = vst [vmem:[%s2898_s4 + $0x998] sm:$0xff] %v757_v51  ;;  %v761_v53 = vld [vmem:[%s2893_s3 + $0x3048] sm:$0xff]  ;;  %v763_v54 = vld [vmem:[%s2893_s3 + $0x3050] sm:$0xff] }
  0xb5   : > { %760 = vst [vmem:[%s2898_s4 + $0x9a0] sm:$0xff] %v759_v52  ;;  %v765_v55 = vld [vmem:[%s2893_s3 + $0x3058] sm:$0xff]  ;;  %762 = vst [vmem:[%s2898_s4 + $0x9a8] sm:$0xff] %v761_v53  ;;  %v767_v56 = vld [vmem:[%s2893_s3 + $0x30c0] sm:$0xff] }
  0xb6   : > { %764 = vst [vmem:[%s2898_s4 + $0x9b0] sm:$0xff] %v763_v54  ;;  %766 = vst [vmem:[%s2898_s4 + $0x9b8] sm:$0xff] %v765_v55  ;;  %v769_v57 = vld [vmem:[%s2893_s3 + $0x30c8] sm:$0xff]  ;;  %v771_v58 = vld [vmem:[%s2893_s3 + $0x30d0] sm:$0xff] }
  0xb7   : > { %768 = vst [vmem:[%s2898_s4 + $0x9c0] sm:$0xff] %v767_v56  ;;  %770 = vst [vmem:[%s2898_s4 + $0x9c8] sm:$0xff] %v769_v57  ;;  %v773_v59 = vld [vmem:[%s2893_s3 + $0x3138] sm:$0xff]  ;;  %v775_v60 = vld [vmem:[%s2893_s3 + $0x3140] sm:$0xff] }
  0xb8   : > { %772 = vst [vmem:[%s2898_s4 + $0x9d0] sm:$0xff] %v771_v58  ;;  %v777_v61 = vld [vmem:[%s2893_s3 + $0x3148] sm:$0xff]  ;;  %774 = vst [vmem:[%s2898_s4 + $0x9d8] sm:$0xff] %v773_v59  ;;  %v779_v62 = vld [vmem:[%s2893_s3 + $0x31b0] sm:$0xff] }
  0xb9   : > { %776 = vst [vmem:[%s2898_s4 + $0x9e0] sm:$0xff] %v775_v60  ;;  %778 = vst [vmem:[%s2898_s4 + $0x9e8] sm:$0xff] %v777_v61  ;;  %v781_v63 = vld [vmem:[%s2893_s3 + $0x31b8] sm:$0xff]  ;;  %v783_v0 = vld [vmem:[%s2893_s3 + $0x31c0] sm:$0xff] }
  0xba   : > { %780 = vst [vmem:[%s2898_s4 + $0x9f0] sm:$0xff] %v779_v62  ;;  %782 = vst [vmem:[%s2898_s4 + $0x9f8] sm:$0xff] %v781_v63  ;;  %v785_v1 = vld [vmem:[%s2893_s3 + $0x3228] sm:$0xff]  ;;  %v787_v2 = vld [vmem:[%s2893_s3 + $0x3230] sm:$0xff] }
  0xbb   : > { %784 = vst [vmem:[%s2898_s4 + $0xa00] sm:$0xff] %v783_v0  ;;  %v789_v3 = vld [vmem:[%s2893_s3 + $0x3238] sm:$0xff]  ;;  %786 = vst [vmem:[%s2898_s4 + $0xa08] sm:$0xff] %v785_v1  ;;  %v791_v4 = vld [vmem:[%s2893_s3 + $0x32a0] sm:$0xff] }
  0xbc   : > { %788 = vst [vmem:[%s2898_s4 + $0xa10] sm:$0xff] %v787_v2  ;;  %790 = vst [vmem:[%s2898_s4 + $0xa18] sm:$0xff] %v789_v3  ;;  %v793_v5 = vld [vmem:[%s2893_s3 + $0x32a8] sm:$0xff]  ;;  %v795_v6 = vld [vmem:[%s2893_s3 + $0x32b0] sm:$0xff] }
  0xbd   : > { %792 = vst [vmem:[%s2898_s4 + $0xa20] sm:$0xff] %v791_v4  ;;  %794 = vst [vmem:[%s2898_s4 + $0xa28] sm:$0xff] %v793_v5  ;;  %v797_v7 = vld [vmem:[%s2893_s3 + $0x3318] sm:$0xff]  ;;  %v799_v8 = vld [vmem:[%s2893_s3 + $0x3320] sm:$0xff] }
  0xbe   : > { %796 = vst [vmem:[%s2898_s4 + $0xa30] sm:$0xff] %v795_v6  ;;  %v801_v9 = vld [vmem:[%s2893_s3 + $0x3328] sm:$0xff]  ;;  %798 = vst [vmem:[%s2898_s4 + $0xa38] sm:$0xff] %v797_v7  ;;  %v803_v10 = vld [vmem:[%s2893_s3 + $0x3390] sm:$0xff] }
  0xbf   : > { %800 = vst [vmem:[%s2898_s4 + $0xa40] sm:$0xff] %v799_v8  ;;  %802 = vst [vmem:[%s2898_s4 + $0xa48] sm:$0xff] %v801_v9  ;;  %v805_v11 = vld [vmem:[%s2893_s3 + $0x3398] sm:$0xff]  ;;  %v807_v12 = vld [vmem:[%s2893_s3 + $0x33a0] sm:$0xff] }
  0xc0   : > { %804 = vst [vmem:[%s2898_s4 + $0xa50] sm:$0xff] %v803_v10  ;;  %806 = vst [vmem:[%s2898_s4 + $0xa58] sm:$0xff] %v805_v11  ;;  %v809_v13 = vld [vmem:[%s2893_s3 + $0x3408] sm:$0xff]  ;;  %v811_v14 = vld [vmem:[%s2893_s3 + $0x3410] sm:$0xff] }
  0xc1   : > { %808 = vst [vmem:[%s2898_s4 + $0xa60] sm:$0xff] %v807_v12  ;;  %v813_v15 = vld [vmem:[%s2893_s3 + $0x3418] sm:$0xff]  ;;  %810 = vst [vmem:[%s2898_s4 + $0xa68] sm:$0xff] %v809_v13  ;;  %v815_v16 = vld [vmem:[%s2893_s3 + $0x3480] sm:$0xff] }
  0xc2   : > { %812 = vst [vmem:[%s2898_s4 + $0xa70] sm:$0xff] %v811_v14  ;;  %814 = vst [vmem:[%s2898_s4 + $0xa78] sm:$0xff] %v813_v15  ;;  %v817_v17 = vld [vmem:[%s2893_s3 + $0x3488] sm:$0xff]  ;;  %v819_v18 = vld [vmem:[%s2893_s3 + $0x3490] sm:$0xff] }
  0xc3   : > { %816 = vst [vmem:[%s2898_s4 + $0xa80] sm:$0xff] %v815_v16  ;;  %818 = vst [vmem:[%s2898_s4 + $0xa88] sm:$0xff] %v817_v17  ;;  %v821_v19 = vld [vmem:[%s2893_s3 + $0x34f8] sm:$0xff]  ;;  %v823_v20 = vld [vmem:[%s2893_s3 + $0x3500] sm:$0xff] }
  0xc4   : > { %820 = vst [vmem:[%s2898_s4 + $0xa90] sm:$0xff] %v819_v18  ;;  %v825_v21 = vld [vmem:[%s2893_s3 + $0x3508] sm:$0xff]  ;;  %822 = vst [vmem:[%s2898_s4 + $0xa98] sm:$0xff] %v821_v19  ;;  %v827_v22 = vld [vmem:[%s2893_s3 + $0x3570] sm:$0xff] }
  0xc5   : > { %824 = vst [vmem:[%s2898_s4 + $0xaa0] sm:$0xff] %v823_v20  ;;  %826 = vst [vmem:[%s2898_s4 + $0xaa8] sm:$0xff] %v825_v21  ;;  %v829_v23 = vld [vmem:[%s2893_s3 + $0x3578] sm:$0xff]  ;;  %v831_v24 = vld [vmem:[%s2893_s3 + $0x3580] sm:$0xff] }
  0xc6   : > { %828 = vst [vmem:[%s2898_s4 + $0xab0] sm:$0xff] %v827_v22  ;;  %830 = vst [vmem:[%s2898_s4 + $0xab8] sm:$0xff] %v829_v23  ;;  %v833_v25 = vld [vmem:[%s2893_s3 + $0x35e8] sm:$0xff]  ;;  %v835_v26 = vld [vmem:[%s2893_s3 + $0x35f0] sm:$0xff] }
  0xc7   : > { %832 = vst [vmem:[%s2898_s4 + $0xac0] sm:$0xff] %v831_v24  ;;  %v837_v27 = vld [vmem:[%s2893_s3 + $0x35f8] sm:$0xff]  ;;  %834 = vst [vmem:[%s2898_s4 + $0xac8] sm:$0xff] %v833_v25  ;;  %v839_v28 = vld [vmem:[%s2893_s3 + $0x3660] sm:$0xff] }
  0xc8   : > { %836 = vst [vmem:[%s2898_s4 + $0xad0] sm:$0xff] %v835_v26  ;;  %838 = vst [vmem:[%s2898_s4 + $0xad8] sm:$0xff] %v837_v27  ;;  %v841_v29 = vld [vmem:[%s2893_s3 + $0x3668] sm:$0xff]  ;;  %v843_v30 = vld [vmem:[%s2893_s3 + $0x3670] sm:$0xff] }
  0xc9   : > { %840 = vst [vmem:[%s2898_s4 + $0xae0] sm:$0xff] %v839_v28  ;;  %842 = vst [vmem:[%s2898_s4 + $0xae8] sm:$0xff] %v841_v29  ;;  %v845_v31 = vld [vmem:[%s2893_s3 + $0x36d8] sm:$0xff]  ;;  %v847_v32 = vld [vmem:[%s2893_s3 + $0x36e0] sm:$0xff] }
  0xca   : > { %844 = vst [vmem:[%s2898_s4 + $0xaf0] sm:$0xff] %v843_v30  ;;  %v849_v33 = vld [vmem:[%s2893_s3 + $0x36e8] sm:$0xff]  ;;  %846 = vst [vmem:[%s2898_s4 + $0xaf8] sm:$0xff] %v845_v31  ;;  %v851_v34 = vld [vmem:[%s2893_s3 + $0x3750] sm:$0xff] }
  0xcb   : > { %848 = vst [vmem:[%s2898_s4 + $0xb00] sm:$0xff] %v847_v32  ;;  %850 = vst [vmem:[%s2898_s4 + $0xb08] sm:$0xff] %v849_v33  ;;  %v853_v35 = vld [vmem:[%s2893_s3 + $0x3758] sm:$0xff]  ;;  %v855_v36 = vld [vmem:[%s2893_s3 + $0x3760] sm:$0xff] }
  0xcc   : > { %852 = vst [vmem:[%s2898_s4 + $0xb10] sm:$0xff] %v851_v34  ;;  %854 = vst [vmem:[%s2898_s4 + $0xb18] sm:$0xff] %v853_v35  ;;  %v857_v37 = vld [vmem:[%s2893_s3 + $0x37c8] sm:$0xff]  ;;  %v859_v38 = vld [vmem:[%s2893_s3 + $0x37d0] sm:$0xff] }
  0xcd   : > { %856 = vst [vmem:[%s2898_s4 + $0xb20] sm:$0xff] %v855_v36  ;;  %v861_v39 = vld [vmem:[%s2893_s3 + $0x37d8] sm:$0xff]  ;;  %858 = vst [vmem:[%s2898_s4 + $0xb28] sm:$0xff] %v857_v37  ;;  %v863_v40 = vld [vmem:[%s2893_s3 + $0x3840] sm:$0xff] }
  0xce   : > { %860 = vst [vmem:[%s2898_s4 + $0xb30] sm:$0xff] %v859_v38  ;;  %862 = vst [vmem:[%s2898_s4 + $0xb38] sm:$0xff] %v861_v39  ;;  %v865_v41 = vld [vmem:[%s2893_s3 + $0x3848] sm:$0xff]  ;;  %v867_v42 = vld [vmem:[%s2893_s3 + $0x3850] sm:$0xff] }
  0xcf   : > { %864 = vst [vmem:[%s2898_s4 + $0xb40] sm:$0xff] %v863_v40  ;;  %866 = vst [vmem:[%s2898_s4 + $0xb48] sm:$0xff] %v865_v41  ;;  %v869_v43 = vld [vmem:[%s2893_s3 + $0x38b8] sm:$0xff]  ;;  %v871_v44 = vld [vmem:[%s2893_s3 + $0x38c0] sm:$0xff] }
  0xd0   : > { %868 = vst [vmem:[%s2898_s4 + $0xb50] sm:$0xff] %v867_v42  ;;  %v873_v45 = vld [vmem:[%s2893_s3 + $0x38c8] sm:$0xff]  ;;  %870 = vst [vmem:[%s2898_s4 + $0xb58] sm:$0xff] %v869_v43  ;;  %v875_v46 = vld [vmem:[%s2893_s3 + $0x3930] sm:$0xff] }
  0xd1   : > { %872 = vst [vmem:[%s2898_s4 + $0xb60] sm:$0xff] %v871_v44  ;;  %874 = vst [vmem:[%s2898_s4 + $0xb68] sm:$0xff] %v873_v45  ;;  %v877_v47 = vld [vmem:[%s2893_s3 + $0x3938] sm:$0xff]  ;;  %v879_v48 = vld [vmem:[%s2893_s3 + $0x3940] sm:$0xff] }
  0xd2   : > { %876 = vst [vmem:[%s2898_s4 + $0xb70] sm:$0xff] %v875_v46  ;;  %878 = vst [vmem:[%s2898_s4 + $0xb78] sm:$0xff] %v877_v47  ;;  %v881_v49 = vld [vmem:[%s2893_s3 + $0x39a8] sm:$0xff]  ;;  %v883_v50 = vld [vmem:[%s2893_s3 + $0x39b0] sm:$0xff] }
  0xd3   : > { %880 = vst [vmem:[%s2898_s4 + $0xb80] sm:$0xff] %v879_v48  ;;  %v885_v51 = vld [vmem:[%s2893_s3 + $0x39b8] sm:$0xff]  ;;  %882 = vst [vmem:[%s2898_s4 + $0xb88] sm:$0xff] %v881_v49  ;;  %v887_v52 = vld [vmem:[%s2893_s3 + $0x3a20] sm:$0xff] }
  0xd4   : > { %884 = vst [vmem:[%s2898_s4 + $0xb90] sm:$0xff] %v883_v50  ;;  %886 = vst [vmem:[%s2898_s4 + $0xb98] sm:$0xff] %v885_v51  ;;  %v889_v53 = vld [vmem:[%s2893_s3 + $0x3a28] sm:$0xff]  ;;  %v891_v54 = vld [vmem:[%s2893_s3 + $0x3a30] sm:$0xff] }
  0xd5   : > { %888 = vst [vmem:[%s2898_s4 + $0xba0] sm:$0xff] %v887_v52  ;;  %890 = vst [vmem:[%s2898_s4 + $0xba8] sm:$0xff] %v889_v53  ;;  %v893_v55 = vld [vmem:[%s2893_s3 + $0x3a98] sm:$0xff]  ;;  %v895_v56 = vld [vmem:[%s2893_s3 + $0x3aa0] sm:$0xff] }
  0xd6   : > { %892 = vst [vmem:[%s2898_s4 + $0xbb0] sm:$0xff] %v891_v54  ;;  %v897_v57 = vld [vmem:[%s2893_s3 + $0x3aa8] sm:$0xff]  ;;  %894 = vst [vmem:[%s2898_s4 + $0xbb8] sm:$0xff] %v893_v55  ;;  %v899_v58 = vld [vmem:[%s2893_s3 + $0x3b10] sm:$0xff] }
  0xd7   : > { %896 = vst [vmem:[%s2898_s4 + $0xbc0] sm:$0xff] %v895_v56  ;;  %898 = vst [vmem:[%s2898_s4 + $0xbc8] sm:$0xff] %v897_v57  ;;  %v901_v59 = vld [vmem:[%s2893_s3 + $0x3b18] sm:$0xff]  ;;  %v903_v60 = vld [vmem:[%s2893_s3 + $0x3b20] sm:$0xff] }
  0xd8   : > { %900 = vst [vmem:[%s2898_s4 + $0xbd0] sm:$0xff] %v899_v58  ;;  %902 = vst [vmem:[%s2898_s4 + $0xbd8] sm:$0xff] %v901_v59  ;;  %v905_v61 = vld [vmem:[%s2893_s3 + $0x3b88] sm:$0xff]  ;;  %v907_v62 = vld [vmem:[%s2893_s3 + $0x3b90] sm:$0xff] }
  0xd9   : > { %904 = vst [vmem:[%s2898_s4 + $0xbe0] sm:$0xff] %v903_v60  ;;  %v909_v63 = vld [vmem:[%s2893_s3 + $0x3b98] sm:$0xff]  ;;  %906 = vst [vmem:[%s2898_s4 + $0xbe8] sm:$0xff] %v905_v61 }
  0xda   : > { %908 = vst [vmem:[%s2898_s4 + $0xbf0] sm:$0xff] %v907_v62  ;;  %910 = vst [vmem:[%s2898_s4 + $0xbf8] sm:$0xff] %v909_v63 }
  0xdb PF: > { %p2483_p7 = scmp.ge.s32.totalorder %s2800_s15, 1  ;;  %p915_p8 = scmp.lt.s32.totalorder %s2800_s15, 16 }
  0xdd   : > { %p916_p9 = pnand %p2483_p7, %p915_p8 }
  0xde   : > { %v1849_v0 = vld [vmem:[%s4741_s1 + $0x8] sm:$0xff] (!%p916_p9)  ;;  %v1851_v2 = vld [vmem:[%s4741_s1 + $0x18] sm:$0xff] (!%p916_p9)  ;;  %v1848_v5 = vld [vmem:[%s4741_s1] sm:$0xff] (!%p916_p9)  ;;  %s922_s7 = sand.u32 (!%p916_p9), 1, %s2776_s9   ;;  %vm1592_vm0 = vcmask (!%p916_p9), 785408   ;;  %s2803_s9 = smov (!%p916_p9), 53  }
  0xdf   : > { %919 = sbr.rel (%p916_p9) target bundleno = 911 (0x38f), region = 47  ;;  %v1853_v1 = vld [vmem:[%s4741_s1 + $0x28] sm:$0xff] (!%p916_p9)  ;;  %v1855_v4 = vld [vmem:[%s4741_s1 + $0x38] sm:$0xff] (!%p916_p9)  ;;  %v1852_v6 = vld [vmem:[%s4741_s1 + $0x20] sm:$0xff] (!%p916_p9)  ;;  %s2804_s25 = smov (!%p916_p9), 103   ;;  %vm2333_vm1 = vcmask (!%p916_p9), 23552  }
  0xe0   : > { %v2489_v3 = vpack.c.bf16 (!%p916_p9), %v1853_v1, %v1849_v0  ;;  %v2577_v7 = vpack.c.bf16 (!%p916_p9), %v1855_v4, %v1851_v2  ;;  %v2491_v8 = vpack.c.bf16 (!%p916_p9), %v1852_v6, %v1848_v5  ;;  %v1850_v9 = vld [vmem:[%s4741_s1 + $0x10] sm:$0xff] (!%p916_p9)  ;;  %v1857_v11 = vld [vmem:[%s4741_s1 + $0x48] sm:$0xff] (!%p916_p9)  ;;  %v1859_v14 = vld [vmem:[%s4741_s1 + $0x58] sm:$0xff] (!%p916_p9)  ;;  %s2672_s27 = smul.u32 (!%p916_p9), 3072, %s922_s7  ;;  %s2805_s26 = smov (!%p916_p9), 28   ;;  %vm2358_vm2 = vcmask (!%p916_p9), 48128  }
  0xe1   : > { %v1854_v10 = vld [vmem:[%s4741_s1 + $0x30] sm:$0xff] (!%p916_p9)  ;;  %v1861_v13 = vld [vmem:[%s4741_s1 + $0x68] sm:$0xff] (!%p916_p9)  ;;  %v1863_v15 = vld [vmem:[%s4741_s1 + $0x78] sm:$0xff] (!%p916_p9)  ;;  %s2806_s28 = smov (!%p916_p9), 78   ;;  %s2807_s29 = smov (!%p916_p9), 6   ;;  %vm2383_vm3 = vcmask (!%p916_p9), 72704  }
  0xe2   : > { %2490 = vmatprep.subr.bf16.mxu0 (!%p916_p9), %v2489_v3  ;;  %v2579_v12 = vpack.c.bf16 (!%p916_p9), %v1854_v10, %v1850_v9  ;;  %2578 = vmatprep.subr.bf16.mxu1 (!%p916_p9), %v2577_v7  ;;  %v2493_v16 = vpack.c.bf16 (!%p916_p9), %v1861_v13, %v1857_v11  ;;  %v2581_v17 = vpack.c.bf16 (!%p916_p9), %v1863_v15, %v1859_v14  ;;  %v1856_v18 = vld [vmem:[%s4741_s1 + $0x40] sm:$0xff] (!%p916_p9)  ;;  %v1858_v20 = vld [vmem:[%s4741_s1 + $0x50] sm:$0xff] (!%p916_p9)  ;;  %v1865_v23 = vld [vmem:[%s4741_s1 + $0x88] sm:$0xff] (!%p916_p9)  ;;  %s3971_s19 = scalar_lea.vmem (!%p916_p9), [#allocation2], %s2672_s27  ;;  %s2808_s30 = smov (!%p916_p9), 3   ;;  %vm2387_vm4 = vcmask (!%p916_p9), 203776  }
  0xe3   : > { %2492 = vmatpush1.bf16.msra.mxu0 (!%p916_p9), %v2491_v8  ;;  %v1860_v19 = vld [vmem:[%s4741_s1 + $0x60] sm:$0xff] (!%p916_p9)  ;;  %v1862_v22 = vld [vmem:[%s4741_s1 + $0x70] sm:$0xff] (!%p916_p9)  ;;  %v1869_v24 = vld [vmem:[%s4741_s1 + $0xa8] sm:$0xff] (!%p916_p9)  ;;  %s2809_s3 = smov (!%p916_p9), 106   ;;  %s2810_s4 = smov (!%p916_p9), 56  }
  0xe4   : > { %2580 = vmatpush1.bf16.msra.mxu1 (!%p916_p9), %v2579_v12  ;;  %v2495_v21 = vpack.c.bf16 (!%p916_p9), %v1860_v19, %v1856_v18  ;;  %2494 = vmatprep.subr.bf16.mxu0 (!%p916_p9), %v2493_v16  ;;  %v2583_v25 = vpack.c.bf16 (!%p916_p9), %v1862_v22, %v1858_v20  ;;  %v2497_v26 = vpack.c.bf16 (!%p916_p9), %v1869_v24, %v1865_v23  ;;  %v1867_v27 = vld [vmem:[%s4741_s1 + $0x98] sm:$0xff] (!%p916_p9)  ;;  %v1864_v29 = vld [vmem:[%s4741_s1 + $0x80] sm:$0xff] (!%p916_p9)  ;;  %v1866_v32 = vld [vmem:[%s4741_s1 + $0x90] sm:$0xff] (!%p916_p9)  ;;  %s2811_s5 = smov (!%p916_p9), 81   ;;  %s2812_s6 = smov (!%p916_p9), 31  }
  0xe5   : > { %2582 = vmatprep.subr.bf16.mxu1 (!%p916_p9), %v2581_v17  ;;  %v1871_v28 = vld [vmem:[%s4741_s1 + $0xb8] sm:$0xff] (!%p916_p9)  ;;  %v1868_v31 = vld [vmem:[%s4741_s1 + $0xa0] sm:$0xff] (!%p916_p9)  ;;  %v1870_v33 = vld [vmem:[%s4741_s1 + $0xb0] sm:$0xff] (!%p916_p9)  ;;  %s2813_s8 = smov (!%p916_p9), 109   ;;  %s2814_s18 = smov (!%p916_p9), 84  }
  0xe6   : > { %v2585_v30 = vpack.c.bf16 %v1871_v28, %v1867_v27  ;;  %v2499_v34 = vpack.c.bf16 %v1868_v31, %v1864_v29  ;;  %v1873_v35 = vld [vmem:[%s4741_s1 + $0xc8] sm:$0xff]  ;;  %v1875_v37 = vld [vmem:[%s4741_s1 + $0xd8] sm:$0xff]  ;;  %v2587_v38 = vpack.c.bf16 %v1870_v33, %v1866_v32  ;;  %v1872_v41 = vld [vmem:[%s4741_s1 + $0xc0] sm:$0xff]  ;;  %s2816_s7 = smov 34   ;;  %s2817_s20 = smov 9  }
  0xe7   : > { %2496 = vmatpush1.bf16.msra.mxu0 %v2495_v21  ;;  %v1877_v36 = vld [vmem:[%s4741_s1 + $0xe8] sm:$0xff]  ;;  %v1879_v40 = vld [vmem:[%s4741_s1 + $0xf8] sm:$0xff]  ;;  %v1876_v42 = vld [vmem:[%s4741_s1 + $0xe0] sm:$0xff]  ;;  %p946_p10 = scmp.lt.s32.totalorder %s2788_s12, 2  ;;  %p948_p11 = scmp.lt.s32.totalorder %s2784_s11, 4 }
  0xe8   : > { %2584 = vmatpush1.bf16.msra.mxu1 %v2583_v25  ;;  %2498 = vmatprep.subr.bf16.mxu0 %v2497_v26  ;;  %v2501_v39 = vpack.c.bf16 %v1877_v36, %v1873_v35  ;;  %v2589_v43 = vpack.c.bf16 %v1879_v40, %v1875_v37  ;;  %v1874_v44 = vld [vmem:[%s4741_s1 + $0xd0] sm:$0xff]  ;;  %v1881_v46 = vld [vmem:[%s4741_s1 + $0x108] sm:$0xff]  ;;  %v1883_v48 = vld [vmem:[%s4741_s1 + $0x118] sm:$0xff]  ;;  %v2503_v50 = vpack.c.bf16 %v1876_v42, %v1872_v41 }
  0xe9   : > { %2586 = vmatprep.subr.bf16.mxu1 %v2585_v30  ;;  %v1878_v45 = vld [vmem:[%s4741_s1 + $0xf0] sm:$0xff]  ;;  %v1885_v47 = vld [vmem:[%s4741_s1 + $0x128] sm:$0xff]  ;;  %v1887_v49 = vld [vmem:[%s4741_s1 + $0x138] sm:$0xff]  ;;  %s4756_s12 = smov (!%p946_p10, %s2788_s12), 2  ;;  %s4758_s11 = smov (!%p948_p11, %s2784_s11), 4 }
  0xea   : > { %v2591_v51 = vpack.c.bf16 %v1878_v45, %v1874_v44  ;;  %v2505_v52 = vpack.c.bf16 %v1885_v47, %v1881_v46  ;;  %v1880_v53 = vld [vmem:[%s4741_s1 + $0x100] sm:$0xff]  ;;  %v1882_v55 = vld [vmem:[%s4741_s1 + $0x110] sm:$0xff]  ;;  %v2593_v56 = vpack.c.bf16 %v1887_v49, %v1883_v48  ;;  %v1889_v58 = vld [vmem:[%s4741_s1 + $0x148] sm:$0xff]  ;;  %s2673_s21 = smul.u32 5, %s4756_s12 }
  0xeb   : > { %2500 = vmatpush1.bf16.msra.mxu0 %v2499_v34  ;;  %v1884_v54 = vld [vmem:[%s4741_s1 + $0x120] sm:$0xff]  ;;  %v1886_v57 = vld [vmem:[%s4741_s1 + $0x130] sm:$0xff]  ;;  %v1893_v59 = vld [vmem:[%s4741_s1 + $0x168] sm:$0xff] }
  0xec   : > { %2588 = vmatpush1.bf16.msra.mxu1 %v2587_v38  ;;  %2502 = vmatprep.subr.bf16.mxu0 %v2501_v39  ;;  %v1891_v60 = vld [vmem:[%s4741_s1 + $0x158] sm:$0xff]  ;;  %v2507_v62 = vpack.c.bf16 %v1884_v54, %v1880_v53  ;;  %v2595_v63 = vpack.c.bf16 %v1886_v57, %v1882_v55  ;;  %v2509_v0 = vpack.c.bf16 %v1893_v59, %v1889_v58  ;;  %v1888_v1 = vld [vmem:[%s4741_s1 + $0x140] sm:$0xff]  ;;  %v1890_v3 = vld [vmem:[%s4741_s1 + $0x150] sm:$0xff]  ;;  %s951_s23 = sadd.s32 %s2673_s21, %s4758_s11 }
  0xed   : > { %2590 = vmatprep.subr.bf16.mxu1 %v2589_v43  ;;  %v1895_v61 = vld [vmem:[%s4741_s1 + $0x178] sm:$0xff]  ;;  %v1892_v2 = vld [vmem:[%s4741_s1 + $0x160] sm:$0xff]  ;;  %v1894_v5 = vld [vmem:[%s4741_s1 + $0x170] sm:$0xff]  ;;  %s2484_s24 = sshll.u32 %s951_s23, 3 }
  0xee   : > { %v2597_v4 = vpack.c.bf16 %v1895_v61, %v1891_v60  ;;  %v1897_v6 = vld [vmem:[%s4741_s1 + $0x188] sm:$0xff]  ;;  %v1899_v8 = vld [vmem:[%s4741_s1 + $0x198] sm:$0xff]  ;;  %v2511_v10 = vpack.c.bf16 %v1892_v2, %v1888_v1  ;;  %v2599_v11 = vpack.c.bf16 %v1894_v5, %v1890_v3  ;;  %v1896_v13 = vld [vmem:[%s4741_s1 + $0x180] sm:$0xff]  ;;  %s953_s12 = scalar_lea.vmem %s4742_s2, %s2484_s24 }
  0xef   : > { %2504 = vmatpush1.bf16.msra.mxu0 %v2503_v50  ;;  %v1901_v7 = vld [vmem:[%s4741_s1 + $0x1a8] sm:$0xff]  ;;  %v1903_v9 = vld [vmem:[%s4741_s1 + $0x1b8] sm:$0xff]  ;;  %v1900_v14 = vld [vmem:[%s4741_s1 + $0x1a0] sm:$0xff] }
  0xf0   : > { %2592 = vmatpush1.bf16.msra.mxu1 %v2591_v51  ;;  %2506 = vmatprep.subr.bf16.mxu0 %v2505_v52  ;;  %v2513_v12 = vpack.c.bf16 %v1901_v7, %v1897_v6  ;;  %v1898_v15 = vld [vmem:[%s4741_s1 + $0x190] sm:$0xff]  ;;  %v2601_v16 = vpack.c.bf16 %v1903_v9, %v1899_v8  ;;  %v1905_v18 = vld [vmem:[%s4741_s1 + $0x1c8] sm:$0xff]  ;;  %v1907_v20 = vld [vmem:[%s4741_s1 + $0x1d8] sm:$0xff]  ;;  %v2515_v22 = vpack.c.bf16 %v1900_v14, %v1896_v13 }
  0xf1   : > { %2594 = vmatprep.subr.bf16.mxu1 %v2593_v56  ;;  %v1902_v17 = vld [vmem:[%s4741_s1 + $0x1b0] sm:$0xff]  ;;  %v1909_v19 = vld [vmem:[%s4741_s1 + $0x1e8] sm:$0xff]  ;;  %v1911_v21 = vld [vmem:[%s4741_s1 + $0x1f8] sm:$0xff] }
  0xf2   : > { %v2603_v23 = vpack.c.bf16 %v1902_v17, %v1898_v15  ;;  %v2517_v24 = vpack.c.bf16 %v1909_v19, %v1905_v18  ;;  %v1904_v25 = vld [vmem:[%s4741_s1 + $0x1c0] sm:$0xff]  ;;  %v1906_v27 = vld [vmem:[%s4741_s1 + $0x1d0] sm:$0xff]  ;;  %v2605_v28 = vpack.c.bf16 %v1911_v21, %v1907_v20  ;;  %v1913_v30 = vld [vmem:[%s4741_s1 + $0x208] sm:$0xff] }
  0xf3   : > { %2508 = vmatpush1.bf16.msra.mxu0 %v2507_v62  ;;  %v1908_v26 = vld [vmem:[%s4741_s1 + $0x1e0] sm:$0xff]  ;;  %v1910_v29 = vld [vmem:[%s4741_s1 + $0x1f0] sm:$0xff]  ;;  %v1917_v31 = vld [vmem:[%s4741_s1 + $0x228] sm:$0xff] }
  0xf4   : > { %2596 = vmatpush1.bf16.msra.mxu1 %v2595_v63  ;;  %2510 = vmatprep.subr.bf16.mxu0 %v2509_v0  ;;  %v1915_v32 = vld [vmem:[%s4741_s1 + $0x218] sm:$0xff]  ;;  %v2519_v34 = vpack.c.bf16 %v1908_v26, %v1904_v25  ;;  %v2607_v35 = vpack.c.bf16 %v1910_v29, %v1906_v27  ;;  %v2521_v36 = vpack.c.bf16 %v1917_v31, %v1913_v30  ;;  %v1912_v37 = vld [vmem:[%s4741_s1 + $0x200] sm:$0xff]  ;;  %v1914_v39 = vld [vmem:[%s4741_s1 + $0x210] sm:$0xff] }
  0xf5   : > { %2598 = vmatprep.subr.bf16.mxu1 %v2597_v4  ;;  %v1919_v33 = vld [vmem:[%s4741_s1 + $0x238] sm:$0xff]  ;;  %v1916_v38 = vld [vmem:[%s4741_s1 + $0x220] sm:$0xff]  ;;  %v1918_v41 = vld [vmem:[%s4741_s1 + $0x230] sm:$0xff] }
  0xf6   : > { %v2609_v40 = vpack.c.bf16 %v1919_v33, %v1915_v32  ;;  %v1921_v42 = vld [vmem:[%s4741_s1 + $0x248] sm:$0xff]  ;;  %v1923_v44 = vld [vmem:[%s4741_s1 + $0x258] sm:$0xff]  ;;  %v2523_v46 = vpack.c.bf16 %v1916_v38, %v1912_v37  ;;  %v2611_v47 = vpack.c.bf16 %v1918_v41, %v1914_v39  ;;  %v1920_v49 = vld [vmem:[%s4741_s1 + $0x240] sm:$0xff] }
  0xf7   : > { %2512 = vmatpush1.bf16.msra.mxu0 %v2511_v10  ;;  %v1925_v43 = vld [vmem:[%s4741_s1 + $0x268] sm:$0xff]  ;;  %v1927_v45 = vld [vmem:[%s4741_s1 + $0x278] sm:$0xff]  ;;  %v1924_v50 = vld [vmem:[%s4741_s1 + $0x260] sm:$0xff] }
  0xf8   : > { %2600 = vmatpush1.bf16.msra.mxu1 %v2599_v11  ;;  %2514 = vmatprep.subr.bf16.mxu0 %v2513_v12  ;;  %v2525_v48 = vpack.c.bf16 %v1925_v43, %v1921_v42  ;;  %v1922_v51 = vld [vmem:[%s4741_s1 + $0x250] sm:$0xff]  ;;  %v2613_v52 = vpack.c.bf16 %v1927_v45, %v1923_v44  ;;  %v1929_v54 = vld [vmem:[%s4741_s1 + $0x288] sm:$0xff]  ;;  %v1931_v56 = vld [vmem:[%s4741_s1 + $0x298] sm:$0xff]  ;;  %v2527_v58 = vpack.c.bf16 %v1924_v50, %v1920_v49 }
  0xf9   : > { %2602 = vmatprep.subr.bf16.mxu1 %v2601_v16  ;;  %v1926_v53 = vld [vmem:[%s4741_s1 + $0x270] sm:$0xff]  ;;  %v1933_v55 = vld [vmem:[%s4741_s1 + $0x2a8] sm:$0xff]  ;;  %v1935_v57 = vld [vmem:[%s4741_s1 + $0x2b8] sm:$0xff] }
  0xfa   : > { %v2615_v59 = vpack.c.bf16 %v1926_v53, %v1922_v51  ;;  %v2529_v60 = vpack.c.bf16 %v1933_v55, %v1929_v54  ;;  %v1928_v61 = vld [vmem:[%s4741_s1 + $0x280] sm:$0xff]  ;;  %v1930_v63 = vld [vmem:[%s4741_s1 + $0x290] sm:$0xff]  ;;  %v2617_v0 = vpack.c.bf16 %v1935_v57, %v1931_v56  ;;  %v1937_v2 = vld [vmem:[%s4741_s1 + $0x2c8] sm:$0xff] }
  0xfb   : > { %2516 = vmatpush1.bf16.msra.mxu0 %v2515_v22  ;;  %v1932_v62 = vld [vmem:[%s4741_s1 + $0x2a0] sm:$0xff]  ;;  %v1934_v1 = vld [vmem:[%s4741_s1 + $0x2b0] sm:$0xff]  ;;  %v1941_v3 = vld [vmem:[%s4741_s1 + $0x2e8] sm:$0xff] }
  0xfc   : > { %2604 = vmatpush1.bf16.msra.mxu1 %v2603_v23  ;;  %2518 = vmatprep.subr.bf16.mxu0 %v2517_v24  ;;  %v1939_v4 = vld [vmem:[%s4741_s1 + $0x2d8] sm:$0xff]  ;;  %v2531_v6 = vpack.c.bf16 %v1932_v62, %v1928_v61  ;;  %v2619_v7 = vpack.c.bf16 %v1934_v1, %v1930_v63  ;;  %v2533_v8 = vpack.c.bf16 %v1941_v3, %v1937_v2  ;;  %v1936_v9 = vld [vmem:[%s4741_s1 + $0x2c0] sm:$0xff]  ;;  %v1938_v11 = vld [vmem:[%s4741_s1 + $0x2d0] sm:$0xff] }
  0xfd   : > { %2606 = vmatprep.subr.bf16.mxu1 %v2605_v28  ;;  %v1943_v5 = vld [vmem:[%s4741_s1 + $0x2f8] sm:$0xff]  ;;  %v1940_v10 = vld [vmem:[%s4741_s1 + $0x2e0] sm:$0xff]  ;;  %v1942_v13 = vld [vmem:[%s4741_s1 + $0x2f0] sm:$0xff] }
  0xfe   : > { %v2621_v12 = vpack.c.bf16 %v1943_v5, %v1939_v4  ;;  %v1945_v14 = vld [vmem:[%s4741_s1 + $0x308] sm:$0xff]  ;;  %v1947_v16 = vld [vmem:[%s4741_s1 + $0x318] sm:$0xff]  ;;  %v1944_v18 = vld [vmem:[%s4741_s1 + $0x300] sm:$0xff]  ;;  %v2535_v19 = vpack.c.bf16 %v1940_v10, %v1936_v9  ;;  %v2623_v23 = vpack.c.bf16 %v1942_v13, %v1938_v11 }
  0xff   : > { %2520 = vmatpush1.bf16.msra.mxu0 %v2519_v34  ;;  %v1949_v15 = vld [vmem:[%s4741_s1 + $0x328] sm:$0xff]  ;;  %v1951_v17 = vld [vmem:[%s4741_s1 + $0x338] sm:$0xff]  ;;  %v970_v21 = vld [vmem:[%s3971_s19 + $0x80] sm:$0xff] }
 0x100   : > { %2608 = vmatpush1.bf16.msra.mxu1 %v2607_v35  ;;  %2522 = vmatprep.subr.bf16.mxu0 %v2521_v36  ;;  %v967_v20 = vld [vmem:[%s3971_s19 + $0x68] sm:$0xff]  ;;  %v973_v22 = vld [vmem:[%s3971_s19 + $0x98] sm:$0xff]  ;;  %v2537_v24 = vpack.c.bf16 %v1949_v15, %v1945_v14  ;;  %v1948_v25 = vld [vmem:[%s4741_s1 + $0x320] sm:$0xff]  ;;  %v2625_v29 = vpack.c.bf16 %v1951_v17, %v1947_v16 }
 0x101   : > { %2610 = vmatprep.subr.bf16.mxu1 %v2609_v40  ;;  %v1946_v26 = vld [vmem:[%s4741_s1 + $0x310] sm:$0xff]  ;;  %v1467_v28 = vmax.f32 %v970_v21, %v967_v20  ;;  %v1953_v30 = vld [vmem:[%s4741_s1 + $0x348] sm:$0xff]  ;;  %v1955_v33 = vld [vmem:[%s4741_s1 + $0x358] sm:$0xff]  ;;  %v2539_v36 = vpack.c.bf16 %v1948_v25, %v1944_v18 }
 0x102   : > { %v1950_v27 = vld [vmem:[%s4741_s1 + $0x330] sm:$0xff]  ;;  %v1957_v31 = vld [vmem:[%s4741_s1 + $0x368] sm:$0xff]  ;;  %v1959_v34 = vld [vmem:[%s4741_s1 + $0x378] sm:$0xff] }
 0x103   : > { %2524 = vmatpush1.bf16.msra.mxu0 %v2523_v46  ;;  %v976_v32 = vld [vmem:[%s3971_s19 + $0xb0] sm:$0xff]  ;;  %v1468_v35 = vmax.f32 %v973_v22, %v1467_v28  ;;  %v1952_v37 = vld [vmem:[%s4741_s1 + $0x340] sm:$0xff]  ;;  %v979_v38 = vld [vmem:[%s3971_s19 + $0xc8] sm:$0xff]  ;;  %v2627_v39 = vpack.c.bf16 %v1950_v27, %v1946_v26  ;;  %v2541_v40 = vpack.c.bf16 %v1957_v31, %v1953_v30  ;;  %v2629_v45 = vpack.c.bf16 %v1959_v34, %v1955_v33 }
 0x104   : > { %2612 = vmatpush1.bf16.msra.mxu1 %v2611_v47  ;;  %2526 = vmatprep.subr.bf16.mxu0 %v2525_v48  ;;  %v1956_v41 = vld [vmem:[%s4741_s1 + $0x360] sm:$0xff]  ;;  %v1954_v42 = vld [vmem:[%s4741_s1 + $0x350] sm:$0xff]  ;;  %v1961_v46 = vld [vmem:[%s4741_s1 + $0x388] sm:$0xff] }
 0x105   : > { %2614 = vmatprep.subr.bf16.mxu1 %v2613_v52  ;;  %v1958_v43 = vld [vmem:[%s4741_s1 + $0x370] sm:$0xff]  ;;  %v1469_v44 = vmax.f32 %v976_v32, %v1468_v35  ;;  %v1965_v47 = vld [vmem:[%s4741_s1 + $0x3a8] sm:$0xff]  ;;  %v982_v48 = vld [vmem:[%s3971_s19 + $0xe0] sm:$0xff]  ;;  %v2543_v52 = vpack.c.bf16 %v1956_v41, %v1952_v37 }
 0x106   : > { %v1963_v49 = vld [vmem:[%s4741_s1 + $0x398] sm:$0xff]  ;;  %v1960_v53 = vld [vmem:[%s4741_s1 + $0x380] sm:$0xff]  ;;  %v2631_v55 = vpack.c.bf16 %v1958_v43, %v1954_v42  ;;  %v2545_v56 = vpack.c.bf16 %v1965_v47, %v1961_v46  ;;  %v1969_v62 = vld [vmem:[%s4741_s1 + $0x3c8] sm:$0xff] }
 0x107   : > { %2528 = vmatpush1.bf16.msra.mxu0 %v2527_v58  ;;  %v1967_v50 = vld [vmem:[%s4741_s1 + $0x3b8] sm:$0xff]  ;;  %v1470_v51 = vmax.f32 %v979_v38, %v1469_v44  ;;  %v1964_v57 = vld [vmem:[%s4741_s1 + $0x3a0] sm:$0xff]  ;;  %v1962_v58 = vld [vmem:[%s4741_s1 + $0x390] sm:$0xff] }
 0x108   : > { %2616 = vmatpush1.bf16.msra.mxu1 %v2615_v59  ;;  %2530 = vmatprep.subr.bf16.mxu0 %v2529_v60  ;;  %v985_v54 = vld [vmem:[%s3971_s19 + $0xf8] sm:$0xff]  ;;  %v1966_v59 = vld [vmem:[%s4741_s1 + $0x3b0] sm:$0xff]  ;;  %v2633_v61 = vpack.c.bf16 %v1967_v50, %v1963_v49  ;;  %v1973_v63 = vld [vmem:[%s4741_s1 + $0x3e8] sm:$0xff]  ;;  %v2547_v4 = vpack.c.bf16 %v1964_v57, %v1960_v53 }
 0x109   : > { %2618 = vmatprep.subr.bf16.mxu1 %v2617_v0  ;;  %v1471_v60 = vmax.f32 %v982_v48, %v1470_v51  ;;  %v988_v0 = vld [vmem:[%s3971_s19 + $0x110] sm:$0xff]  ;;  %v1971_v1 = vld [vmem:[%s4741_s1 + $0x3d8] sm:$0xff]  ;;  %v991_v5 = vld [vmem:[%s3971_s19 + $0x128] sm:$0xff] }
 0x10a   : > { %v1975_v2 = vld [vmem:[%s4741_s1 + $0x3f8] sm:$0xff]  ;;  %v1972_v9 = vld [vmem:[%s4741_s1 + $0x3e0] sm:$0xff]  ;;  %v1974_v13 = vld [vmem:[%s4741_s1 + $0x3f0] sm:$0xff] }
 0x10b   : > { %2532 = vmatpush1.bf16.msra.mxu0 %v2531_v6  ;;  %v1472_v3 = vmax.f32 %v985_v54, %v1471_v60  ;;  %v2635_v6 = vpack.c.bf16 %v1966_v59, %v1962_v58  ;;  %v2637_v11 = vpack.c.bf16 %v1975_v2, %v1971_v1  ;;  %v994_v14 = vld [vmem:[%s3971_s19 + $0x140] sm:$0xff]  ;;  %v997_v17 = vld [vmem:[%s3971_s19 + $0x158] sm:$0xff]  ;;  %v1000_v20 = vld [vmem:[%s3971_s19 + $0x170] sm:$0xff] }
 0x10c   : > { %2620 = vmatpush1.bf16.msra.mxu1 %v2619_v7  ;;  %2534 = vmatprep.subr.bf16.mxu0 %v2533_v8  ;;  %v2549_v7 = vpack.c.bf16 %v1973_v63, %v1969_v62  ;;  %v1968_v8 = vld [vmem:[%s4741_s1 + $0x3c0] sm:$0xff]  ;;  %v1003_v22 = vld [vmem:[%s3971_s19 + $0x188] sm:$0xff]  ;;  %v1009_v26 = vld [vmem:[%s3971_s19 + $0x1b8] sm:$0xff] }
 0x10d   : > { %2622 = vmatprep.subr.bf16.mxu1 %v2621_v12  ;;  %v1473_v10 = vmax.f32 %v988_v0, %v1472_v3  ;;  %v1970_v12 = vld [vmem:[%s4741_s1 + $0x3d0] sm:$0xff]  ;;  %v2551_v16 = vpack.c.bf16 %v1972_v9, %v1968_v8  ;;  %v969_v30 = vld [vmem:[%s3971_s19 + $0x78] sm:$0xff]  ;;  %v1015_v34 = vld [vmem:[%s3971_s19 + $0x1e8] sm:$0xff] }
 0x10e   : > { %v2639_v18 = vpack.c.bf16 %v1974_v13, %v1970_v12  ;;  %v1012_v28 = vld [vmem:[%s3971_s19 + $0x1d0] sm:$0xff]  ;;  %v975_v35 = vld [vmem:[%s3971_s19 + $0xa8] sm:$0xff]  ;;  %v1018_v38 = vld [vmem:[%s3971_s19 + $0x200] sm:$0xff] }
 0x10f   : > { %2536 = vmatpush1.bf16.msra.mxu0 %v2535_v19  ;;  %v1474_v15 = vmax.f32 %v991_v5, %v1473_v10  ;;  %v972_v33 = vld [vmem:[%s3971_s19 + $0x90] sm:$0xff]  ;;  %v1021_v42 = vld [vmem:[%s3971_s19 + $0x218] sm:$0xff]  ;;  %v1027_v50 = vld [vmem:[%s3971_s19 + $0x248] sm:$0xff] }
 0x110   : > { %2624 = vmatpush1.bf16.msra.mxu1 %v2623_v23  ;;  %2538 = vmatprep.subr.bf16.mxu0 %v2537_v24  ;;  %v1006_v24 = vld [vmem:[%s3971_s19 + $0x1a0] sm:$0xff]  ;;  %v981_v43 = vld [vmem:[%s3971_s19 + $0xd8] sm:$0xff]  ;;  %v1024_v46 = vld [vmem:[%s3971_s19 + $0x230] sm:$0xff] }
 0x111   : > { %2626 = vmatprep.subr.bf16.mxu1 %v2625_v29  ;;  %v1475_v19 = vmax.f32 %v994_v14, %v1474_v15  ;;  %v966_v29 = vld [vmem:[%s3971_s19 + $0x60] sm:$0xff]  ;;  %v984_v47 = vld [vmem:[%s3971_s19 + $0xf0] sm:$0xff]  ;;  %v987_v51 = vld [vmem:[%s3971_s19 + $0x108] sm:$0xff] }
 0x112   : > { %v1340_v32 = vmax.f32 %v969_v30, %v966_v29  ;;  %v1030_v54 = vld [vmem:[%s3971_s19 + $0x260] sm:$0xff]  ;;  %v1033_v58 = vld [vmem:[%s3971_s19 + $0x278] sm:$0xff]  ;;  %v1036_v62 = vld [vmem:[%s3971_s19 + $0x290] sm:$0xff] }
 0x113   : > { %2540 = vmatpush1.bf16.msra.mxu0 %v2539_v36  ;;  %v1476_v21 = vmax.f32 %v997_v17, %v1475_v19  ;;  %v993_v59 = vld [vmem:[%s3971_s19 + $0x138] sm:$0xff]  ;;  %v996_v63 = vld [vmem:[%s3971_s19 + $0x150] sm:$0xff]  ;;  %v1039_v2 = vld [vmem:[%s3971_s19 + $0x2a8] sm:$0xff] }
 0x114   : > { %2628 = vmatpush1.bf16.msra.mxu1 %v2627_v39  ;;  %2542 = vmatprep.subr.bf16.mxu0 %v2541_v40  ;;  %v1341_v37 = vmax.f32 %v972_v33, %v1340_v32  ;;  %v978_v39 = vld [vmem:[%s3971_s19 + $0xc0] sm:$0xff]  ;;  %v999_v3 = vld [vmem:[%s3971_s19 + $0x168] sm:$0xff]  ;;  %v1045_v10 = vld [vmem:[%s3971_s19 + $0x2d8] sm:$0xff] }
 0x115   : > { %2630 = vmatprep.subr.bf16.mxu1 %v2629_v45  ;;  %v1477_v23 = vmax.f32 %v1000_v20, %v1476_v21  ;;  %v1048_v14 = vld [vmem:[%s3971_s19 + $0x2f0] sm:$0xff]  ;;  %v1011_v19 = vld [vmem:[%s3971_s19 + $0x1c8] sm:$0xff] }
 0x116   : > { %v1342_v41 = vmax.f32 %v975_v35, %v1341_v37  ;;  %v1008_v15 = vld [vmem:[%s3971_s19 + $0x1b0] sm:$0xff]  ;;  %v1063_v33 = vld [vmem:[%s3971_s19 + $0x368] sm:$0xff] }
 0x117   : > { %2544 = vmatpush1.bf16.msra.mxu0 %v2543_v52  ;;  %v1478_v25 = vmax.f32 %v1003_v22, %v1477_v23  ;;  %v1054_v22 = vld [vmem:[%s3971_s19 + $0x320] sm:$0xff]  ;;  %v1060_v30 = vld [vmem:[%s3971_s19 + $0x350] sm:$0xff]  ;;  %v1023_v37 = vld [vmem:[%s3971_s19 + $0x228] sm:$0xff] }
 0x118   : > { %2632 = vmatpush1.bf16.msra.mxu1 %v2631_v55  ;;  %2546 = vmatprep.subr.bf16.mxu0 %v2545_v56  ;;  %v1343_v45 = vmax.f32 %v978_v39, %v1342_v41  ;;  %v990_v55 = vld [vmem:[%s3971_s19 + $0x120] sm:$0xff]  ;;  %v956_v35 = vld [vmem:[%s3971_s19 + $0x10] sm:$0xff]  ;;  %v965_v39 = vld [vmem:[%s3971_s19 + $0x58] sm:$0xff] }
 0x119   : > { %2634 = vmatprep.subr.bf16.mxu1 %v2633_v61  ;;  %v1479_v27 = vmax.f32 %v1006_v24, %v1478_v25  ;;  %v1014_v23 = vld [vmem:[%s3971_s19 + $0x1e0] sm:$0xff] }
 0x11a   : > { %v1344_v49 = vmax.f32 %v981_v43, %v1343_v45  ;;  %v1066_v43 = vld [vmem:[%s3971_s19 + $0x380] sm:$0xff]  ;;  %v968_v45 = vld [vmem:[%s3971_s19 + $0x70] sm:$0xff] }
 0x11b   : > { %2548 = vmatpush1.bf16.msra.mxu0 %v2547_v4  ;;  %v1480_v31 = vmax.f32 %v1009_v26, %v1479_v27  ;;  %v1057_v26 = vld [vmem:[%s3971_s19 + $0x338] sm:$0xff] }
 0x11c   : > { %2636 = vmatpush1.bf16.msra.mxu1 %v2635_v6  ;;  %2550 = vmatprep.subr.bf16.mxu0 %v2549_v7  ;;  %v1345_v53 = vmax.f32 %v984_v47, %v1344_v49  ;;  %v1042_v6 = vld [vmem:[%s3971_s19 + $0x2c0] sm:$0xff]  ;;  %v1017_v27 = vld [vmem:[%s3971_s19 + $0x1f8] sm:$0xff] }
 0x11d   : > { %2638 = vmatprep.subr.bf16.mxu1 %v2637_v11  ;;  %v1481_v36 = vmax.f32 %v1012_v28, %v1480_v31  ;;  %v1002_v7 = vld [vmem:[%s3971_s19 + $0x180] sm:$0xff]  ;;  %v1005_v11 = vld [vmem:[%s3971_s19 + $0x198] sm:$0xff]  ;;  %v1020_v31 = vld [vmem:[%s3971_s19 + $0x210] sm:$0xff] }
 0x11e   : > { %v1346_v57 = vmax.f32 %v987_v51, %v1345_v53  ;;  %v1026_v49 = vld [vmem:[%s3971_s19 + $0x240] sm:$0xff]  ;;  %v977_v51 = vld [vmem:[%s3971_s19 + $0xb8] sm:$0xff] }
 0x11f   : > { %2552 = vmatpush1.bf16.msra.mxu0 %v2551_v16  ;;  %v1482_v40 = vmax.f32 %v1015_v34, %v1481_v36  ;;  %v959_v36 = vld [vmem:[%s3971_s19 + $0x28] sm:$0xff] }
 0x120   : > { %2640 = vmatpush1.bf16.msra.mxu1 %v2639_v18  ;;  %v1347_v61 = vmax.f32 %v990_v55, %v1346_v57  ;;  %v1051_v18 = vld [vmem:[%s3971_s19 + $0x308] sm:$0xff]  ;;  %v1594_v41 = vsel %vm1592_vm0, %v959_v36, -inf  ;;  %v1069_v57 = vld [vmem:[%s3971_s19 + $0x398] sm:$0xff] }
 0x121   : > { %v1483_v44 = vmax.f32 %v1018_v38, %v1482_v40  ;;  %v962_v38 = vld [vmem:[%s3971_s19 + $0x40] sm:$0xff]  ;;  %v1593_v40 = vsel %vm1592_vm0, %v956_v35, -inf  ;;  %v1081_v35 = vld [vmem:[%s3971_s19 + $0x3f8] sm:$0xff] }
 0x122   : > { %v1348_v1 = vmax.f32 %v993_v59, %v1347_v61  ;;  %v1595_v47 = vsel %vm1592_vm0, %v962_v38, -inf  ;;  %v980_v59 = vld [vmem:[%s3971_s19 + $0xd0] sm:$0xff] }
 0x123   : > { %v1484_v48 = vmax.f32 %v1021_v42, %v1483_v44 }
 0x124   : > { %v1349_v5 = vmax.f32 %v996_v63, %v1348_v1  ;;  %v1029_v63 = vld [vmem:[%s3971_s19 + $0x258] sm:$0xff] }
 0x125   : > { %v1485_v52 = vmax.f32 %v1024_v46, %v1484_v48  ;;  %v971_v46 = vld [vmem:[%s3971_s19 + $0x88] sm:$0xff]  ;;  %v1597_v48 = vsel %vm1592_vm0, %v965_v39, -inf  ;;  %v989_v1 = vld [vmem:[%s3971_s19 + $0x118] sm:$0xff] }
 0x126   : > { %v1350_v9 = vmax.f32 %v999_v3, %v1349_v5  ;;  %v1598_v53 = vmax.f32 %v1594_v41, %v1597_v48  ;;  %v1601_v55 = vsel %vm1592_vm0, %v971_v46, -inf  ;;  %v1072_v5 = vld [vmem:[%s3971_s19 + $0x3b0] sm:$0xff]  ;;  %v1041_v39 = vld [vmem:[%s3971_s19 + $0x2b8] sm:$0xff] }
 0x127   : > { %v1486_v56 = vmax.f32 %v1027_v50, %v1485_v52  ;;  %v974_v50 = vld [vmem:[%s3971_s19 + $0xa0] sm:$0xff]  ;;  %v1596_v52 = vmax.f32 %v1593_v40, %v1595_v47  ;;  %v1013_v41 = vld [vmem:[%s3971_s19 + $0x1d8] sm:$0xff]  ;;  %v1084_v48 = vld [vmem:[%s3971_s19 + $0x410] sm:$0xff] }
 0x128   : > { %v1351_v13 = vmax.f32 %v1002_v7, %v1350_v9  ;;  %v1603_v61 = vsel %vm1592_vm0, %v974_v50, -inf  ;;  %v1602_v3 = vmax.f32 %v1598_v53, %v1601_v55  ;;  %v1607_v7 = vsel %vm1592_vm0, %v980_v59, -inf  ;;  %v1032_v9 = vld [vmem:[%s3971_s19 + $0x270] sm:$0xff]  ;;  %v1010_v40 = vld [vmem:[%s3971_s19 + $0x1c0] sm:$0xff]  ;;  %v1019_v55 = vld [vmem:[%s3971_s19 + $0x208] sm:$0xff] }
 0x129   : > { %v1487_v60 = vmax.f32 %v1030_v54, %v1486_v56  ;;  %v1599_v54 = vsel %vm1592_vm0, %v968_v45, -inf  ;;  %v1016_v50 = vld [vmem:[%s3971_s19 + $0x1f0] sm:$0xff]  ;;  %v1047_v59 = vld [vmem:[%s3971_s19 + $0x2e8] sm:$0xff] }
 0x12a   : > { %v1352_v17 = vmax.f32 %v1005_v11, %v1351_v13  ;;  %v995_v11 = vld [vmem:[%s3971_s19 + $0x148] sm:$0xff] }
 0x12b   : > { %v1488_v0 = vmax.f32 %v1033_v58, %v1487_v60  ;;  %v983_v60 = vld [vmem:[%s3971_s19 + $0xe8] sm:$0xff] }
 0x12c   : > { %v1353_v21 = vmax.f32 %v1008_v15, %v1352_v17  ;;  %v1075_v15 = vld [vmem:[%s3971_s19 + $0x3c8] sm:$0xff] }
 0x12d   : > { %v1489_v4 = vmax.f32 %v1036_v62, %v1488_v0  ;;  %v1605_v62 = vsel %vm1592_vm0, %v977_v51, -inf  ;;  %v986_v0 = vld [vmem:[%s3971_s19 + $0x100] sm:$0xff] }
 0x12e   : > { %v1354_v25 = vmax.f32 %v1011_v19, %v1353_v21  ;;  %v1606_v13 = vmax.f32 %v1602_v3, %v1605_v62  ;;  %v1611_v17 = vsel %vm1592_vm0, %v986_v0, -inf  ;;  %v1035_v19 = vld [vmem:[%s3971_s19 + $0x288] sm:$0xff]  ;;  %v1001_v21 = vld [vmem:[%s3971_s19 + $0x178] sm:$0xff]  ;;  %v1631_v0 = vsel %vm1592_vm0, %v1016_v50, -inf  ;;  %v1022_v3 = vld [vmem:[%s3971_s19 + $0x220] sm:$0xff] }
 0x12f   : > { %v1490_v8 = vmax.f32 %v1039_v2, %v1489_v4  ;;  %v1600_v2 = vmax.f32 %v1596_v52, %v1599_v54  ;;  %v1621_v38 = vsel %vm1592_vm0, %v1001_v21, -inf }
 0x130   : > { %v1355_v29 = vmax.f32 %v1014_v23, %v1354_v25  ;;  %v1078_v25 = vld [vmem:[%s3971_s19 + $0x3e0] sm:$0xff] }
 0x131   : > { %v1491_v12 = vmax.f32 %v1042_v6, %v1490_v8  ;;  %v1609_v8 = vsel %vm1592_vm0, %v983_v60, -inf }
 0x132   : > { %v1356_v34 = vmax.f32 %v1017_v27, %v1355_v29  ;;  %v1610_v23 = vmax.f32 %v1606_v13, %v1609_v8  ;;  %v1038_v29 = vld [vmem:[%s3971_s19 + $0x2a0] sm:$0xff] }
 0x133   : > { %v1492_v16 = vmax.f32 %v1045_v10, %v1491_v12  ;;  %v992_v10 = vld [vmem:[%s3971_s19 + $0x130] sm:$0xff]  ;;  %v1604_v12 = vmax.f32 %v1600_v2, %v1603_v61  ;;  %v1050_v2 = vld [vmem:[%s3971_s19 + $0x300] sm:$0xff] }
 0x134   : > { %v1357_v44 = vmax.f32 %v1020_v31, %v1356_v34  ;;  %v1615_v27 = vsel %vm1592_vm0, %v992_v10, -inf  ;;  %v1007_v31 = vld [vmem:[%s3971_s19 + $0x1a8] sm:$0xff]  ;;  %v1093_v10 = vld [vmem:[%s3971_s19 + $0x458] sm:$0xff] }
 0x135   : > { %v1493_v20 = vmax.f32 %v1048_v14, %v1492_v16  ;;  %v1625_v47 = vsel %vm1592_vm0, %v1007_v31, -inf  ;;  %v1102_v31 = vld [vmem:[%s3971_s19 + $0x4a0] sm:$0xff] }
 0x136   : > { %v1358_v58 = vmax.f32 %v1023_v37, %v1357_v44 }
 0x137   : > { %v1494_v24 = vmax.f32 %v1051_v18, %v1493_v20  ;;  %v1613_v18 = vsel %vm1592_vm0, %v989_v1, -inf  ;;  %v998_v20 = vld [vmem:[%s3971_s19 + $0x160] sm:$0xff] }
 0x138   : > { %v1359_v6 = vmax.f32 %v1026_v49, %v1358_v58  ;;  %v1619_v37 = vsel %vm1592_vm0, %v998_v20, -inf  ;;  %v1044_v49 = vld [vmem:[%s3971_s19 + $0x2d0] sm:$0xff]  ;;  %v1087_v58 = vld [vmem:[%s3971_s19 + $0x428] sm:$0xff]  ;;  %v1090_v1 = vld [vmem:[%s3971_s19 + $0x440] sm:$0xff] }
 0x139   : > { %v1495_v28 = vmax.f32 %v1054_v22, %v1494_v24  ;;  %v1608_v22 = vmax.f32 %v1604_v12, %v1607_v7 }
 0x13a   : > { %v1360_v16 = vmax.f32 %v1029_v63, %v1359_v6  ;;  %v1633_v6 = vsel %vm1592_vm0, %v1019_v55, -inf }
 0x13b   : > { %v1496_v32 = vmax.f32 %v1057_v26, %v1495_v28  ;;  %v1617_v28 = vsel %vm1592_vm0, %v995_v11, -inf  ;;  %v1053_v11 = vld [vmem:[%s3971_s19 + $0x318] sm:$0xff] }
 0x13c   : > { %v1361_v26 = vmax.f32 %v1032_v9, %v1360_v16  ;;  %v1025_v9 = vld [vmem:[%s3971_s19 + $0x238] sm:$0xff]  ;;  %v1635_v16 = vsel %vm1592_vm0, %v1022_v3, -inf }
 0x13d   : > { %v1497_v42 = vmax.f32 %v1060_v30, %v1496_v32  ;;  %v1004_v30 = vld [vmem:[%s3971_s19 + $0x190] sm:$0xff]  ;;  %v1612_v32 = vmax.f32 %v1608_v22, %v1611_v17  ;;  %v1637_v20 = vsel %vm1592_vm0, %v1025_v9, -inf  ;;  %v1077_v3 = vld [vmem:[%s3971_s19 + $0x3d8] sm:$0xff] }
 0x13e   : > { %v1362_v36 = vmax.f32 %v1035_v19, %v1361_v26  ;;  %v1623_v46 = vsel %vm1592_vm0, %v1004_v30, -inf  ;;  %v1096_v17 = vld [vmem:[%s3971_s19 + $0x470] sm:$0xff] }
 0x13f   : > { %v1498_v56 = vmax.f32 %v1063_v33, %v1497_v42  ;;  %v1614_v33 = vmax.f32 %v1610_v23, %v1613_v18  ;;  %v1616_v42 = vmax.f32 %v1612_v32, %v1615_v27  ;;  %v1056_v18 = vld [vmem:[%s3971_s19 + $0x330] sm:$0xff]  ;;  %v1031_v23 = vld [vmem:[%s3971_s19 + $0x268] sm:$0xff]  ;;  %v1062_v32 = vld [vmem:[%s3971_s19 + $0x360] sm:$0xff] }
 0x140   : > { %v1363_v45 = vmax.f32 %v1038_v29, %v1362_v36  ;;  %v1028_v19 = vld [vmem:[%s3971_s19 + $0x250] sm:$0xff] }
 0x141   : > { %v1499_v4 = vmax.f32 %v1066_v43, %v1498_v56  ;;  %v1618_v43 = vmax.f32 %v1614_v33, %v1617_v28  ;;  %v1620_v51 = vmax.f32 %v1616_v42, %v1619_v37  ;;  %v1627_v56 = vsel %vm1592_vm0, %v1010_v40, -inf  ;;  %v1034_v33 = vld [vmem:[%s3971_s19 + $0x280] sm:$0xff]  ;;  %v1037_v37 = vld [vmem:[%s3971_s19 + $0x298] sm:$0xff]  ;;  %v1120_v9 = vld [vmem:[%s3971_s19 + $0x530] sm:$0xff] }
 0x142   : > { %v1364_v54 = vmax.f32 %v1041_v39, %v1363_v45  ;;  %v1639_v30 = vsel %vm1592_vm0, %v1028_v19, -inf  ;;  %v1065_v39 = vld [vmem:[%s3971_s19 + $0x378] sm:$0xff]  ;;  %v1108_v45 = vld [vmem:[%s3971_s19 + $0x4d0] sm:$0xff] }
 0x143   : > { %v1500_v14 = vmax.f32 %v1069_v57, %v1499_v4  ;;  %v1622_v52 = vmax.f32 %v1618_v43, %v1621_v38  ;;  %v1629_v57 = vsel %vm1592_vm0, %v1013_v41, -inf  ;;  %v1624_v60 = vmax.f32 %v1620_v51, %v1623_v46  ;;  %v1105_v38 = vld [vmem:[%s3971_s19 + $0x4b8] sm:$0xff]  ;;  %v1068_v46 = vld [vmem:[%s3971_s19 + $0x390] sm:$0xff]  ;;  %v1043_v51 = vld [vmem:[%s3971_s19 + $0x2c8] sm:$0xff] }
 0x144   : > { %v1365_v63 = vmax.f32 %v1044_v49, %v1364_v54 }
 0x145   : > { %v1501_v24 = vmax.f32 %v1072_v5, %v1500_v14  ;;  %v1626_v61 = vmax.f32 %v1622_v52, %v1625_v47  ;;  %v1628_v4 = vmax.f32 %v1624_v60, %v1627_v56  ;;  %v1040_v47 = vld [vmem:[%s3971_s19 + $0x2b0] sm:$0xff]  ;;  %v1111_v52 = vld [vmem:[%s3971_s19 + $0x4e8] sm:$0xff]  ;;  %v1074_v60 = vld [vmem:[%s3971_s19 + $0x3c0] sm:$0xff] }
 0x146   : > { %v1366_v8 = vmax.f32 %v1047_v59, %v1365_v63  ;;  %v1114_v59 = vld [vmem:[%s3971_s19 + $0x500] sm:$0xff] }
 0x147   : > { %v1502_v34 = vmax.f32 %v1075_v15, %v1501_v24  ;;  %v1630_v5 = vmax.f32 %v1626_v61, %v1629_v57  ;;  %v1632_v12 = vmax.f32 %v1628_v4, %v1631_v0  ;;  %v1099_v24 = vld [vmem:[%s3971_s19 + $0x488] sm:$0xff]  ;;  %v1046_v61 = vld [vmem:[%s3971_s19 + $0x2e0] sm:$0xff] }
 0x148   : > { %v1367_v14 = vmax.f32 %v1050_v2, %v1366_v8  ;;  %v1117_v2 = vld [vmem:[%s3971_s19 + $0x518] sm:$0xff]  ;;  %v1651_v8 = vsel %vm1592_vm0, %v1046_v61, -inf }
 0x149   : > { %v1503_v44 = vmax.f32 %v1078_v25, %v1502_v34  ;;  %v1634_v15 = vmax.f32 %v1630_v5, %v1633_v6  ;;  %v1059_v25 = vld [vmem:[%s3971_s19 + $0x348] sm:$0xff]  ;;  %v1636_v26 = vmax.f32 %v1632_v12, %v1635_v16  ;;  %v1641_v34 = vsel %vm1592_vm0, %v1031_v23, -inf  ;;  %v1126_v23 = vld [vmem:[%s3971_s19 + $0x560] sm:$0xff] }
 0x14a   : > { %v1368_v22 = vmax.f32 %v1053_v11, %v1367_v14  ;;  %v1052_v11 = vld [vmem:[%s3971_s19 + $0x310] sm:$0xff]  ;;  %v1123_v16 = vld [vmem:[%s3971_s19 + $0x548] sm:$0xff] }
 0x14b   : > { %v1504_v53 = vmax.f32 %v1081_v35, %v1503_v44  ;;  %v1638_v29 = vmax.f32 %v1634_v15, %v1637_v20  ;;  %v1640_v40 = vmax.f32 %v1636_v26, %v1639_v30  ;;  %v1643_v44 = vsel %vm1592_vm0, %v1034_v33, -inf  ;;  %v1055_v15 = vld [vmem:[%s3971_s19 + $0x328] sm:$0xff]  ;;  %v1129_v30 = vld [vmem:[%s3971_s19 + $0x578] sm:$0xff] }
 0x14c   : > { %v1369_v28 = vmax.f32 %v1056_v18, %v1368_v22  ;;  %v1655_v22 = vsel %vm1592_vm0, %v1052_v11, -inf  ;;  %v1657_v26 = vsel %vm1592_vm0, %v1055_v15, -inf  ;;  %v1150_v15 = vld [vmem:[%s3971_s19 + $0x620] sm:$0xff] }
 0x14d   : > { %v1505_v62 = vmax.f32 %v1084_v48, %v1504_v53  ;;  %v1642_v43 = vmax.f32 %v1638_v29, %v1641_v34  ;;  %v1645_v48 = vsel %vm1592_vm0, %v1037_v37, -inf  ;;  %v1071_v53 = vld [vmem:[%s3971_s19 + $0x3a8] sm:$0xff]  ;;  %v1644_v54 = vmax.f32 %v1640_v40, %v1643_v44  ;;  %v1061_v29 = vld [vmem:[%s3971_s19 + $0x358] sm:$0xff]  ;;  %v1132_v37 = vld [vmem:[%s3971_s19 + $0x590] sm:$0xff] }
 0x14e   : > { %v1370_v36 = vmax.f32 %v1059_v25, %v1369_v28  ;;  %v1058_v25 = vld [vmem:[%s3971_s19 + $0x340] sm:$0xff]  ;;  %v1661_v40 = vsel %vm1592_vm0, %v1061_v29, -inf  ;;  %v1135_v44 = vld [vmem:[%s3971_s19 + $0x5a8] sm:$0xff] }
 0x14f   : > { %v1506_v7 = vmax.f32 %v1087_v58, %v1505_v62  ;;  %v1646_v57 = vmax.f32 %v1642_v43, %v1645_v48  ;;  %v1647_v58 = vsel %vm1592_vm0, %v1040_v47, -inf  ;;  %v1649_v62 = vsel %vm1592_vm0, %v1043_v51, -inf  ;;  %v1067_v43 = vld [vmem:[%s3971_s19 + $0x388] sm:$0xff]  ;;  %v1138_v51 = vld [vmem:[%s3971_s19 + $0x5c0] sm:$0xff] }
 0x150   : > { %v1371_v42 = vmax.f32 %v1062_v32, %v1370_v36  ;;  %v1648_v4 = vmax.f32 %v1644_v54, %v1647_v58  ;;  %v1659_v36 = vsel %vm1592_vm0, %v1058_v25, -inf  ;;  %v1665_v54 = vsel %vm1592_vm0, %v1067_v43, -inf  ;;  %v1141_v58 = vld [vmem:[%s3971_s19 + $0x5d8] sm:$0xff]  ;;  %v1981_v25 = vld [vmem:[%s4741_s1 + $0x428] sm:$0xff] }
 0x151   : > { %v1507_v13 = vmax.f32 %v1090_v1, %v1506_v7  ;;  %v1049_v1 = vld [vmem:[%s3971_s19 + $0x2f8] sm:$0xff]  ;;  %v1650_v7 = vmax.f32 %v1646_v57, %v1649_v62  ;;  %v1119_v43 = vld [vmem:[%s3971_s19 + $0x528] sm:$0xff] }
 0x152   : > { %v1372_v50 = vmax.f32 %v1065_v39, %v1371_v42  ;;  %v1653_v12 = vsel %vm1592_vm0, %v1049_v1, -inf  ;;  %v1652_v18 = vmax.f32 %v1648_v4, %v1651_v8  ;;  %v1064_v39 = vld [vmem:[%s3971_s19 + $0x370] sm:$0xff]  ;;  %v1073_v57 = vld [vmem:[%s3971_s19 + $0x3b8] sm:$0xff]  ;;  %v1147_v8 = vld [vmem:[%s3971_s19 + $0x608] sm:$0xff] }
 0x153   : > { %v1508_v21 = vmax.f32 %v1093_v10, %v1507_v13  ;;  %v1080_v10 = vld [vmem:[%s3971_s19 + $0x3f0] sm:$0xff]  ;;  %v1669_v4 = vsel %vm1592_vm0, %v1073_v57, -inf  ;;  %v1125_v57 = vld [vmem:[%s3971_s19 + $0x558] sm:$0xff] }
 0x154   : > { %v1373_v56 = vmax.f32 %v1068_v46, %v1372_v50  ;;  %v1656_v32 = vmax.f32 %v1652_v18, %v1655_v22  ;;  %v1663_v50 = vsel %vm1592_vm0, %v1064_v39, -inf  ;;  %v1144_v1 = vld [vmem:[%s3971_s19 + $0x5f0] sm:$0xff]  ;;  %v1082_v22 = vld [vmem:[%s3971_s19 + $0x400] sm:$0xff] }
 0x155   : > { %v1509_v27 = vmax.f32 %v1096_v17, %v1508_v21  ;;  %v1083_v17 = vld [vmem:[%s3971_s19 + $0x408] sm:$0xff]  ;;  %v1654_v21 = vmax.f32 %v1650_v7, %v1653_v12 }
 0x156   : > { %v1374_v0 = vmax.f32 %v1071_v53, %v1373_v56  ;;  %v1660_v46 = vmax.f32 %v1656_v32, %v1659_v36  ;;  %v1070_v53 = vld [vmem:[%s3971_s19 + $0x3a0] sm:$0xff]  ;;  %v1079_v7 = vld [vmem:[%s3971_s19 + $0x3e8] sm:$0xff]  ;;  %v1675_v36 = vsel %vm1592_vm0, %v1082_v22, -inf }
 0x157   : > { %v1510_v35 = vmax.f32 %v1099_v24, %v1509_v27  ;;  %v1086_v24 = vld [vmem:[%s3971_s19 + $0x420] sm:$0xff]  ;;  %v1673_v18 = vsel %vm1592_vm0, %v1079_v7, -inf  ;;  %v1131_v7 = vld [vmem:[%s3971_s19 + $0x588] sm:$0xff] }
 0x158   : > { %v1375_v6 = vmax.f32 %v1074_v60, %v1374_v0  ;;  %v1664_v60 = vmax.f32 %v1660_v46, %v1663_v50  ;;  %v1667_v0 = vsel %vm1592_vm0, %v1070_v53, -inf }
 0x159   : > { %v1511_v41 = vmax.f32 %v1102_v31, %v1510_v35  ;;  %v1089_v31 = vld [vmem:[%s3971_s19 + $0x438] sm:$0xff]  ;;  %v1658_v35 = vmax.f32 %v1654_v21, %v1657_v26 }
 0x15a   : > { %v1376_v14 = vmax.f32 %v1077_v3, %v1375_v6  ;;  %v1076_v3 = vld [vmem:[%s3971_s19 + $0x3d0] sm:$0xff]  ;;  %v1113_v21 = vld [vmem:[%s3971_s19 + $0x4f8] sm:$0xff] }
 0x15b   : > { %v1512_v49 = vmax.f32 %v1105_v38, %v1511_v41  ;;  %v1092_v38 = vld [vmem:[%s3971_s19 + $0x450] sm:$0xff]  ;;  %v1979_v26 = vld [vmem:[%s4741_s1 + $0x418] sm:$0xff] }
 0x15c   : > { %v1377_v20 = vmax.f32 %v1080_v10, %v1376_v14  ;;  %v1668_v10 = vmax.f32 %v1664_v60, %v1667_v0  ;;  %v1671_v14 = vsel %vm1592_vm0, %v1076_v3, -inf }
 0x15d   : > { %v1513_v55 = vmax.f32 %v1108_v45, %v1512_v49  ;;  %v1095_v45 = vld [vmem:[%s3971_s19 + $0x468] sm:$0xff]  ;;  %v1662_v49 = vmax.f32 %v1658_v35, %v1661_v40  ;;  %v1116_v35 = vld [vmem:[%s3971_s19 + $0x510] sm:$0xff] }
 0x15e   : > { %v1378_v28 = vmax.f32 %v1083_v17, %v1377_v20  ;;  %v1110_v17 = vld [vmem:[%s3971_s19 + $0x4e0] sm:$0xff]  ;;  %v1088_v40 = vld [vmem:[%s3971_s19 + $0x430] sm:$0xff] }
 0x15f   : > { %v1514_v63 = vmax.f32 %v1111_v52, %v1513_v55  ;;  %v1098_v52 = vld [vmem:[%s3971_s19 + $0x480] sm:$0xff]  ;;  %v1679_v50 = vsel %vm1592_vm0, %v1088_v40, -inf }
 0x160   : > { %v1379_v34 = vmax.f32 %v1086_v24, %v1378_v28  ;;  %v1977_v24 = vld [vmem:[%s4741_s1 + $0x408] sm:$0xff]  ;;  %v1186_v40 = vld [vmem:[%s3971_s19 + $0x740] sm:$0xff] }
 0x161   : > { %v1515_v5 = vmax.f32 %v1114_v59, %v1514_v63  ;;  %v1101_v59 = vld [vmem:[%s3971_s19 + $0x498] sm:$0xff]  ;;  %v1666_v63 = vmax.f32 %v1662_v49, %v1665_v54  ;;  %v2553_v29 = vpack.c.bf16 %v1981_v25, %v1977_v24  ;;  %v1122_v49 = vld [vmem:[%s3971_s19 + $0x540] sm:$0xff] }
 0x162   : > { %v1380_v42 = vmax.f32 %v1089_v31, %v1379_v34  ;;  %v1094_v54 = vld [vmem:[%s3971_s19 + $0x460] sm:$0xff] }
 0x163   : > { %v1516_v13 = vmax.f32 %v1117_v2, %v1515_v5  ;;  %v1104_v2 = vld [vmem:[%s3971_s19 + $0x4b0] sm:$0xff]  ;;  %2554 = vmatprep.subr.bf16.mxu0 %v2553_v29  ;;  %v1683_v0 = vsel %vm1592_vm0, %v1094_v54, -inf }
 0x164   : > { %v1381_v48 = vmax.f32 %v1092_v38, %v1380_v42  ;;  %v1159_v42 = vld [vmem:[%s3971_s19 + $0x668] sm:$0xff]  ;;  %v1192_v54 = vld [vmem:[%s3971_s19 + $0x770] sm:$0xff] }
 0x165   : > { %v1517_v19 = vmax.f32 %v1120_v9, %v1516_v13  ;;  %v1107_v9 = vld [vmem:[%s3971_s19 + $0x4c8] sm:$0xff]  ;;  %v1670_v13 = vmax.f32 %v1666_v63, %v1669_v4  ;;  %v1128_v63 = vld [vmem:[%s3971_s19 + $0x570] sm:$0xff] }
 0x166   : > { %v1382_v56 = vmax.f32 %v1095_v45, %v1381_v48  ;;  %v1162_v48 = vld [vmem:[%s3971_s19 + $0x680] sm:$0xff]  ;;  %v1100_v4 = vld [vmem:[%s3971_s19 + $0x490] sm:$0xff] }
 0x167   : > { %v1518_v27 = vmax.f32 %v1123_v16, %v1517_v19  ;;  %v1153_v16 = vld [vmem:[%s3971_s19 + $0x638] sm:$0xff]  ;;  %v1674_v32 = vmax.f32 %v1670_v13, %v1673_v18  ;;  %v1134_v13 = vld [vmem:[%s3971_s19 + $0x5a0] sm:$0xff] }
 0x168   : > { %v1383_v62 = vmax.f32 %v1098_v52, %v1382_v56  ;;  %v1165_v56 = vld [vmem:[%s3971_s19 + $0x698] sm:$0xff]  ;;  %v1106_v18 = vld [vmem:[%s3971_s19 + $0x4c0] sm:$0xff] }
 0x169   : > { %v1519_v33 = vmax.f32 %v1126_v23, %v1518_v27  ;;  %v1085_v23 = vld [vmem:[%s3971_s19 + $0x418] sm:$0xff]  ;;  %v1672_v27 = vmax.f32 %v1668_v10, %v1671_v14  ;;  %v1687_v14 = vsel %vm1592_vm0, %v1100_v4, -inf  ;;  %v1198_v4 = vld [vmem:[%s3971_s19 + $0x7a0] sm:$0xff] }
 0x16a   : > { %v1384_v6 = vmax.f32 %v1101_v59, %v1383_v62  ;;  %v1168_v62 = vld [vmem:[%s3971_s19 + $0x6b0] sm:$0xff] }
 0x16b   : > { %v1520_v41 = vmax.f32 %v1129_v30, %v1519_v33  ;;  %v1983_v30 = vld [vmem:[%s4741_s1 + $0x438] sm:$0xff]  ;;  %v1156_v33 = vld [vmem:[%s3971_s19 + $0x650] sm:$0xff]  ;;  %v1676_v46 = vmax.f32 %v1672_v27, %v1675_v36 }
 0x16c   : > { %v1385_v12 = vmax.f32 %v1104_v2, %v1384_v6  ;;  %v2641_v34 = vpack.c.bf16 %v1983_v30, %v1979_v26  ;;  %v1171_v6 = vld [vmem:[%s3971_s19 + $0x6c8] sm:$0xff]  ;;  %v1180_v26 = vld [vmem:[%s3971_s19 + $0x710] sm:$0xff] }
 0x16d   : > { %v1521_v47 = vmax.f32 %v1132_v37, %v1520_v41  ;;  %v1677_v37 = vsel %vm1592_vm0, %v1085_v23, -inf  ;;  %v1091_v41 = vld [vmem:[%s3971_s19 + $0x448] sm:$0xff]  ;;  %v1680_v60 = vmax.f32 %v1676_v46, %v1679_v50  ;;  %v1140_v27 = vld [vmem:[%s3971_s19 + $0x5d0] sm:$0xff]  ;;  %v1118_v46 = vld [vmem:[%s3971_s19 + $0x520] sm:$0xff] }
 0x16e   : > { %v1386_v20 = vmax.f32 %v1107_v9, %v1385_v12  ;;  %2642 = vmatprep.subr.bf16.mxu1 %v2641_v34  ;;  %v1174_v12 = vld [vmem:[%s3971_s19 + $0x6e0] sm:$0xff]  ;;  %v1183_v34 = vld [vmem:[%s3971_s19 + $0x728] sm:$0xff] }
 0x16f   : > { %v1522_v55 = vmax.f32 %v1135_v44, %v1521_v47  ;;  %v1678_v47 = vmax.f32 %v1674_v32, %v1677_v37  ;;  %v1684_v10 = vmax.f32 %v1680_v60, %v1683_v0  ;;  %v1112_v32 = vld [vmem:[%s3971_s19 + $0x4f0] sm:$0xff] }
 0x170   : > { %v1387_v31 = vmax.f32 %v1110_v17, %v1386_v20  ;;  %v1177_v20 = vld [vmem:[%s3971_s19 + $0x6f8] sm:$0xff]  ;;  %v1124_v60 = vld [vmem:[%s3971_s19 + $0x550] sm:$0xff] }
 0x171   : > { %v1523_v61 = vmax.f32 %v1138_v51, %v1522_v55  ;;  %v1681_v51 = vsel %vm1592_vm0, %v1091_v41, -inf  ;;  %v1097_v55 = vld [vmem:[%s3971_s19 + $0x478] sm:$0xff]  ;;  %v1688_v24 = vmax.f32 %v1684_v10, %v1687_v14  ;;  %v1146_v41 = vld [vmem:[%s3971_s19 + $0x600] sm:$0xff] }
 0x172   : > { %v1388_v39 = vmax.f32 %v1113_v21, %v1387_v31  ;;  %v1137_v21 = vld [vmem:[%s3971_s19 + $0x5b8] sm:$0xff]  ;;  %v1130_v10 = vld [vmem:[%s3971_s19 + $0x580] sm:$0xff] }
 0x173   : > { %v1524_v5 = vmax.f32 %v1141_v58, %v1523_v61  ;;  %v1682_v61 = vmax.f32 %v1678_v47, %v1681_v51  ;;  %v1121_v47 = vld [vmem:[%s3971_s19 + $0x538] sm:$0xff] }
 0x174   : > { %v1389_v45 = vmax.f32 %v1116_v35, %v1388_v39  ;;  %v1143_v35 = vld [vmem:[%s3971_s19 + $0x5e8] sm:$0xff] }
 0x175   : > { %v1525_v11 = vmax.f32 %v1144_v1, %v1524_v5  ;;  %v1685_v1 = vsel %vm1592_vm0, %v1097_v55, -inf  ;;  %v1103_v5 = vld [vmem:[%s3971_s19 + $0x4a8] sm:$0xff]  ;;  %v1152_v55 = vld [vmem:[%s3971_s19 + $0x630] sm:$0xff] }
 0x176   : > { %v1390_v53 = vmax.f32 %v1119_v43, %v1389_v45 }
 0x177   : > { %v1526_v19 = vmax.f32 %v1147_v8, %v1525_v11  ;;  %v1686_v11 = vmax.f32 %v1682_v61, %v1685_v1  ;;  %v1127_v61 = vld [vmem:[%s3971_s19 + $0x568] sm:$0xff] }
 0x178   : > { %v1391_v59 = vmax.f32 %v1122_v49, %v1390_v53  ;;  %v1149_v49 = vld [vmem:[%s3971_s19 + $0x618] sm:$0xff] }
 0x179   : > { %v1527_v28 = vmax.f32 %v1150_v15, %v1526_v19  ;;  %v1689_v15 = vsel %vm1592_vm0, %v1103_v5, -inf  ;;  %v1109_v19 = vld [vmem:[%s3971_s19 + $0x4d8] sm:$0xff]  ;;  %v1158_v5 = vld [vmem:[%s3971_s19 + $0x660] sm:$0xff] }
 0x17a   : > { %v1392_v3 = vmax.f32 %v1125_v57, %v1391_v59  ;;  %v1690_v25 = vmax.f32 %v1686_v11, %v1689_v15  ;;  %v1693_v29 = vsel %vm1592_vm0, %v1109_v19, -inf  ;;  %v1701_v57 = vsel %vm1592_vm0, %v1121_v47, -inf  ;;  %v1133_v11 = vld [vmem:[%s3971_s19 + $0x598] sm:$0xff]  ;;  %v1164_v19 = vld [vmem:[%s3971_s19 + $0x690] sm:$0xff] }
 0x17b   : > { %v1528_v38 = vmax.f32 %v1153_v16, %v1527_v28  ;;  %v1691_v28 = vsel %vm1592_vm0, %v1106_v18, -inf  ;;  %v1204_v18 = vld [vmem:[%s3971_s19 + $0x7d0] sm:$0xff] }
 0x17c   : > { %v1393_v9 = vmax.f32 %v1128_v63, %v1392_v3  ;;  %v1694_v39 = vmax.f32 %v1690_v25, %v1693_v29  ;;  %v1155_v63 = vld [vmem:[%s3971_s19 + $0x648] sm:$0xff]  ;;  %v1176_v47 = vld [vmem:[%s3971_s19 + $0x6f0] sm:$0xff] }
 0x17d   : > { %v1529_v44 = vmax.f32 %v1156_v33, %v1528_v38  ;;  %v1115_v33 = vld [vmem:[%s3971_s19 + $0x508] sm:$0xff]  ;;  %v1692_v38 = vmax.f32 %v1688_v24, %v1691_v28  ;;  %v1136_v24 = vld [vmem:[%s3971_s19 + $0x5b0] sm:$0xff] }
 0x17e   : > { %v1394_v17 = vmax.f32 %v1131_v7, %v1393_v9  ;;  %v1697_v43 = vsel %vm1592_vm0, %v1115_v33, -inf  ;;  %v1705_v7 = vsel %vm1592_vm0, %v1127_v61, -inf  ;;  %v1139_v25 = vld [vmem:[%s3971_s19 + $0x5c8] sm:$0xff]  ;;  %v1170_v33 = vld [vmem:[%s3971_s19 + $0x6c0] sm:$0xff] }
 0x17f   : > { %v1530_v52 = vmax.f32 %v1159_v42, %v1529_v44  ;;  %v1695_v42 = vsel %vm1592_vm0, %v1112_v32, -inf  ;;  %v1698_v53 = vmax.f32 %v1694_v39, %v1697_v43  ;;  %v1210_v32 = vld [vmem:[%s3971_s19 + $0x800] sm:$0xff]  ;;  %v1145_v39 = vld [vmem:[%s3971_s19 + $0x5f8] sm:$0xff] }
 0x180   : > { %v1395_v23 = vmax.f32 %v1134_v13, %v1394_v17  ;;  %v1161_v13 = vld [vmem:[%s3971_s19 + $0x678] sm:$0xff]  ;;  %v1182_v61 = vld [vmem:[%s3971_s19 + $0x720] sm:$0xff] }
 0x181   : > { %v1531_v58 = vmax.f32 %v1162_v48, %v1530_v52  ;;  %v1189_v48 = vld [vmem:[%s3971_s19 + $0x758] sm:$0xff]  ;;  %v1696_v52 = vmax.f32 %v1692_v38, %v1695_v42  ;;  %v1702_v3 = vmax.f32 %v1698_v53, %v1701_v57  ;;  %v1142_v38 = vld [vmem:[%s3971_s19 + $0x5e0] sm:$0xff]  ;;  %v1151_v53 = vld [vmem:[%s3971_s19 + $0x628] sm:$0xff] }
 0x182   : > { %v1396_v31 = vmax.f32 %v1137_v21, %v1395_v23  ;;  %v1709_v21 = vsel %vm1592_vm0, %v1133_v11, -inf  ;;  %v1188_v11 = vld [vmem:[%s3971_s19 + $0x750] sm:$0xff] }
 0x183   : > { %v1532_v2 = vmax.f32 %v1165_v56, %v1531_v58  ;;  %v1699_v56 = vsel %vm1592_vm0, %v1118_v46, -inf  ;;  %v1706_v17 = vmax.f32 %v1702_v3, %v1705_v7  ;;  %v1216_v46 = vld [vmem:[%s3971_s19 + $0x830] sm:$0xff]  ;;  %v1157_v3 = vld [vmem:[%s3971_s19 + $0x658] sm:$0xff] }
 0x184   : > { %v1397_v37 = vmax.f32 %v1140_v27, %v1396_v31  ;;  %v1167_v27 = vld [vmem:[%s3971_s19 + $0x6a8] sm:$0xff] }
 0x185   : > { %v1533_v8 = vmax.f32 %v1168_v62, %v1532_v2  ;;  %v1195_v62 = vld [vmem:[%s3971_s19 + $0x788] sm:$0xff]  ;;  %v1700_v2 = vmax.f32 %v1696_v52, %v1699_v56  ;;  %v1710_v31 = vmax.f32 %v1706_v17, %v1709_v21  ;;  %v1148_v52 = vld [vmem:[%s3971_s19 + $0x610] sm:$0xff] }
 0x186   : > { %v1398_v45 = vmax.f32 %v1143_v35, %v1397_v37  ;;  %v1713_v35 = vsel %vm1592_vm0, %v1139_v25, -inf  ;;  %v1163_v17 = vld [vmem:[%s3971_s19 + $0x688] sm:$0xff]  ;;  %v1194_v25 = vld [vmem:[%s3971_s19 + $0x780] sm:$0xff] }
 0x187   : > { %v1534_v16 = vmax.f32 %v1171_v6, %v1533_v8  ;;  %v1703_v6 = vsel %vm1592_vm0, %v1124_v60, -inf  ;;  %v1222_v60 = vld [vmem:[%s3971_s19 + $0x860] sm:$0xff] }
 0x188   : > { %v1399_v51 = vmax.f32 %v1146_v41, %v1398_v45  ;;  %v1173_v41 = vld [vmem:[%s3971_s19 + $0x6d8] sm:$0xff]  ;;  %v1714_v45 = vmax.f32 %v1710_v31, %v1713_v35 }
 0x189   : > { %v1535_v22 = vmax.f32 %v1174_v12, %v1534_v16  ;;  %v1201_v12 = vld [vmem:[%s3971_s19 + $0x7b8] sm:$0xff]  ;;  %v1704_v16 = vmax.f32 %v1700_v2, %v1703_v6  ;;  %v1154_v2 = vld [vmem:[%s3971_s19 + $0x640] sm:$0xff] }
 0x18a   : > { %v1400_v59 = vmax.f32 %v1149_v49, %v1399_v51  ;;  %v1717_v49 = vsel %vm1592_vm0, %v1145_v39, -inf  ;;  %v1169_v31 = vld [vmem:[%s3971_s19 + $0x6b8] sm:$0xff]  ;;  %v1200_v39 = vld [vmem:[%s3971_s19 + $0x7b0] sm:$0xff] }
 0x18b   : > { %v1536_v30 = vmax.f32 %v1177_v20, %v1535_v22  ;;  %v1707_v20 = vsel %vm1592_vm0, %v1130_v10, -inf  ;;  %v1228_v10 = vld [vmem:[%s3971_s19 + $0x890] sm:$0xff] }
 0x18c   : > { %v1401_v1 = vmax.f32 %v1152_v55, %v1400_v59  ;;  %v1179_v55 = vld [vmem:[%s3971_s19 + $0x708] sm:$0xff]  ;;  %v1718_v59 = vmax.f32 %v1714_v45, %v1717_v49 }
 0x18d   : > { %v1537_v36 = vmax.f32 %v1180_v26, %v1536_v30  ;;  %v1207_v26 = vld [vmem:[%s3971_s19 + $0x7e8] sm:$0xff]  ;;  %v1708_v30 = vmax.f32 %v1704_v16, %v1707_v20  ;;  %v1160_v16 = vld [vmem:[%s3971_s19 + $0x670] sm:$0xff] }
 0x18e   : > { %v1402_v9 = vmax.f32 %v1155_v63, %v1401_v1  ;;  %v1721_v63 = vsel %vm1592_vm0, %v1151_v53, -inf  ;;  %v1175_v45 = vld [vmem:[%s3971_s19 + $0x6e8] sm:$0xff]  ;;  %v1206_v53 = vld [vmem:[%s3971_s19 + $0x7e0] sm:$0xff] }
 0x18f   : > { %v1538_v44 = vmax.f32 %v1183_v34, %v1537_v36  ;;  %v1711_v34 = vsel %vm1592_vm0, %v1136_v24, -inf  ;;  %v1234_v24 = vld [vmem:[%s3971_s19 + $0x8c0] sm:$0xff] }
 0x190   : > { %v1403_v15 = vmax.f32 %v1158_v5, %v1402_v9  ;;  %v1185_v5 = vld [vmem:[%s3971_s19 + $0x738] sm:$0xff]  ;;  %v1722_v9 = vmax.f32 %v1718_v59, %v1721_v63 }
 0x191   : > { %v1539_v50 = vmax.f32 %v1186_v40, %v1538_v44  ;;  %v1213_v40 = vld [vmem:[%s3971_s19 + $0x818] sm:$0xff]  ;;  %v1712_v44 = vmax.f32 %v1708_v30, %v1711_v34  ;;  %v1166_v30 = vld [vmem:[%s3971_s19 + $0x6a0] sm:$0xff] }
 0x192   : > { %v1404_v23 = vmax.f32 %v1161_v13, %v1403_v15  ;;  %v1725_v13 = vsel %vm1592_vm0, %v1157_v3, -inf  ;;  %v1181_v59 = vld [vmem:[%s3971_s19 + $0x718] sm:$0xff]  ;;  %v1212_v3 = vld [vmem:[%s3971_s19 + $0x810] sm:$0xff] }
 0x193   : > { %v1540_v58 = vmax.f32 %v1189_v48, %v1539_v50  ;;  %v1715_v48 = vsel %vm1592_vm0, %v1142_v38, -inf  ;;  %v1240_v38 = vld [vmem:[%s3971_s19 + $0x8f0] sm:$0xff] }
 0x194   : > { %v1405_v29 = vmax.f32 %v1164_v19, %v1404_v23  ;;  %v1191_v19 = vld [vmem:[%s3971_s19 + $0x768] sm:$0xff]  ;;  %v1726_v23 = vmax.f32 %v1722_v9, %v1725_v13 }
 0x195   : > { %v1541_v0 = vmax.f32 %v1192_v54, %v1540_v58  ;;  %v1219_v54 = vld [vmem:[%s3971_s19 + $0x848] sm:$0xff]  ;;  %v1716_v58 = vmax.f32 %v1712_v44, %v1715_v48  ;;  %v1172_v44 = vld [vmem:[%s3971_s19 + $0x6d0] sm:$0xff] }
 0x196   : > { %v1406_v37 = vmax.f32 %v1167_v27, %v1405_v29  ;;  %v1729_v27 = vsel %vm1592_vm0, %v1163_v17, -inf  ;;  %v1187_v9 = vld [vmem:[%s3971_s19 + $0x748] sm:$0xff]  ;;  %v1218_v17 = vld [vmem:[%s3971_s19 + $0x840] sm:$0xff] }
 0x197   : > { %v1542_v8 = vmax.f32 %v1195_v62, %v1541_v0  ;;  %v1719_v62 = vsel %vm1592_vm0, %v1148_v52, -inf  ;;  %v1246_v52 = vld [vmem:[%s3971_s19 + $0x920] sm:$0xff] }
 0x198   : > { %v1407_v43 = vmax.f32 %v1170_v33, %v1406_v37  ;;  %v1197_v33 = vld [vmem:[%s3971_s19 + $0x798] sm:$0xff]  ;;  %v1730_v37 = vmax.f32 %v1726_v23, %v1729_v27 }
 0x199   : > { %v1543_v14 = vmax.f32 %v1198_v4, %v1542_v8  ;;  %v1225_v4 = vld [vmem:[%s3971_s19 + $0x878] sm:$0xff]  ;;  %v1720_v8 = vmax.f32 %v1716_v58, %v1719_v62  ;;  %v1178_v58 = vld [vmem:[%s3971_s19 + $0x700] sm:$0xff] }
 0x19a   : > { %v1408_v51 = vmax.f32 %v1173_v41, %v1407_v43  ;;  %v1733_v41 = vsel %vm1592_vm0, %v1169_v31, -inf  ;;  %v1193_v23 = vld [vmem:[%s3971_s19 + $0x778] sm:$0xff]  ;;  %v1224_v31 = vld [vmem:[%s3971_s19 + $0x870] sm:$0xff] }
 0x19b   : > { %v1544_v22 = vmax.f32 %v1201_v12, %v1543_v14  ;;  %v1723_v12 = vsel %vm1592_vm0, %v1154_v2, -inf  ;;  %v1252_v2 = vld [vmem:[%s3971_s19 + $0x950] sm:$0xff] }
 0x19c   : > { %v1409_v57 = vmax.f32 %v1176_v47, %v1408_v51  ;;  %v1203_v47 = vld [vmem:[%s3971_s19 + $0x7c8] sm:$0xff]  ;;  %v1734_v51 = vmax.f32 %v1730_v37, %v1733_v41 }
 0x19d   : > { %v1545_v28 = vmax.f32 %v1204_v18, %v1544_v22  ;;  %v1231_v18 = vld [vmem:[%s3971_s19 + $0x8a8] sm:$0xff]  ;;  %v1724_v22 = vmax.f32 %v1720_v8, %v1723_v12  ;;  %v1184_v8 = vld [vmem:[%s3971_s19 + $0x730] sm:$0xff] }
 0x19e   : > { %v1410_v1 = vmax.f32 %v1179_v55, %v1409_v57  ;;  %v1737_v55 = vsel %vm1592_vm0, %v1175_v45, -inf  ;;  %v1199_v37 = vld [vmem:[%s3971_s19 + $0x7a8] sm:$0xff]  ;;  %v1230_v45 = vld [vmem:[%s3971_s19 + $0x8a0] sm:$0xff] }
 0x19f   : > { %v1546_v36 = vmax.f32 %v1207_v26, %v1545_v28  ;;  %v1727_v26 = vsel %vm1592_vm0, %v1160_v16, -inf  ;;  %v1258_v16 = vld [vmem:[%s3971_s19 + $0x980] sm:$0xff] }
 0x1a0   : > { %v1411_v7 = vmax.f32 %v1182_v61, %v1410_v1  ;;  %v1209_v61 = vld [vmem:[%s3971_s19 + $0x7f8] sm:$0xff]  ;;  %v1738_v1 = vmax.f32 %v1734_v51, %v1737_v55 }
 0x1a1   : > { %v1547_v42 = vmax.f32 %v1210_v32, %v1546_v36  ;;  %v1237_v32 = vld [vmem:[%s3971_s19 + $0x8d8] sm:$0xff]  ;;  %v1728_v36 = vmax.f32 %v1724_v22, %v1727_v26  ;;  %v1190_v22 = vld [vmem:[%s3971_s19 + $0x760] sm:$0xff] }
 0x1a2   : > { %v1412_v15 = vmax.f32 %v1185_v5, %v1411_v7  ;;  %v1741_v5 = vsel %vm1592_vm0, %v1181_v59, -inf  ;;  %v1205_v51 = vld [vmem:[%s3971_s19 + $0x7d8] sm:$0xff]  ;;  %v1236_v59 = vld [vmem:[%s3971_s19 + $0x8d0] sm:$0xff] }
 0x1a3   : > { %v1548_v50 = vmax.f32 %v1213_v40, %v1547_v42  ;;  %v1731_v40 = vsel %vm1592_vm0, %v1166_v30, -inf  ;;  %v1264_v30 = vld [vmem:[%s3971_s19 + $0x9b0] sm:$0xff] }
 0x1a4   : > { %v1413_v21 = vmax.f32 %v1188_v11, %v1412_v15  ;;  %v1215_v11 = vld [vmem:[%s3971_s19 + $0x828] sm:$0xff]  ;;  %v1742_v15 = vmax.f32 %v1738_v1, %v1741_v5 }
 0x1a5   : > { %v1549_v56 = vmax.f32 %v1216_v46, %v1548_v50  ;;  %v1243_v46 = vld [vmem:[%s3971_s19 + $0x908] sm:$0xff]  ;;  %v1732_v50 = vmax.f32 %v1728_v36, %v1731_v40  ;;  %v1196_v36 = vld [vmem:[%s3971_s19 + $0x790] sm:$0xff] }
 0x1a6   : > { %v1414_v29 = vmax.f32 %v1191_v19, %v1413_v21  ;;  %v1745_v19 = vsel %vm1592_vm0, %v1187_v9, -inf  ;;  %v1211_v1 = vld [vmem:[%s3971_s19 + $0x808] sm:$0xff]  ;;  %v1242_v9 = vld [vmem:[%s3971_s19 + $0x900] sm:$0xff] }
 0x1a7   : > { %v1550_v0 = vmax.f32 %v1219_v54, %v1549_v56  ;;  %v1735_v54 = vsel %vm1592_vm0, %v1172_v44, -inf  ;;  %v1270_v44 = vld [vmem:[%s3971_s19 + $0x9e0] sm:$0xff] }
 0x1a8   : > { %v1415_v35 = vmax.f32 %v1194_v25, %v1414_v29  ;;  %v1221_v25 = vld [vmem:[%s3971_s19 + $0x858] sm:$0xff]  ;;  %v1746_v29 = vmax.f32 %v1742_v15, %v1745_v19 }
 0x1a9   : > { %v1551_v6 = vmax.f32 %v1222_v60, %v1550_v0  ;;  %v1249_v60 = vld [vmem:[%s3971_s19 + $0x938] sm:$0xff]  ;;  %v1736_v0 = vmax.f32 %v1732_v50, %v1735_v54  ;;  %v1202_v50 = vld [vmem:[%s3971_s19 + $0x7c0] sm:$0xff] }
 0x1aa   : > { %v1416_v43 = vmax.f32 %v1197_v33, %v1415_v35  ;;  %v1749_v33 = vsel %vm1592_vm0, %v1193_v23, -inf  ;;  %v1217_v15 = vld [vmem:[%s3971_s19 + $0x838] sm:$0xff]  ;;  %v1248_v23 = vld [vmem:[%s3971_s19 + $0x930] sm:$0xff] }
 0x1ab   : > { %v1552_v14 = vmax.f32 %v1225_v4, %v1551_v6  ;;  %v1739_v4 = vsel %vm1592_vm0, %v1178_v58, -inf  ;;  %v1276_v58 = vld [vmem:[%s3971_s19 + $0xa10] sm:$0xff] }
 0x1ac   : > { %v1417_v49 = vmax.f32 %v1200_v39, %v1416_v43  ;;  %v1227_v39 = vld [vmem:[%s3971_s19 + $0x888] sm:$0xff]  ;;  %v1750_v43 = vmax.f32 %v1746_v29, %v1749_v33 }
 0x1ad   : > { %v1553_v20 = vmax.f32 %v1228_v10, %v1552_v14  ;;  %v1255_v10 = vld [vmem:[%s3971_s19 + $0x968] sm:$0xff]  ;;  %v1740_v14 = vmax.f32 %v1736_v0, %v1739_v4  ;;  %v1208_v0 = vld [vmem:[%s3971_s19 + $0x7f0] sm:$0xff] }
 0x1ae   : > { %v1418_v57 = vmax.f32 %v1203_v47, %v1417_v49  ;;  %v1753_v47 = vsel %vm1592_vm0, %v1199_v37, -inf  ;;  %v1223_v29 = vld [vmem:[%s3971_s19 + $0x868] sm:$0xff]  ;;  %v1254_v37 = vld [vmem:[%s3971_s19 + $0x960] sm:$0xff] }
 0x1af   : > { %v1554_v28 = vmax.f32 %v1231_v18, %v1553_v20  ;;  %v1743_v18 = vsel %vm1592_vm0, %v1184_v8, -inf  ;;  %v1282_v8 = vld [vmem:[%s3971_s19 + $0xa40] sm:$0xff] }
 0x1b0   : > { %v1419_v63 = vmax.f32 %v1206_v53, %v1418_v57  ;;  %v1233_v53 = vld [vmem:[%s3971_s19 + $0x8b8] sm:$0xff]  ;;  %v1754_v57 = vmax.f32 %v1750_v43, %v1753_v47 }
 0x1b1   : > { %v1555_v34 = vmax.f32 %v1234_v24, %v1554_v28  ;;  %v1261_v24 = vld [vmem:[%s3971_s19 + $0x998] sm:$0xff]  ;;  %v1744_v28 = vmax.f32 %v1740_v14, %v1743_v18  ;;  %v1214_v14 = vld [vmem:[%s3971_s19 + $0x820] sm:$0xff] }
 0x1b2   : > { %v1420_v7 = vmax.f32 %v1209_v61, %v1419_v63  ;;  %v1757_v61 = vsel %vm1592_vm0, %v1205_v51, -inf  ;;  %v1229_v43 = vld [vmem:[%s3971_s19 + $0x898] sm:$0xff]  ;;  %v1260_v51 = vld [vmem:[%s3971_s19 + $0x990] sm:$0xff] }
 0x1b3   : > { %v1556_v42 = vmax.f32 %v1237_v32, %v1555_v34  ;;  %v1747_v32 = vsel %vm1592_vm0, %v1190_v22, -inf  ;;  %v1288_v22 = vld [vmem:[%s3971_s19 + $0xa70] sm:$0xff] }
 0x1b4   : > { %v1421_v13 = vmax.f32 %v1212_v3, %v1420_v7  ;;  %v1239_v3 = vld [vmem:[%s3971_s19 + $0x8e8] sm:$0xff]  ;;  %v1758_v7 = vmax.f32 %v1754_v57, %v1757_v61 }
 0x1b5   : > { %v1557_v48 = vmax.f32 %v1240_v38, %v1556_v42  ;;  %v1267_v38 = vld [vmem:[%s3971_s19 + $0x9c8] sm:$0xff]  ;;  %v1748_v42 = vmax.f32 %v1744_v28, %v1747_v32  ;;  %v1220_v28 = vld [vmem:[%s3971_s19 + $0x850] sm:$0xff] }
 0x1b6   : > { %v1422_v21 = vmax.f32 %v1215_v11, %v1421_v13  ;;  %v1761_v11 = vsel %vm1592_vm0, %v1211_v1, -inf  ;;  %v1235_v57 = vld [vmem:[%s3971_s19 + $0x8c8] sm:$0xff]  ;;  %v1266_v1 = vld [vmem:[%s3971_s19 + $0x9c0] sm:$0xff] }
 0x1b7   : > { %v1558_v56 = vmax.f32 %v1243_v46, %v1557_v48  ;;  %v1751_v46 = vsel %vm1592_vm0, %v1196_v36, -inf  ;;  %v1294_v36 = vld [vmem:[%s3971_s19 + $0xaa0] sm:$0xff] }
 0x1b8   : > { %v1423_v27 = vmax.f32 %v1218_v17, %v1422_v21  ;;  %v1245_v17 = vld [vmem:[%s3971_s19 + $0x918] sm:$0xff]  ;;  %v1762_v21 = vmax.f32 %v1758_v7, %v1761_v11 }
 0x1b9   : > { %v1559_v62 = vmax.f32 %v1246_v52, %v1558_v56  ;;  %v1273_v52 = vld [vmem:[%s3971_s19 + $0x9f8] sm:$0xff]  ;;  %v1752_v56 = vmax.f32 %v1748_v42, %v1751_v46  ;;  %v1226_v42 = vld [vmem:[%s3971_s19 + $0x880] sm:$0xff] }
 0x1ba   : > { %v1424_v35 = vmax.f32 %v1221_v25, %v1423_v27  ;;  %v1765_v25 = vsel %vm1592_vm0, %v1217_v15, -inf  ;;  %v1241_v7 = vld [vmem:[%s3971_s19 + $0x8f8] sm:$0xff]  ;;  %v1272_v15 = vld [vmem:[%s3971_s19 + $0x9f0] sm:$0xff] }
 0x1bb   : > { %v1560_v6 = vmax.f32 %v1249_v60, %v1559_v62  ;;  %v1755_v60 = vsel %vm1592_vm0, %v1202_v50, -inf  ;;  %v1300_v50 = vld [vmem:[%s3971_s19 + $0xad0] sm:$0xff] }
 0x1bc   : > { %v1425_v41 = vmax.f32 %v1224_v31, %v1424_v35  ;;  %v1251_v31 = vld [vmem:[%s3971_s19 + $0x948] sm:$0xff]  ;;  %v1766_v35 = vmax.f32 %v1762_v21, %v1765_v25 }
 0x1bd   : > { %v1561_v12 = vmax.f32 %v1252_v2, %v1560_v6  ;;  %v1279_v2 = vld [vmem:[%s3971_s19 + $0xa28] sm:$0xff]  ;;  %v1756_v6 = vmax.f32 %v1752_v56, %v1755_v60  ;;  %v1232_v56 = vld [vmem:[%s3971_s19 + $0x8b0] sm:$0xff] }
 0x1be   : > { %v1426_v49 = vmax.f32 %v1227_v39, %v1425_v41  ;;  %v1769_v39 = vsel %vm1592_vm0, %v1223_v29, -inf  ;;  %v1247_v21 = vld [vmem:[%s3971_s19 + $0x928] sm:$0xff]  ;;  %v1278_v29 = vld [vmem:[%s3971_s19 + $0xa20] sm:$0xff] }
 0x1bf   : > { %v1562_v20 = vmax.f32 %v1255_v10, %v1561_v12  ;;  %v1759_v10 = vsel %vm1592_vm0, %v1208_v0, -inf  ;;  %v1306_v0 = vld [vmem:[%s3971_s19 + $0xb00] sm:$0xff] }
 0x1c0   : > { %v1427_v55 = vmax.f32 %v1230_v45, %v1426_v49  ;;  %v1257_v45 = vld [vmem:[%s3971_s19 + $0x978] sm:$0xff]  ;;  %v1770_v49 = vmax.f32 %v1766_v35, %v1769_v39 }
 0x1c1   : > { %v1563_v26 = vmax.f32 %v1258_v16, %v1562_v20  ;;  %v1285_v16 = vld [vmem:[%s3971_s19 + $0xa58] sm:$0xff]  ;;  %v1760_v20 = vmax.f32 %v1756_v6, %v1759_v10  ;;  %v1238_v6 = vld [vmem:[%s3971_s19 + $0x8e0] sm:$0xff] }
 0x1c2   : > { %v1428_v63 = vmax.f32 %v1233_v53, %v1427_v55  ;;  %v1773_v53 = vsel %vm1592_vm0, %v1229_v43, -inf  ;;  %v1253_v35 = vld [vmem:[%s3971_s19 + $0x958] sm:$0xff]  ;;  %v1284_v43 = vld [vmem:[%s3971_s19 + $0xa50] sm:$0xff] }
 0x1c3   : > { %v1564_v34 = vmax.f32 %v1261_v24, %v1563_v26  ;;  %v1763_v24 = vsel %vm1592_vm0, %v1214_v14, -inf  ;;  %v1312_v14 = vld [vmem:[%s3971_s19 + $0xb30] sm:$0xff] }
 0x1c4   : > { %v1429_v5 = vmax.f32 %v1236_v59, %v1428_v63  ;;  %v1263_v59 = vld [vmem:[%s3971_s19 + $0x9a8] sm:$0xff]  ;;  %v1774_v63 = vmax.f32 %v1770_v49, %v1773_v53 }
 0x1c5   : > { %v1565_v40 = vmax.f32 %v1264_v30, %v1564_v34  ;;  %v1291_v30 = vld [vmem:[%s3971_s19 + $0xa88] sm:$0xff]  ;;  %v1764_v34 = vmax.f32 %v1760_v20, %v1763_v24  ;;  %v1244_v20 = vld [vmem:[%s3971_s19 + $0x910] sm:$0xff] }
 0x1c6   : > { %v1430_v13 = vmax.f32 %v1239_v3, %v1429_v5  ;;  %v1777_v3 = vsel %vm1592_vm0, %v1235_v57, -inf  ;;  %v1259_v49 = vld [vmem:[%s3971_s19 + $0x988] sm:$0xff]  ;;  %v1290_v57 = vld [vmem:[%s3971_s19 + $0xa80] sm:$0xff] }
 0x1c7   : > { %v1566_v48 = vmax.f32 %v1267_v38, %v1565_v40  ;;  %v1767_v38 = vsel %vm1592_vm0, %v1220_v28, -inf  ;;  %v1318_v28 = vld [vmem:[%s3971_s19 + $0xb60] sm:$0xff] }
 0x1c8   : > { %v1431_v19 = vmax.f32 %v1242_v9, %v1430_v13  ;;  %v1269_v9 = vld [vmem:[%s3971_s19 + $0x9d8] sm:$0xff]  ;;  %v1778_v13 = vmax.f32 %v1774_v63, %v1777_v3  ;;  %v1262_v63 = vld [vmem:[%s3971_s19 + $0x9a0] sm:$0xff] }
 0x1c9   : > { %v1567_v54 = vmax.f32 %v1270_v44, %v1566_v48  ;;  %v1297_v44 = vld [vmem:[%s3971_s19 + $0xab8] sm:$0xff]  ;;  %v1768_v48 = vmax.f32 %v1764_v34, %v1767_v38  ;;  %v1250_v34 = vld [vmem:[%s3971_s19 + $0x940] sm:$0xff] }
 0x1ca   : > { %v1432_v27 = vmax.f32 %v1245_v17, %v1431_v19  ;;  %v1781_v17 = vsel %vm1592_vm0, %v1241_v7, -inf  ;;  %v1293_v3 = vld [vmem:[%s3971_s19 + $0xa98] sm:$0xff] }
 0x1cb   : > { %v1568_v62 = vmax.f32 %v1273_v52, %v1567_v54  ;;  %v1771_v52 = vsel %vm1592_vm0, %v1226_v42, -inf  ;;  %v1324_v42 = vld [vmem:[%s3971_s19 + $0xb90] sm:$0xff] }
 0x1cc   : > { %v1433_v33 = vmax.f32 %v1248_v23, %v1432_v27  ;;  %v1275_v23 = vld [vmem:[%s3971_s19 + $0xa08] sm:$0xff]  ;;  %v1782_v27 = vmax.f32 %v1778_v13, %v1781_v17  ;;  %v1268_v17 = vld [vmem:[%s3971_s19 + $0x9d0] sm:$0xff] }
 0x1cd   : > { %v1569_v4 = vmax.f32 %v1276_v58, %v1568_v62  ;;  %v1303_v58 = vld [vmem:[%s3971_s19 + $0xae8] sm:$0xff]  ;;  %v1772_v62 = vmax.f32 %v1768_v48, %v1771_v52  ;;  %v1256_v48 = vld [vmem:[%s3971_s19 + $0x970] sm:$0xff] }
 0x1ce   : > { %v1434_v41 = vmax.f32 %v1251_v31, %v1433_v33  ;;  %v1785_v31 = vsel %vm1592_vm0, %v1247_v21, -inf }
 0x1cf   : > { %v1570_v12 = vmax.f32 %v1279_v2, %v1569_v4  ;;  %v1775_v2 = vsel %vm1592_vm0, %v1232_v56, -inf  ;;  %v1330_v56 = vld [vmem:[%s3971_s19 + $0xbc0] sm:$0xff] }
 0x1d0   : > { %v1435_v47 = vmax.f32 %v1254_v37, %v1434_v41  ;;  %v1281_v37 = vld [vmem:[%s3971_s19 + $0xa38] sm:$0xff]  ;;  %v1786_v41 = vmax.f32 %v1782_v27, %v1785_v31 }
 0x1d1   : > { %v1571_v18 = vmax.f32 %v1282_v8, %v1570_v12  ;;  %v1309_v8 = vld [vmem:[%s3971_s19 + $0xb18] sm:$0xff]  ;;  %v1776_v12 = vmax.f32 %v1772_v62, %v1775_v2 }
 0x1d2   : > { %v1436_v55 = vmax.f32 %v1257_v45, %v1435_v47  ;;  %v1789_v45 = vsel %vm1592_vm0, %v1253_v35, -inf  ;;  %v1333_v2 = vld [vmem:[%s3971_s19 + $0xbd8] sm:$0xff] }
 0x1d3   : > { %v1572_v26 = vmax.f32 %v1285_v16, %v1571_v18  ;;  %v1779_v16 = vsel %vm1592_vm0, %v1238_v6, -inf  ;;  %v1277_v31 = vld [vmem:[%s3971_s19 + $0xa18] sm:$0xff] }
 0x1d4   : > { %v1437_v61 = vmax.f32 %v1260_v51, %v1436_v55  ;;  %v1287_v51 = vld [vmem:[%s3971_s19 + $0xa68] sm:$0xff]  ;;  %v1790_v55 = vmax.f32 %v1786_v41, %v1789_v45  ;;  %v1280_v41 = vld [vmem:[%s3971_s19 + $0xa30] sm:$0xff] }
 0x1d5   : > { %v1573_v32 = vmax.f32 %v1288_v22, %v1572_v26  ;;  %v1315_v22 = vld [vmem:[%s3971_s19 + $0xb48] sm:$0xff]  ;;  %v1780_v26 = vmax.f32 %v1776_v12, %v1779_v16  ;;  %v1795_v12 = vsel %vm1592_vm0, %v1262_v63, -inf }
 0x1d6   : > { %v1438_v5 = vmax.f32 %v1263_v59, %v1437_v61  ;;  %v1793_v59 = vsel %vm1592_vm0, %v1259_v49, -inf  ;;  %v1323_v63 = vld [vmem:[%s3971_s19 + $0xb88] sm:$0xff] }
 0x1d7   : > { %v1574_v40 = vmax.f32 %v1291_v30, %v1573_v32  ;;  %v1783_v30 = vsel %vm1592_vm0, %v1244_v20, -inf  ;;  %v1299_v20 = vld [vmem:[%s3971_s19 + $0xac8] sm:$0xff] }
 0x1d8   : > { %v1439_v11 = vmax.f32 %v1266_v1, %v1438_v5  ;;  %v961_v1 = vld [vmem:[%s3971_s19 + $0x38] sm:$0xff]  ;;  %v964_v5 = vld [vmem:[%s3971_s19 + $0x50] sm:$0xff] }
 0x1d9   : > { %v1575_v46 = vmax.f32 %v1294_v36, %v1574_v40  ;;  %v1321_v36 = vld [vmem:[%s3971_s19 + $0xb78] sm:$0xff]  ;;  %v1784_v40 = vmax.f32 %v1780_v26, %v1783_v30  ;;  %v1799_v26 = vsel %vm1592_vm0, %v1268_v17, -inf  ;;  %v1274_v30 = vld [vmem:[%s3971_s19 + $0xa00] sm:$0xff] }
 0x1da   : > { %v1440_v19 = vmax.f32 %v1269_v9, %v1439_v11  ;;  %v1794_v9 = vmax.f32 %v1790_v55, %v1793_v59  ;;  %v1296_v11 = vld [vmem:[%s3971_s19 + $0xab0] sm:$0xff] }
 0x1db   : > { %v1576_v54 = vmax.f32 %v1297_v44, %v1575_v46  ;;  %v1787_v44 = vsel %vm1592_vm0, %v1250_v34, -inf }
 0x1dc   : > { %v1441_v25 = vmax.f32 %v1272_v15, %v1440_v19 }
 0x1dd   : > { %v1577_v60 = vmax.f32 %v1300_v50, %v1576_v54  ;;  %v1327_v50 = vld [vmem:[%s3971_s19 + $0xba8] sm:$0xff]  ;;  %v1788_v54 = vmax.f32 %v1784_v40, %v1787_v44 }
 0x1de   : > { %v1442_v33 = vmax.f32 %v1275_v23, %v1441_v25  ;;  %v1302_v25 = vld [vmem:[%s3971_s19 + $0xae0] sm:$0xff] }
 0x1df   : > { %v1578_v4 = vmax.f32 %v1303_v58, %v1577_v60  ;;  %v1791_v58 = vsel %vm1592_vm0, %v1256_v48, -inf  ;;  %v955_v60 = vld [vmem:[%s3971_s19 + $0x8] sm:$0xff]  ;;  %v1807_v48 = vsel %vm1592_vm0, %v1280_v41, -inf  ;;  %v1991_v41 = vld [vmem:[%s4741_s1 + $0x478] sm:$0xff] }
 0x1e0   : > { %v1443_v39 = vmax.f32 %v1278_v29, %v1442_v33  ;;  %v1465_v15 = vmax.f32 %v955_v60, %v961_v1 }
 0x1e1   : > { %v1579_v10 = vmax.f32 %v1306_v0, %v1578_v4  ;;  %v1265_v0 = vld [vmem:[%s3971_s19 + $0x9b8] sm:$0xff]  ;;  %v958_v4 = vld [vmem:[%s3971_s19 + $0x20] sm:$0xff] }
 0x1e2   : > { %v1444_v47 = vmax.f32 %v1281_v37, %v1443_v39  ;;  %v1797_v13 = vsel %vm1592_vm0, %v1265_v0, -inf  ;;  %v1466_v19 = vmax.f32 %v958_v4, %v964_v5  ;;  %v1308_v37 = vld [vmem:[%s3971_s19 + $0xb10] sm:$0xff]  ;;  %v1805_v39 = vsel %vm1592_vm0, %v1277_v31, -inf }
 0x1e3   : > { %v1580_v18 = vmax.f32 %v1309_v8, %v1579_v10  ;;  %v1792_v8 = vmax.f32 %v1788_v54, %v1791_v58  ;;  %v1336_v10 = vld [vmem:[%s3971_s19 + $0xbf0] sm:$0xff] }
 0x1e4   : > { %v1445_v53 = vmax.f32 %v1284_v43, %v1444_v47  ;;  %v1311_v43 = vld [vmem:[%s3971_s19 + $0xb28] sm:$0xff]  ;;  %v1314_v47 = vld [vmem:[%s3971_s19 + $0xb40] sm:$0xff]  ;;  %v1982_v31 = vld [vmem:[%s4741_s1 + $0x430] sm:$0xff] }
 0x1e5   : > { %v1581_v24 = vmax.f32 %v1312_v14, %v1580_v18  ;;  %v1271_v18 = vld [vmem:[%s3971_s19 + $0x9e8] sm:$0xff]  ;;  %v1796_v23 = vmax.f32 %v1792_v8, %v1795_v12  ;;  %v1301_v8 = vld [vmem:[%s3971_s19 + $0xad8] sm:$0xff] }
 0x1e6   : > { %v1446_v62 = vmax.f32 %v1287_v51, %v1445_v53  ;;  %v1801_v27 = vsel %vm1592_vm0, %v1271_v18, -inf  ;;  %v1286_v51 = vld [vmem:[%s3971_s19 + $0xa60] sm:$0xff]  ;;  %v1317_v53 = vld [vmem:[%s3971_s19 + $0xb58] sm:$0xff]  ;;  %v1821_v17 = vsel %vm1592_vm0, %v1301_v8, -inf }
 0x1e7   : > { %v1582_v32 = vmax.f32 %v1315_v22, %v1581_v24  ;;  %v1798_v24 = vmax.f32 %v1794_v9, %v1797_v13  ;;  %v1800_v35 = vmax.f32 %v1796_v23, %v1799_v26  ;;  %v1811_v58 = vsel %vm1592_vm0, %v1286_v51, -inf  ;;  %v1329_v9 = vld [vmem:[%s3971_s19 + $0xbb8] sm:$0xff]  ;;  %v954_v13 = vld [vmem:[%s3971_s19] sm:$0xff]  ;;  %v1335_v23 = vld [vmem:[%s3971_s19 + $0xbe8] sm:$0xff] }
 0x1e8   : > { %v1447_v7 = vmax.f32 %v1290_v57, %v1446_v62  ;;  %v1320_v57 = vld [vmem:[%s3971_s19 + $0xb70] sm:$0xff]  ;;  %v1295_v62 = vld [vmem:[%s3971_s19 + $0xaa8] sm:$0xff]  ;;  %v1976_v26 = vld [vmem:[%s4741_s1 + $0x400] sm:$0xff] }
 0x1e9   : > { %v1583_v38 = vmax.f32 %v1318_v28, %v1582_v32  ;;  %v1305_v32 = vld [vmem:[%s3971_s19 + $0xaf8] sm:$0xff]  ;;  %v1817_v5 = vsel %vm1592_vm0, %v1295_v62, -inf  ;;  %v1992_v62 = vld [vmem:[%s4741_s1 + $0x480] sm:$0xff] }
 0x1ea   : > { %v1448_v16 = vmax.f32 %v1293_v3, %v1447_v7  ;;  %v1326_v3 = vld [vmem:[%s3971_s19 + $0xba0] sm:$0xff] }
 0x1eb   : > { %v1584_v46 = vmax.f32 %v1321_v36, %v1583_v38  ;;  %v1802_v36 = vmax.f32 %v1798_v24, %v1801_v27  ;;  %v1803_v38 = vsel %vm1592_vm0, %v1274_v30, -inf  ;;  %v1298_v7 = vld [vmem:[%s3971_s19 + $0xac0] sm:$0xff]  ;;  %v1978_v30 = vld [vmem:[%s4741_s1 + $0x410] sm:$0xff] }
 0x1ec   : > { %v1449_v22 = vmax.f32 %v1296_v11, %v1448_v16  ;;  %v1804_v45 = vmax.f32 %v1800_v35, %v1803_v38  ;;  %v1819_v16 = vsel %vm1592_vm0, %v1298_v7, -inf  ;;  %v1313_v38 = vld [vmem:[%s3971_s19 + $0xb38] sm:$0xff] }
 0x1ed   : > { %v1585_v52 = vmax.f32 %v1324_v42, %v1584_v46  ;;  %v1283_v42 = vld [vmem:[%s3971_s19 + $0xa48] sm:$0xff]  ;;  %v1806_v46 = vmax.f32 %v1802_v36, %v1805_v39 }
 0x1ee   : > { %v1450_v29 = vmax.f32 %v1299_v20, %v1449_v22  ;;  %v1809_v49 = vsel %vm1592_vm0, %v1283_v42, -inf  ;;  %v1808_v55 = vmax.f32 %v1804_v45, %v1807_v48  ;;  %v1307_v20 = vld [vmem:[%s3971_s19 + $0xb08] sm:$0xff]  ;;  %v1988_v48 = vld [vmem:[%s4741_s1 + $0x460] sm:$0xff] }
 0x1ef   : > { %v1586_v61 = vmax.f32 %v1327_v50, %v1585_v52  ;;  %v1289_v52 = vld [vmem:[%s3971_s19 + $0xa78] sm:$0xff]  ;;  %v963_v22 = vld [vmem:[%s3971_s19 + $0x48] sm:$0xff] }
 0x1f0   : > { %v1451_v34 = vmax.f32 %v1302_v25, %v1450_v29  ;;  %v1813_v59 = vsel %vm1592_vm0, %v1289_v52, -inf  ;;  %v1812_v1 = vmax.f32 %v1808_v55, %v1811_v58  ;;  %v1980_v29 = vld [vmem:[%s4741_s1 + $0x420] sm:$0xff]  ;;  %v1985_v36 = vld [vmem:[%s4741_s1 + $0x448] sm:$0xff]  ;;  %v1829_v52 = vsel %vm1592_vm0, %v1313_v38, -inf }
 0x1f1   : > { %v1587_v6 = vmax.f32 %v1330_v56, %v1586_v61  ;;  %v1810_v56 = vmax.f32 %v1806_v46, %v1809_v49  ;;  %v1292_v61 = vld [vmem:[%s3971_s19 + $0xa90] sm:$0xff]  ;;  %v1989_v39 = vld [vmem:[%s4741_s1 + $0x468] sm:$0xff]  ;;  %v2555_v46 = vpack.c.bf16 %v1980_v29, %v1976_v26 }
 0x1f2   : > { %v1452_v40 = vmax.f32 %v1305_v32, %v1451_v34  ;;  %v1815_v4 = vsel %vm1592_vm0, %v1292_v61, -inf  ;;  %v1986_v49 = vld [vmem:[%s4741_s1 + $0x450] sm:$0xff]  ;;  %v1319_v58 = vld [vmem:[%s3971_s19 + $0xb68] sm:$0xff]  ;;  %v1999_v61 = vld [vmem:[%s4741_s1 + $0x4b8] sm:$0xff] }
 0x1f3   : > { %v1588_v14 = vmax.f32 %v1333_v2, %v1587_v6  ;;  %v1814_v2 = vmax.f32 %v1810_v56, %v1813_v59  ;;  %v1816_v11 = vmax.f32 %v1812_v1, %v1815_v4  ;;  %v1993_v56 = vld [vmem:[%s4741_s1 + $0x488] sm:$0xff]  ;;  %v1994_v4 = vld [vmem:[%s4741_s1 + $0x490] sm:$0xff]  ;;  %v1833_v7 = vsel %vm1592_vm0, %v1319_v58, -inf }
 0x1f4   : > { %v1453_v44 = vmax.f32 %v1308_v37, %v1452_v40  ;;  %v1310_v37 = vld [vmem:[%s3971_s19 + $0xb20] sm:$0xff]  ;;  %v1987_v40 = vld [vmem:[%s4741_s1 + $0x458] sm:$0xff]  ;;  %v1997_v59 = vld [vmem:[%s4741_s1 + $0x4a8] sm:$0xff] }
 0x1f5   : > { %v1589_v21 = vmax.f32 %v1336_v10, %v1588_v14  ;;  %v1818_v12 = vmax.f32 %v1814_v2, %v1817_v5  ;;  %v960_v14 = vld [vmem:[%s3971_s19 + $0x30] sm:$0xff]  ;;  %v1820_v27 = vmax.f32 %v1816_v11, %v1819_v16  ;;  %v1827_v51 = vsel %vm1592_vm0, %v1310_v37, -inf  ;;  %v1322_v11 = vld [vmem:[%s3971_s19 + $0xb80] sm:$0xff]  ;;  %v2009_v29 = vld [vmem:[%s4741_s1 + $0x508] sm:$0xff] }
 0x1f6   : > { %v1454_v50 = vmax.f32 %v1311_v43, %v1453_v44  ;;  %v1338_v25 = vmax.f32 %v954_v13, %v960_v14  ;;  %v1984_v43 = vld [vmem:[%s4741_s1 + $0x440] sm:$0xff]  ;;  %v2645_v55 = vpack.c.bf16 %v1991_v41, %v1987_v40  ;;  %v1998_v5 = vld [vmem:[%s4741_s1 + $0x4b0] sm:$0xff]  ;;  %v2561_v8 = vpack.c.bf16 %v1997_v59, %v1993_v56  ;;  %v2005_v13 = vld [vmem:[%s4741_s1 + $0x4e8] sm:$0xff] }
 0x1f7   : > { %v1590_v28 = vmax.f32 %v1465_v15, %v1589_v21  ;;  %v1332_v15 = vld [vmem:[%s3971_s19 + $0xbd0] sm:$0xff]  ;;  %v957_v21 = vld [vmem:[%s3971_s19 + $0x18] sm:$0xff]  ;;  %v2559_v1 = vpack.c.bf16 %v1988_v48, %v1984_v43  ;;  %v2802_v16 = vmov 0.0   ;;  %v2012_v40 = vld [vmem:[%s4741_s1 + $0x520] sm:$0xff] }
 0x1f8   : > { %v1455_v54 = vmax.f32 %v1314_v47, %v1454_v50  ;;  %v1339_v35 = vmax.f32 %v957_v21, %v963_v22  ;;  %v2643_v47 = vpack.c.bf16 %v1982_v31, %v1978_v30  ;;  %v1990_v50 = vld [vmem:[%s4741_s1 + $0x470] sm:$0xff]  ;;  %v2003_v14 = vld [vmem:[%s4741_s1 + $0x4d8] sm:$0xff]  ;;  %v2651_v21 = vpack.c.bf16 %v1998_v5, %v1994_v4  ;;  %v2004_v22 = vld [vmem:[%s4741_s1 + $0x4e0] sm:$0xff] }
 0x1f9   : > { %v1591_v33 = vmax.f32 %v1466_v19, %v1590_v28  ;;  %v1304_v19 = vld [vmem:[%s3971_s19 + $0xaf0] sm:$0xff]  ;;  %v1822_v28 = vmax.f32 %v1818_v12, %v1821_v17  ;;  %v2647_v2 = vpack.c.bf16 %v1990_v50, %v1986_v49  ;;  %v1325_v12 = vld [vmem:[%s3971_s19 + $0xb98] sm:$0xff]  ;;  %v2000_v17 = vld [vmem:[%s4741_s1 + $0x4c0] sm:$0xff] }
 0x1fa   : > { %v1456_v60 = vmax.f32 %v1317_v53, %v1455_v54  ;;  %v1823_v32 = vsel %vm1592_vm0, %v1304_v19, -inf  ;;  %v2557_v54 = vpack.c.bf16 %v1989_v39, %v1985_v36  ;;  %v1837_v26 = vsel %vm1592_vm0, %v1325_v12, -inf  ;;  %v1328_v30 = vld [vmem:[%s3971_s19 + $0xbb0] sm:$0xff]  ;;  %v1331_v31 = vld [vmem:[%s3971_s19 + $0xbc8] sm:$0xff]  ;;  %v1334_v48 = vld [vmem:[%s3971_s19 + $0xbe0] sm:$0xff] }
 0x1fb   : > { %2091 = vmatprep.mubr.f32.mxu0 %v1591_v33  ;;  %2233 = vmatprep.mubr.f32.mxu1 %v1591_v33  ;;  %v1825_v33 = vsel %vm1592_vm0, %v1307_v20, -inf  ;;  %v1824_v44 = vmax.f32 %v1820_v27, %v1823_v32  ;;  %v2013_v32 = vld [vmem:[%s4741_s1 + $0x528] sm:$0xff]  ;;  %v2567_v38 = vpack.c.bf16 %v2004_v22, %v2000_v17  ;;  %v2010_v41 = vld [vmem:[%s4741_s1 + $0x510] sm:$0xff]  ;;  %v1839_v43 = vsel %vm1592_vm0, %v1328_v30, -inf  ;;  %v1337_v49 = vld [vmem:[%s3971_s19 + $0xbf8] sm:$0xff] }
 0x1fc   : > { %v1457_v0 = vmax.f32 %v1320_v57, %v1456_v60  ;;  %v1826_v45 = vmax.f32 %v1822_v28, %v1825_v33  ;;  %v1316_v57 = vld [vmem:[%s3971_s19 + $0xb50] sm:$0xff]  ;;  %v1995_v60 = vld [vmem:[%s4741_s1 + $0x498] sm:$0xff]  ;;  %v2021_v50 = vld [vmem:[%s4741_s1 + $0x568] sm:$0xff]  ;;  %v1843_v58 = vsel %vm1592_vm0, %v1334_v48, -inf  ;;  %v1845_v59 = vsel %vm1592_vm0, %v1337_v49, -inf  ;;  %s2815_s19 = smov 59  }
 0x1fd   : > { %v2011_v33 = vld [vmem:[%s4741_s1 + $0x518] sm:$0xff] }
 0x1fe   : > { %v1458_v6 = vmax.f32 %v1323_v63, %v1457_v0  ;;  %v1828_v63 = vmax.f32 %v1824_v44, %v1827_v51  ;;  %v1830_v0 = vmax.f32 %v1826_v45, %v1829_v52  ;;  %v1841_v44 = vsel %vm1592_vm0, %v1331_v31, -inf  ;;  %v2019_v51 = vld [vmem:[%s4741_s1 + $0x558] sm:$0xff] }
 0x1ff   : > { %v2569_v45 = vpack.c.bf16 %v2013_v32, %v2009_v29  ;;  %v2023_v52 = vld [vmem:[%s4741_s1 + $0x578] sm:$0xff] }
 0x200   : > { %v1459_v10 = vmax.f32 %v1326_v3, %v1458_v6  ;;  %v1996_v3 = vld [vmem:[%s4741_s1 + $0x4a0] sm:$0xff]  ;;  %v1831_v6 = vsel %vm1592_vm0, %v1316_v57, -inf  ;;  %v1834_v19 = vmax.f32 %v1830_v0, %v1833_v7  ;;  %v2022_v0 = vld [vmem:[%s4741_s1 + $0x570] sm:$0xff] }
 0x201   : > { %v2563_v20 = vpack.c.bf16 %v1996_v3, %v1992_v62  ;;  %v2016_v57 = vld [vmem:[%s4741_s1 + $0x540] sm:$0xff] }
 0x202   : > { %v1460_v18 = vmax.f32 %v1329_v9, %v1459_v10  ;;  %v2649_v9 = vpack.c.bf16 %v1999_v61, %v1995_v60  ;;  %v2001_v10 = vld [vmem:[%s4741_s1 + $0x4c8] sm:$0xff]  ;;  %v1838_v37 = vmax.f32 %v1834_v19, %v1837_v26  ;;  %v2661_v61 = vpack.c.bf16 %v2023_v52, %v2019_v51  ;;  %v2020_v62 = vld [vmem:[%s4741_s1 + $0x560] sm:$0xff] }
 0x203   : > { %v2565_v27 = vpack.c.bf16 %v2005_v13, %v2001_v10  ;;  %v2575_v3 = vpack.c.bf16 %v2020_v62, %v2016_v57 }
 0x204   : > { %v1461_v24 = vmax.f32 %v1332_v15, %v1460_v18  ;;  %v2007_v15 = vld [vmem:[%s4741_s1 + $0x4f8] sm:$0xff]  ;;  %v1832_v18 = vmax.f32 %v1828_v63, %v1831_v6  ;;  %v2018_v63 = vld [vmem:[%s4741_s1 + $0x550] sm:$0xff] }
 0x205   : > { %v2653_v28 = vpack.c.bf16 %v2007_v15, %v2003_v14  ;;  %v2663_v4 = vpack.c.bf16 %v2022_v0, %v2018_v63 }
 0x206   : > { %v1462_v34 = vmax.f32 %v1335_v23, %v1461_v24  ;;  %v2002_v23 = vld [vmem:[%s4741_s1 + $0x4d0] sm:$0xff] }
 0x207   : > { %v2006_v24 = vld [vmem:[%s4741_s1 + $0x4f0] sm:$0xff] }
 0x208   : > { %v1463_v42 = vmax.f32 %v1338_v25, %v1462_v34  ;;  %v1835_v25 = vsel %vm1592_vm0, %v1322_v11, -inf  ;;  %v2015_v34 = vld [vmem:[%s4741_s1 + $0x538] sm:$0xff]  ;;  %v2655_v39 = vpack.c.bf16 %v2006_v24, %v2002_v23 }
 0x209   : > { %v1836_v36 = vmax.f32 %v1832_v18, %v1835_v25 }
 0x20a   : > { %v1464_v53 = vmax.f32 %v1339_v35, %v1463_v42  ;;  %v2008_v35 = vld [vmem:[%s4741_s1 + $0x500] sm:$0xff]  ;;  %v2014_v42 = vld [vmem:[%s4741_s1 + $0x530] sm:$0xff] }
 0x20b   : > { %v2659_v56 = vpack.c.bf16 %v2014_v42, %v2010_v41 }
 0x20c   : > { %2092 = vmatmul.mubr.f32.vlgmr.msra.gmra.mrb[0].mxu0 %v1464_v53  ;;  %2234 = vmatmul.mubr.f32.vlgmr.msra.gmra.mrb[0].mxu1 %v1464_v53  ;;  %v1840_v53 = vmax.f32 %v1836_v36, %v1839_v43 }
 0x20d   : > { %2556 = vmatpush1.bf16.msra.mxu0 %v2555_v46  ;;  %2644 = vmatpush1.bf16.msra.mxu1 %v2643_v47  ;;  %v2657_v46 = vpack.c.bf16 %v2015_v34, %v2011_v33  ;;  %v2017_v47 = vld [vmem:[%s4741_s1 + $0x548] sm:$0xff] }
 0x20e   : > { %2558 = vmatprep.subr.bf16.mxu0 %v2557_v54  ;;  %2646 = vmatprep.subr.bf16.mxu1 %v2645_v55  ;;  %v1842_v54 = vmax.f32 %v1838_v37, %v1841_v44  ;;  %v2571_v55 = vpack.c.bf16 %v2012_v40, %v2008_v35  ;;  %v2573_v60 = vpack.c.bf16 %v2021_v50, %v2017_v47 }
 0x20f   : > { %2162 = vmatprep.mubr.f32.mxu0 %v2802_v16  ;;  %2304 = vmatprep.mubr.f32.mxu1 %v2802_v16 }
 0x211   : > { %2560 = vmatpush1.bf16.msra.mxu0 %v2559_v1  ;;  %2648 = vmatpush1.bf16.msra.mxu1 %v2647_v2  ;;  %v1844_v1 = vmax.f32 %v1840_v53, %v1843_v58  ;;  %v1846_v2 = vmax.f32 %v1842_v54, %v1845_v59 }
 0x212   : > { %2562 = vmatprep.subr.bf16.mxu0 %v2561_v8  ;;  %2650 = vmatprep.subr.bf16.mxu1 %v2649_v9 }
 0x213   : > { %v1847_v5 = vmax.f32 %v1844_v1, %v1846_v2 }
 0x215   : > { %2564 = vmatpush1.bf16.msra.mxu0 %v2563_v20  ;;  %2652 = vmatpush1.bf16.msra.mxu1 %v2651_v21 }
 0x216   : > { %2566 = vmatprep.subr.bf16.mxu0 %v2565_v27  ;;  %2654 = vmatprep.subr.bf16.mxu1 %v2653_v28 }
 0x219   : > { %2568 = vmatpush1.bf16.msra.mxu0 %v2567_v38  ;;  %2656 = vmatpush1.bf16.msra.mxu1 %v2655_v39 }
 0x21a   : > { %2570 = vmatprep.subr.bf16.mxu0 %v2569_v45  ;;  %2658 = vmatprep.subr.bf16.mxu1 %v2657_v46 }
 0x21d   : > { %2572 = vmatpush1.bf16.msra.mxu0 %v2571_v55  ;;  %2660 = vmatpush1.bf16.msra.mxu1 %v2659_v56 }
 0x21e   : > { %2574 = vmatprep.subr.bf16.mxu0 %v2573_v60  ;;  %2662 = vmatprep.subr.bf16.mxu1 %v2661_v61 }
 0x221   : > { %2576 = vmatpush1.bf16.msra.mxu0 %v2575_v3  ;;  %2664 = vmatpush1.bf16.msra.mxu1 %v2663_v4 }
 0x224   : > { %2485 = vmatmul.mubr.msk.f32.vlgmr.msra.gmra.mrb[0].mxu0 %vm1592_vm0, %v1847_v5  ;;  %2486 = vmatmul.mubr.msk.f32.vlgmr.msra.gmra.mrb[0].mxu1 %vm1592_vm0, %v1847_v5 }
 0x2f7   : > { %v2164_v6 = vpop.f32.mrb[0].mxu0  ;;  %v2306_v7 = vpop.f32.mrb[0].mxu1 }
 0x2f8   : > { %v2308_v8 = vpop.f32.mrb[1].mxu1  ;;  %2320 = vrot.lane.b32.xlu1 %v2164_v6, %s2803_s9  ;;  %2312 = vrot.lane.b32.xlu0 %v2164_v6, %s2804_s25  ;;  %v2166_v9 = vpop.f32.mrb[1].mxu0 }
 0x2fc   : > { %2324 = vrot.lane.b32.xlu1 %v2164_v6, %s2805_s26  ;;  %2316 = vrot.lane.b32.xlu0 %v2164_v6, %s2806_s28 }
 0x300   : > { %2356 = vrot.lane.b32.xlu1 %v2306_v7, %s2807_s29  ;;  %2329 = vrot.lane.b32.xlu0 %v2164_v6, %s2808_s30 }
 0x304   : > { %2337 = vrot.lane.b32.xlu0 %v2166_v9, %s2809_s3  ;;  %2331 = vrot.lane.b32.xlu1 %v2166_v9, %s2808_s30 }
 0x308   : > { %2345 = vrot.lane.b32.xlu0 %v2166_v9, %s2810_s4  ;;  %2341 = vrot.lane.b32.xlu1 %v2166_v9, %s2811_s5 }
 0x30c   : > { %2354 = vrot.lane.b32.xlu0 %v2166_v9, %s2807_s29  ;;  %2349 = vrot.lane.b32.xlu1 %v2166_v9, %s2812_s6 }
 0x310   : > { %2362 = vrot.lane.b32.xlu0 %v2306_v7, %s2813_s8  ;;  %2366 = vrot.lane.b32.xlu1 %v2306_v7, %s2814_s18 }
 0x314   : > { %2370 = vrot.lane.b32.xlu0 %v2306_v7, %s2815_s19  ;;  %2374 = vrot.lane.b32.xlu1 %v2306_v7, %s2816_s7 }
 0x318   : > { %2379 = vrot.lane.b32.xlu0 %v2306_v7, %s2817_s20  ;;  %2381 = vrot.lane.b32.xlu1 %v2308_v8, %s2817_s20 }
 0x36a   : > { %v2321_v10 = vpop.permute.xlu1 %2320  ;;  %v2313_v11 = vpop.permute.xlu0 %2312 }
 0x36b   : > { %v2315_v12 = vmax.f32 %v2164_v6, %v2313_v11 }
 0x36e   : > { %v2325_v13 = vpop.permute.xlu1 %2324  ;;  %v2317_v14 = vpop.permute.xlu0 %2316 }
 0x36f   : > { %v2319_v15 = vmax.f32 %v2315_v12, %v2317_v14 }
 0x371   : > { %v2323_v16 = vmax.f32 %v2319_v15, %v2321_v10 }
 0x372   : > { %v2357_v17 = vpop.permute.xlu1 %2356  ;;  %v2330_v18 = vpop.permute.xlu0 %2329 }
 0x373   : > { %v2327_v19 = vmax.f32 %v2323_v16, %v2325_v13 }
 0x376   : > { %v2338_v20 = vpop.permute.xlu0 %2337  ;;  %v2332_v21 = vpop.permute.xlu1 %2331 }
 0x377   : > { %v2334_v22 = vsel %vm2333_vm1, %v2330_v18, %v2332_v21 }
 0x378   : > { %v2336_v23 = vmax.f32 %v2327_v19, %v2334_v22 }
 0x37a   : > { %v2346_v24 = vpop.permute.xlu0 %2345  ;;  %v2340_v25 = vmax.f32 %v2336_v23, %v2338_v20  ;;  %v2342_v26 = vpop.permute.xlu1 %2341 }
 0x37c   : > { %v2344_v27 = vmax.f32 %v2340_v25, %v2342_v26 }
 0x37e   : > { %v2355_v28 = vpop.permute.xlu0 %2354  ;;  %v2348_v29 = vmax.f32 %v2344_v27, %v2346_v24  ;;  %v2350_v30 = vpop.permute.xlu1 %2349 }
 0x37f   : > { %v2359_v32 = vsel %vm2358_vm2, %v2355_v28, %v2357_v17 }
 0x380   : > { %v2352_v31 = vmax.f32 %v2348_v29, %v2350_v30 }
 0x382   : > { %v2363_v33 = vpop.permute.xlu0 %2362  ;;  %v2361_v34 = vmax.f32 %v2352_v31, %v2359_v32  ;;  %v2367_v35 = vpop.permute.xlu1 %2366 }
 0x384   : > { %v2365_v36 = vmax.f32 %v2361_v34, %v2363_v33 }
 0x386   : > { %v2369_v37 = vmax.f32 %v2365_v36, %v2367_v35  ;;  %v2371_v38 = vpop.permute.xlu0 %2370  ;;  %v2375_v39 = vpop.permute.xlu1 %2374 }
 0x388   : > { %v2373_v40 = vmax.f32 %v2369_v37, %v2371_v38 }
 0x38a   : > { %v2377_v41 = vmax.f32 %v2373_v40, %v2375_v39  ;;  %v2380_v42 = vpop.permute.xlu0 %2379  ;;  %v2382_v43 = vpop.permute.xlu1 %2381 }
 0x38b   : > { %v2384_v44 = vsel %vm2383_vm3, %v2380_v42, %v2382_v43 }
 0x38c   : > { %v2386_v45 = vmax.f32 %v2377_v41, %v2384_v44 }
 0x38e   : > { %2388 = vst.msk [vmem:[%s953_s12] sm:$0xff] %vm2387_vm4, %v2386_v45 }
 0x38f PF: > { %s12_s15 = sadd.s32 1, %s2800_s15   ;;  %s4743_s9 = smov %s2780_s10 }
 0x390   : > { %p9_p12 = scmp.ge.s32.totalorder %s12_s15, 17   ;;  %s4744_s10 = smov %s2884_s22 }
 0x391   : > { %s4745_s11 = smov %s2792_s13  ;;  %s4746_s12 = smov %s2796_s14 }
 0x392   : > { %s4747_s13 = smov %s4750_s16  ;;  %s4748_s14 = smov %s4754_s17 }
 0x393   :  { %11 = sbr.rel (!%p9_p12) target bundleno = 4 (0x4), region = 86 }

// kernel: resnet_forward.5
= control target key start
LH: loop header
LB: loop body
LE: loop exit
PB: predicated region body
PF: predicated region fallthrough
CT: control target
= control target key end

     0   :  { %14 = vsyncpa [#allocation3], 0  ;;  %vm922_vm0 = vcmask 130048   ;;  %v8134_v6 = vmov 0.0   ;;  %vm124_vm1 = vcmask 523264   ;;  %vm8173_vm2 = vcmask 1041409   ;;  %s8125_s0 = inlined_call_operand.vmem [shape: f32[3,256,64], index: 0, kind: input, shape index: {}]   ;;  %s8126_s1 = inlined_call_operand.vmem [shape: f32[64,1000], index: 1, kind: input, shape index: {}]   ;;  %s8127_s2 = inlined_call_operand.vmem [shape: f32[3,512,16], index: 2, kind: input, shape index: {}]   ;;  %s8128_s3 = inlined_call_operand.vmem [shape: f32[16,400], index: 3, kind: input, shape index: {}]   ;;  %s8129_s4 = inlined_call_operand.vmem [shape: f32[512,10], index: 4, kind: input, shape index: {}]   ;;  %s8130_s5 = inlined_call_operand.vmem [shape: f32[1,10], index: 5, kind: input, shape index: {}]   ;;  %s8131_s6 = inlined_call_operand.hbm [shape: f32[3,500], index: 6, kind: output, shape index: {0}]   ;;  %s8132_s7 = inlined_call_operand.hbm [shape: f32[3,200], index: 7, kind: output, shape index: {1}]   ;;  %s8133_s8 = inlined_call_operand.hbm [shape: f32[3,10], index: 8, kind: output, shape index: {2}]  }
   0x1   :  { %v1503_v0 = vld [vmem:[%s8127_s2 + $0x8] sm:$0xff]  ;;  %v1502_v1 = vld [vmem:[%s8127_s2] sm:$0xff]  ;;  %v1504_v5 = vld [vmem:[%s8127_s2 + $0x10] sm:$0xff]  ;;  %540 = vmatprep.mubr.f32.mxu1 %v8134_v6  ;;  %469 = vmatprep.mubr.f32.mxu0 %v8134_v6  ;;  %vm8172_vm3 = vcmask 1042434  }
   0x2   :  { %v1506_v2 = vld [vmem:[%s8127_s2 + $0x20] sm:$0xff]  ;;  %v1697_v3 = vsel %vm922_vm0, %v1503_v0, 0.0  ;;  %v1694_v4 = vsel %vm922_vm0, %v1502_v1, 0.0  ;;  %v1700_v8 = vsel %vm922_vm0, %v1504_v5, 0.0  ;;  %v1508_v9 = vld [vmem:[%s8127_s2 + $0x30] sm:$0xff]  ;;  %v1505_v10 = vld [vmem:[%s8127_s2 + $0x18] sm:$0xff] }
   0x3   :  { %1698 = vadd.xlane.f32.xlu1 %v1697_v3  ;;  %1695 = vadd.xlane.f32.xlu0 %v1694_v4  ;;  %v1706_v7 = vsel %vm922_vm0, %v1506_v2, 0.0  ;;  %v335_v11 = vld [vmem:[%s8126_s1 + $0x18] sm:$0xff]  ;;  %v1510_v13 = vld [vmem:[%s8127_s2 + $0x40] sm:$0xff]  ;;  %v334_v15 = vld [vmem:[%s8126_s1 + $0x10] sm:$0xff]  ;;  %v1712_v17 = vsel %vm922_vm0, %v1508_v9, 0.0  ;;  %v1703_v18 = vsel %vm922_vm0, %v1505_v10, 0.0 }
   0x4   :  { %v343_v12 = vld [vmem:[%s8126_s1 + $0x58] sm:$0xff]  ;;  %v342_v16 = vld [vmem:[%s8126_s1 + $0x50] sm:$0xff]  ;;  %v1507_v19 = vld [vmem:[%s8127_s2 + $0x28] sm:$0xff]  ;;  %v1718_v36 = vsel %vm922_vm0, %v1510_v13, 0.0 }
   0x5   :  { %v3994_v14 = vpack.c.bf16 %v343_v12, %v335_v11  ;;  %v3996_v20 = vpack.c.bf16 %v342_v16, %v334_v15  ;;  %v333_v21 = vld [vmem:[%s8126_s1 + $0x8] sm:$0xff]  ;;  %v332_v24 = vld [vmem:[%s8126_s1] sm:$0xff]  ;;  %v351_v26 = vld [vmem:[%s8126_s1 + $0x98] sm:$0xff]  ;;  %v1709_v37 = vsel %vm922_vm0, %v1507_v19, 0.0 }
   0x6   :  { %v341_v22 = vld [vmem:[%s8126_s1 + $0x48] sm:$0xff]  ;;  %v340_v25 = vld [vmem:[%s8126_s1 + $0x40] sm:$0xff]  ;;  %v359_v28 = vld [vmem:[%s8126_s1 + $0xd8] sm:$0xff] }
   0x7   :  { %1707 = vadd.xlane.f32.xlu1 %v1706_v7  ;;  %1701 = vadd.xlane.f32.xlu0 %v1700_v8  ;;  %v3978_v23 = vpack.c.bf16 %v341_v22, %v333_v21  ;;  %v3980_v27 = vpack.c.bf16 %v340_v25, %v332_v24  ;;  %v350_v29 = vld [vmem:[%s8126_s1 + $0x90] sm:$0xff]  ;;  %v1509_v32 = vld [vmem:[%s8127_s2 + $0x38] sm:$0xff]  ;;  %v3998_v33 = vpack.c.bf16 %v359_v28, %v351_v26  ;;  %v349_v35 = vld [vmem:[%s8126_s1 + $0x88] sm:$0xff] }
   0x8   :  { %3995 = vmatprep.subr.bf16.mxu1 %v3994_v14  ;;  %v358_v30 = vld [vmem:[%s8126_s1 + $0xd0] sm:$0xff]  ;;  %v357_v38 = vld [vmem:[%s8126_s1 + $0xc8] sm:$0xff]  ;;  %v348_v39 = vld [vmem:[%s8126_s1 + $0x80] sm:$0xff]  ;;  %v1715_v57 = vsel %vm922_vm0, %v1509_v32, 0.0 }
   0x9   :  { %3997 = vmatpush1.bf16.msra.mxu1 %v3996_v20  ;;  %v1512_v31 = vld [vmem:[%s8127_s2 + $0x50] sm:$0xff]  ;;  %v4000_v34 = vpack.c.bf16 %v358_v30, %v350_v29  ;;  %3979 = vmatprep.subr.bf16.mxu0 %v3978_v23  ;;  %v356_v40 = vld [vmem:[%s8126_s1 + $0xc0] sm:$0xff]  ;;  %v3982_v41 = vpack.c.bf16 %v357_v38, %v349_v35  ;;  %v367_v43 = vld [vmem:[%s8126_s1 + $0x118] sm:$0xff] }
   0xa   :  { %3981 = vmatpush1.bf16.msra.mxu0 %v3980_v27  ;;  %3999 = vmatprep.subr.bf16.mxu1 %v3998_v33  ;;  %v3984_v42 = vpack.c.bf16 %v356_v40, %v348_v39  ;;  %v375_v44 = vld [vmem:[%s8126_s1 + $0x158] sm:$0xff]  ;;  %v366_v45 = vld [vmem:[%s8126_s1 + $0x110] sm:$0xff]  ;;  %v1514_v46 = vld [vmem:[%s8127_s2 + $0x60] sm:$0xff]  ;;  %v1724_v56 = vsel %vm922_vm0, %v1512_v31, 0.0 }
   0xb   :  { %1713 = vadd.xlane.f32.xlu1 %v1712_v17  ;;  %1704 = vadd.xlane.f32.xlu0 %v1703_v18  ;;  %v1511_v47 = vld [vmem:[%s8127_s2 + $0x48] sm:$0xff]  ;;  %v4002_v48 = vpack.c.bf16 %v375_v44, %v367_v43  ;;  %v374_v49 = vld [vmem:[%s8126_s1 + $0x150] sm:$0xff]  ;;  %v1513_v51 = vld [vmem:[%s8127_s2 + $0x58] sm:$0xff]  ;;  %v1730_v8 = vsel %vm922_vm0, %v1514_v46, 0.0 }
   0xc   :  { %v1516_v50 = vld [vmem:[%s8127_s2 + $0x70] sm:$0xff]  ;;  %v4004_v52 = vpack.c.bf16 %v374_v49, %v366_v45  ;;  %v365_v53 = vld [vmem:[%s8126_s1 + $0x108] sm:$0xff]  ;;  %v364_v55 = vld [vmem:[%s8126_s1 + $0x100] sm:$0xff]  ;;  %3983 = vmatprep.subr.bf16.mxu0 %v3982_v41  ;;  %v1721_v9 = vsel %vm922_vm0, %v1511_v47, 0.0  ;;  %v1727_v17 = vsel %vm922_vm0, %v1513_v51, 0.0 }
   0xd   :  { %4001 = vmatpush1.bf16.msra.mxu1 %v4000_v34  ;;  %v373_v54 = vld [vmem:[%s8126_s1 + $0x148] sm:$0xff]  ;;  %v372_v59 = vld [vmem:[%s8126_s1 + $0x140] sm:$0xff]  ;;  %v383_v60 = vld [vmem:[%s8126_s1 + $0x198] sm:$0xff]  ;;  %v1736_v16 = vsel %vm922_vm0, %v1516_v50, 0.0 }
   0xe   :  { %4003 = vmatprep.subr.bf16.mxu1 %v4002_v48  ;;  %v3986_v58 = vpack.c.bf16 %v373_v54, %v365_v53  ;;  %v391_v61 = vld [vmem:[%s8126_s1 + $0x1d8] sm:$0xff]  ;;  %v1518_v62 = vld [vmem:[%s8127_s2 + $0x80] sm:$0xff]  ;;  %3985 = vmatpush1.bf16.msra.mxu0 %v3984_v42  ;;  %v3988_v63 = vpack.c.bf16 %v372_v59, %v364_v55  ;;  %v382_v1 = vld [vmem:[%s8126_s1 + $0x190] sm:$0xff] }
   0xf   :  { %1719 = vadd.xlane.f32.xlu1 %v1718_v36  ;;  %1710 = vadd.xlane.f32.xlu0 %v1709_v37  ;;  %v4006_v0 = vpack.c.bf16 %v391_v61, %v383_v60  ;;  %v390_v2 = vld [vmem:[%s8126_s1 + $0x1d0] sm:$0xff]  ;;  %v1515_v3 = vld [vmem:[%s8127_s2 + $0x68] sm:$0xff]  ;;  %v1517_v11 = vld [vmem:[%s8127_s2 + $0x78] sm:$0xff]  ;;  %v4413_v18 = vsel %vm922_vm0, %v1518_v62, 0.0 }
  0x10   :  { %3987 = vmatprep.subr.bf16.mxu0 %v3986_v58  ;;  %v4008_v4 = vpack.c.bf16 %v390_v2, %v382_v1  ;;  %v381_v5 = vld [vmem:[%s8126_s1 + $0x188] sm:$0xff]  ;;  %v1520_v10 = vld [vmem:[%s8127_s2 + $0x90] sm:$0xff]  ;;  %v380_v13 = vld [vmem:[%s8126_s1 + $0x180] sm:$0xff]  ;;  %v1733_v38 = vsel %vm922_vm0, %v1515_v3, 0.0  ;;  %v4471_v46 = vsel %vm922_vm0, %v1517_v11, 0.0 }
  0x11   :  { %4005 = vmatpush1.bf16.msra.mxu1 %v4004_v52  ;;  %v389_v7 = vld [vmem:[%s8126_s1 + $0x1c8] sm:$0xff]  ;;  %v388_v14 = vld [vmem:[%s8126_s1 + $0x1c0] sm:$0xff]  ;;  %v339_v15 = vld [vmem:[%s8126_s1 + $0x38] sm:$0xff]  ;;  %v4468_v45 = vsel %vm922_vm0, %v1520_v10, 0.0 }
  0x12   :  { %v3990_v12 = vpack.c.bf16 %v389_v7, %v381_v5  ;;  %v1522_v19 = vld [vmem:[%s8127_s2 + $0xa0] sm:$0xff]  ;;  %v1519_v20 = vld [vmem:[%s8127_s2 + $0x88] sm:$0xff]  ;;  %4007 = vmatprep.subr.bf16.mxu1 %v4006_v0  ;;  %v347_v21 = vld [vmem:[%s8126_s1 + $0x78] sm:$0xff]  ;;  %3989 = vmatpush1.bf16.msra.mxu0 %v3988_v63  ;;  %v3992_v25 = vpack.c.bf16 %v388_v14, %v380_v13 }
  0x13   :  { %1725 = vadd.xlane.f32.xlu1 %v1724_v56  ;;  %1716 = vadd.xlane.f32.xlu0 %v1715_v57  ;;  %v28_v22 = vld [vmem:[%s8125_s0] sm:$0xff]  ;;  %v29_v23 = vld [vmem:[%s8125_s0 + $0x8] sm:$0xff]  ;;  %v1524_v24 = vld [vmem:[%s8127_s2 + $0xb0] sm:$0xff]  ;;  %v4026_v26 = vpack.c.bf16 %v347_v21, %v339_v15  ;;  %v4482_v51 = vsel %vm922_vm0, %v1522_v19, 0.0  ;;  %v4485_v52 = vsel %vm922_vm0, %v1519_v20, 0.0 }
  0x14   :  { %v30_v27 = vld [vmem:[%s8125_s0 + $0x10] sm:$0xff]  ;;  %v31_v28 = vld [vmem:[%s8125_s0 + $0x18] sm:$0xff]  ;;  %v32_v29 = vld [vmem:[%s8125_s0 + $0x20] sm:$0xff]  ;;  %v125_v30 = vsel %vm124_vm1, %v28_v22, -inf  ;;  %v126_v31 = vsel %vm124_vm1, %v29_v23, -inf  ;;  %3991 = vmatprep.subr.bf16.mxu0 %v3990_v12  ;;  %v4497_v58 = vsel %vm922_vm0, %v1524_v24, 0.0 }
  0x15   :  { %4009 = vmatpush1.bf16.msra.mxu1 %v4008_v4  ;;  %v33_v32 = vld [vmem:[%s8125_s0 + $0x28] sm:$0xff]  ;;  %v34_v33 = vld [vmem:[%s8125_s0 + $0x30] sm:$0xff]  ;;  %v35_v34 = vld [vmem:[%s8125_s0 + $0x38] sm:$0xff]  ;;  %v127_v35 = vsel %vm124_vm1, %v30_v27, -inf  ;;  %v129_v36 = vsel %vm124_vm1, %v31_v28, -inf  ;;  %v131_v37 = vsel %vm124_vm1, %v32_v29, -inf }
  0x16   :  { %v1521_v39 = vld [vmem:[%s8127_s2 + $0x98] sm:$0xff]  ;;  %v36_v40 = vld [vmem:[%s8125_s0 + $0x40] sm:$0xff]  ;;  %v37_v41 = vld [vmem:[%s8125_s0 + $0x48] sm:$0xff]  ;;  %v128_v42 = vmax.f32 %v125_v30, %v127_v35  ;;  %v130_v43 = vmax.f32 %v126_v31, %v129_v36  ;;  %v133_v44 = vsel %vm124_vm1, %v33_v32, -inf  ;;  %4027 = vmatprep.subr.bf16.mxu1 %v4026_v26  ;;  %v135_v49 = vsel %vm124_vm1, %v34_v33, -inf  ;;  %3993 = vmatpush1.bf16.msra.mxu0 %v3992_v25 }
  0x17   :  { %1731 = vadd.xlane.f32.xlu1 %v1730_v8  ;;  %1722 = vadd.xlane.f32.xlu0 %v1721_v9  ;;  %v1526_v47 = vld [vmem:[%s8127_s2 + $0xc0] sm:$0xff]  ;;  %v1523_v48 = vld [vmem:[%s8127_s2 + $0xa8] sm:$0xff]  ;;  %v137_v50 = vsel %vm124_vm1, %v35_v34, -inf  ;;  %v38_v53 = vld [vmem:[%s8125_s0 + $0x50] sm:$0xff]  ;;  %v4500_v59 = vsel %vm922_vm0, %v1521_v39, 0.0  ;;  %v139_v62 = vsel %vm124_vm1, %v36_v40, -inf }
  0x18   :  { %v39_v54 = vld [vmem:[%s8125_s0 + $0x58] sm:$0xff]  ;;  %v40_v55 = vld [vmem:[%s8125_s0 + $0x60] sm:$0xff]  ;;  %v132_v56 = vmax.f32 %v128_v42, %v131_v37  ;;  %v134_v57 = vmax.f32 %v130_v43, %v133_v44  ;;  %v41_v60 = vld [vmem:[%s8125_s0 + $0x68] sm:$0xff]  ;;  %v141_v63 = vsel %vm124_vm1, %v37_v41, -inf  ;;  %v4511_v0 = vsel %vm922_vm0, %v1526_v47, 0.0 }
  0x19   :  { %v42_v61 = vld [vmem:[%s8125_s0 + $0x70] sm:$0xff]  ;;  %v4514_v1 = vsel %vm922_vm0, %v1523_v48, 0.0  ;;  %v43_v2 = vld [vmem:[%s8125_s0 + $0x78] sm:$0xff]  ;;  %v44_v3 = vld [vmem:[%s8125_s0 + $0x80] sm:$0xff]  ;;  %v143_v11 = vsel %vm124_vm1, %v38_v53, -inf  ;;  %v145_v12 = vsel %vm124_vm1, %v39_v54, -inf }
  0x1a   :  { %v45_v4 = vld [vmem:[%s8125_s0 + $0x88] sm:$0xff]  ;;  %v136_v5 = vmax.f32 %v132_v56, %v135_v49  ;;  %v138_v7 = vmax.f32 %v134_v57, %v137_v50  ;;  %v46_v8 = vld [vmem:[%s8125_s0 + $0x90] sm:$0xff]  ;;  %v47_v9 = vld [vmem:[%s8125_s0 + $0x98] sm:$0xff]  ;;  %v147_v13 = vsel %vm124_vm1, %v40_v55, -inf  ;;  %v149_v20 = vsel %vm124_vm1, %v41_v60, -inf }
  0x1b   :  { %1737 = vadd.xlane.f32.xlu1 %v1736_v16  ;;  %1728 = vadd.xlane.f32.xlu0 %v1727_v17  ;;  %v48_v10 = vld [vmem:[%s8125_s0 + $0xa0] sm:$0xff]  ;;  %v49_v14 = vld [vmem:[%s8125_s0 + $0xa8] sm:$0xff]  ;;  %v50_v15 = vld [vmem:[%s8125_s0 + $0xb0] sm:$0xff]  ;;  %v151_v21 = vsel %vm124_vm1, %v42_v61, -inf  ;;  %v153_v25 = vsel %vm124_vm1, %v43_v2, -inf  ;;  %v155_v26 = vsel %vm124_vm1, %v44_v3, -inf }
  0x1c   :  { %v51_v16 = vld [vmem:[%s8125_s0 + $0xb8] sm:$0xff]  ;;  %v140_v17 = vmax.f32 %v136_v5, %v139_v62  ;;  %v142_v19 = vmax.f32 %v138_v7, %v141_v63  ;;  %v52_v22 = vld [vmem:[%s8125_s0 + $0xc0] sm:$0xff]  ;;  %v53_v23 = vld [vmem:[%s8125_s0 + $0xc8] sm:$0xff]  ;;  %v157_v27 = vsel %vm124_vm1, %v45_v4, -inf  ;;  %v4571_v33 = vsel %vm124_vm1, %v46_v8, -inf }
  0x1d   :  { %v54_v24 = vld [vmem:[%s8125_s0 + $0xd0] sm:$0xff]  ;;  %v60_v28 = vld [vmem:[%s8125_s0 + $0x100] sm:$0xff]  ;;  %v61_v29 = vld [vmem:[%s8125_s0 + $0x108] sm:$0xff]  ;;  %v163_v35 = vsel %vm124_vm1, %v48_v10, -inf  ;;  %v165_v36 = vsel %vm124_vm1, %v49_v14, -inf  ;;  %v4582_v37 = vsel %vm124_vm1, %v50_v15, -inf }
  0x1e   :  { %v62_v30 = vld [vmem:[%s8125_s0 + $0x110] sm:$0xff]  ;;  %v144_v31 = vmax.f32 %v140_v17, %v143_v11  ;;  %v146_v32 = vmax.f32 %v142_v19, %v145_v12  ;;  %v63_v34 = vld [vmem:[%s8125_s0 + $0x118] sm:$0xff]  ;;  %v64_v39 = vld [vmem:[%s8125_s0 + $0x120] sm:$0xff]  ;;  %v4597_v44 = vsel %vm124_vm1, %v52_v22, -inf  ;;  %v4600_v47 = vsel %vm124_vm1, %v53_v23, -inf }
  0x1f   :  { %1743 = vadd.xlane.f32.xlu1 %v4413_v18  ;;  %1734 = vadd.xlane.f32.xlu0 %v1733_v38  ;;  %v4574_v18 = vsel %vm124_vm1, %v47_v9, -inf  ;;  %v4585_v38 = vsel %vm124_vm1, %v51_v16, -inf  ;;  %v65_v40 = vld [vmem:[%s8125_s0 + $0x128] sm:$0xff]  ;;  %v66_v41 = vld [vmem:[%s8125_s0 + $0x130] sm:$0xff]  ;;  %v67_v48 = vld [vmem:[%s8125_s0 + $0x138] sm:$0xff]  ;;  %v4606_v49 = vsel %vm124_vm1, %v54_v24, -inf }
  0x20   :  { %v148_v42 = vmax.f32 %v144_v31, %v147_v13  ;;  %v150_v43 = vmax.f32 %v146_v32, %v149_v20  ;;  %v194_v50 = vsel %vm124_vm1, %v60_v28, -inf  ;;  %v195_v53 = vsel %vm124_vm1, %v61_v29, -inf  ;;  %v55_v55 = vld [vmem:[%s8125_s0 + $0xd8] sm:$0xff]  ;;  %v56_v56 = vld [vmem:[%s8125_s0 + $0xe0] sm:$0xff]  ;;  %v57_v5 = vld [vmem:[%s8125_s0 + $0xe8] sm:$0xff] }
  0x21   :  { %v196_v54 = vsel %vm124_vm1, %v62_v30, -inf  ;;  %v68_v57 = vld [vmem:[%s8125_s0 + $0x140] sm:$0xff]  ;;  %v198_v63 = vsel %vm124_vm1, %v63_v34, -inf  ;;  %v200_v2 = vsel %vm124_vm1, %v64_v39, -inf  ;;  %v202_v3 = vsel %vm124_vm1, %v65_v40, -inf  ;;  %v58_v7 = vld [vmem:[%s8125_s0 + $0xf0] sm:$0xff] }
  0x22   :  { %v152_v60 = vmax.f32 %v148_v42, %v151_v21  ;;  %v154_v61 = vmax.f32 %v150_v43, %v153_v25  ;;  %v197_v62 = vmax.f32 %v194_v50, %v196_v54  ;;  %v204_v4 = vsel %vm124_vm1, %v66_v41, -inf  ;;  %v70_v8 = vld [vmem:[%s8125_s0 + $0x150] sm:$0xff]  ;;  %v71_v13 = vld [vmem:[%s8125_s0 + $0x158] sm:$0xff]  ;;  %v72_v20 = vld [vmem:[%s8125_s0 + $0x160] sm:$0xff] }
  0x23   :  { %1749 = vadd.xlane.f32.xlu1 %v4468_v45  ;;  %1740 = vadd.xlane.f32.xlu0 %v4471_v46  ;;  %v69_v45 = vld [vmem:[%s8125_s0 + $0x148] sm:$0xff]  ;;  %v199_v46 = vmax.f32 %v195_v53, %v198_v63  ;;  %v206_v12 = vsel %vm124_vm1, %v67_v48, -inf  ;;  %v4643_v14 = vsel %vm124_vm1, %v55_v55, -inf  ;;  %v4646_v15 = vsel %vm124_vm1, %v56_v56, -inf  ;;  %v59_v19 = vld [vmem:[%s8125_s0 + $0xf8] sm:$0xff]  ;;  %v76_v30 = vld [vmem:[%s8125_s0 + $0x180] sm:$0xff] }
  0x24   :  { %v156_v9 = vmax.f32 %v152_v60, %v155_v26  ;;  %v158_v10 = vmax.f32 %v154_v61, %v157_v27  ;;  %v201_v11 = vmax.f32 %v197_v62, %v200_v2  ;;  %v208_v17 = vsel %vm124_vm1, %v68_v57, -inf  ;;  %v73_v21 = vld [vmem:[%s8125_s0 + $0x168] sm:$0xff]  ;;  %v75_v29 = vld [vmem:[%s8125_s0 + $0x178] sm:$0xff]  ;;  %v78_v39 = vld [vmem:[%s8125_s0 + $0x190] sm:$0xff] }
  0x25   :  { %v203_v16 = vmax.f32 %v199_v46, %v202_v3  ;;  %v181_v25 = vsel %vm124_vm1, %v57_v5, -inf  ;;  %v4668_v26 = vsel %vm124_vm1, %v58_v7, -inf  ;;  %v212_v28 = vsel %vm124_vm1, %v70_v8, -inf  ;;  %v77_v31 = vld [vmem:[%s8125_s0 + $0x188] sm:$0xff]  ;;  %v86_v2 = vld [vmem:[%s8125_s0 + $0x1d0] sm:$0xff] }
  0x26   :  { %v160_v22 = vmax.f32 %v156_v9, %v4571_v33  ;;  %v162_v23 = vmax.f32 %v158_v10, %v4574_v18  ;;  %v205_v24 = vmax.f32 %v201_v11, %v204_v4  ;;  %v214_v34 = vsel %vm124_vm1, %v71_v13, -inf  ;;  %v81_v48 = vld [vmem:[%s8125_s0 + $0x1a8] sm:$0xff]  ;;  %v94_v8 = vld [vmem:[%s8125_s0 + $0x210] sm:$0xff] }
  0x27   :  { %1755 = vadd.xlane.f32.xlu1 %v4482_v51  ;;  %1746 = vadd.xlane.f32.xlu0 %v4485_v52  ;;  %v210_v51 = vsel %vm124_vm1, %v69_v45, -inf  ;;  %v74_v52 = vld [vmem:[%s8125_s0 + $0x170] sm:$0xff]  ;;  %v207_v27 = vmax.f32 %v203_v16, %v206_v12  ;;  %v4685_v40 = vsel %vm124_vm1, %v59_v19, -inf  ;;  %v216_v42 = vsel %vm124_vm1, %v72_v20, -inf  ;;  %v85_v61 = vld [vmem:[%s8125_s0 + $0x1c8] sm:$0xff] }
  0x28   :  { %v164_v32 = vmax.f32 %v160_v22, %v163_v35  ;;  %v166_v33 = vmax.f32 %v162_v23, %v165_v36  ;;  %v209_v18 = vmax.f32 %v205_v24, %v208_v17  ;;  %v218_v43 = vsel %vm124_vm1, %v73_v21, -inf  ;;  %v79_v35 = vld [vmem:[%s8125_s0 + $0x198] sm:$0xff]  ;;  %v80_v36 = vld [vmem:[%s8125_s0 + $0x1a0] sm:$0xff] }
  0x29   :  { %v211_v41 = vmax.f32 %v207_v27, %v210_v51  ;;  %v222_v56 = vsel %vm124_vm1, %v75_v29, -inf  ;;  %v224_v57 = vsel %vm124_vm1, %v76_v30, -inf  ;;  %v226_v60 = vsel %vm124_vm1, %v77_v31, -inf  ;;  %v95_v17 = vld [vmem:[%s8125_s0 + $0x218] sm:$0xff]  ;;  %v98_v27 = vld [vmem:[%s8125_s0 + $0x230] sm:$0xff] }
  0x2a   :  { %v168_v50 = vmax.f32 %v164_v32, %v4582_v37  ;;  %v170_v53 = vmax.f32 %v166_v33, %v4585_v38  ;;  %v213_v54 = vmax.f32 %v209_v18, %v212_v28  ;;  %v83_v37 = vld [vmem:[%s8125_s0 + $0x1b8] sm:$0xff]  ;;  %v84_v38 = vld [vmem:[%s8125_s0 + $0x1c0] sm:$0xff]  ;;  %v228_v46 = vsel %vm124_vm1, %v78_v39, -inf }
  0x2b   :  { %1761 = vadd.xlane.f32.xlu1 %v4497_v58  ;;  %1752 = vadd.xlane.f32.xlu0 %v4500_v59  ;;  %v220_v58 = vsel %vm124_vm1, %v74_v52, -inf  ;;  %v82_v59 = vld [vmem:[%s8125_s0 + $0x1b0] sm:$0xff]  ;;  %v215_v55 = vmax.f32 %v211_v41, %v214_v34  ;;  %v230_v4 = vsel %vm124_vm1, %v79_v35, -inf  ;;  %v232_v5 = vsel %vm124_vm1, %v80_v36, -inf  ;;  %v87_v32 = vld [vmem:[%s8125_s0 + $0x1d8] sm:$0xff]  ;;  %v101_v41 = vld [vmem:[%s8125_s0 + $0x248] sm:$0xff] }
  0x2c   :  { %v172_v62 = vmax.f32 %v168_v50, %v4597_v44  ;;  %v174_v63 = vmax.f32 %v170_v53, %v4600_v47  ;;  %v217_v45 = vmax.f32 %v213_v54, %v216_v42  ;;  %v234_v7 = vsel %vm124_vm1, %v81_v48, -inf  ;;  %v92_v44 = vld [vmem:[%s8125_s0 + $0x200] sm:$0xff]  ;;  %v93_v47 = vld [vmem:[%s8125_s0 + $0x208] sm:$0xff] }
  0x2d   :  { %v219_v3 = vmax.f32 %v215_v55, %v218_v43  ;;  %v238_v12 = vsel %vm124_vm1, %v83_v37, -inf  ;;  %v240_v13 = vsel %vm124_vm1, %v84_v38, -inf  ;;  %v242_v16 = vsel %vm124_vm1, %v85_v61, -inf  ;;  %v88_v36 = vld [vmem:[%s8125_s0 + $0x1e0] sm:$0xff]  ;;  %v90_v38 = vld [vmem:[%s8125_s0 + $0x1f0] sm:$0xff] }
  0x2e   :  { %v176_v9 = vmax.f32 %v172_v62, %v4606_v49  ;;  %v178_v10 = vmax.f32 %v174_v63, %v4643_v14  ;;  %v221_v11 = vmax.f32 %v217_v45, %v220_v58  ;;  %v96_v49 = vld [vmem:[%s8125_s0 + $0x220] sm:$0xff]  ;;  %v97_v14 = vld [vmem:[%s8125_s0 + $0x228] sm:$0xff]  ;;  %v4755_v22 = vsel %vm124_vm1, %v86_v2, -inf  ;;  %v106_v2 = vld [vmem:[%s8125_s0 + $0x270] sm:$0xff] }
  0x2f   :  { %1767 = vadd.xlane.f32.xlu1 %v4511_v0  ;;  %1758 = vadd.xlane.f32.xlu0 %v4514_v1  ;;  %v236_v0 = vsel %vm124_vm1, %v82_v59, -inf  ;;  %v223_v1 = vmax.f32 %v219_v3, %v222_v56  ;;  %v263_v24 = vsel %vm124_vm1, %v92_v44, -inf  ;;  %v264_v51 = vsel %vm124_vm1, %v93_v47, -inf  ;;  %v89_v58 = vld [vmem:[%s8125_s0 + $0x1e8] sm:$0xff]  ;;  %v103_v59 = vld [vmem:[%s8125_s0 + $0x258] sm:$0xff]  ;;  %v104_v55 = vld [vmem:[%s8125_s0 + $0x260] sm:$0xff] }
  0x30   :  { %v180_v19 = vmax.f32 %v176_v9, %v4646_v15  ;;  %v182_v20 = vmax.f32 %v178_v10, %v181_v25  ;;  %v225_v21 = vmax.f32 %v221_v11, %v224_v57  ;;  %v265_v52 = vsel %vm124_vm1, %v94_v8, -inf  ;;  %v99_v15 = vld [vmem:[%s8125_s0 + $0x238] sm:$0xff]  ;;  %v100_v25 = vld [vmem:[%s8125_s0 + $0x240] sm:$0xff] }
  0x31   :  { %v227_v23 = vmax.f32 %v223_v1, %v226_v60  ;;  %v266_v31 = vmax.f32 %v263_v24, %v265_v52  ;;  %v267_v18 = vsel %vm124_vm1, %v95_v17, -inf  ;;  %v269_v34 = vsel %vm124_vm1, %v96_v49, -inf  ;;  %v91_v44 = vld [vmem:[%s8125_s0 + $0x1f8] sm:$0xff] }
  0x32   :  { %v184_v28 = vmax.f32 %v180_v19, %v4668_v26  ;;  %v186_v29 = vmax.f32 %v182_v20, %v4685_v40  ;;  %v229_v30 = vmax.f32 %v225_v21, %v228_v46  ;;  %v271_v39 = vsel %vm124_vm1, %v97_v14, -inf  ;;  %v102_v26 = vld [vmem:[%s8125_s0 + $0x250] sm:$0xff]  ;;  %v105_v46 = vld [vmem:[%s8125_s0 + $0x268] sm:$0xff]  ;;  %v107_v11 = vld [vmem:[%s8125_s0 + $0x278] sm:$0xff] }
  0x33   :  { %v231_v33 = vmax.f32 %v227_v23, %v230_v4  ;;  %v268_v43 = vmax.f32 %v264_v51, %v267_v18  ;;  %v270_v35 = vmax.f32 %v266_v31, %v269_v34  ;;  %v273_v50 = vsel %vm124_vm1, %v98_v27, -inf  ;;  %v109_v20 = vld [vmem:[%s8125_s0 + $0x288] sm:$0xff]  ;;  %v110_v21 = vld [vmem:[%s8125_s0 + $0x290] sm:$0xff] }
  0x34   :  { %v187_v40 = vmax.f32 %v184_v28, %v186_v29  ;;  %v233_v42 = vmax.f32 %v229_v30, %v232_v5  ;;  %v275_v53 = vsel %vm124_vm1, %v99_v15, -inf  ;;  %v277_v54 = vsel %vm124_vm1, %v100_v25, -inf  ;;  %v111_v25 = vld [vmem:[%s8125_s0 + $0x298] sm:$0xff]  ;;  %v112_v28 = vld [vmem:[%s8125_s0 + $0x2a0] sm:$0xff] }
  0x35   :  { %v235_v48 = vmax.f32 %v231_v33, %v234_v7  ;;  %v246_v57 = vsel %vm124_vm1, %v87_v32, -inf  ;;  %v272_v60 = vmax.f32 %v268_v43, %v271_v39  ;;  %v274_v37 = vmax.f32 %v270_v35, %v273_v50  ;;  %v113_v39 = vld [vmem:[%s8125_s0 + $0x2a8] sm:$0xff]  ;;  %v4863_v50 = vld [vmem:[%s8127_s2 + $0xb8] sm:$0xff] }
  0x36   :  { %v237_v56 = vmax.f32 %v233_v42, %v236_v0  ;;  %v188_v61 = vrot.slane %v187_v40, 4  ;;  %v279_v63 = vsel %vm124_vm1, %v101_v41, -inf  ;;  %v281_v45 = vsel %vm124_vm1, %v102_v26, -inf  ;;  %v108_v0 = vld [vmem:[%s8125_s0 + $0x280] sm:$0xff]  ;;  %v114_v41 = vld [vmem:[%s8125_s0 + $0x2b0] sm:$0xff]  ;;  %v115_v42 = vld [vmem:[%s8125_s0 + $0x2b8] sm:$0xff] }
  0x37   :  { %v239_v62 = vmax.f32 %v235_v48, %v238_v12  ;;  %v248_v4 = vsel %vm124_vm1, %v88_v36, -inf  ;;  %v276_v5 = vmax.f32 %v272_v60, %v275_v53  ;;  %v278_v7 = vmax.f32 %v274_v37, %v277_v54  ;;  %v4858_v48 = vld [vmem:[%s8127_s2 + $0xd0] sm:$0xff]  ;;  %v116_v53 = vld [vmem:[%s8125_s0 + $0x2c0] sm:$0xff] }
  0x38   :  { %v241_v3 = vmax.f32 %v237_v56, %v240_v13  ;;  %v250_v8 = vsel %vm124_vm1, %v89_v58, -inf  ;;  %v283_v9 = vsel %vm124_vm1, %v103_v59, -inf  ;;  %v285_v10 = vsel %vm124_vm1, %v104_v55, -inf  ;;  %v337_v59 = vld [vmem:[%s8126_s1 + $0x28] sm:$0xff] }
  0x39   :  { %v243_v47 = vmax.f32 %v239_v62, %v242_v16  ;;  %v252_v12 = vsel %vm124_vm1, %v90_v38, -inf  ;;  %v280_v13 = vmax.f32 %v276_v5, %v279_v63  ;;  %v282_v16 = vmax.f32 %v278_v7, %v281_v45  ;;  %v345_v55 = vld [vmem:[%s8126_s1 + $0x68] sm:$0xff]  ;;  %v4881_v38 = vld [vmem:[%s8127_s2 + $0xe0] sm:$0xff]  ;;  %v118_v62 = vld [vmem:[%s8125_s0 + $0x2d0] sm:$0xff] }
  0x3a   :  { %v245_v1 = vmax.f32 %v241_v3, %v4755_v22  ;;  %v189_v17 = vmax.f32 %v187_v40, %v188_v61  ;;  %v287_v14 = vsel %vm124_vm1, %v105_v46, -inf  ;;  %v289_v19 = vsel %vm124_vm1, %v106_v2, -inf  ;;  %v117_v61 = vld [vmem:[%s8125_s0 + $0x2c8] sm:$0xff] }
  0x3b   :  { %v247_v49 = vmax.f32 %v243_v47, %v246_v57  ;;  %v254_v22 = vsel %vm124_vm1, %v91_v44, -inf  ;;  %v284_v24 = vmax.f32 %v280_v13, %v283_v9  ;;  %v286_v51 = vmax.f32 %v282_v16, %v285_v10  ;;  %v4896_v3 = vld [vmem:[%s8127_s2 + $0xc8] sm:$0xff]  ;;  %v122_v10 = vld [vmem:[%s8125_s0 + $0x2f0] sm:$0xff] }
  0x3c   :  { %v249_v23 = vmax.f32 %v245_v1, %v248_v4  ;;  %v291_v27 = vsel %vm124_vm1, %v107_v11, -inf  ;;  %v293_v15 = vsel %vm124_vm1, %v108_v0, -inf  ;;  %v190_v32 = vrot.slane %v189_v17, 2  ;;  %v119_v4 = vld [vmem:[%s8125_s0 + $0x2d8] sm:$0xff]  ;;  %v121_v9 = vld [vmem:[%s8125_s0 + $0x2e8] sm:$0xff] }
  0x3d   :  { %v251_v52 = vmax.f32 %v247_v49, %v250_v8  ;;  %v288_v30 = vmax.f32 %v284_v24, %v287_v14  ;;  %v290_v31 = vmax.f32 %v286_v51, %v289_v19  ;;  %v295_v18 = vsel %vm124_vm1, %v109_v20, -inf  ;;  %v120_v8 = vld [vmem:[%s8125_s0 + $0x2e0] sm:$0xff]  ;;  %v4924_v49 = vld [vmem:[%s8126_s1 + $0x70] sm:$0xff]  ;;  %v4936_v20 = vld [vmem:[%s8127_s2 + $0xd8] sm:$0xff] }
  0x3e   :  { %v253_v29 = vmax.f32 %v249_v23, %v252_v12  ;;  %v297_v34 = vsel %vm124_vm1, %v110_v21, -inf  ;;  %v299_v35 = vsel %vm124_vm1, %v111_v25, -inf  ;;  %v301_v36 = vsel %vm124_vm1, %v112_v28, -inf  ;;  %v4931_v19 = vld [vmem:[%s8127_s2 + $0xf0] sm:$0xff]  ;;  %v123_v21 = vld [vmem:[%s8125_s0 + $0x2f8] sm:$0xff]  ;;  %v4945_v51 = vld [vmem:[%s8126_s1 + $0x20] sm:$0xff] }
  0x3f   :  { %v255_v33 = vmax.f32 %v251_v52, %v254_v22  ;;  %v292_v26 = vmax.f32 %v288_v30, %v291_v27  ;;  %v294_v40 = vmax.f32 %v290_v31, %v293_v15  ;;  %v4874_v56 = vmax.f32 %v189_v17, %v190_v32  ;;  %v4919_v17 = vld [vmem:[%s8126_s1 + $0x30] sm:$0xff]  ;;  %v4950_v52 = vld [vmem:[%s8126_s1 + $0x60] sm:$0xff]  ;;  %v4955_v27 = vld [vmem:[%s8126_s1 + $0xb8] sm:$0xff] }
  0x40   :  { %v303_v60 = vsel %vm124_vm1, %v113_v39, -inf  ;;  %v305_v37 = vsel %vm124_vm1, %v114_v41, -inf  ;;  %v1772_v46 = vsel %vm922_vm0, %v4858_v48, 0.0  ;;  %v1763_v2 = vsel %vm922_vm0, %v4863_v50, 0.0  ;;  %v4967_v30 = vld [vmem:[%s8126_s1 + $0xb0] sm:$0xff]  ;;  %v4987_v39 = vld [vmem:[%s8126_s1 + $0xa0] sm:$0xff] }
  0x41   :  { %v256_v43 = vmax.f32 %v253_v29, %v255_v33  ;;  %v296_v54 = vmax.f32 %v292_v26, %v295_v18  ;;  %v298_v58 = vmax.f32 %v294_v40, %v297_v34  ;;  %v307_v7 = vsel %vm124_vm1, %v115_v42, -inf  ;;  %1773 = vadd.xlane.f32.xlu1 %v1772_v46  ;;  %1764 = vadd.xlane.f32.xlu0 %v1763_v2  ;;  %v4962_v29 = vld [vmem:[%s8126_s1 + $0xf8] sm:$0xff]  ;;  %v4972_v31 = vld [vmem:[%s8126_s1 + $0xf0] sm:$0xff]  ;;  %v4977_v18 = vld [vmem:[%s8126_s1 + $0xa8] sm:$0xff] }
  0x42   :  { %v309_v44 = vsel %vm124_vm1, %v116_v53, -inf  ;;  %v4010_v47 = vpack.c.bf16 %v345_v55, %v337_v59  ;;  %v1778_v1 = vsel %vm922_vm0, %v4881_v38, 0.0  ;;  %v311_v13 = vsel %vm124_vm1, %v117_v61, -inf  ;;  %v4982_v34 = vld [vmem:[%s8126_s1 + $0xe8] sm:$0xff]  ;;  %v4992_v41 = vld [vmem:[%s8126_s1 + $0xe0] sm:$0xff]  ;;  %v4997_v26 = vld [vmem:[%s8126_s1 + $0x138] sm:$0xff] }
  0x43   :  { %v257_v57 = vrot.slane %v256_v43, 4  ;;  %v300_v63 = vmax.f32 %v296_v54, %v299_v35  ;;  %v302_v45 = vmax.f32 %v298_v58, %v301_v36  ;;  %v313_v16 = vsel %vm124_vm1, %v118_v62, -inf  ;;  %v5002_v40 = vld [vmem:[%s8126_s1 + $0x178] sm:$0xff]  ;;  %v5013_v54 = vld [vmem:[%s8126_s1 + $0x130] sm:$0xff]  ;;  %v5023_v59 = vld [vmem:[%s8126_s1 + $0x128] sm:$0xff] }
  0x44   :  { %4011 = vmatprep.subr.bf16.mxu0 %v4010_v47  ;;  %v1769_v14 = vsel %vm922_vm0, %v4896_v3, 0.0  ;;  %v192_v23 = vrot.slane %v4874_v56, 1  ;;  %v315_v25 = vsel %vm124_vm1, %v119_v4, -inf  ;;  %v317_v28 = vsel %vm124_vm1, %v120_v8, -inf  ;;  %v5018_v58 = vld [vmem:[%s8126_s1 + $0x170] sm:$0xff]  ;;  %v5028_v55 = vld [vmem:[%s8126_s1 + $0x168] sm:$0xff] }
  0x45   :  { %v258_v5 = vmax.f32 %v256_v43, %v257_v57  ;;  %v304_v11 = vmax.f32 %v300_v63, %v303_v60  ;;  %v306_v0 = vmax.f32 %v302_v45, %v305_v37  ;;  %1779 = vadd.xlane.f32.xlu1 %v1778_v1  ;;  %1770 = vadd.xlane.f32.xlu0 %v1769_v14  ;;  %v1784_v42 = vsel %vm922_vm0, %v4931_v19, 0.0  ;;  %v5033_v57 = vld [vmem:[%s8127_s2 + $0x100] sm:$0xff]  ;;  %v5038_v60 = vld [vmem:[%s8127_s2 + $0xe8] sm:$0xff]  ;;  %v5056_v2 = vld [vmem:[%s8126_s1 + $0x1b8] sm:$0xff] }
  0x46   :  { %v1775_v43 = vsel %vm922_vm0, %v4936_v20, 0.0  ;;  %v319_v36 = vsel %vm124_vm1, %v121_v9, -inf  ;;  %v321_v53 = vsel %vm124_vm1, %v122_v10, -inf  ;;  %v193_v37 = vmax.f32 %v4874_v56, %v192_v23  ;;  %v5046_v45 = vld [vmem:[%s8126_s1 + $0x120] sm:$0xff]  ;;  %v5073_v47 = vld [vmem:[%s8126_s1 + $0x1b0] sm:$0xff]  ;;  %v5087_v1 = vld [vmem:[%s8126_s1 + $0x1a8] sm:$0xff] }
  0x47   :  { %v259_v12 = vrot.slane %v258_v5, 2  ;;  %v308_v22 = vmax.f32 %v304_v11, %v307_v7  ;;  %v310_v24 = vmax.f32 %v306_v0, %v309_v44  ;;  %v5051_v46 = vld [vmem:[%s8126_s1 + $0x160] sm:$0xff]  ;;  %v323_v56 = vsel %vm124_vm1, %v123_v21, -inf  ;;  %v5068_v44 = vld [vmem:[%s8126_s1 + $0x1f8] sm:$0xff]  ;;  %8174 = vst [vmem:[#allocation9_spill] sm:$0xff] %v5073_v47  ;;  %v5078_v8 = vld [vmem:[%s8126_s1 + $0x1f0] sm:$0xff] }
  0x48   :  { %8175 = vst [vmem:[#allocation10_spill] sm:$0xff] %v5078_v8  ;;  %v1790_v11 = vsel %vm922_vm0, %v5033_v57, 0.0  ;;  %v1781_v0 = vsel %vm922_vm0, %v5038_v60, 0.0  ;;  %v5202_v21 = vld [vmem:[%s8127_s2 + $0x380] sm:$0xff]  ;;  %v5229_v4 = vld [vmem:[%s8127_s2 + $0x298] sm:$0xff]  ;;  %v5234_v63 = vld [vmem:[%s8127_s2 + $0x490] sm:$0xff] }
  0x49   :  { %v260_v15 = vmax.f32 %v258_v5, %v259_v12  ;;  %v312_v32 = vmax.f32 %v308_v22, %v311_v13  ;;  %v314_v33 = vmax.f32 %v310_v24, %v313_v16  ;;  %1785 = vadd.xlane.f32.xlu1 %v1784_v42  ;;  %1776 = vadd.xlane.f32.xlu0 %v1775_v43  ;;  %v5092_v12 = vld [vmem:[%s8126_s1 + $0x1e8] sm:$0xff]  ;;  %v5097_v13 = vld [vmem:[%s8126_s1 + $0x1a0] sm:$0xff]  ;;  %v5113_v24 = vld [vmem:[%s8127_s2 + $0x110] sm:$0xff] }
  0x4a   :  { %8176 = vst [vmem:[#allocation11_spill] sm:$0xff] %v5097_v13  ;;  %v5108_v22 = vld [vmem:[%s8126_s1 + $0x1e0] sm:$0xff]  ;;  %v5129_v42 = vld [vmem:[%s8127_s2 + $0x288] sm:$0xff]  ;;  %8187 = vst [vmem:[#allocation22_spill] sm:$0xff] %v5202_v21 }
  0x4b   :  { %v261_v35 = vrot.slane %v260_v15, 1  ;;  %v316_v61 = vmax.f32 %v312_v32, %v315_v25  ;;  %v318_v62 = vmax.f32 %v314_v33, %v317_v28  ;;  %8177 = vst [vmem:[#allocation12_spill] sm:$0xff] %v5108_v22  ;;  %8178 = vst [vmem:[#allocation13_spill] sm:$0xff] %v5129_v42  ;;  %v5134_v43 = vld [vmem:[%s8127_s2 + $0x108] sm:$0xff]  ;;  %v5176_v33 = vld [vmem:[%s8127_s2 + $0x290] sm:$0xff] }
  0x4c   :  { %8184 = vst [vmem:[#allocation19_spill] sm:$0xff] %v5176_v33  ;;  %v5181_v28 = vld [vmem:[%s8127_s2 + $0x210] sm:$0xff]  ;;  %v1793_v32 = vsel %vm922_vm0, %v5134_v43, 0.0  ;;  %8190 = vst [vmem:[#allocation25_spill] sm:$0xff] %v5229_v4  ;;  %v733_v22 = vld [vmem:[%s8127_s2 + $0x18] sm:$0xff] }
  0x4d   :  { %v320_v9 = vmax.f32 %v316_v61, %v319_v36  ;;  %v322_v10 = vmax.f32 %v318_v62, %v321_v53  ;;  %v262_v16 = vmax.f32 %v260_v15, %v261_v35  ;;  %v5118_v15 = vld [vmem:[%s8127_s2 + $0xf8] sm:$0xff]  ;;  %v5139_v35 = vld [vmem:[%s8127_s2 + $0x208] sm:$0xff]  ;;  %1791 = vadd.xlane.f32.xlu1 %v1790_v11  ;;  %1782 = vadd.xlane.f32.xlu0 %v1781_v0  ;;  %v5150_v62 = vld [vmem:[%s8127_s2 + $0x280] sm:$0xff]  ;;  %v1796_v61 = vsel %vm922_vm0, %v5113_v24, 0.0 }
  0x4e   :  { %8179 = vst [vmem:[#allocation14_spill] sm:$0xff] %v5139_v35  ;;  %8180 = vst [vmem:[#allocation15_spill] sm:$0xff] %v5150_v62  ;;  %v5165_v11 = vld [vmem:[%s8127_s2 + $0x180] sm:$0xff]  ;;  %v1787_v36 = vsel %vm922_vm0, %v5118_v15, 0.0  ;;  %v1937_v53 = vsel %vm922_vm0, %v5129_v42, 0.0  ;;  %v5197_v23 = vsel %vm922_vm0, %v5139_v35, 0.0 }
  0x4f   :  { %v324_v25 = vmax.f32 %v320_v9, %v323_v56  ;;  %v5155_v56 = vld [vmem:[%s8127_s2 + $0x480] sm:$0xff]  ;;  %8183 = vst [vmem:[#allocation18_spill] sm:$0xff] %v5165_v11  ;;  %8185 = vst [vmem:[#allocation20_spill] sm:$0xff] %v5181_v28  ;;  %v5216_v6 = vsel %vm922_vm0, %v5150_v62, 0.0  ;;  %v5239_v42 = vld [vmem:[%s8127_s2 + $0x388] sm:$0xff]  ;;  %v5246_v62 = vsel %vm922_vm0, %v5165_v11, 0.0 }
  0x50   :  { %8181 = vst [vmem:[#allocation16_spill] sm:$0xff] %v5155_v56  ;;  %v5160_v9 = vld [vmem:[%s8127_s2 + $0x200] sm:$0xff]  ;;  %v5220_v14 = vsel %vm922_vm0, %v5155_v56, 0.0  ;;  %8191 = vst [vmem:[#allocation26_spill] sm:$0xff] %v5234_v63  ;;  %v5250_v35 = vsel %vm922_vm0, %v5176_v33, 0.0  ;;  %v5268_v33 = vsel %vm922_vm0, %v5202_v21, 0.0 }
  0x51   :  { %8182 = vst [vmem:[#allocation17_spill] sm:$0xff] %v5160_v9  ;;  %v325_v0 = vmax.f32 %v322_v10, %v324_v25  ;;  %v5186_v10 = vld [vmem:[%s8127_s2 + $0x488] sm:$0xff]  ;;  %v5189_v25 = vsel %vm8173_vm2, %v262_v16, %v193_v37  ;;  %v5212_v16 = vld [vmem:[%s8127_s2 + $0x400] sm:$0xff]  ;;  %v5224_v5 = vsel %vm922_vm0, %v5160_v9, 0.0  ;;  %8192 = vst [vmem:[#allocation27_spill] sm:$0xff] %v5239_v42  ;;  %1797 = vadd.xlane.f32.xlu1 %v1796_v61  ;;  %1788 = vadd.xlane.f32.xlu0 %v1787_v36 }
  0x52   :  { %8186 = vst [vmem:[#allocation21_spill] sm:$0xff] %v5186_v10  ;;  %v5207_v37 = vld [vmem:[%s8127_s2 + $0x188] sm:$0xff]  ;;  %8189 = vst [vmem:[#allocation24_spill] sm:$0xff] %v5212_v16  ;;  %v730_v56 = vld [vmem:[%s8127_s2] sm:$0xff]  ;;  %v5254_v9 = vsel %vm922_vm0, %v5181_v28, 0.0  ;;  %v5258_v13 = vsel %vm922_vm0, %v5186_v10, 0.0 }
  0x53   :  { %8188 = vst [vmem:[#allocation23_spill] sm:$0xff] %v5207_v37  ;;  %v326_v7 = vrot.slane %v325_v0, 4  ;;  %8193 = vst [vmem:[#allocation28_spill] sm:$0xff] %v5258_v13  ;;  %v731_v36 = vld [vmem:[%s8127_s2 + $0x8] sm:$0xff]  ;;  %v732_v61 = vld [vmem:[%s8127_s2 + $0x10] sm:$0xff]  ;;  %v5272_v28 = vsel %vm922_vm0, %v5207_v37, 0.0 }
  0x54   :  { %8194 = vst [vmem:[#allocation29_spill] sm:$0xff] %v5268_v33  ;;  %8195 = vst [vmem:[#allocation30_spill] sm:$0xff] %v5272_v28  ;;  %v5276_v10 = vsel %vm922_vm0, %v5212_v16, 0.0  ;;  %v5289_v21 = vsel %vm922_vm0, %v5229_v4, 0.0  ;;  %v5293_v16 = vsel %vm922_vm0, %v5234_v63, 0.0  ;;  %v5302_v37 = vld [vmem:[%s8127_s2 + $0x218] sm:$0xff] }
  0x55   :  { %v327_v11 = vmax.f32 %v325_v0, %v326_v7  ;;  %8196 = vst [vmem:[#allocation31_spill] sm:$0xff] %v5276_v10  ;;  %v734_v7 = vld [vmem:[%s8127_s2 + $0x20] sm:$0xff]  ;;  %v735_v0 = vld [vmem:[%s8127_s2 + $0x28] sm:$0xff]  ;;  %8197 = vst [vmem:[#allocation32_spill] sm:$0xff] %v5289_v21  ;;  %v5297_v10 = vsel %vm922_vm0, %v5239_v42, 0.0  ;;  %v923_v4 = vsel %vm922_vm0, %v730_v56, -inf  ;;  %1938 = vadd.xlane.f32.xlu1 %v1937_v53  ;;  %1794 = vadd.xlane.f32.xlu0 %v1793_v32 }
  0x56   :  { %8198 = vst [vmem:[#allocation33_spill] sm:$0xff] %v5293_v16  ;;  %8199 = vst [vmem:[#allocation34_spill] sm:$0xff] %v5297_v10  ;;  %v736_v28 = vld [vmem:[%s8127_s2 + $0x30] sm:$0xff]  ;;  %v5310_v63 = vsel %vm922_vm0, %v5302_v37, 0.0  ;;  %v5315_v42 = vld [vmem:[%s8127_s2 + $0x408] sm:$0xff]  ;;  %v924_v16 = vsel %vm922_vm0, %v731_v36, -inf }
  0x57   :  { %8200 = vst [vmem:[#allocation35_spill] sm:$0xff] %v5302_v37  ;;  %v328_v21 = vrot.slane %v327_v11, 2  ;;  %8201 = vst [vmem:[#allocation36_spill] sm:$0xff] %v5310_v63  ;;  %v737_v10 = vld [vmem:[%s8127_s2 + $0x38] sm:$0xff]  ;;  %v925_v33 = vsel %vm922_vm0, %v732_v61, -inf  ;;  %v5325_v56 = vld [vmem:[%s8127_s2 + $0x300] sm:$0xff] }
  0x58   :  { %8202 = vst [vmem:[#allocation37_spill] sm:$0xff] %v5315_v42  ;;  %8203 = vst [vmem:[#allocation38_spill] sm:$0xff] %v5325_v56  ;;  %v5330_v63 = vld [vmem:[%s8127_s2 + $0x190] sm:$0xff]  ;;  %v738_v37 = vld [vmem:[%s8127_s2 + $0x40] sm:$0xff]  ;;  %v926_v47 = vmax.f32 %v923_v4, %v925_v33  ;;  %v927_v36 = vsel %vm922_vm0, %v733_v22, -inf  ;;  %v929_v53 = vsel %vm922_vm0, %v734_v7, -inf }
  0x59   :  { %8204 = vst [vmem:[#allocation39_spill] sm:$0xff] %v5330_v63  ;;  %v931_v32 = vsel %vm922_vm0, %v735_v0, -inf  ;;  %v329_v61 = vmax.f32 %v327_v11, %v328_v21  ;;  %v5340_v8 = vsel %vm922_vm0, %v5315_v42, 0.0  ;;  %v5345_v13 = vld [vmem:[%s8127_s2 + $0x390] sm:$0xff]  ;;  %v5350_v4 = vld [vmem:[%s8127_s2 + $0x2a0] sm:$0xff]  ;;  %v739_v22 = vld [vmem:[%s8127_s2 + $0x48] sm:$0xff]  ;;  %v928_v33 = vmax.f32 %v924_v16, %v927_v36  ;;  %1890 = vadd.xlane.f32.xlu1 %v5197_v23  ;;  %1935 = vadd.xlane.f32.xlu0 %v5216_v6 }
  0x5a   :  { %8205 = vst [vmem:[#allocation40_spill] sm:$0xff] %v5340_v8  ;;  %8206 = vst [vmem:[#allocation41_spill] sm:$0xff] %v5345_v13  ;;  %v933_v21 = vsel %vm922_vm0, %v736_v28, -inf  ;;  %v5358_v11 = vsel %vm922_vm0, %v5325_v56, 0.0  ;;  %v5362_v7 = vsel %vm922_vm0, %v5330_v63, 0.0  ;;  %v5367_v0 = vld [vmem:[%s8127_s2 + $0x498] sm:$0xff]  ;;  %v930_v16 = vmax.f32 %v926_v47, %v929_v53 }
  0x5b   :  { %8207 = vst [vmem:[#allocation42_spill] sm:$0xff] %v5350_v4  ;;  %8208 = vst [vmem:[#allocation43_spill] sm:$0xff] %v5358_v11  ;;  %v5372_v42 = vld [vmem:[%s8127_s2 + $0x308] sm:$0xff]  ;;  %v740_v28 = vld [vmem:[%s8127_s2 + $0x50] sm:$0xff]  ;;  %v935_v36 = vsel %vm922_vm0, %v737_v10, -inf  ;;  %v330_v56 = vrot.slane %v329_v61, 1  ;;  %v932_v53 = vmax.f32 %v928_v33, %v931_v32 }
  0x5c   :  { %8209 = vst [vmem:[#allocation44_spill] sm:$0xff] %v5362_v7  ;;  %8210 = vst [vmem:[#allocation45_spill] sm:$0xff] %v5367_v0  ;;  %v5380_v7 = vsel %vm922_vm0, %v5345_v13, 0.0  ;;  %v1679_v11 = vld [vmem:[%s8127_s2 + $0x588] sm:$0xff]  ;;  %v5388_v8 = vld [vmem:[%s8127_s2 + $0x410] sm:$0xff]  ;;  %v937_v10 = vsel %vm922_vm0, %v738_v37, -inf  ;;  %v934_v23 = vmax.f32 %v930_v16, %v933_v21 }
  0x5d   :  { %8211 = vst [vmem:[#allocation46_spill] sm:$0xff] %v5372_v42  ;;  %8212 = vst [vmem:[#allocation47_spill] sm:$0xff] %v5380_v7  ;;  %v741_v47 = vld [vmem:[%s8127_s2 + $0x58] sm:$0xff]  ;;  %v5398_v13 = vsel %vm922_vm0, %v5350_v4, 0.0  ;;  %v5402_v7 = vsel %vm922_vm0, %v5367_v0, 0.0  ;;  %v5407_v63 = vld [vmem:[%s8127_s2 + $0x220] sm:$0xff]  ;;  %v331_v33 = vmax.f32 %v329_v61, %v330_v56  ;;  %v936_v61 = vmax.f32 %v932_v53, %v935_v36  ;;  %2127 = vadd.xlane.f32.xlu1 %v5220_v14 }
  0x5e   :  { %8213 = vst [vmem:[#allocation48_spill] sm:$0xff] %v5388_v8  ;;  %8214 = vst [vmem:[#allocation49_spill] sm:$0xff] %v5398_v13  ;;  %v5412_v37 = vld [vmem:[%s8128_s3 + $0x8] sm:$0xff]  ;;  %v742_v6 = vld [vmem:[%s8127_s2 + $0x60] sm:$0xff]  ;;  %v939_v32 = vsel %vm922_vm0, %v739_v22, -inf  ;;  %v5420_v0 = vsel %vm922_vm0, %v5372_v42, 0.0  ;;  %1887 = vadd.xlane.f32.xlu0 %v5224_v5 }
  0x5f   :  { %8215 = vst [vmem:[#allocation50_spill] sm:$0xff] %v5402_v7  ;;  %8216 = vst [vmem:[#allocation51_spill] sm:$0xff] %v5407_v63  ;;  %v1678_v7 = vld [vmem:[%s8127_s2 + $0x580] sm:$0xff]  ;;  %v5428_v13 = vld [vmem:[%s8128_s3 + $0x28] sm:$0xff]  ;;  %v941_v22 = vsel %vm922_vm0, %v740_v28, -inf  ;;  %v5440_v16 = vsel %vm922_vm0, %v1679_v11, 0.0  ;;  %v938_v11 = vmax.f32 %v934_v23, %v937_v10  ;;  %v5462_v53 = vsel %vm8172_vm3, %v331_v33, %v5189_v25 }
  0x60   :  { %8217 = vst [vmem:[#allocation52_spill] sm:$0xff] %v5420_v0  ;;  %v5433_v21 = vld [vmem:[%s8128_s3] sm:$0xff]  ;;  %v743_v56 = vld [vmem:[%s8127_s2 + $0x68] sm:$0xff]  ;;  %8218 = vst [vmem:[#allocation53_spill] sm:$0xff] %v5440_v16  ;;  %v5444_v0 = vsel %vm922_vm0, %v5388_v8, 0.0  ;;  %v943_v36 = vsel %vm922_vm0, %v741_v47, -inf  ;;  %v940_v10 = vmax.f32 %v936_v61, %v939_v32  ;;  %3902 = vmatmul.mubr.msk.f32.vlgmr.msra.gmra.mrb[0].mxu1 %vm124_vm1, %v5462_v53  ;;  %3901 = vmatmul.mubr.msk.f32.vlgmr.msra.gmra.mrb[0].mxu0 %vm124_vm1, %v5462_v53 }
  0x61   :  { %8219 = vst [vmem:[#allocation54_spill] sm:$0xff] %v5444_v0  ;;  %v5449_v42 = vld [vmem:[%s8128_s3 + $0x20] sm:$0xff]  ;;  %v5454_v4 = vld [vmem:[%s8127_s2 + $0x310] sm:$0xff]  ;;  %8220 = vst [vmem:[#allocation55_spill] sm:$0xff] %v5462_v53  ;;  %v5466_v8 = vsel %vm922_vm0, %v5407_v63, 0.0  ;;  %v945_v25 = vsel %vm922_vm0, %v742_v6, -inf  ;;  %v942_v61 = vmax.f32 %v938_v11, %v941_v22  ;;  %v8224_v33 = vpack.c.bf16 %v4950_v52, %v4945_v51  ;;  %1839 = vadd.xlane.f32.xlu1 %v5246_v62 }
  0x62   :  { %v744_v28 = vld [vmem:[%s8127_s2 + $0x70] sm:$0xff]  ;;  %8221 = vst [vmem:[#allocation56_spill] sm:$0xff] %v5466_v8  ;;  %v5471_v0 = vld [vmem:[%s8127_s2 + $0x198] sm:$0xff]  ;;  %v746_v47 = vld [vmem:[%s8127_s2 + $0x80] sm:$0xff]  ;;  %v5485_v23 = vsel %vm922_vm0, %v1678_v7, 0.0  ;;  %v947_v53 = vsel %vm922_vm0, %v743_v56, -inf  ;;  %v8223_v7 = vpack.c.bf16 %v4924_v49, %v4919_v17  ;;  %v944_v51 = vmax.f32 %v940_v10, %v943_v36  ;;  %1941 = vadd.xlane.f32.xlu0 %v5250_v35 }
  0x63   :  { %v745_v16 = vld [vmem:[%s8127_s2 + $0x78] sm:$0xff]  ;;  %8222 = vst [vmem:[#allocation57_spill] sm:$0xff] %v5485_v23  ;;  %v747_v8 = vld [vmem:[%s8127_s2 + $0x88] sm:$0xff]  ;;  %v748_v6 = vld [vmem:[%s8127_s2 + $0x90] sm:$0xff]  ;;  %4013 = vmatpush1.bf16.msra.mxu0 %v8224_v33  ;;  %v5509_v63 = vsel %vm922_vm0, %v5454_v4, 0.0  ;;  %v949_v52 = vsel %vm922_vm0, %v744_v28, -inf  ;;  %v8225_v56 = vpack.c.bf16 %v4962_v29, %v4955_v27  ;;  %v8226_v11 = vpack.c.bf16 %v4982_v34, %v4977_v18 }
  0x64   :  { %v749_v32 = vld [vmem:[%s8127_s2 + $0x98] sm:$0xff]  ;;  %4029 = vmatpush1.bf16.msra.mxu1 %v8223_v7  ;;  %v750_v22 = vld [vmem:[%s8127_s2 + $0xa0] sm:$0xff]  ;;  %v751_v17 = vld [vmem:[%s8127_s2 + $0xa8] sm:$0xff]  ;;  %v5529_v33 = vsel %vm922_vm0, %v5471_v0, 0.0  ;;  %v946_v23 = vmax.f32 %v942_v61, %v945_v25  ;;  %v951_v36 = vsel %vm922_vm0, %v745_v16, -inf  ;;  %v953_v28 = vsel %vm922_vm0, %v746_v47, -inf }
  0x65   :  { %v752_v49 = vld [vmem:[%s8127_s2 + $0xb0] sm:$0xff]  ;;  %4031 = vmatprep.subr.bf16.mxu1 %v8225_v56  ;;  %4015 = vmatprep.subr.bf16.mxu0 %v8226_v11  ;;  %v754_v7 = vld [vmem:[%s8127_s2 + $0xc0] sm:$0xff]  ;;  %v8227_v10 = vmov 0.0   ;;  %v948_v27 = vmax.f32 %v944_v51, %v947_v53  ;;  %v955_v29 = vsel %vm922_vm0, %v747_v8, -inf  ;;  %v957_v18 = vsel %vm922_vm0, %v748_v6, -inf }
  0x66   :  { %682 = vmatprep.mubr.f32.mxu1 %v8227_v10  ;;  %611 = vmatprep.mubr.f32.mxu0 %v8227_v10  ;;  %v959_v34 = vsel %vm922_vm0, %v749_v32, -inf  ;;  %v950_v25 = vmax.f32 %v946_v23, %v949_v52  ;;  %v961_v16 = vsel %vm922_vm0, %v750_v22, -inf  ;;  %v963_v47 = vsel %vm922_vm0, %v751_v17, -inf  ;;  %v769_v32 = vld [vmem:[%s8127_s2 + $0x138] sm:$0xff] }
  0x67   :  { %v5546_v61 = vsel %vm922_vm0, %v752_v49, -inf  ;;  %v8228_v53 = vpack.c.bf16 %v4972_v31, %v4967_v30  ;;  %v8229_v8 = vpack.c.bf16 %v4992_v41, %v4987_v39  ;;  %v952_v6 = vmax.f32 %v948_v27, %v951_v36  ;;  %v766_v39 = vld [vmem:[%s8127_s2 + $0x120] sm:$0xff]  ;;  %v771_v49 = vld [vmem:[%s8127_s2 + $0x148] sm:$0xff]  ;;  %v777_v36 = vld [vmem:[%s8127_s2 + $0x178] sm:$0xff]  ;;  %1893 = vadd.xlane.f32.xlu1 %v5254_v9 }
  0x68   :  { %v5556_v5 = vsel %vm922_vm0, %v4863_v50, -inf  ;;  %v5559_v14 = vsel %vm922_vm0, %v754_v7, -inf  ;;  %v5563_v23 = vsel %vm922_vm0, %v4896_v3, -inf  ;;  %v8230_v30 = vpack.c.bf16 %v5002_v40, %v4997_v26  ;;  %v765_v50 = vld [vmem:[%s8127_s2 + $0x118] sm:$0xff]  ;;  %v767_v3 = vld [vmem:[%s8127_s2 + $0x128] sm:$0xff] }
  0x69   :  { %4033 = vmatpush1.bf16.msra.mxu1 %v8228_v53  ;;  %4017 = vmatpush1.bf16.msra.mxu0 %v8229_v8  ;;  %v8231_v31 = vpack.c.bf16 %v5028_v55, %v5023_v59  ;;  %v954_v41 = vmax.f32 %v950_v25, %v953_v28  ;;  %v5582_v26 = vsel %vm922_vm0, %v4858_v48, -inf  ;;  %v5586_v40 = vsel %vm922_vm0, %v4936_v20, -inf  ;;  %v768_v55 = vld [vmem:[%s8127_s2 + $0x130] sm:$0xff]  ;;  %v770_v48 = vld [vmem:[%s8127_s2 + $0x140] sm:$0xff] }
  0x6a   :  { %4035 = vmatprep.subr.bf16.mxu1 %v8230_v30  ;;  %v5590_v59 = vsel %vm922_vm0, %v4881_v38, -inf  ;;  %v956_v22 = vmax.f32 %v952_v6, %v955_v29  ;;  %v5603_v20 = vsel %vm922_vm0, %v5038_v60, -inf  ;;  %v5607_v38 = vsel %vm922_vm0, %v4931_v19, -inf  ;;  %v772_v60 = vld [vmem:[%s8127_s2 + $0x150] sm:$0xff]  ;;  %v773_v19 = vld [vmem:[%s8127_s2 + $0x158] sm:$0xff]  ;;  %v8237_v8 = vld [vmem:[#allocation10_spill] sm:$0xff] }
  0x6b   :  { %4019 = vmatprep.subr.bf16.mxu0 %v8231_v31  ;;  %v5611_v17 = vsel %vm922_vm0, %v5118_v15, -inf  ;;  %v958_v51 = vmax.f32 %v954_v41, %v957_v18  ;;  %v5626_v15 = vsel %vm922_vm0, %v5033_v57, -inf  ;;  %v5630_v35 = vsel %vm922_vm0, %v5134_v43, -inf  ;;  %v774_v57 = vld [vmem:[%s8127_s2 + $0x160] sm:$0xff]  ;;  %v775_v43 = vld [vmem:[%s8127_s2 + $0x168] sm:$0xff]  ;;  %v8240_v31 = vld [vmem:[#allocation12_spill] sm:$0xff] }
  0x6c   :  { %v5634_v62 = vsel %vm922_vm0, %v5113_v24, -inf  ;;  %v8232_v52 = vpack.c.bf16 %v5018_v58, %v5013_v54  ;;  %v8233_v56 = vpack.c.bf16 %v5051_v46, %v5046_v45  ;;  %v776_v24 = vld [vmem:[%s8127_s2 + $0x170] sm:$0xff]  ;;  %v960_v11 = vmax.f32 %v956_v22, %v959_v34  ;;  %v8238_v6 = vld [vmem:[#allocation9_spill] sm:$0xff] }
  0x6d   :  { %v5652_v54 = vsel %vm922_vm0, %v765_v50, -inf  ;;  %v5655_v58 = vsel %vm922_vm0, %v766_v39, -inf  ;;  %v5658_v45 = vsel %vm922_vm0, %v767_v3, -inf  ;;  %v8234_v46 = vpack.c.bf16 %v5068_v44, %v5056_v2  ;;  %v8236_v34 = vld [vmem:[#allocation28_spill] sm:$0xff]  ;;  %v8241_v50 = vld [vmem:[#allocation11_spill] sm:$0xff]  ;;  %v8244_v22 = vld [vmem:[#allocation17_spill] sm:$0xff] }
  0x6e   :  { %4037 = vmatpush1.bf16.msra.mxu1 %v8232_v52  ;;  %4021 = vmatpush1.bf16.msra.mxu0 %v8233_v56  ;;  %v8235_v7 = vpack.c.bf16 %v5092_v12, %v5087_v1  ;;  %v962_v28 = vmax.f32 %v958_v51, %v961_v16  ;;  %v5670_v27 = vsel %vm922_vm0, %v768_v55, -inf  ;;  %v5673_v29 = vsel %vm922_vm0, %v769_v32, -inf  ;;  %v800_v39 = vld [vmem:[%s8127_s2 + $0x230] sm:$0xff]  ;;  %v801_v3 = vld [vmem:[%s8127_s2 + $0x238] sm:$0xff]  ;;  %v8243_v32 = vld [vmem:[#allocation18_spill] sm:$0xff] }
  0x6f   :  { %4039 = vmatprep.subr.bf16.mxu1 %v8234_v46  ;;  %v5676_v18 = vsel %vm922_vm0, %v770_v48, -inf  ;;  %v964_v2 = vmax.f32 %v960_v11, %v963_v47  ;;  %v5679_v44 = vsel %vm922_vm0, %v771_v49, -inf  ;;  %v5682_v1 = vsel %vm922_vm0, %v772_v60, -inf  ;;  %2130 = vadd.xlane.f32.xlu0 %v8236_v34  ;;  %v8246_v51 = vld [vmem:[#allocation14_spill] sm:$0xff]  ;;  %v8249_v46 = vld [vmem:[#allocation51_spill] sm:$0xff] }
  0x70   :  { %4023 = vmatprep.subr.bf16.mxu0 %v8235_v7  ;;  %v5685_v12 = vsel %vm922_vm0, %v773_v19, -inf  ;;  %v966_v25 = vmax.f32 %v962_v28, %v5546_v61  ;;  %v5691_v16 = vsel %vm922_vm0, %v774_v57, -inf  ;;  %v5694_v47 = vsel %vm922_vm0, %v775_v43, -inf  ;;  %v799_v61 = vld [vmem:[%s8127_s2 + $0x228] sm:$0xff] }
  0x71   :  { %v5697_v53 = vsel %vm922_vm0, %v776_v24, -inf  ;;  %v8239_v30 = vpack.c.bf16 %v8237_v8, %v8238_v6  ;;  %v8242_v9 = vpack.c.bf16 %v8240_v31, %v8241_v50  ;;  %v968_v41 = vmax.f32 %v964_v2, %v5556_v5  ;;  %v8247_v5 = vld [vmem:[#allocation20_spill] sm:$0xff]  ;;  %v8248_v57 = vld [vmem:[#allocation35_spill] sm:$0xff]  ;;  %v802_v24 = vld [vmem:[%s8127_s2 + $0x240] sm:$0xff] }
  0x72   :  { %v5716_v55 = vsel %vm922_vm0, %v777_v36, -inf  ;;  %v5720_v48 = vsel %vm922_vm0, %v8243_v32, -inf  ;;  %v1056_v49 = vsel %vm922_vm0, %v8244_v22, -inf  ;;  %v8245_v60 = vpack.c.bf16 %v5428_v13, %v5412_v37  ;;  %v803_v13 = vld [vmem:[%s8127_s2 + $0x248] sm:$0xff]  ;;  %v782_v6 = vld [vmem:[%s8127_s2 + $0x1a0] sm:$0xff] }
  0x73   :  { %4041 = vmatpush1.bf16.msra.mxu1 %v8239_v30  ;;  %4025 = vmatpush1.bf16.msra.mxu0 %v8242_v9  ;;  %v970_v19 = vmax.f32 %v966_v25, %v5559_v14  ;;  %v1057_v52 = vsel %vm922_vm0, %v8246_v51, -inf  ;;  %v1058_v56 = vsel %vm922_vm0, %v8247_v5, -inf  ;;  %v1060_v43 = vsel %vm922_vm0, %v8248_v57, -inf  ;;  %v8250_v36 = vld [vmem:[#allocation55_spill] sm:$0xff]  ;;  %v8252_v8 = vld [vmem:[#allocation30_spill] sm:$0xff] }
  0x74   :  { %4043 = vmatprep.subr.bf16.mxu0 %v8245_v60  ;;  %v972_v37 = vmax.f32 %v968_v41, %v5563_v23  ;;  %v1059_v14 = vmax.f32 %v1056_v49, %v1058_v56  ;;  %v1061_v11 = vmax.f32 %v1057_v52, %v1060_v43  ;;  %v1062_v7 = vsel %vm922_vm0, %v8249_v46, -inf  ;;  %v8251_v23 = vld [vmem:[#allocation29_spill] sm:$0xff]  ;;  %1842 = vadd.xlane.f32.xlu0 %v8252_v8  ;;  %v804_v30 = vld [vmem:[%s8127_s2 + $0x250] sm:$0xff]  ;;  %v783_v41 = vld [vmem:[%s8127_s2 + $0x1a8] sm:$0xff] }
  0x75   :  { %v974_v28 = vmax.f32 %v970_v19, %v5582_v26  ;;  %v1064_v2 = vsel %vm922_vm0, %v799_v61, -inf  ;;  %v1066_v34 = vsel %vm922_vm0, %v800_v39, -inf  ;;  %v1068_v25 = vsel %vm922_vm0, %v801_v3, -inf  ;;  %2031 = vadd.xlane.f32.xlu1 %v8251_v23  ;;  %v805_v26 = vld [vmem:[%s8127_s2 + $0x258] sm:$0xff]  ;;  %v8253_v50 = vld [vmem:[#allocation23_spill] sm:$0xff] }
  0x76   :  { %3904 = vmatmul.mubr.msk.f32.vlgmr.msra.gmra.mrb[2].mxu1 %vm124_vm1, %v8250_v36  ;;  %3903 = vmatmul.mubr.msk.f32.vlgmr.msra.gmra.mrb[2].mxu0 %vm124_vm1, %v8250_v36  ;;  %v976_v31 = vmax.f32 %v972_v37, %v5586_v40  ;;  %v5765_v9 = vsel %vm922_vm0, %v8253_v50, -inf  ;;  %v1063_v61 = vmax.f32 %v1059_v14, %v1062_v7  ;;  %v1065_v39 = vmax.f32 %v1061_v11, %v1064_v2  ;;  %v8255_v22 = vld [vmem:[#allocation39_spill] sm:$0xff]  ;;  %v785_v56 = vld [vmem:[%s8127_s2 + $0x1b8] sm:$0xff] }
  0x77   :  { %v8254_v3 = vpack.c.bf16 %v5449_v42, %v5433_v21  ;;  %1401 = vmatprep.mubr.f32.mxu0 %v8227_v10  ;;  %v978_v32 = vmax.f32 %v974_v28, %v5590_v59  ;;  %v5777_v40 = vsel %vm922_vm0, %v8255_v22, -inf  ;;  %v1070_v49 = vsel %vm922_vm0, %v802_v24, -inf  ;;  %v784_v42 = vld [vmem:[%s8127_s2 + $0x1b0] sm:$0xff]  ;;  %v806_v21 = vld [vmem:[%s8127_s2 + $0x260] sm:$0xff]  ;;  %v807_v59 = vld [vmem:[%s8127_s2 + $0x268] sm:$0xff]  ;;  %1472 = vmatprep.mubr.f32.mxu1 %v8227_v10 }
  0x78   :  { %v1072_v60 = vsel %vm922_vm0, %v803_v13, -inf  ;;  %v980_v19 = vmax.f32 %v976_v31, %v5603_v20  ;;  %v5793_v51 = vsel %vm922_vm0, %v5471_v0, -inf  ;;  %v1067_v52 = vmax.f32 %v1063_v61, %v1066_v34  ;;  %v8256_v13 = vld [vmem:[#allocation31_spill] sm:$0xff]  ;;  %v8257_v0 = vld [vmem:[#allocation32_spill] sm:$0xff]  ;;  %v786_v10 = vld [vmem:[%s8127_s2 + $0x1c0] sm:$0xff] }
  0x79   :  { %4045 = vmatpush1.bf16.msra.mxu0 %v8254_v3  ;;  %v1069_v5 = vmax.f32 %v1065_v39, %v1068_v25  ;;  %v982_v57 = vmax.f32 %v978_v32, %v5607_v38  ;;  %v5801_v43 = vsel %vm922_vm0, %v782_v6, -inf  ;;  %v1074_v24 = vsel %vm922_vm0, %v804_v30, -inf  ;;  %2079 = vadd.xlane.f32.xlu1 %v8256_v13  ;;  %v808_v37 = vld [vmem:[%s8127_s2 + $0x270] sm:$0xff]  ;;  %v809_v38 = vld [vmem:[%s8127_s2 + $0x278] sm:$0xff]  ;;  %v787_v36 = vld [vmem:[%s8127_s2 + $0x1c8] sm:$0xff] }
  0x7a   :  { %v1076_v20 = vsel %vm922_vm0, %v805_v26, -inf  ;;  %1944 = vadd.xlane.f32.xlu0 %v8257_v0  ;;  %v984_v14 = vmax.f32 %v980_v19, %v5611_v17  ;;  %v5818_v11 = vsel %vm922_vm0, %v783_v41, -inf  ;;  %v1071_v46 = vmax.f32 %v1067_v52, %v1070_v49  ;;  %v788_v17 = vld [vmem:[%s8127_s2 + $0x1d0] sm:$0xff]  ;;  %v8258_v39 = vld [vmem:[#allocation33_spill] sm:$0xff]  ;;  %v791_v49 = vld [vmem:[%s8127_s2 + $0x1e8] sm:$0xff] }
  0x7b   :  { %v1073_v7 = vmax.f32 %v1069_v5, %v1072_v60  ;;  %v986_v28 = vmax.f32 %v982_v57, %v5626_v15  ;;  %v5825_v2 = vsel %vm922_vm0, %v784_v42, -inf  ;;  %v1078_v34 = vsel %vm922_vm0, %v806_v21, -inf  ;;  %v789_v15 = vld [vmem:[%s8127_s2 + $0x1d8] sm:$0xff]  ;;  %v790_v3 = vld [vmem:[%s8127_s2 + $0x1e0] sm:$0xff]  ;;  %v8260_v21 = vld [vmem:[#allocation15_spill] sm:$0xff] }
  0x7c   :  { %v1080_v25 = vsel %vm922_vm0, %v807_v59, -inf  ;;  %v988_v23 = vmax.f32 %v984_v14, %v5630_v35  ;;  %v5834_v8 = vsel %vm922_vm0, %v785_v56, -inf  ;;  %v1075_v6 = vmax.f32 %v1071_v46, %v1074_v24  ;;  %v8259_v35 = vld [vmem:[#allocation34_spill] sm:$0xff]  ;;  %v8261_v19 = vld [vmem:[#allocation13_spill] sm:$0xff]  ;;  %v792_v52 = vld [vmem:[%s8127_s2 + $0x1f0] sm:$0xff] }
  0x7d   :  { %v1077_v30 = vmax.f32 %v1073_v7, %v1076_v20  ;;  %v990_v26 = vmax.f32 %v986_v28, %v5634_v62  ;;  %v5841_v31 = vsel %vm922_vm0, %v786_v10, -inf  ;;  %v1082_v50 = vsel %vm922_vm0, %v808_v37, -inf  ;;  %2133 = vadd.xlane.f32.xlu1 %v8258_v39  ;;  %v815_v5 = vld [vmem:[%s8127_s2 + $0x2a8] sm:$0xff]  ;;  %v793_v20 = vld [vmem:[%s8127_s2 + $0x1f8] sm:$0xff]  ;;  %v816_v7 = vld [vmem:[%s8127_s2 + $0x2b0] sm:$0xff] }
  0x7e   :  { %v1084_v61 = vsel %vm922_vm0, %v809_v38, -inf  ;;  %2034 = vadd.xlane.f32.xlu0 %v8259_v35  ;;  %v992_v41 = vmax.f32 %v988_v23, %v5652_v54  ;;  %v5852_v32 = vsel %vm922_vm0, %v787_v36, -inf  ;;  %v1079_v62 = vmax.f32 %v1075_v6, %v1078_v34  ;;  %v8262_v10 = vld [vmem:[#allocation19_spill] sm:$0xff]  ;;  %v8263_v38 = vld [vmem:[#allocation25_spill] sm:$0xff]  ;;  %v8264_v14 = vld [vmem:[#allocation36_spill] sm:$0xff] }
  0x7f   :  { %v1081_v22 = vmax.f32 %v1077_v30, %v1080_v25  ;;  %v994_v60 = vmax.f32 %v990_v26, %v5655_v58  ;;  %v5859_v42 = vsel %vm922_vm0, %v788_v17, -inf  ;;  %v1086_v59 = vsel %vm922_vm0, %v8260_v21, -inf  ;;  %v8265_v46 = vld [vmem:[#allocation40_spill] sm:$0xff]  ;;  %v818_v36 = vld [vmem:[%s8127_s2 + $0x2c0] sm:$0xff]  ;;  %v819_v23 = vld [vmem:[%s8127_s2 + $0x2c8] sm:$0xff] }
  0x80   :  { %v1088_v54 = vsel %vm922_vm0, %v8261_v19, -inf  ;;  %v996_v56 = vmax.f32 %v992_v41, %v5658_v45  ;;  %v5873_v58 = vsel %vm922_vm0, %v789_v15, -inf  ;;  %v1083_v57 = vmax.f32 %v1079_v62, %v1082_v50  ;;  %v8266_v15 = vld [vmem:[#allocation42_spill] sm:$0xff]  ;;  %v824_v19 = vld [vmem:[%s8127_s2 + $0x2f0] sm:$0xff] }
  0x81   :  { %v1085_v24 = vmax.f32 %v1081_v22, %v1084_v61  ;;  %v998_v13 = vmax.f32 %v994_v60, %v5670_v27  ;;  %v5880_v0 = vsel %vm922_vm0, %v790_v3, -inf  ;;  %v1090_v37 = vsel %vm922_vm0, %v8262_v10, -inf  ;;  %1896 = vadd.xlane.f32.xlu1 %v8264_v14  ;;  %v817_v27 = vld [vmem:[%s8127_s2 + $0x2b8] sm:$0xff]  ;;  %v823_v62 = vld [vmem:[%s8127_s2 + $0x2e8] sm:$0xff] }
  0x82   :  { %v1092_v45 = vsel %vm922_vm0, %v8263_v38, -inf  ;;  %2082 = vadd.xlane.f32.xlu0 %v8265_v46  ;;  %v1000_v28 = vmax.f32 %v996_v56, %v5673_v29  ;;  %v5899_v34 = vsel %vm922_vm0, %v791_v49, -inf  ;;  %v1087_v25 = vmax.f32 %v1083_v57, %v1086_v59  ;;  %v820_v29 = vld [vmem:[%s8127_s2 + $0x2d0] sm:$0xff]  ;;  %v821_v61 = vld [vmem:[%s8127_s2 + $0x2d8] sm:$0xff]  ;;  %v831_v14 = vld [vmem:[%s8127_s2 + $0x328] sm:$0xff] }
  0x83   :  { %v1089_v17 = vmax.f32 %v1085_v24, %v1088_v54  ;;  %v1002_v6 = vmax.f32 %v998_v13, %v5676_v18  ;;  %v5906_v30 = vsel %vm922_vm0, %v792_v52, -inf  ;;  %v1094_v26 = vsel %vm922_vm0, %v8266_v15, -inf  ;;  %v822_v18 = vld [vmem:[%s8127_s2 + $0x2e0] sm:$0xff]  ;;  %v8267_v59 = vld [vmem:[#allocation43_spill] sm:$0xff]  ;;  %v825_v54 = vld [vmem:[%s8127_s2 + $0x2f8] sm:$0xff] }
  0x84   :  { %v1096_v50 = vsel %vm922_vm0, %v815_v5, -inf  ;;  %v1004_v39 = vmax.f32 %v1000_v28, %v5679_v44  ;;  %v5922_v35 = vsel %vm922_vm0, %v793_v20, -inf  ;;  %v1091_v3 = vmax.f32 %v1087_v25, %v1090_v37  ;;  %v8268_v44 = vld [vmem:[#allocation44_spill] sm:$0xff]  ;;  %v8270_v25 = vld [vmem:[#allocation47_spill] sm:$0xff] }
  0x85   :  { %v1093_v41 = vmax.f32 %v1089_v17, %v1092_v45  ;;  %v1006_v22 = vmax.f32 %v1002_v6, %v5682_v1  ;;  %v1098_v49 = vsel %vm922_vm0, %v816_v7, -inf  ;;  %v1100_v60 = vsel %vm922_vm0, %v817_v27, -inf  ;;  %1983 = vadd.xlane.f32.xlu1 %v8267_v59  ;;  %v829_v10 = vld [vmem:[%s8127_s2 + $0x318] sm:$0xff]  ;;  %v832_v17 = vld [vmem:[%s8127_s2 + $0x330] sm:$0xff] }
  0x86   :  { %v1102_v21 = vsel %vm922_vm0, %v818_v36, -inf  ;;  %1845 = vadd.xlane.f32.xlu0 %v8268_v44  ;;  %v1008_v1 = vmax.f32 %v1004_v39, %v5685_v12  ;;  %v1095_v52 = vmax.f32 %v1091_v3, %v1094_v26  ;;  %v1104_v56 = vsel %vm922_vm0, %v819_v23, -inf  ;;  %v830_v12 = vld [vmem:[%s8127_s2 + $0x320] sm:$0xff]  ;;  %v833_v23 = vld [vmem:[%s8127_s2 + $0x338] sm:$0xff] }
  0x87   :  { %v1097_v5 = vmax.f32 %v1093_v41, %v1096_v50  ;;  %v1010_v57 = vmax.f32 %v1006_v22, %v5691_v16  ;;  %v1106_v24 = vsel %vm922_vm0, %v820_v29, -inf  ;;  %v1108_v20 = vsel %vm922_vm0, %v821_v61, -inf  ;;  %v8269_v36 = vld [vmem:[#allocation38_spill] sm:$0xff]  ;;  %v836_v41 = vld [vmem:[%s8127_s2 + $0x350] sm:$0xff] }
  0x88   :  { %v1110_v13 = vsel %vm922_vm0, %v822_v18, -inf  ;;  %v1012_v37 = vmax.f32 %v1008_v1, %v5694_v47  ;;  %v1099_v38 = vmax.f32 %v1095_v52, %v1098_v49  ;;  %v1112_v16 = vsel %vm922_vm0, %v823_v62, -inf  ;;  %v8271_v47 = vld [vmem:[#allocation49_spill] sm:$0xff]  ;;  %v8272_v50 = vld [vmem:[#allocation46_spill] sm:$0xff]  ;;  %v8274_v1 = vld [vmem:[#allocation52_spill] sm:$0xff] }
  0x89   :  { %v1101_v45 = vmax.f32 %v1097_v5, %v1100_v60  ;;  %v1014_v46 = vmax.f32 %v1010_v57, %v5697_v53  ;;  %v1114_v7 = vsel %vm922_vm0, %v824_v19, -inf  ;;  %v1116_v27 = vsel %vm922_vm0, %v825_v54, -inf  ;;  %2037 = vadd.xlane.f32.xlu1 %v8270_v25  ;;  %v834_v53 = vld [vmem:[%s8127_s2 + $0x340] sm:$0xff]  ;;  %v835_v61 = vld [vmem:[%s8127_s2 + $0x348] sm:$0xff]  ;;  %v837_v62 = vld [vmem:[%s8127_s2 + $0x358] sm:$0xff] }
  0x8a   :  { %v1118_v28 = vsel %vm922_vm0, %v8269_v36, -inf  ;;  %1947 = vadd.xlane.f32.xlu0 %v8271_v47  ;;  %v1016_v6 = vmax.f32 %v1012_v37, %v5716_v55  ;;  %v1103_v15 = vmax.f32 %v1099_v38, %v1102_v21  ;;  %v1120_v29 = vsel %vm922_vm0, %v8272_v50, -inf  ;;  %v839_v21 = vld [vmem:[%s8127_s2 + $0x368] sm:$0xff]  ;;  %v840_v52 = vld [vmem:[%s8127_s2 + $0x370] sm:$0xff]  ;;  %v8276_v47 = vld [vmem:[#allocation53_spill] sm:$0xff] }
  0x8b   :  { %v1105_v26 = vmax.f32 %v1101_v45, %v1104_v56  ;;  %v1018_v18 = vmax.f32 %v1014_v46, %v5720_v48  ;;  %v5981_v39 = vsel %vm922_vm0, %v5454_v4, -inf  ;;  %v5984_v3 = vsel %vm922_vm0, %v829_v10, -inf  ;;  %v838_v48 = vld [vmem:[%s8127_s2 + $0x360] sm:$0xff] }
  0x8c   :  { %v5987_v55 = vsel %vm922_vm0, %v830_v12, -inf  ;;  %v1020_v4 = vmax.f32 %v1016_v6, %v5765_v9  ;;  %v1107_v22 = vmax.f32 %v1103_v15, %v1106_v24  ;;  %v1128_v60 = vsel %vm922_vm0, %v831_v14, -inf  ;;  %v8273_v9 = vld [vmem:[#allocation50_spill] sm:$0xff] }
  0x8d   :  { %v1109_v49 = vmax.f32 %v1105_v26, %v1108_v20  ;;  %v1022_v59 = vmax.f32 %v1018_v18, %v5777_v40  ;;  %v6005_v44 = vsel %vm922_vm0, %v832_v17, -inf  ;;  %v6008_v19 = vsel %vm922_vm0, %v833_v23, -inf  ;;  %2136 = vadd.xlane.f32.xlu1 %v8273_v9  ;;  %v841_v40 = vld [vmem:[%s8127_s2 + $0x378] sm:$0xff]  ;;  %v8275_v36 = vld [vmem:[#allocation22_spill] sm:$0xff] }
  0x8e   :  { %v6011_v54 = vsel %vm922_vm0, %v834_v53, -inf  ;;  %1986 = vadd.xlane.f32.xlu0 %v8274_v1  ;;  %v1024_v5 = vmax.f32 %v1020_v4, %v5793_v51  ;;  %v1111_v56 = vmax.f32 %v1107_v22, %v1110_v13  ;;  %v6023_v24 = vsel %vm922_vm0, %v835_v61, -inf  ;;  %v6038_v51 = vld [vmem:[%s8127_s2 + $0x418] sm:$0xff] }
  0x8f   :  { %v1113_v57 = vmax.f32 %v1109_v49, %v1112_v16  ;;  %v1026_v20 = vmax.f32 %v1022_v59, %v5801_v43  ;;  %v6027_v10 = vsel %vm922_vm0, %v836_v41, -inf  ;;  %v6030_v12 = vsel %vm922_vm0, %v837_v62, -inf  ;;  %v8278_v53 = vld [vmem:[#allocation24_spill] sm:$0xff] }
  0x90   :  { %v6033_v37 = vsel %vm922_vm0, %v838_v48, -inf  ;;  %v1028_v13 = vmax.f32 %v1024_v5, %v5818_v11  ;;  %v1115_v38 = vmax.f32 %v1111_v56, %v1114_v7  ;;  %v6042_v43 = vsel %vm922_vm0, %v839_v21, -inf  ;;  %v8277_v11 = vld [vmem:[#allocation54_spill] sm:$0xff] }
  0x91   :  { %v1117_v45 = vmax.f32 %v1113_v57, %v1116_v27  ;;  %v1030_v16 = vmax.f32 %v1026_v20, %v5825_v2  ;;  %v6046_v14 = vsel %vm922_vm0, %v840_v52, -inf  ;;  %v6049_v46 = vsel %vm922_vm0, %v841_v40, -inf  ;;  %2226 = vadd.xlane.f32.xlu1 %v8276_v47  ;;  %v862_v7 = vld [vmem:[%s8127_s2 + $0x420] sm:$0xff]  ;;  %v863_v2 = vld [vmem:[%s8127_s2 + $0x428] sm:$0xff] }
  0x92   :  { %v6053_v25 = vsel %vm922_vm0, %v8275_v36, -inf  ;;  %2085 = vadd.xlane.f32.xlu0 %v8277_v11  ;;  %v1032_v27 = vmax.f32 %v1028_v13, %v5834_v8  ;;  %v1119_v17 = vmax.f32 %v1115_v38, %v1118_v28  ;;  %v1189_v6 = vsel %vm922_vm0, %v8278_v53, -inf }
  0x93   :  { %v1121_v23 = vmax.f32 %v1117_v45, %v1120_v29 }
  0x94   :  { %15 = vsyncpa [#allocation5], 0  ;;  %v864_v15 = vld [vmem:[%s8127_s2 + $0x430] sm:$0xff]  ;;  %v1034_v26 = vmax.f32 %v1030_v16, %v5841_v31  ;;  %v8279_v50 = vld [vmem:[#allocation37_spill] sm:$0xff]  ;;  %v1193_v8 = vsel %vm922_vm0, %v6038_v51, -inf  ;;  %v6076_v28 = vpop.xlane.xlu1 %1698  ;;  %v6078_v29 = vpop.xlane.xlu0 %1695  ;;  %v1036_v48 = vmax.f32 %v1032_v27, %v5852_v32  ;;  %v1123_v31 = vmax.f32 %v1119_v17, %v5981_v39  ;;  %s4193_s0 = smov 12  }
  0x95   :  { %v1190_v61 = vsel %vm922_vm0, %v8279_v50, -inf  ;;  %v8280_v18 = vld [vmem:[#allocation48_spill] sm:$0xff]  ;;  %8281 = vst [vmem:[#allocation28_spill] sm:$0xff] %v6076_v28  ;;  %8282 = vst [vmem:[#allocation10_spill] sm:$0xff] %v6078_v29  ;;  %v1125_v4 = vmax.f32 %v1121_v23, %v5984_v3  ;;  %v866_v49 = vld [vmem:[%s8127_s2 + $0x440] sm:$0xff]  ;;  %v1195_v9 = vsel %vm922_vm0, %v862_v7, -inf }
  0x96   :  { %v1191_v41 = vsel %vm922_vm0, %v8280_v18, -inf  ;;  %v865_v62 = vld [vmem:[%s8127_s2 + $0x438] sm:$0xff]  ;;  %v1038_v21 = vmax.f32 %v1034_v26, %v5859_v42  ;;  %v1194_v59 = vmax.f32 %v1190_v61, %v1193_v8  ;;  %v1197_v1 = vsel %vm922_vm0, %v863_v2, -inf  ;;  %v867_v32 = vld [vmem:[%s8127_s2 + $0x448] sm:$0xff]  ;;  %v868_v56 = vld [vmem:[%s8127_s2 + $0x450] sm:$0xff]  ;;  %s4194_s24 = smov 56  }
  0x97   :  { %v1192_v22 = vmax.f32 %v1189_v6, %v1191_v41  ;;  %v8283_v52 = vld [vmem:[#allocation56_spill] sm:$0xff]  ;;  %v8284_v40 = vld [vmem:[#allocation57_spill] sm:$0xff]  ;;  %v1040_v39 = vmax.f32 %v1036_v48, %v5873_v58  ;;  %v1127_v3 = vmax.f32 %v1123_v31, %v5987_v55  ;;  %v1129_v5 = vmax.f32 %v1125_v4, %v1128_v60  ;;  %v871_v11 = vld [vmem:[%s8127_s2 + $0x468] sm:$0xff]  ;;  %s4196_s9 = smov [#allocation2]  }
  0x98   :  { %1899 = vadd.xlane.f32.xlu1 %v8283_v52  ;;  %2223 = vadd.xlane.f32.xlu0 %v8284_v40  ;;  %v1199_v42 = vsel %vm922_vm0, %v864_v15, -inf  ;;  %v1042_v57 = vmax.f32 %v1038_v21, %v5880_v0  ;;  %v1198_v13 = vmax.f32 %v1194_v59, %v1197_v1  ;;  %v1201_v38 = vsel %vm922_vm0, %v865_v62, -inf  ;;  %v6105_v45 = vpop.xlane.xlu1 %1707  ;;  %v6107_v16 = vpop.xlane.xlu0 %1701  ;;  %v869_v58 = vld [vmem:[%s8127_s2 + $0x458] sm:$0xff]  ;;  %v870_v55 = vld [vmem:[%s8127_s2 + $0x460] sm:$0xff]  ;;  %v8289_v8 = vld [vmem:[#allocation27_spill] sm:$0xff]  ;;  %s3866_s10 = sshll.u32 %s4196_s9, 4  ;;  %s3867_s10 = int_to_ptr.vmem [resolvable:$true] %s3866_s10 }
  0x99   :  { %v1196_v20 = vmax.f32 %v1192_v22, %v1195_v9  ;;  %8285 = vst [vmem:[#allocation9_spill] sm:$0xff] %v6105_v45  ;;  %8286 = vst [vmem:[#allocation12_spill] sm:$0xff] %v6107_v16  ;;  %v1044_v60 = vmax.f32 %v1040_v39, %v5899_v34  ;;  %v1131_v0 = vmax.f32 %v1127_v3, %v6005_v44  ;;  %v1203_v47 = vsel %vm922_vm0, %v866_v49, -inf  ;;  %v873_v53 = vld [vmem:[%s8127_s2 + $0x478] sm:$0xff]  ;;  %v846_v26 = vld [vmem:[%s8127_s2 + $0x3a0] sm:$0xff] }
  0x9a   :  { %v1133_v36 = vmax.f32 %v1129_v5, %v6008_v19  ;;  %v1046_v7 = vmax.f32 %v1042_v57, %v5906_v30  ;;  %v1202_v27 = vmax.f32 %v1198_v13, %v1201_v38  ;;  %v1205_v17 = vsel %vm922_vm0, %v867_v32, -inf  ;;  %v872_v30 = vld [vmem:[%s8127_s2 + $0x470] sm:$0xff]  ;;  %v8290_v48 = vld [vmem:[#allocation41_spill] sm:$0xff]  ;;  %v847_v49 = vld [vmem:[%s8127_s2 + $0x3a8] sm:$0xff] }
  0x9b   :  { %v1200_v2 = vmax.f32 %v1196_v20, %v1199_v42  ;;  %v1048_v34 = vmax.f32 %v1044_v60, %v5922_v35  ;;  %v1135_v44 = vmax.f32 %v1131_v0, %v6011_v54  ;;  %v1207_v23 = vsel %vm922_vm0, %v868_v56, -inf  ;;  %v849_v39 = vld [vmem:[%s8127_s2 + $0x3b8] sm:$0xff]  ;;  %v6191_v38 = vld [vmem:[%s8127_s2 + $0x4a0] sm:$0xff]  ;;  %v851_v0 = vld [vmem:[%s8127_s2 + $0x3c8] sm:$0xff] }
  0x9c   :  { %1989 = vadd.xlane.f32.xlu1 %v5509_v63  ;;  %1848 = vadd.xlane.f32.xlu0 %v5529_v33  ;;  %v1137_v19 = vmax.f32 %v1133_v36, %v6023_v24  ;;  %v1206_v63 = vmax.f32 %v1202_v27, %v1205_v17  ;;  %v1209_v33 = vsel %vm922_vm0, %v869_v58, -inf  ;;  %v1211_v35 = vsel %vm922_vm0, %v870_v55, -inf  ;;  %v6138_v15 = vpop.xlane.xlu1 %1713  ;;  %v6140_v54 = vpop.xlane.xlu0 %1704  ;;  %v6145_v24 = vld [vmem:[%s8127_s2 + $0x398] sm:$0xff]  ;;  %v880_v17 = vld [vmem:[%s8127_s2 + $0x4b0] sm:$0xff] }
  0x9d   :  { %v1204_v6 = vmax.f32 %v1200_v2, %v1203_v47  ;;  %8287 = vst [vmem:[#allocation11_spill] sm:$0xff] %v6138_v15  ;;  %8288 = vst [vmem:[#allocation18_spill] sm:$0xff] %v6140_v54  ;;  %v6150_v50 = vmax.f32 %v1046_v7, %v1048_v34  ;;  %v1139_v61 = vmax.f32 %v1135_v44, %v6027_v10  ;;  %v1213_v41 = vsel %vm922_vm0, %v871_v11, -inf  ;;  %v848_v10 = vld [vmem:[%s8127_s2 + $0x3b0] sm:$0xff]  ;;  %v8292_v56 = vld [vmem:[#allocation21_spill] sm:$0xff] }
  0x9e   :  { %v1141_v18 = vmax.f32 %v1137_v19, %v6030_v12  ;;  %v1152_v62 = vsel %vm922_vm0, %v8289_v8, -inf  ;;  %v1154_v31 = vsel %vm922_vm0, %v8290_v48, -inf  ;;  %v1210_v22 = vmax.f32 %v1206_v63, %v1209_v33  ;;  %v8291_v5 = vld [vmem:[#allocation16_spill] sm:$0xff]  ;;  %v8295_v11 = vld [vmem:[#allocation26_spill] sm:$0xff]  ;;  %v8296_v2 = vld [vmem:[#allocation45_spill] sm:$0xff] }
  0x9f   :  { %v1208_v4 = vmax.f32 %v1204_v6, %v1207_v23  ;;  %v1143_v12 = vmax.f32 %v1139_v61, %v6033_v37  ;;  %v1215_v59 = vsel %vm922_vm0, %v872_v30, -inf  ;;  %v1217_v9 = vsel %vm922_vm0, %v873_v53, -inf  ;;  %v850_v37 = vld [vmem:[%s8127_s2 + $0x3c0] sm:$0xff]  ;;  %v881_v34 = vld [vmem:[%s8127_s2 + $0x4b8] sm:$0xff]  ;;  %v852_v30 = vld [vmem:[%s8127_s2 + $0x3d0] sm:$0xff] }
  0xa0   :  { %v1145_v21 = vmax.f32 %v1141_v18, %v6042_v43  ;;  %v1156_v1 = vsel %vm922_vm0, %v6145_v24, -inf  ;;  %v1158_v52 = vsel %vm922_vm0, %v846_v26, -inf  ;;  %v1214_v32 = vmax.f32 %v1210_v22, %v1213_v41  ;;  %v6184_v20 = vpop.xlane.xlu1 %1719  ;;  %v6186_v13 = vpop.xlane.xlu0 %1710  ;;  %v853_v53 = vld [vmem:[%s8127_s2 + $0x3d8] sm:$0xff]  ;;  %v882_v26 = vld [vmem:[%s8127_s2 + $0x4c0] sm:$0xff]  ;;  %v883_v61 = vld [vmem:[%s8127_s2 + $0x4c8] sm:$0xff] }
  0xa1   :  { %v1212_v40 = vmax.f32 %v1208_v4, %v1211_v35  ;;  %v1147_v43 = vmax.f32 %v1143_v12, %v6046_v14  ;;  %v1219_v42 = vsel %vm922_vm0, %v8291_v5, -inf  ;;  %v1221_v57 = vsel %vm922_vm0, %v8292_v56, -inf  ;;  %8293 = vst [vmem:[#allocation17_spill] sm:$0xff] %v6184_v20  ;;  %8294 = vst [vmem:[#allocation14_spill] sm:$0xff] %v6186_v13  ;;  %v879_v14 = vld [vmem:[%s8127_s2 + $0x4a8] sm:$0xff]  ;;  %v854_v48 = vld [vmem:[%s8127_s2 + $0x3e0] sm:$0xff] }
  0xa2   :  { %v1149_v3 = vmax.f32 %v1145_v21, %v6049_v46  ;;  %v1160_v46 = vsel %vm922_vm0, %v847_v49, -inf  ;;  %v1162_v58 = vsel %vm922_vm0, %v848_v10, -inf  ;;  %v1218_v60 = vmax.f32 %v1214_v32, %v1217_v9  ;;  %v884_v21 = vld [vmem:[%s8127_s2 + $0x4d0] sm:$0xff]  ;;  %v855_v32 = vld [vmem:[%s8127_s2 + $0x3e8] sm:$0xff] }
  0xa3   :  { %v1216_v55 = vmax.f32 %v1212_v40, %v1215_v59  ;;  %v1151_v36 = vmax.f32 %v1147_v43, %v6053_v25  ;;  %v1223_v7 = vsel %vm922_vm0, %v8295_v11, -inf  ;;  %v1225_v27 = vsel %vm922_vm0, %v8296_v2, -inf  ;;  %v885_v59 = vld [vmem:[%s8127_s2 + $0x4d8] sm:$0xff]  ;;  %v887_v56 = vld [vmem:[%s8127_s2 + $0x4e8] sm:$0xff]  ;;  %v888_v11 = vld [vmem:[%s8127_s2 + $0x4f0] sm:$0xff] }
  0xa4   :  { %v1153_v47 = vmax.f32 %v1149_v3, %v1152_v62  ;;  %v1164_v44 = vsel %vm922_vm0, %v849_v39, -inf  ;;  %v1166_v19 = vsel %vm922_vm0, %v850_v37, -inf  ;;  %v1222_v23 = vmax.f32 %v1218_v60, %v1221_v57  ;;  %v6236_v10 = vpop.xlane.xlu1 %1725  ;;  %v6238_v12 = vpop.xlane.xlu0 %1716  ;;  %v856_v39 = vld [vmem:[%s8127_s2 + $0x3f0] sm:$0xff] }
  0xa5   :  { %v1220_v25 = vmax.f32 %v1216_v55, %v1219_v42  ;;  %v1155_v6 = vmax.f32 %v1151_v36, %v1154_v31  ;;  %v1227_v33 = vsel %vm922_vm0, %v6191_v38, -inf  ;;  %v1229_v35 = vsel %vm922_vm0, %v879_v14, -inf  ;;  %8297 = vst [vmem:[#allocation20_spill] sm:$0xff] %v6236_v10  ;;  %8298 = vst [vmem:[#allocation35_spill] sm:$0xff] %v6238_v12  ;;  %v886_v42 = vld [vmem:[%s8127_s2 + $0x4e0] sm:$0xff] }
  0xa6   :  { %v1157_v63 = vmax.f32 %v1153_v47, %v1156_v1  ;;  %v1050_v18 = vrot.slane %v6150_v50, 4  ;;  %v1168_v41 = vsel %vm922_vm0, %v851_v0, -inf  ;;  %v1226_v62 = vmax.f32 %v1222_v23, %v1225_v27 }
  0xa7   :  { %v1224_v8 = vmax.f32 %v1220_v25, %v1223_v7  ;;  %v1159_v31 = vmax.f32 %v1155_v6, %v1158_v52  ;;  %v1231_v22 = vsel %vm922_vm0, %v880_v17, -inf  ;;  %v1233_v49 = vsel %vm922_vm0, %v881_v34, -inf  ;;  %v6291_v6 = vld [vmem:[%s8127_s2 + $0x508] sm:$0xff] }
  0xa8   :  { %v1161_v4 = vmax.f32 %v1157_v63, %v1160_v46  ;;  %v1170_v9 = vsel %vm922_vm0, %v852_v30, -inf  ;;  %v1172_v1 = vsel %vm922_vm0, %v853_v53, -inf  ;;  %v1230_v40 = vmax.f32 %v1226_v62, %v1229_v35  ;;  %v6279_v23 = vpop.xlane.xlu1 %1731  ;;  %v6281_v30 = vpop.xlane.xlu0 %1722  ;;  %v6286_v53 = vld [vmem:[%s8127_s2 + $0x500] sm:$0xff]  ;;  %v892_v62 = vld [vmem:[%s8127_s2 + $0x510] sm:$0xff] }
  0xa9   :  { %v1228_v52 = vmax.f32 %v1224_v8, %v1227_v33  ;;  %v1163_v37 = vmax.f32 %v1159_v31, %v1162_v58  ;;  %v1235_v3 = vsel %vm922_vm0, %v882_v26, -inf  ;;  %v1237_v5 = vsel %vm922_vm0, %v883_v61, -inf  ;;  %v857_v58 = vld [vmem:[%s8127_s2 + $0x3f8] sm:$0xff]  ;;  %8299 = vst [vmem:[#allocation51_spill] sm:$0xff] %v6279_v23  ;;  %8300 = vst [vmem:[#allocation55_spill] sm:$0xff] %v6281_v30 }
  0xaa   :  { %v1165_v43 = vmax.f32 %v1161_v4, %v1164_v44  ;;  %v1051_v57 = vmax.f32 %v6150_v50, %v1050_v18  ;;  %v1174_v14 = vsel %vm922_vm0, %v854_v48, -inf  ;;  %v1234_v55 = vmax.f32 %v1230_v40, %v1233_v49  ;;  %v889_v50 = vld [vmem:[%s8127_s2 + $0x4f8] sm:$0xff] }
  0xab   :  { %v1232_v46 = vmax.f32 %v1228_v52, %v1231_v22  ;;  %v1167_v60 = vmax.f32 %v1163_v37, %v1166_v19  ;;  %v1239_v36 = vsel %vm922_vm0, %v884_v21, -inf  ;;  %v1241_v47 = vsel %vm922_vm0, %v885_v59, -inf  ;;  %v893_v48 = vld [vmem:[%s8127_s2 + $0x518] sm:$0xff] }
  0xac   :  { %v1169_v0 = vmax.f32 %v1165_v43, %v1168_v41  ;;  %v1176_v7 = vsel %vm922_vm0, %v855_v32, -inf  ;;  %v1178_v2 = vsel %vm922_vm0, %v856_v39, -inf  ;;  %v1238_v17 = vmax.f32 %v1234_v55, %v1237_v5  ;;  %v6316_v5 = vpop.xlane.xlu0 %1728  ;;  %v899_v55 = vld [vmem:[%s8127_s2 + $0x548] sm:$0xff] }
  0xad   :  { %v1236_v27 = vmax.f32 %v1232_v46, %v1235_v3  ;;  %v1171_v34 = vmax.f32 %v1167_v60, %v1170_v9  ;;  %v1243_v19 = vsel %vm922_vm0, %v886_v42, -inf  ;;  %v1245_v25 = vsel %vm922_vm0, %v887_v56, -inf  ;;  %v894_v9 = vld [vmem:[%s8127_s2 + $0x520] sm:$0xff]  ;;  %v6314_v3 = vpop.xlane.xlu1 %1737  ;;  %8302 = vst [vmem:[#allocation30_spill] sm:$0xff] %v6316_v5  ;;  %v896_v42 = vld [vmem:[%s8127_s2 + $0x530] sm:$0xff]  ;;  %v897_v56 = vld [vmem:[%s8127_s2 + $0x538] sm:$0xff] }
  0xae   :  { %v1173_v44 = vmax.f32 %v1169_v0, %v1172_v1  ;;  %v1052_v63 = vrot.slane %v1051_v57, 2  ;;  %v1180_v33 = vsel %vm922_vm0, %v857_v58, -inf  ;;  %v1242_v26 = vmax.f32 %v1238_v17, %v1241_v47  ;;  %v895_v1 = vld [vmem:[%s8127_s2 + $0x528] sm:$0xff]  ;;  %8301 = vst [vmem:[#allocation29_spill] sm:$0xff] %v6314_v3  ;;  %v1329_v47 = vld [vmem:[%s8128_s3 + $0x38] sm:$0xff] }
  0xaf   :  { %v1240_v35 = vmax.f32 %v1236_v27, %v1239_v36  ;;  %v1175_v61 = vmax.f32 %v1171_v34, %v1174_v14  ;;  %v1247_v41 = vsel %vm922_vm0, %v888_v11, -inf  ;;  %v1249_v8 = vsel %vm922_vm0, %v889_v50, -inf  ;;  %v1325_v36 = vld [vmem:[%s8128_s3 + $0x18] sm:$0xff]  ;;  %v1328_v27 = vld [vmem:[%s8128_s3 + $0x30] sm:$0xff]  ;;  %v1587_v17 = vld [vmem:[%s8127_s2 + $0x2a8] sm:$0xff] }
  0xb0   :  { %v1177_v18 = vmax.f32 %v1173_v44, %v1176_v7  ;;  %v1246_v4 = vmax.f32 %v1242_v26, %v1245_v25  ;;  %v1251_v21 = vsel %vm922_vm0, %v6286_v53, -inf  ;;  %v1253_v59 = vsel %vm922_vm0, %v6291_v6, -inf }
  0xb1   :  { %v1244_v31 = vmax.f32 %v1240_v35, %v1243_v19  ;;  %v1179_v22 = vmax.f32 %v1175_v61, %v1178_v2  ;;  %v1053_v52 = vmax.f32 %v1051_v57, %v1052_v63  ;;  %v1255_v37 = vsel %vm922_vm0, %v892_v62, -inf  ;;  %v898_v57 = vld [vmem:[%s8127_s2 + $0x540] sm:$0xff]  ;;  %v1324_v2 = vld [vmem:[%s8128_s3 + $0x10] sm:$0xff] }
  0xb2   :  { %v1181_v49 = vmax.f32 %v1177_v18, %v1180_v33  ;;  %v1250_v32 = vmax.f32 %v1246_v4, %v1249_v8  ;;  %v1257_v43 = vsel %vm922_vm0, %v893_v48, -inf  ;;  %v1259_v60 = vsel %vm922_vm0, %v894_v9, -inf  ;;  %v900_v63 = vld [vmem:[%s8127_s2 + $0x550] sm:$0xff]  ;;  %v901_v33 = vld [vmem:[%s8127_s2 + $0x558] sm:$0xff]  ;;  %v6362_v4 = vpop.xlane.xlu0 %1734 }
  0xb3   :  { %v1248_v40 = vmax.f32 %v1244_v31, %v1247_v41  ;;  %v1261_v0 = vsel %vm922_vm0, %v895_v1, -inf  ;;  %v1054_v11 = vrot.slane %v1053_v52, 1  ;;  %v1263_v44 = vsel %vm922_vm0, %v896_v42, -inf  ;;  %v6360_v31 = vpop.xlane.xlu1 %1743  ;;  %8304 = vst [vmem:[#allocation39_spill] sm:$0xff] %v6362_v4 }
  0xb4   :  { %v1182_v39 = vmax.f32 %v1179_v22, %v1181_v49  ;;  %v1254_v46 = vmax.f32 %v1250_v32, %v1253_v59  ;;  %v1265_v19 = vsel %vm922_vm0, %v897_v56, -inf  ;;  %v1267_v25 = vsel %vm922_vm0, %v898_v57, -inf  ;;  %8303 = vst [vmem:[#allocation23_spill] sm:$0xff] %v6360_v31  ;;  %v902_v22 = vld [vmem:[%s8127_s2 + $0x560] sm:$0xff]  ;;  %v903_v49 = vld [vmem:[%s8127_s2 + $0x568] sm:$0xff]  ;;  %v904_v32 = vld [vmem:[%s8127_s2 + $0x570] sm:$0xff] }
  0xb5   :  { %v1252_v14 = vmax.f32 %v1248_v40, %v1251_v21  ;;  %v1269_v61 = vsel %vm922_vm0, %v899_v55, -inf  ;;  %v4046_v18 = vpack.c.bf16 %v1329_v47, %v1325_v36  ;;  %v4048_v8 = vpack.c.bf16 %v1328_v27, %v1324_v2  ;;  %v1554_v27 = vld [vmem:[%s8127_s2 + $0x1a0] sm:$0xff] }
  0xb6   :  { %v1183_v58 = vrot.slane %v1182_v39, 4  ;;  %v1258_v7 = vmax.f32 %v1254_v46, %v1257_v43  ;;  %v2087_v62 = vsel %vm922_vm0, %v6038_v51, 0.0  ;;  %v1949_v48 = vsel %vm922_vm0, %v1587_v17, 0.0  ;;  %v6392_v47 = vpop.xlane.xlu0 %1740  ;;  %v4120_v17 = vld [vmem:[%s8127_s2 + $0x580] sm:$0xff] }
  0xb7   :  { %v1256_v50 = vmax.f32 %v1252_v14, %v1255_v37  ;;  %4047 = vmatprep.subr.bf16.mxu1 %v4046_v18  ;;  %2088 = vadd.xlane.f32.xlu1 %v2087_v62  ;;  %v1271_v51 = vsel %vm922_vm0, %v900_v63, -inf  ;;  %v1273_v1 = vsel %vm922_vm0, %v901_v33, -inf  ;;  %v2174_v40 = vsel %vm922_vm0, %v6286_v53, 0.0  ;;  %v908_v53 = vld [vmem:[%s8127_s2 + $0x590] sm:$0xff]  ;;  %8306 = vst [vmem:[#allocation32_spill] sm:$0xff] %v6392_v47  ;;  %v911_v63 = vld [vmem:[%s8127_s2 + $0x5a8] sm:$0xff] }
  0xb8   :  { %v1184_v34 = vmax.f32 %v1182_v39, %v1183_v58  ;;  %v1262_v26 = vmax.f32 %v1258_v7, %v1261_v0  ;;  %4049 = vmatpush1.bf16.msra.mxu1 %v4048_v8  ;;  %1950 = vadd.xlane.f32.xlu0 %v1949_v48  ;;  %v905_v39 = vld [vmem:[%s8127_s2 + $0x578] sm:$0xff]  ;;  %v2039_v42 = vsel %vm922_vm0, %v6145_v24, 0.0  ;;  %v1055_v56 = vmax.f32 %v1053_v52, %v1054_v11  ;;  %v6390_v52 = vpop.xlane.xlu1 %1749 }
  0xb9   :  { %v1260_v35 = vmax.f32 %v1256_v50, %v1259_v60  ;;  %v1275_v14 = vsel %vm922_vm0, %v902_v22, -inf  ;;  %v1277_v46 = vsel %vm922_vm0, %v903_v49, -inf  ;;  %v1279_v0 = vsel %vm922_vm0, %v904_v32, -inf  ;;  %8305 = vst [vmem:[#allocation31_spill] sm:$0xff] %v6390_v52  ;;  %v909_v11 = vld [vmem:[%s8127_s2 + $0x598] sm:$0xff]  ;;  %v1588_v49 = vld [vmem:[%s8127_s2 + $0x2b0] sm:$0xff] }
  0xba   :  { %v1185_v41 = vrot.slane %v1184_v34, 2  ;;  %v1266_v59 = vmax.f32 %v1262_v26, %v1265_v19  ;;  %v1281_v36 = vsel %vm922_vm0, %v905_v39, -inf  ;;  %v2228_v24 = vsel %vm922_vm0, %v908_v53, 0.0  ;;  %v913_v8 = vld [vmem:[%s8127_s2 + $0x5b8] sm:$0xff]  ;;  %v1559_v52 = vld [vmem:[%s8127_s2 + $0x1c8] sm:$0xff] }
  0xbb   :  { %v1264_v21 = vmax.f32 %v1260_v35, %v1263_v44  ;;  %2175 = vadd.xlane.f32.xlu1 %v2174_v40  ;;  %v2138_v2 = vsel %vm922_vm0, %v6191_v38, 0.0  ;;  %v4121_v44 = vld [vmem:[%s8127_s2 + $0x588] sm:$0xff]  ;;  %v910_v38 = vld [vmem:[%s8127_s2 + $0x5a0] sm:$0xff]  ;;  %v1287_v26 = vsel %vm922_vm0, %v908_v53, -inf  ;;  %v1850_v18 = vsel %vm922_vm0, %v1554_v27, 0.0 }
  0xbc   :  { %v1186_v9 = vmax.f32 %v1184_v34, %v1185_v41  ;;  %v1270_v43 = vmax.f32 %v1266_v59, %v1269_v61  ;;  %2040 = vadd.xlane.f32.xlu0 %v2039_v42  ;;  %v1283_v34 = vsel %vm922_vm0, %v4120_v17, -inf  ;;  %v1285_v19 = vsel %vm922_vm0, %v4121_v44, -inf  ;;  %v912_v41 = vld [vmem:[%s8127_s2 + $0x5b0] sm:$0xff]  ;;  %v915_v40 = vld [vmem:[%s8127_s2 + $0x5c8] sm:$0xff] }
  0xbd   :  { %v1268_v37 = vmax.f32 %v1264_v21, %v1267_v25  ;;  %v1289_v61 = vsel %vm922_vm0, %v909_v11, -inf  ;;  %v2177_v22 = vsel %vm922_vm0, %v6291_v6, 0.0  ;;  %v1291_v21 = vsel %vm922_vm0, %v910_v38, -inf  ;;  %v914_v6 = vld [vmem:[%s8127_s2 + $0x5c0] sm:$0xff]  ;;  %v920_v44 = vld [vmem:[%s8127_s2 + $0x5f0] sm:$0xff] }
  0xbe   :  { %v1187_v57 = vrot.slane %v1186_v9, 1  ;;  %v1274_v58 = vmax.f32 %v1270_v43, %v1273_v1  ;;  %v1293_v59 = vsel %vm922_vm0, %v911_v63, -inf  ;;  %v6440_v1 = vpop.xlane.xlu0 %1746  ;;  %v1297_v43 = vsel %vm922_vm0, %v913_v8, -inf }
  0xbf   :  { %v1272_v55 = vmax.f32 %v1268_v37, %v1271_v51  ;;  %2229 = vadd.xlane.f32.xlu1 %v2228_v24  ;;  %v6438_v51 = vpop.xlane.xlu1 %1755  ;;  %8308 = vst [vmem:[#allocation34_spill] sm:$0xff] %v6440_v1  ;;  %v1295_v37 = vsel %vm922_vm0, %v912_v41, -inf  ;;  %v1952_v42 = vsel %vm922_vm0, %v1588_v49, 0.0  ;;  %v919_v24 = vld [vmem:[%s8127_s2 + $0x5e8] sm:$0xff]  ;;  %vm2737_vm4 = vcmask 130112  }
  0xc0   :  { %v1188_v60 = vmax.f32 %v1186_v9, %v1187_v57  ;;  %v1278_v7 = vmax.f32 %v1274_v58, %v1277_v46  ;;  %2139 = vadd.xlane.f32.xlu0 %v2138_v2  ;;  %v1537_v9 = vld [vmem:[%s8127_s2 + $0x118] sm:$0xff]  ;;  %8307 = vst [vmem:[#allocation33_spill] sm:$0xff] %v6438_v51  ;;  %v1299_v58 = vsel %vm922_vm0, %v914_v6, -inf  ;;  %v1634_v6 = vld [vmem:[%s8127_s2 + $0x420] sm:$0xff]  ;;  %vm2744_vm5 = vcmask 195712  }
  0xc1   :  { %v1276_v50 = vmax.f32 %v1272_v55, %v1275_v14  ;;  %v917_v57 = vld [vmem:[%s8127_s2 + $0x5d8] sm:$0xff]  ;;  %v1799_v53 = vsel %vm922_vm0, %v1537_v9, 0.0  ;;  %v1618_v55 = vld [vmem:[%s8127_s2 + $0x3a0] sm:$0xff]  ;;  %vm2751_vm6 = vcmask 261312   ;;  %vm2758_vm7 = vcmask 326912  }
  0xc2   :  { %v6411_v25 = vsel %vm8173_vm2, %v1188_v60, %v1055_v56  ;;  %v1282_v35 = vmax.f32 %v1278_v7, %v1281_v36  ;;  %v916_v56 = vld [vmem:[%s8127_s2 + $0x5d0] sm:$0xff]  ;;  %v1301_v60 = vsel %vm922_vm0, %v915_v40, -inf  ;;  %v918_v36 = vld [vmem:[%s8127_s2 + $0x5e0] sm:$0xff]  ;;  %v1305_v2 = vsel %vm922_vm0, %v917_v57, -inf  ;;  %v1681_v9 = vld [vmem:[%s8127_s2 + $0x598] sm:$0xff] }
  0xc3   :  { %v1280_v33 = vmax.f32 %v1276_v50, %v1279_v0  ;;  %1851 = vadd.xlane.f32.xlu1 %v1850_v18  ;;  %v1571_v0 = vld [vmem:[%s8127_s2 + $0x228] sm:$0xff]  ;;  %v1303_v7 = vsel %vm922_vm0, %v916_v56, -inf  ;;  %v2042_v27 = vsel %vm922_vm0, %v1618_v55, 0.0  ;;  %v6475_v17 = vpop.xlane.xlu1 %1761  ;;  %v1601_v18 = vld [vmem:[%s8127_s2 + $0x318] sm:$0xff]  ;;  %v2090_v56 = vsel %vm922_vm0, %v1634_v6, 0.0 }
  0xc4   :  { %v1286_v48 = vmax.f32 %v1282_v35, %v1285_v19  ;;  %2178 = vadd.xlane.f32.xlu0 %v2177_v22  ;;  %8309 = vst [vmem:[#allocation15_spill] sm:$0xff] %v6475_v17  ;;  %v921_v19 = vld [vmem:[%s8127_s2 + $0x5f8] sm:$0xff]  ;;  %v1651_v35 = vld [vmem:[%s8127_s2 + $0x4a8] sm:$0xff]  ;;  %vm2765_vm8 = vcmask 392512   ;;  %vm2772_vm9 = vcmask 458112   ;;  %vm2779_vm10 = vcmask 523712  }
  0xc5   :  { %v1284_v62 = vmax.f32 %v1280_v33, %v1283_v34  ;;  %v6477_v34 = vpop.xlane.xlu0 %1752  ;;  %v1901_v33 = vsel %vm922_vm0, %v1571_v0, 0.0  ;;  %v2141_v22 = vsel %vm922_vm0, %v1651_v35, 0.0  ;;  %v1555_v57 = vld [vmem:[%s8127_s2 + $0x1a8] sm:$0xff]  ;;  %vm2786_vm11 = vcmask 589312  }
  0xc6   :  { %v1290_v39 = vmax.f32 %v1286_v48, %v1289_v61  ;;  %8310 = vst [vmem:[#allocation13_spill] sm:$0xff] %v6477_v34  ;;  %v1309_v61 = vsel %vm922_vm0, %v919_v24, -inf  ;;  %v1313_v48 = vsel %vm922_vm0, %v921_v19, -inf  ;;  %v1538_v24 = vld [vmem:[%s8127_s2 + $0x120] sm:$0xff]  ;;  %v1619_v19 = vld [vmem:[%s8127_s2 + $0x3a8] sm:$0xff]  ;;  %vm2793_vm12 = vcmask 654912  }
  0xc7   :  { %v1288_v32 = vmax.f32 %v1284_v62, %v1287_v26  ;;  %1953 = vadd.xlane.f32.xlu1 %v1952_v42  ;;  %v1307_v26 = vsel %vm922_vm0, %v918_v36, -inf  ;;  %v1311_v62 = vsel %vm922_vm0, %v920_v44, -inf  ;;  %v6504_v40 = vpop.xlane.xlu1 %1767  ;;  %v1589_v36 = vld [vmem:[%s8127_s2 + $0x2b8] sm:$0xff]  ;;  %v1802_v44 = vsel %vm922_vm0, %v1538_v24, 0.0 }
  0xc8   :  { %v1294_v46 = vmax.f32 %v1290_v39, %v1293_v59  ;;  %1800 = vadd.xlane.f32.xlu0 %v1799_v53  ;;  %v1991_v59 = vsel %vm922_vm0, %v1601_v18, 0.0  ;;  %8311 = vst [vmem:[#allocation19_spill] sm:$0xff] %v6504_v40  ;;  %v1853_v53 = vsel %vm922_vm0, %v1555_v57, 0.0  ;;  %v1652_v18 = vld [vmem:[%s8127_s2 + $0x4b0] sm:$0xff]  ;;  %v1590_v57 = vld [vmem:[%s8127_s2 + $0x2c0] sm:$0xff]  ;;  %vm2800_vm13 = vcmask 720512  }
  0xc9   :  { %v1292_v14 = vmax.f32 %v1288_v32, %v1291_v21  ;;  %v6506_v32 = vpop.xlane.xlu0 %1758  ;;  %vm704_vm14 = vcmask 97280   ;;  %vm726_vm15 = vcmask 1042432   ;;  %vm727_vm1 = vcmask 948228  }
  0xca   :  { %v1298_v50 = vmax.f32 %v1294_v46, %v1297_v43  ;;  %8312 = vst [vmem:[#allocation25_spill] sm:$0xff] %v6506_v32  ;;  %v2231_v43 = vsel %vm922_vm0, %v1681_v9, 0.0 }
  0xcb   :  { %v1296_v11 = vmax.f32 %v1292_v14, %v1295_v37  ;;  %2043 = vadd.xlane.f32.xlu1 %v2042_v27  ;;  %v1664_v14 = vld [vmem:[%s8127_s2 + $0x510] sm:$0xff] }
  0xcc   :  { %v1302_v63 = vmax.f32 %v1298_v50, %v1301_v60  ;;  %1902 = vadd.xlane.f32.xlu0 %v1901_v33  ;;  %v2180_v0 = vsel %vm922_vm0, %v1664_v14, 0.0  ;;  %v1955_v50 = vsel %vm922_vm0, %v1589_v36, 0.0  ;;  %v2045_v33 = vsel %vm922_vm0, %v1619_v19, 0.0  ;;  %v1620_v36 = vld [vmem:[%s8127_s2 + $0x3b0] sm:$0xff] }
  0xcd   :  { %v1300_v38 = vmax.f32 %v1296_v11, %v1299_v58 }
  0xce   :  { %v1306_v8 = vmax.f32 %v1302_v63, %v1305_v2  ;;  %v6517_v55 = vpop.xlane.xlu1 %1773  ;;  %v6519_v58 = vpop.xlane.xlu0 %1764  ;;  %v1572_v63 = vld [vmem:[%s8127_s2 + $0x230] sm:$0xff] }
  0xcf   :  { %v1304_v41 = vmax.f32 %v1300_v38, %v1303_v7  ;;  %2142 = vadd.xlane.f32.xlu1 %v2141_v22  ;;  %8313 = vst [vmem:[#allocation36_spill] sm:$0xff] %v6517_v55  ;;  %8314 = vst [vmem:[#allocation40_spill] sm:$0xff] %v6519_v58 }
  0xd0   :  { %v1310_v21 = vmax.f32 %v1306_v8, %v1309_v61  ;;  %1992 = vadd.xlane.f32.xlu0 %v1991_v59  ;;  %v1635_v59 = vld [vmem:[%s8127_s2 + $0x428] sm:$0xff] }
  0xd1   :  { %v1308_v49 = vmax.f32 %v1304_v41, %v1307_v26  ;;  %v1904_v41 = vsel %vm922_vm0, %v1572_v63, 0.0  ;;  %v1603_v63 = vld [vmem:[%s8127_s2 + $0x328] sm:$0xff] }
  0xd2   :  { %v1314_v37 = vmax.f32 %v1310_v21, %v1313_v48  ;;  %v6529_v7 = vpop.xlane.xlu1 %1779  ;;  %v6531_v2 = vpop.xlane.xlu0 %1770  ;;  %v2144_v48 = vsel %vm922_vm0, %v1652_v18, 0.0  ;;  %v1997_v18 = vsel %vm922_vm0, %v1603_v63, 0.0  ;;  %v1604_v63 = vld [vmem:[%s8127_s2 + $0x330] sm:$0xff] }
  0xd3   :  { %v1312_v39 = vmax.f32 %v1308_v49, %v1311_v62  ;;  %2232 = vadd.xlane.f32.xlu1 %v2231_v43  ;;  %8315 = vst [vmem:[#allocation42_spill] sm:$0xff] %v6529_v7  ;;  %8316 = vst [vmem:[#allocation43_spill] sm:$0xff] %v6531_v2  ;;  %v1602_v62 = vld [vmem:[%s8127_s2 + $0x320] sm:$0xff]  ;;  %v2093_v43 = vsel %vm922_vm0, %v1635_v59, 0.0 }
  0xd4   :  { %2091 = vadd.xlane.f32.xlu0 %v2090_v56  ;;  %v1994_v21 = vsel %vm922_vm0, %v1602_v62, 0.0  ;;  %v1666_v59 = vld [vmem:[%s8127_s2 + $0x520] sm:$0xff] }
  0xd5   :  { %v1315_v42 = vmax.f32 %v1312_v39, %v1314_v37  ;;  %v1556_v39 = vld [vmem:[%s8127_s2 + $0x1b0] sm:$0xff] }
  0xd6   :  { %v6541_v35 = vpop.xlane.xlu1 %1785  ;;  %v6543_v26 = vpop.xlane.xlu0 %1776  ;;  %v1856_v56 = vsel %vm922_vm0, %v1556_v39, 0.0 }
  0xd7   :  { %v1316_v46 = vrot.slane %v1315_v42, 4  ;;  %1854 = vadd.xlane.f32.xlu1 %v1853_v53  ;;  %8317 = vst [vmem:[#allocation44_spill] sm:$0xff] %v6541_v35  ;;  %8318 = vst [vmem:[#allocation38_spill] sm:$0xff] %v6543_v26  ;;  %v1539_v53 = vld [vmem:[%s8127_s2 + $0x128] sm:$0xff] }
  0xd8   :  { %2181 = vadd.xlane.f32.xlu0 %v2180_v0  ;;  %v1958_v0 = vsel %vm922_vm0, %v1590_v57, 0.0  ;;  %v1805_v24 = vsel %vm922_vm0, %v1539_v53, 0.0  ;;  %v1540_v57 = vld [vmem:[%s8127_s2 + $0x130] sm:$0xff]  ;;  %v1621_v53 = vld [vmem:[%s8127_s2 + $0x3b8] sm:$0xff] }
  0xd9   :  { %v1317_v60 = vmax.f32 %v1315_v42, %v1316_v46  ;;  %v1665_v42 = vld [vmem:[%s8127_s2 + $0x518] sm:$0xff] }
  0xda   :  { %v6557_v22 = vpop.xlane.xlu1 %1791  ;;  %v6559_v49 = vpop.xlane.xlu0 %1782  ;;  %v2183_v14 = vsel %vm922_vm0, %v1665_v42, 0.0 }
  0xdb   :  { %v1318_v11 = vrot.slane %v1317_v60, 2  ;;  %1956 = vadd.xlane.f32.xlu1 %v1955_v50  ;;  %8319 = vst [vmem:[#allocation47_spill] sm:$0xff] %v6557_v22  ;;  %8320 = vst [vmem:[#allocation49_spill] sm:$0xff] %v6559_v49  ;;  %v2048_v50 = vsel %vm922_vm0, %v1620_v36, 0.0 }
  0xdc   :  { %1803 = vadd.xlane.f32.xlu0 %v1802_v44  ;;  %v1653_v44 = vld [vmem:[%s8127_s2 + $0x4b8] sm:$0xff] }
  0xdd   :  { %v1319_v27 = vmax.f32 %v1317_v60, %v1318_v11  ;;  %v1573_v11 = vld [vmem:[%s8127_s2 + $0x238] sm:$0xff] }
  0xde   :  { %v6569_v6 = vpop.xlane.xlu1 %1797  ;;  %v6574_v37 = vpop.xlane.xlu0 %1788 }
  0xdf   :  { %v1320_v38 = vrot.slane %v1319_v27, 1  ;;  %2046 = vadd.xlane.f32.xlu1 %v2045_v33  ;;  %8321 = vst [vmem:[#allocation46_spill] sm:$0xff] %v6569_v6  ;;  %8322 = vst [vmem:[#allocation50_spill] sm:$0xff] %v6574_v37  ;;  %v2147_v33 = vsel %vm922_vm0, %v1653_v44, 0.0  ;;  %v1654_v44 = vld [vmem:[%s8127_s2 + $0x4c0] sm:$0xff] }
  0xe0   :  { %1905 = vadd.xlane.f32.xlu0 %v1904_v41 }
  0xe1   :  { %v1321_v61 = vmax.f32 %v1319_v27, %v1320_v38  ;;  %v1907_v38 = vsel %vm922_vm0, %v1573_v11, 0.0 }
  0xe2   :  { %v6585_v46 = vpop.xlane.xlu1 %1938  ;;  %v6590_v60 = vpop.xlane.xlu0 %1794 }
  0xe3   :  { %v1334_v8 = vsel %vm8172_vm3, %v1321_v61, %v6411_v25  ;;  %v1682_v25 = vld [vmem:[%s8127_s2 + $0x5a0] sm:$0xff]  ;;  %2145 = vadd.xlane.f32.xlu1 %v2144_v48  ;;  %8323 = vst [vmem:[#allocation52_spill] sm:$0xff] %v6590_v60  ;;  %v1683_v61 = vld [vmem:[%s8127_s2 + $0x5a8] sm:$0xff]  ;;  %vm1499_vm3 = vcmask 587780  }
  0xe4   :  { %3905 = vmatmul.mubr.msk.f32.vlgmr.msra.gmra.mrb[4].mxu0 %vm922_vm0, %v1334_v8  ;;  %3906 = vmatmul.mubr.msk.f32.vlgmr.msra.gmra.mrb[4].mxu1 %vm922_vm0, %v1334_v8  ;;  %v2234_v9 = vsel %vm922_vm0, %v1682_v25, 0.0  ;;  %v1636_v8 = vld [vmem:[%s8127_s2 + $0x430] sm:$0xff]  ;;  %v2237_v48 = vsel %vm922_vm0, %v1683_v61, 0.0  ;;  %v1557_v25 = vld [vmem:[%s8127_s2 + $0x1b8] sm:$0xff]  ;;  %vm1500_vm2 = vmor %vm1499_vm3, %vm726_vm15  ;;  %vm2828_vm3 = vcmask 982912  }
  0xe5   :  { %1995 = vadd.xlane.f32.xlu0 %v1994_v21  ;;  %v2096_v21 = vsel %vm922_vm0, %v1636_v8, 0.0 }
  0xe6   :  { %v6601_v27 = vpop.xlane.xlu1 %1890  ;;  %v6606_v19 = vpop.xlane.xlu0 %1935 }
  0xe7   :  { %2235 = vadd.xlane.f32.xlu1 %v2234_v9  ;;  %v1859_v9 = vsel %vm922_vm0, %v1557_v25, 0.0  ;;  %v1637_v25 = vld [vmem:[%s8127_s2 + $0x438] sm:$0xff] }
  0xe9   :  { %2094 = vadd.xlane.f32.xlu0 %v2093_v43  ;;  %v1591_v43 = vld [vmem:[%s8127_s2 + $0x2c8] sm:$0xff] }
  0xea   :  { %v6617_v41 = vpop.xlane.xlu1 %2127 }
  0xeb   :  { %1857 = vadd.xlane.f32.xlu1 %v1856_v56  ;;  %v6622_v62 = vpop.xlane.xlu0 %1887  ;;  %v2186_v56 = vsel %vm922_vm0, %v1666_v59, 0.0  ;;  %v1558_v59 = vld [vmem:[%s8127_s2 + $0x1c0] sm:$0xff] }
  0xed   :  { %2184 = vadd.xlane.f32.xlu0 %v2183_v14  ;;  %v1961_v14 = vsel %vm922_vm0, %v1591_v43, 0.0 }
  0xee   :  { %v6633_v39 = vpop.xlane.xlu1 %1839 }
  0xef   :  { %1959 = vadd.xlane.f32.xlu1 %v1958_v0  ;;  %v6638_v42 = vpop.xlane.xlu0 %1941  ;;  %v1808_v0 = vsel %vm922_vm0, %v1540_v57, 0.0 }
  0xf1   :  { %1806 = vadd.xlane.f32.xlu0 %v1805_v24  ;;  %v1574_v24 = vld [vmem:[%s8127_s2 + $0x240] sm:$0xff] }
  0xf3   :  { %2049 = vadd.xlane.f32.xlu1 %v2048_v50  ;;  %v2051_v50 = vsel %vm922_vm0, %v1621_v53, 0.0  ;;  %v1592_v53 = vld [vmem:[%s8127_s2 + $0x2d0] sm:$0xff] }
  0xf4   :  { %v6649_v36 = vpop.xlane.xlu1 %1893 }
  0xf5   :  { %1908 = vadd.xlane.f32.xlu0 %v1907_v38  ;;  %v1910_v38 = vsel %vm922_vm0, %v1574_v24, 0.0  ;;  %v1541_v24 = vld [vmem:[%s8127_s2 + $0x138] sm:$0xff] }
  0xf7   :  { %2148 = vadd.xlane.f32.xlu1 %v2147_v33  ;;  %v2150_v33 = vsel %vm922_vm0, %v1654_v44, 0.0 }
  0xf9   :  { %1998 = vadd.xlane.f32.xlu0 %v1997_v18  ;;  %v1684_v18 = vld [vmem:[%s8127_s2 + $0x5b0] sm:$0xff] }
  0xfb   :  { %2238 = vadd.xlane.f32.xlu1 %v2237_v48  ;;  %v2000_v48 = vsel %vm922_vm0, %v1604_v63, 0.0 }
  0xfc   :  { %v6654_v11 = vpop.xlane.xlu0 %2130 }
  0xfd   :  { %2097 = vadd.xlane.f32.xlu0 %v2096_v21  ;;  %v2240_v21 = vsel %vm922_vm0, %v1684_v18, 0.0  ;;  %v1575_v18 = vld [vmem:[%s8127_s2 + $0x248] sm:$0xff] }
  0xff   :  { %1860 = vadd.xlane.f32.xlu1 %v1859_v9  ;;  %v2099_v9 = vsel %vm922_vm0, %v1637_v25, 0.0  ;;  %v1655_v25 = vld [vmem:[%s8127_s2 + $0x4c8] sm:$0xff] }
 0x101   :  { %2187 = vadd.xlane.f32.xlu0 %v2186_v56  ;;  %v6670_v8 = vpop.xlane.xlu0 %1842  ;;  %v1667_v56 = vld [vmem:[%s8127_s2 + $0x528] sm:$0xff] }
 0x102   :  { %v6665_v61 = vpop.xlane.xlu1 %2031 }
 0x103   :  { %1962 = vadd.xlane.f32.xlu1 %v1961_v14  ;;  %v1862_v14 = vsel %vm922_vm0, %v1558_v59, 0.0 }
 0x105   :  { %1809 = vadd.xlane.f32.xlu0 %v1808_v0  ;;  %v2189_v0 = vsel %vm922_vm0, %v1667_v56, 0.0  ;;  %v2153_v56 = vsel %vm922_vm0, %v1655_v25, 0.0 }
 0x106   :  { %v6681_v43 = vpop.xlane.xlu1 %2079 }
 0x107   :  { %2052 = vadd.xlane.f32.xlu1 %v2051_v50  ;;  %8324 = vst [vmem:[#allocation22_spill] sm:$0xff] %v6681_v43  ;;  %v6686_v57 = vpop.xlane.xlu0 %1944  ;;  %v1964_v50 = vsel %vm922_vm0, %v1592_v53, 0.0 }
 0x109   :  { %1911 = vadd.xlane.f32.xlu0 %v1910_v38  ;;  %v1622_v38 = vld [vmem:[%s8127_s2 + $0x3c0] sm:$0xff] }
 0x10a   :  { %v6697_v44 = vpop.xlane.xlu1 %2133 }
 0x10b   :  { %2151 = vadd.xlane.f32.xlu1 %v2150_v33  ;;  %v6702_v63 = vpop.xlane.xlu0 %2034  ;;  %v1811_v33 = vsel %vm922_vm0, %v1541_v24, 0.0 }
 0x10d   :  { %2001 = vadd.xlane.f32.xlu0 %v2000_v48  ;;  %v2054_v48 = vsel %vm922_vm0, %v1622_v38, 0.0 }
 0x10e   :  { %v6713_v59 = vpop.xlane.xlu1 %1896 }
 0x10f   :  { %2241 = vadd.xlane.f32.xlu1 %v2240_v21  ;;  %v1913_v21 = vsel %vm922_vm0, %v1575_v18, 0.0 }
 0x111   :  { %2100 = vadd.xlane.f32.xlu0 %v2099_v9  ;;  %v6715_v9 = vpop.xlane.xlu0 %2082 }
 0x112   :  { %8325 = vst [vmem:[#allocation53_spill] sm:$0xff] %v6715_v9 }
 0x113   :  { %1863 = vadd.xlane.f32.xlu1 %v1862_v14  ;;  %v6718_v14 = vpop.xlane.xlu1 %1983 }
 0x115   :  { %2190 = vadd.xlane.f32.xlu0 %v2189_v0  ;;  %v6720_v53 = vpop.xlane.xlu0 %1845 }
 0x117   :  { %1965 = vadd.xlane.f32.xlu1 %v1964_v50  ;;  %v6722_v0 = vpop.xlane.xlu1 %2037 }
 0x119   :  { %1812 = vadd.xlane.f32.xlu0 %v1811_v33  ;;  %v6724_v24 = vpop.xlane.xlu0 %1947 }
 0x11b   :  { %2055 = vadd.xlane.f32.xlu1 %v2054_v48  ;;  %v6726_v50 = vpop.xlane.xlu1 %2136 }
 0x11d   :  { %1914 = vadd.xlane.f32.xlu0 %v1913_v21  ;;  %v6728_v38 = vpop.xlane.xlu0 %1986 }
 0x11f   :  { %2154 = vadd.xlane.f32.xlu1 %v2153_v56  ;;  %v6730_v33 = vpop.xlane.xlu1 %2226 }
 0x120   :  { %8326 = vst [vmem:[#allocation54_spill] sm:$0xff] %v6730_v33 }
 0x121   :  { %v6732_v18 = vpop.xlane.xlu0 %2085 }
 0x122   :  { %8327 = vst [vmem:[#allocation24_spill] sm:$0xff] %v6732_v18  ;;  %v2353_v18 = vmul.f32 0.0625, %v6638_v42  ;;  %v2319_v42 = vmul.f32 0.0625, %v6633_v39 }
 0x125   :  { %v6744_v47 = vpop.xlane.xlu1 %1899  ;;  %v6746_v3 = vpop.xlane.xlu0 %2223 }
 0x126   :  { %8332 = vst [vmem:[#allocation27_spill] sm:$0xff] %v6746_v3  ;;  %v2351_v3 = vmul.f32 0.0625, %v6606_v19 }
 0x129   :  { %v6748_v4 = vpop.xlane.xlu1 %1989  ;;  %v6750_v23 = vpop.xlane.xlu0 %1848 }
 0x12a   :  { %8333 = vst [vmem:[#allocation41_spill] sm:$0xff] %v6748_v4 }
 0x133   :  { %v6734_v48 = vpop.f32.mrb[0].mxu1  ;;  %v6736_v25 = vpop.f32.mrb[0].mxu0 }
 0x134   :  { %8328 = vst [vmem:[#allocation37_spill] sm:$0xff] %v6734_v48  ;;  %8329 = vst [vmem:[#allocation48_spill] sm:$0xff] %v6736_v25  ;;  %v6738_v21 = vpop.f32.mrb[1].mxu1  ;;  %v6740_v56 = vpop.f32.mrb[1].mxu0  ;;  %v2336_v25 = vmul.f32 0.0625, %v6601_v27 }
 0x135   :  { %8330 = vst [vmem:[#allocation56_spill] sm:$0xff] %v6738_v21  ;;  %8331 = vst [vmem:[#allocation57_spill] sm:$0xff] %v6740_v56  ;;  %694 = vrot.lane.b32.xlu0 %v6738_v21, %s4193_s0 }
 0x144   :  { %v6752_v5 = vpop.xlane.xlu1 %2088 }
 0x145   :  { %8334 = vst [vmem:[#allocation16_spill] sm:$0xff] %v6752_v5  ;;  %v6754_v10 = vpop.xlane.xlu0 %1950 }
 0x148   :  { %v6757_v7 = vpop.xlane.xlu1 %2175 }
 0x149   :  { %v684_v37 = vpop.f32.mrb[2].mxu1  ;;  %v613_v35 = vpop.f32.mrb[2].mxu0  ;;  %8335 = vst [vmem:[#allocation21_spill] sm:$0xff] %v6757_v7 }
 0x14a   :  { %700 = vrot.lane.b32.xlu1 %v684_v37, %s4193_s0  ;;  %v615_v30 = vpop.f32.mrb[3].mxu0  ;;  %v686_v49 = vpop.f32.mrb[3].mxu1  ;;  %v1605_v37 = vld [vmem:[%s8127_s2 + $0x338] sm:$0xff] }
 0x14b   :  { %v6759_v20 = vpop.xlane.xlu0 %2040  ;;  %v2003_v13 = vsel %vm922_vm0, %v1605_v37, 0.0 }
 0x14c   :  { %v6762_v12 = vpop.xlane.xlu1 %2229 }
 0x14d   :  { %8336 = vst [vmem:[#allocation26_spill] sm:$0xff] %v6762_v12 }
 0x14e   :  { %698 = vrot.lane.b32.xlu1 %v615_v30, %s4193_s0  ;;  %v1638_v30 = vld [vmem:[%s8127_s2 + $0x440] sm:$0xff] }
 0x14f   :  { %v6764_v26 = vpop.xlane.xlu0 %2139  ;;  %v2102_v58 = vsel %vm922_vm0, %v1638_v30, 0.0 }
 0x150   :  { %v6766_v55 = vpop.xlane.xlu1 %1851 }
 0x153   :  { %v6768_v15 = vpop.xlane.xlu0 %2178 }
 0x154   :  { %8337 = vst [vmem:[#allocation45_spill] sm:$0xff] %v6768_v15  ;;  %v6773_v2 = vpop.xlane.xlu1 %1953  ;;  %2004 = vadd.xlane.f32.xlu0 %v2003_v13 }
 0x157   :  { %v6776_v40 = vpop.xlane.xlu0 %1800 }
 0x158   :  { %8338 = vst [vmem:[#allocation58_spill] sm:$0xff] %v6776_v40  ;;  %v6781_v45 = vpop.xlane.xlu1 %2043  ;;  %2103 = vadd.xlane.f32.xlu0 %v2102_v58  ;;  %v1685_v58 = vld [vmem:[%s8127_s2 + $0x5b8] sm:$0xff]  ;;  %v1865_v40 = vsel %vm922_vm0, %v1559_v52, 0.0 }
 0x159   :  { %v2243_v34 = vsel %vm922_vm0, %v1685_v58, 0.0 }
 0x15b   :  { %v6784_v54 = vpop.xlane.xlu0 %1902 }
 0x15c   :  { %v6786_v17 = vpop.xlane.xlu1 %2142 }
 0x15f   :  { %v6788_v16 = vpop.xlane.xlu0 %1992 }
 0x160   :  { %8339 = vst [vmem:[#allocation59_spill] sm:$0xff] %v6788_v16  ;;  %v6790_v32 = vpop.xlane.xlu1 %2232 }
 0x161   :  { %8340 = vst [vmem:[#allocation60_spill] sm:$0xff] %v6790_v32 }
 0x163   :  { %v6792_v37 = vpop.xlane.xlu0 %2091 }
 0x164   :  { %8341 = vst [vmem:[#allocation61_spill] sm:$0xff] %v6792_v37  ;;  %v6794_v29 = vpop.xlane.xlu1 %1854 }
 0x167   :  { %v6796_v28 = vpop.xlane.xlu0 %2181 }
 0x168   :  { %8342 = vst [vmem:[#allocation62_spill] sm:$0xff] %v6796_v28  ;;  %v6798_v13 = vpop.xlane.xlu1 %1956 }
 0x16b   :  { %v6800_v51 = vpop.xlane.xlu0 %1803 }
 0x16c   :  { %8343 = vst [vmem:[#allocation63_spill] sm:$0xff] %v6800_v51  ;;  %v6805_v30 = vpop.xlane.xlu1 %2046  ;;  %v1593_v51 = vld [vmem:[%s8127_s2 + $0x2d8] sm:$0xff] }
 0x16d   :  { %v1967_v28 = vsel %vm922_vm0, %v1593_v51, 0.0 }
 0x16e   :  { %696 = vrot.lane.b32.xlu0 %v613_v35, %s4193_s0  ;;  %v2726_v35 = vlaneseq }
 0x16f   :  { %v6811_v1 = vpop.xlane.xlu0 %1905 }
 0x170   :  { %v6813_v31 = vpop.xlane.xlu1 %2145  ;;  %v6836_v22 = vand.u32 127, %v2726_v35  ;;  %v6842_v51 = vshrl.u32 %v2726_v35, 7 }
 0x172   :  { %2244 = vadd.xlane.f32.xlu1 %v2243_v34  ;;  %702 = vrot.lane.b32.xlu0 %v686_v49, %s4193_s0  ;;  %8349 = vst [vmem:[#allocation69_spill] sm:$0xff] %v6836_v22  ;;  %8350 = vst [vmem:[#allocation70_spill] sm:$0xff] %v6842_v51  ;;  %v2732_v49 = vadd.s32 4294967288, %v6836_v22  ;;  %v2753_v32 = vadd.s32 4294967264, %v6836_v22  ;;  %v2767_v12 = vadd.s32 4294967248, %v6836_v22  ;;  %v6856_v35 = vsub.s32 %v6836_v22, %v6842_v51 }
 0x173   :  { %v6820_v6 = vpop.xlane.xlu0 %1995  ;;  %v2746_v21 = vadd.s32 4294967272, %v6836_v22  ;;  %v2781_v56 = vadd.s32 4294967232, %v6836_v22  ;;  %v2760_v5 = vadd.s32 4294967256, %v6836_v22 }
 0x174   :  { %8344 = vst [vmem:[#allocation64_spill] sm:$0xff] %v6820_v6  ;;  %v6822_v58 = vpop.xlane.xlu1 %2235  ;;  %v6860_v48 = vsub.s32 %v2732_v49, %v6842_v51  ;;  %v6868_v19 = vsub.s32 %v2753_v32, %v6842_v51  ;;  %v6875_v49 = vsub.s32 %v2767_v12, %v6842_v51  ;;  %v2337_v6 = vmul.f32 0.0625, %v6649_v36 }
 0x175   :  { %8345 = vst [vmem:[#allocation65_spill] sm:$0xff] %v6822_v58  ;;  %v6883_v32 = vsub.s32 %v2746_v21, %v6842_v51  ;;  %v6889_v12 = vsub.s32 %v2781_v56, %v6842_v51  ;;  %v6897_v21 = vsub.s32 %v2760_v5, %v6842_v51  ;;  %v2320_v36 = vmul.f32 0.0625, %v6670_v8  ;;  %v1668_v5 = vld [vmem:[%s8127_s2 + $0x530] sm:$0xff] }
 0x176   :  { %1866 = vadd.xlane.f32.xlu1 %v1865_v40  ;;  %v3081_v16 = vrot.slane %v2336_v25, %v6860_v48  ;;  %v2788_v25 = vadd.s32 4294967224, %v6836_v22 }
 0x177   :  { %v6826_v34 = vpop.xlane.xlu0 %2094 }
 0x178   :  { %8346 = vst [vmem:[#allocation66_spill] sm:$0xff] %v6826_v34  ;;  %v6828_v15 = vpop.xlane.xlu1 %1857  ;;  %v2335_v34 = vmul.f32 0.0625, %v6622_v62  ;;  %v3156_v62 = vrot.slane %v2351_v3, %v6856_v35  ;;  %v2416_v3 = vmul.f32 0.0625, %v6654_v11  ;;  %v2354_v11 = vmul.f32 0.0625, %v6686_v57 }
 0x179   :  { %v2383_v57 = vmul.f32 0.0625, %v6665_v61  ;;  %v2338_v61 = vmul.f32 0.0625, %v6713_v59 }
 0x17a   :  { %1968 = vadd.xlane.f32.xlu1 %v1967_v28 }
 0x17b   :  { %v6830_v52 = vpop.xlane.xlu0 %2184  ;;  %v3314_v59 = vrot.slane %v2383_v57, %v6856_v35  ;;  %v2356_v57 = vmul.f32 0.0625, %v6754_v10  ;;  %v2357_v10 = vmul.f32 0.0625, %v6773_v2  ;;  %v2325_v2 = vmul.f32 0.0625, %v6828_v15 }
 0x17c   :  { %8347 = vst [vmem:[#allocation67_spill] sm:$0xff] %v6830_v52  ;;  %v6832_v7 = vpop.xlane.xlu1 %1959  ;;  %v2739_v52 = vadd.s32 4294967280, %v6836_v22  ;;  %v2387_v15 = vmul.f32 0.0625, %v6781_v45 }
 0x17e   :  { %v6871_v37 = vsub.s32 %v2739_v52, %v6842_v51  ;;  %v2415_v52 = vmul.f32 0.0625, %v6617_v41  ;;  %v2774_v41 = vadd.s32 4294967240, %v6836_v22 }
 0x17f   :  { %v6834_v60 = vpop.xlane.xlu0 %1806 }
 0x180   :  { %8348 = vst [vmem:[#allocation68_spill] sm:$0xff] %v6834_v60  ;;  %v6838_v40 = vpop.xlane.xlu1 %2049  ;;  %v2352_v60 = vmul.f32 0.0625, %v6585_v46  ;;  %v3472_v43 = vrot.slane %v2415_v52, %v6856_v35  ;;  %v3165_v39 = vrot.slane %v2353_v18, %v6871_v37  ;;  %v3086_v8 = vrot.slane %v2337_v6, %v6871_v37 }
 0x181   :  { %v6924_v4 = vsub.s32 %v2774_v41, %v6842_v51  ;;  %v2998_v52 = vrot.slane %v2319_v42, %v6856_v35  ;;  %v3002_v18 = vrot.slane %v2320_v36, %v6860_v48  ;;  %v2192_v6 = vsel %vm922_vm0, %v1668_v5, 0.0 }
 0x182   :  { %v3160_v27 = vrot.slane %v2352_v60, %v6860_v48  ;;  %v3077_v60 = vrot.slane %v2335_v34, %v6856_v35  ;;  %v2355_v5 = vmul.f32 0.0625, %v6724_v24  ;;  %v2322_v24 = vmul.f32 0.0625, %v6750_v23 }
 0x183   :  { %v6840_v58 = vpop.xlane.xlu0 %1908  ;;  %v2419_v23 = vmul.f32 0.0625, %v6764_v26  ;;  %v2324_v26 = vmul.f32 0.0625, %v6794_v29 }
 0x184   :  { %v6845_v28 = vpop.xlane.xlu1 %2148  ;;  %v3161_v34 = vsel %vm2737_vm4, %v3160_v27, %v3156_v62  ;;  %v3476_v27 = vrot.slane %v2416_v3, %v6860_v48  ;;  %v2384_v62 = vmul.f32 0.0625, %v6702_v63  ;;  %v2321_v63 = vmul.f32 0.0625, %v6720_v53  ;;  %v1542_v3 = vld [vmem:[%s8127_s2 + $0x140] sm:$0xff] }
 0x185   :  { %v3166_v41 = vsel %vm2744_vm5, %v3165_v39, %v3161_v34  ;;  %v2418_v34 = vmul.f32 0.0625, %v6726_v50  ;;  %v1814_v39 = vsel %vm922_vm0, %v1542_v3, 0.0 }
 0x186   :  { %v3318_v53 = vrot.slane %v2384_v62, %v6860_v48  ;;  %v2386_v62 = vmul.f32 0.0625, %v6759_v20 }
 0x187   :  { %v6852_v33 = vpop.xlane.xlu0 %1998 }
 0x188   :  { %8351 = vst [vmem:[#allocation71_spill] sm:$0xff] %v6852_v33  ;;  %v6865_v46 = vpop.xlane.xlu1 %2238  ;;  %v2795_v33 = vadd.s32 4294967216, %v6836_v22  ;;  %v3082_v22 = vsel %vm2737_vm4, %v3081_v16, %v3077_v60  ;;  %v3170_v16 = vrot.slane %v2354_v11, %v6883_v32  ;;  %v3477_v11 = vsel %vm2737_vm4, %v3476_v27, %v3472_v43  ;;  %v1576_v27 = vld [vmem:[%s8127_s2 + $0x250] sm:$0xff] }
 0x189   :  { %8352 = vst [vmem:[#allocation72_spill] sm:$0xff] %v6865_v46  ;;  %v3087_v42 = vsel %vm2744_vm5, %v3086_v8, %v3082_v22  ;;  %v2339_v22 = vmul.f32 0.0625, %v6744_v47  ;;  %v3007_v8 = vrot.slane %v2321_v63, %v6871_v37  ;;  %v1916_v20 = vsel %vm922_vm0, %v1576_v27, 0.0 }
 0x18a   :  { %v6903_v56 = vsub.s32 %v2795_v33, %v6842_v51  ;;  %v2417_v33 = vmul.f32 0.0625, %v6697_v44  ;;  %v6930_v44 = vsub.s32 %v2788_v25, %v6842_v51  ;;  %v2385_v25 = vmul.f32 0.0625, %v6722_v0 }
 0x18b   :  { %v6880_v46 = vpop.xlane.xlu0 %2097  ;;  %v3003_v51 = vsel %vm2737_vm4, %v3002_v18, %v2998_v52  ;;  %v3171_v43 = vsel %vm2751_vm6, %v3170_v16, %v3166_v41  ;;  %v3091_v0 = vrot.slane %v2338_v61, %v6883_v32  ;;  %v3319_v52 = vsel %vm2737_vm4, %v3318_v53, %v3314_v59 }
 0x18c   :  { %8353 = vst [vmem:[#allocation73_spill] sm:$0xff] %v6880_v46  ;;  %v6894_v9 = vpop.xlane.xlu1 %1860  ;;  %v3481_v36 = vrot.slane %v2417_v33, %v6871_v37  ;;  %v3323_v47 = vrot.slane %v2385_v25, %v6871_v37  ;;  %v3175_v18 = vrot.slane %v2355_v5, %v6868_v19  ;;  %v3486_v61 = vrot.slane %v2418_v34, %v6883_v32 }
 0x18d   :  { %v3096_v63 = vrot.slane %v2339_v22, %v6868_v19  ;;  %v3092_v3 = vsel %vm2751_vm6, %v3091_v0, %v3087_v42  ;;  %v3008_v41 = vsel %vm2744_vm5, %v3007_v8, %v3003_v51  ;;  %v3328_v59 = vrot.slane %v2386_v62, %v6883_v32 }
 0x18e   :  { %v3482_v50 = vsel %vm2744_vm5, %v3481_v36, %v3477_v11  ;;  %v3012_v36 = vrot.slane %v2322_v24, %v6883_v32  ;;  %v3324_v25 = vsel %vm2744_vm5, %v3323_v47, %v3319_v52  ;;  %v3180_v11 = vrot.slane %v2356_v57, %v6897_v21 }
 0x18f   :  { %v6908_v46 = vpop.xlane.xlu0 %2187  ;;  %v3176_v42 = vsel %vm2758_vm7, %v3175_v18, %v3171_v43  ;;  %v3491_v51 = vrot.slane %v2419_v23, %v6868_v19  ;;  %v2326_v29 = vmul.f32 0.0625, %v6894_v9  ;;  %v3487_v34 = vsel %vm2751_vm6, %v3486_v61, %v3482_v50 }
 0x190   :  { %8354 = vst [vmem:[#allocation74_spill] sm:$0xff] %v6908_v46  ;;  %v6921_v46 = vpop.xlane.xlu1 %1962  ;;  %v3097_v22 = vsel %vm2758_vm7, %v3096_v63, %v3092_v3  ;;  %v3013_v0 = vsel %vm2751_vm6, %v3012_v36, %v3008_v41  ;;  %v2340_v43 = vmul.f32 0.0625, %v6784_v54  ;;  %v3022_v8 = vrot.slane %v2324_v26, %v6897_v21 }
 0x191   :  { %2193 = vadd.xlane.f32.xlu0 %v2192_v6  ;;  %v2323_v6 = vmul.f32 0.0625, %v6766_v55  ;;  %v2358_v24 = vmul.f32 0.0625, %v6798_v13  ;;  %v3181_v27 = vsel %vm2765_vm8, %v3180_v11, %v3176_v42  ;;  %v3329_v50 = vsel %vm2751_vm6, %v3328_v59, %v3324_v25 }
 0x192   :  { %v3027_v47 = vrot.slane %v2325_v2, %v6875_v49  ;;  %v2359_v57 = vmul.f32 0.0625, %v6832_v7  ;;  %v3492_v45 = vsel %vm2758_vm7, %v3491_v51, %v3487_v34  ;;  %v3032_v62 = vrot.slane %v2326_v29, %v6924_v4 }
 0x193   :  { %v6935_v60 = vpop.xlane.xlu0 %1809  ;;  %v3017_v53 = vrot.slane %v2323_v6, %v6868_v19  ;;  %v2360_v13 = vmul.f32 0.0625, %v6921_v46  ;;  %v3333_v23 = vrot.slane %v2387_v15, %v6868_v19  ;;  %v2420_v6 = vmul.f32 0.0625, %v6786_v17 }
 0x194   :  { %8355 = vst [vmem:[#allocation75_spill] sm:$0xff] %v6935_v60  ;;  %v6948_v60 = vpop.xlane.xlu1 %2052  ;;  %v3101_v63 = vrot.slane %v2340_v43, %v6897_v21  ;;  %v3195_v41 = vrot.slane %v2359_v57, %v6889_v12  ;;  %v2389_v36 = vmul.f32 0.0625, %v6838_v40  ;;  %v2341_v17 = vmul.f32 0.0625, %v6811_v1 }
 0x195   :  { %1815 = vadd.xlane.f32.xlu0 %v1814_v39  ;;  %v3185_v39 = vrot.slane %v2357_v10, %v6875_v49  ;;  %v3018_v54 = vsel %vm2758_vm7, %v3017_v53, %v3013_v0  ;;  %v3190_v10 = vrot.slane %v2358_v24, %v6924_v4  ;;  %v3200_v11 = vrot.slane %v2360_v13, %v6930_v44 }
 0x196   :  { %v3023_v7 = vsel %vm2765_vm8, %v3022_v8, %v3018_v54  ;;  %v2390_v59 = vmul.f32 0.0625, %v6948_v60  ;;  %v2342_v42 = vmul.f32 0.0625, %v6840_v58  ;;  %v2421_v1 = vmul.f32 0.0625, %v6813_v31 }
 0x197   :  { %v6958_v33 = vpop.xlane.xlu0 %1911  ;;  %v3186_v18 = vsel %vm2772_vm9, %v3185_v39, %v3181_v27  ;;  %v3028_v46 = vsel %vm2772_vm9, %v3027_v47, %v3023_v7  ;;  %v3343_v15 = vrot.slane %v2389_v36, %v6875_v49  ;;  %v2422_v58 = vmul.f32 0.0625, %v6845_v28 }
 0x198   :  { %v6971_v16 = vpop.xlane.xlu1 %2151  ;;  %v3033_v25 = vsel %vm2779_vm10, %v3032_v62, %v3028_v46  ;;  %v3191_v40 = vsel %vm2779_vm10, %v3190_v10, %v3186_v18  ;;  %v2343_v34 = vmul.f32 0.0625, %v6958_v33  ;;  %v3106_v43 = vrot.slane %v2341_v17, %v6875_v49 }
 0x199   :  { %1917 = vadd.xlane.f32.xlu0 %v1916_v20  ;;  %v2388_v20 = vmul.f32 0.0625, %v6805_v30  ;;  %v3496_v30 = vrot.slane %v2420_v6, %v6897_v21  ;;  %v3196_v60 = vsel %vm2786_vm11, %v3195_v41, %v3191_v40  ;;  %v3348_v24 = vrot.slane %v2390_v59, %v6924_v4 }
 0x19a   :  { %v3201_v8 = vsel %vm2793_vm12, %v3200_v11, %v3196_v60  ;;  %v2423_v31 = vmul.f32 0.0625, %v6971_v16  ;;  %v3334_v33 = vsel %vm2758_vm7, %v3333_v23, %v3329_v50  ;;  %v3111_v47 = vrot.slane %v2342_v42, %v6924_v4 }
 0x19b   :  { %v6981_v55 = vpop.xlane.xlu0 %2001  ;;  %v3338_v29 = vrot.slane %v2388_v20, %v6897_v21  ;;  %v3102_v28 = vsel %vm2765_vm8, %v3101_v63, %v3097_v22  ;;  %v3501_v13 = vrot.slane %v2421_v1, %v6875_v49  ;;  %v3506_v6 = vrot.slane %v2422_v58, %v6924_v4  ;;  %v1623_v58 = vld [vmem:[%s8127_s2 + $0x3c8] sm:$0xff] }
 0x19c   :  { %v6991_v5 = vpop.xlane.xlu1 %2241  ;;  %v3107_v7 = vsel %vm2772_vm9, %v3106_v43, %v3102_v28  ;;  %v3511_v63 = vrot.slane %v2423_v31, %v6889_v12  ;;  %v1543_v43 = vld [vmem:[%s8127_s2 + $0x148] sm:$0xff]  ;;  %v2057_v31 = vsel %vm922_vm0, %v1623_v58, 0.0 }
 0x19d   :  { %v3339_v62 = vsel %vm2765_vm8, %v3338_v29, %v3334_v33  ;;  %v3112_v20 = vsel %vm2779_vm10, %v3111_v47, %v3107_v7  ;;  %v1606_v29 = vld [vmem:[%s8127_s2 + $0x340] sm:$0xff]  ;;  %v1656_v47 = vld [vmem:[%s8127_s2 + $0x4d0] sm:$0xff] }
 0x19e   :  { %v3344_v16 = vsel %vm2772_vm9, %v3343_v15, %v3339_v62  ;;  %v2006_v1 = vsel %vm922_vm0, %v1606_v29, 0.0  ;;  %v1669_v15 = vld [vmem:[%s8127_s2 + $0x538] sm:$0xff]  ;;  %v8357_v28 = vld [vmem:[#allocation22_spill] sm:$0xff] }
 0x19f   :  { %v7001_v9 = vpop.xlane.xlu0 %2100  ;;  %v3349_v22 = vsel %vm2779_vm10, %v3348_v24, %v3344_v16  ;;  %v2368_v24 = vmul.f32 0.0625, %v6728_v38  ;;  %v2399_v62 = vmul.f32 0.0625, %v8357_v28  ;;  %v8361_v7 = vld [vmem:[#allocation24_spill] sm:$0xff]  ;;  %v8364_v29 = vld [vmem:[#allocation61_spill] sm:$0xff] }
 0x1a0   :  { %v1864_v52 = vpop.xlane.xlu1 %1863  ;;  %v2406_v28 = vmul.f32 0.0625, %v7001_v9 }
 0x1a1   :  { %v2327_v61 = vmul.f32 0.0625, %v1864_v52  ;;  %v3116_v52 = vrot.slane %v2343_v34, %v6889_v12  ;;  %v1639_v34 = vld [vmem:[%s8127_s2 + $0x448] sm:$0xff] }
 0x1a2   :  { %v2105_v60 = vsel %vm922_vm0, %v1639_v34, 0.0  ;;  %v1607_v34 = vld [vmem:[%s8127_s2 + $0x348] sm:$0xff] }
 0x1a3   :  { %v7018_v3 = vpop.xlane.xlu0 %2190  ;;  %v3037_v26 = vrot.slane %v2327_v61, %v6889_v12  ;;  %v3497_v61 = vsel %vm2765_vm8, %v3496_v30, %v3492_v45  ;;  %v3117_v17 = vsel %vm2786_vm11, %v3116_v52, %v3112_v20 }
 0x1a4   :  { %v1966_v2 = vpop.xlane.xlu1 %1965 }
 0x1a5   :  { %v7031_v51 = vsel %vm2786_vm11, %v3037_v26, %v3033_v25  ;;  %v2361_v53 = vmul.f32 0.0625, %v1966_v2  ;;  %v3502_v26 = vsel %vm2772_vm9, %v3501_v13, %v3497_v61  ;;  %v8358_v13 = vld [vmem:[#allocation53_spill] sm:$0xff]  ;;  %v2156_v61 = vsel %vm922_vm0, %v1656_v47, 0.0 }
 0x1a6   :  { %v3507_v45 = vsel %vm2779_vm10, %v3506_v6, %v3502_v26  ;;  %v2400_v52 = vmul.f32 0.0625, %v8358_v13  ;;  %v3239_v6 = vrot.slane %v2368_v24, %v6860_v48  ;;  %v2009_v13 = vsel %vm922_vm0, %v1607_v34, 0.0 }
 0x1a7   :  { %v7037_v39 = vpop.xlane.xlu0 %1812  ;;  %v3205_v0 = vrot.slane %v2361_v53, %v6903_v56  ;;  %v3512_v59 = vsel %vm2786_vm11, %v3511_v63, %v3507_v45 }
 0x1a8   :  { %v2056_v27 = vpop.xlane.xlu1 %2055 }
 0x1a9   :  { %v7050_v57 = vsel %vm2800_vm13, %v3205_v0, %v3201_v8  ;;  %v2391_v54 = vmul.f32 0.0625, %v2056_v27  ;;  %v2195_v0 = vsel %vm922_vm0, %v1669_v15, 0.0  ;;  %v2367_v8 = vmul.f32 0.0625, %v6718_v14  ;;  %v8356_v27 = vld [vmem:[#allocation41_spill] sm:$0xff]  ;;  %v8365_v15 = vld [vmem:[#allocation66_spill] sm:$0xff] }
 0x1aa   :  { %v2369_v33 = vmul.f32 0.0625, %v8356_v27  ;;  %v1577_v14 = vld [vmem:[%s8127_s2 + $0x258] sm:$0xff]  ;;  %v2404_v58 = vmul.f32 0.0625, %v8365_v15 }
 0x1ab   :  { %v1915_v18 = vpop.xlane.xlu0 %1914  ;;  %v3353_v50 = vrot.slane %v2391_v54, %v6889_v12  ;;  %v1817_v54 = vsel %vm922_vm0, %v1543_v43, 0.0  ;;  %v3235_v38 = vrot.slane %v2367_v8, %v6856_v35 }
 0x1ac   :  { %v2344_v23 = vmul.f32 0.0625, %v1915_v18  ;;  %v2155_v10 = vpop.xlane.xlu1 %2154  ;;  %v8359_v18 = vld [vmem:[#allocation59_spill] sm:$0xff]  ;;  %v3244_v63 = vrot.slane %v2369_v33, %v6871_v37 }
 0x1ad   :  { %v7065_v46 = vsel %vm2786_vm11, %v3353_v50, %v3349_v22  ;;  %v2424_v36 = vmul.f32 0.0625, %v2155_v10  ;;  %v2370_v16 = vmul.f32 0.0625, %v8359_v18  ;;  %v8360_v50 = vld [vmem:[#allocation64_spill] sm:$0xff]  ;;  %v2401_v22 = vmul.f32 0.0625, %v8361_v7  ;;  %v8362_v10 = vld [vmem:[#allocation71_spill] sm:$0xff] }
 0x1ae   :  { %v3121_v41 = vrot.slane %v2344_v23, %v6930_v44  ;;  %v2371_v23 = vmul.f32 0.0625, %v8360_v50  ;;  %v2372_v20 = vmul.f32 0.0625, %v8362_v10  ;;  %v1560_v33 = vld [vmem:[%s8127_s2 + $0x1d0] sm:$0xff]  ;;  %v3417_v50 = vrot.slane %v2404_v58, %v6897_v21 }
 0x1af   :  { %v3516_v11 = vrot.slane %v2424_v36, %v6930_v44  ;;  %v8363_v36 = vld [vmem:[#allocation16_spill] sm:$0xff]  ;;  %v7128_v45 = vpop.permute.xlu0 %694  ;;  %v3402_v43 = vrot.slane %v2401_v22, %v6871_v37 }
 0x1b0   :  { %v7072_v25 = vsel %vm2793_vm12, %v3121_v41, %v3117_v17  ;;  %v1686_v41 = vld [vmem:[%s8127_s2 + $0x5c0] sm:$0xff]  ;;  %v2402_v26 = vmul.f32 0.0625, %v8363_v36  ;;  %v2373_v17 = vmul.f32 0.0625, %v6981_v55  ;;  %v3254_v55 = vrot.slane %v2371_v23, %v6868_v19 }
 0x1b1   :  { %v7077_v2 = vsel %vm2793_vm12, %v3516_v11, %v3512_v59  ;;  %v1919_v11 = vsel %vm922_vm0, %v1577_v14, 0.0  ;;  %v3393_v59 = vrot.slane %v2399_v62, %v6856_v35  ;;  %v3259_v24 = vrot.slane %v2372_v20, %v6897_v21  ;;  %v1640_v14 = vld [vmem:[%s8127_s2 + $0x450] sm:$0xff] }
 0x1b2   :  { %v3407_v47 = vrot.slane %v2402_v26, %v6883_v32  ;;  %v1868_v23 = vsel %vm922_vm0, %v1560_v33, 0.0  ;;  %v3427_v36 = vrot.slane %v2406_v28, %v6924_v4  ;;  %v8368_v28 = vld [vmem:[#allocation57_spill] sm:$0xff] }
 0x1b7   :  { %v7079_v30 = vpop.f32.mrb[4].mxu0  ;;  %v1474_v42 = vpop.f32.mrb[4].mxu1 }
 0x1b8   :  { %v7081_v53 = vpop.f32.mrb[5].mxu0  ;;  %v1476_v40 = vpop.f32.mrb[5].mxu1  ;;  %1484 = vrot.lane.b32.xlu0 %v1474_v42, %s4194_s24  ;;  %v3397_v42 = vrot.slane %v2400_v52, %v6860_v48 }
 0x1b9   :  { %1482 = vrot.lane.b32.xlu1 %v7081_v53, %s4194_s24 }
 0x1bc   :  { %v701_v9 = vpop.permute.xlu1 %700 }
 0x1bd   :  { %1486 = vrot.lane.b32.xlu1 %v1476_v40, %s4194_s24  ;;  %v3249_v40 = vrot.slane %v2370_v16, %v6883_v32 }
 0x1c0   :  { %v699_v58 = vpop.permute.xlu1 %698 }
 0x1d7   :  { %2007 = vadd.xlane.f32.xlu0 %v2006_v1  ;;  %v2403_v1 = vmul.f32 0.0625, %v8364_v29 }
 0x1d9   :  { %v3412_v18 = vrot.slane %v2403_v1, %v6868_v19 }
 0x1db   :  { %2106 = vadd.xlane.f32.xlu0 %v2105_v60  ;;  %v3240_v60 = vsel %vm2737_vm4, %v3239_v6, %v3235_v38  ;;  %v3398_v38 = vsel %vm2737_vm4, %v3397_v42, %v3393_v59 }
 0x1dc   :  { %v3245_v8 = vsel %vm2744_vm5, %v3244_v63, %v3240_v60  ;;  %v1594_v63 = vld [vmem:[%s8127_s2 + $0x2e0] sm:$0xff]  ;;  %v1624_v60 = vld [vmem:[%s8127_s2 + $0x3d0] sm:$0xff] }
 0x1dd   :  { %v3250_v52 = vsel %vm2751_vm6, %v3249_v40, %v3245_v8  ;;  %v1670_v40 = vld [vmem:[%s8127_s2 + $0x540] sm:$0xff]  ;;  %v1970_v1 = vsel %vm922_vm0, %v1594_v63, 0.0  ;;  %v2060_v33 = vsel %vm922_vm0, %v1624_v60, 0.0 }
 0x1de   :  { %v3255_v6 = vsel %vm2758_vm7, %v3254_v55, %v3250_v52  ;;  %v1657_v52 = vld [vmem:[%s8127_s2 + $0x4d8] sm:$0xff] }
 0x1df   :  { %2196 = vadd.xlane.f32.xlu0 %v2195_v0  ;;  %v2246_v0 = vsel %vm922_vm0, %v1686_v41, 0.0  ;;  %v3260_v7 = vsel %vm2765_vm8, %v3259_v24, %v3255_v6  ;;  %v8369_v6 = vld [vmem:[#allocation37_spill] sm:$0xff] }
 0x1e1   :  { %2058 = vadd.xlane.f32.xlu1 %v2057_v31  ;;  %v8366_v31 = vld [vmem:[#allocation73_spill] sm:$0xff]  ;;  %v2005_v62 = vpop.xlane.xlu0 %2004 }
 0x1e2   :  { %v2405_v27 = vmul.f32 0.0625, %v8366_v31  ;;  %v2374_v16 = vmul.f32 0.0625, %v2005_v62 }
 0x1e3   :  { %1818 = vadd.xlane.f32.xlu0 %v1817_v54  ;;  %v3264_v54 = vrot.slane %v2373_v17, %v6875_v49  ;;  %v2108_v17 = vsel %vm922_vm0, %v1640_v14, 0.0 }
 0x1e4   :  { %v3422_v22 = vrot.slane %v2405_v27, %v6875_v49  ;;  %v3269_v10 = vrot.slane %v2374_v16, %v6924_v4  ;;  %v1544_v27 = vld [vmem:[%s8127_s2 + $0x150] sm:$0xff] }
 0x1e5   :  { %2157 = vadd.xlane.f32.xlu1 %v2156_v61  ;;  %v3403_v61 = vsel %vm2744_vm5, %v3402_v43, %v3398_v38  ;;  %v3265_v41 = vsel %vm2772_vm9, %v3264_v54, %v3260_v7  ;;  %v2104_v26 = vpop.xlane.xlu0 %2103  ;;  %v2198_v43 = vsel %vm922_vm0, %v1670_v40, 0.0  ;;  %v1578_v38 = vld [vmem:[%s8127_s2 + $0x260] sm:$0xff]  ;;  %v1608_v40 = vld [vmem:[%s8127_s2 + $0x350] sm:$0xff] }
 0x1e6   :  { %v3408_v20 = vsel %vm2751_vm6, %v3407_v47, %v3403_v61  ;;  %v7175_v59 = vsel %vm2779_vm10, %v3269_v10, %v3265_v41  ;;  %v2407_v42 = vmul.f32 0.0625, %v2104_v26  ;;  %v8367_v47 = vld [vmem:[#allocation48_spill] sm:$0xff]  ;;  %v8372_v10 = vld [vmem:[#allocation27_spill] sm:$0xff]  ;;  %v1922_v26 = vsel %vm922_vm0, %v1578_v38, 0.0 }
 0x1e7   :  { %1920 = vadd.xlane.f32.xlu0 %v1919_v11  ;;  %v3413_v11 = vsel %vm2758_vm7, %v3412_v18, %v3408_v20  ;;  %v1820_v18 = vsel %vm922_vm0, %v1544_v27, 0.0  ;;  %v8370_v61 = vld [vmem:[#allocation56_spill] sm:$0xff]  ;;  %v2447_v20 = vmul.f32 0.0625, %v8372_v10  ;;  %v1687_v41 = vld [vmem:[%s8127_s2 + $0x5c8] sm:$0xff] }
 0x1e8   :  { %v3418_v29 = vsel %vm2765_vm8, %v3417_v50, %v3413_v11  ;;  %v3432_v55 = vrot.slane %v2407_v42, %v6889_v12  ;;  %v8374_v11 = vld [vmem:[#allocation60_spill] sm:$0xff]  ;;  %v1671_v38 = vld [vmem:[%s8127_s2 + $0x548] sm:$0xff] }
 0x1e9   :  { %2247 = vadd.xlane.f32.xlu1 %v2246_v0  ;;  %v3423_v34 = vsel %vm2772_vm9, %v3422_v22, %v3418_v29  ;;  %v697_v0 = vpop.permute.xlu0 %696  ;;  %v8371_v22 = vld [vmem:[#allocation54_spill] sm:$0xff]  ;;  %v2450_v42 = vmul.f32 0.0625, %v8374_v11  ;;  %v8375_v29 = vld [vmem:[#allocation65_spill] sm:$0xff]  ;;  %v2201_v10 = vsel %vm922_vm0, %v1671_v38, 0.0  ;;  %v8379_v38 = vld [vmem:[#allocation47_spill] sm:$0xff] }
 0x1ea   :  { %v3428_v15 = vsel %vm2779_vm10, %v3427_v36, %v3423_v34  ;;  %v705_v24 = vsel %vm704_vm14, %v7128_v45, %v697_v0  ;;  %v706_v31 = vsel %vm704_vm14, %v697_v0, %v699_v58  ;;  %v2448_v63 = vmul.f32 0.0625, %v8371_v22  ;;  %v1561_v0 = vld [vmem:[%s8127_s2 + $0x1d8] sm:$0xff]  ;;  %v1658_v11 = vld [vmem:[%s8127_s2 + $0x4e0] sm:$0xff] }
 0x1eb   :  { %2010 = vadd.xlane.f32.xlu0 %v2009_v13  ;;  %v7190_v8 = vsel %vm2786_vm11, %v3432_v55, %v3428_v15  ;;  %v713_v54 = vmax.f32 %v8367_v47, %v705_v24  ;;  %v714_v62 = vmax.f32 %v8368_v28, %v706_v31  ;;  %v707_v13 = vsel %vm704_vm14, %v699_v58, %v701_v9  ;;  %v8376_v15 = vld [vmem:[#allocation72_spill] sm:$0xff] }
 0x1ec   :  { %v715_v50 = vmax.f32 %v8369_v6, %v707_v13  ;;  %v2249_v34 = vsel %vm922_vm0, %v1687_v41, 0.0  ;;  %v3634_v60 = vrot.slane %v2448_v63, %v6860_v48  ;;  %v3630_v55 = vrot.slane %v2447_v20, %v6856_v35  ;;  %v8377_v20 = vld [vmem:[#allocation69_spill] sm:$0xff] }
 0x1ed   :  { %1869 = vadd.xlane.f32.xlu1 %v1868_v23  ;;  %v703_v45 = vpop.permute.xlu0 %702  ;;  %v721_v16 = vcombine.low %v713_v54, %v714_v62  ;;  %v2159_v23 = vsel %vm922_vm0, %v1657_v52, 0.0  ;;  %v2452_v58 = vmul.f32 0.0625, %v8376_v15  ;;  %v2453_v24 = vmul.f32 0.0625, %v6991_v5  ;;  %v1595_v5 = vld [vmem:[%s8127_s2 + $0x2e8] sm:$0xff] }
 0x1ee   :  { %v708_v14 = vsel %vm704_vm14, %v701_v9, %v703_v45  ;;  %vm728_vm14 = vmor %vm727_vm1, %vm726_vm15  ;;  %v8373_v9 = vld [vmem:[#allocation26_spill] sm:$0xff]  ;;  %v2012_v31 = vsel %vm922_vm0, %v1608_v40, 0.0  ;;  %v3644_v27 = vrot.slane %v2450_v42, %v6883_v32  ;;  %v1871_v54 = vsel %vm922_vm0, %v1561_v0, 0.0  ;;  %v1688_v0 = vld [vmem:[%s8127_s2 + $0x5d0] sm:$0xff] }
 0x1ef   :  { %2109 = vadd.xlane.f32.xlu0 %v2108_v17  ;;  %v716_v7 = vmax.f32 %v8370_v61, %v708_v14  ;;  %725 = vst [vmem:[#allocation2] sm:$0x77] %v721_v16  ;;  %v2449_v36 = vmul.f32 0.0625, %v8373_v9  ;;  %v3635_v28 = vsel %vm2737_vm4, %v3634_v60, %v3630_v55  ;;  %v3654_v62 = vrot.slane %v2452_v58, %v6897_v21  ;;  %v1625_v61 = vld [vmem:[%s8127_s2 + $0x3d8] sm:$0xff]  ;;  %v1579_v15 = vld [vmem:[%s8127_s2 + $0x268] sm:$0xff] }
 0x1f0   :  { %v3659_v52 = vrot.slane %v2453_v24, %v6875_v49  ;;  %v2802_v41 = vadd.s32 4294967208, %v8377_v20  ;;  %v2162_v58 = vsel %vm922_vm0, %v1658_v11, 0.0  ;;  %vm2807_vm1 = vcmask 786112   ;;  %v8384_v11 = vld [vmem:[#allocation46_spill] sm:$0xff] }
 0x1f1   :  { %1971 = vadd.xlane.f32.xlu1 %v1970_v1  ;;  %v722_v17 = vcombine.low %v715_v50, %v716_v7  ;;  %v2451_v1 = vmul.f32 0.0625, %v8375_v29  ;;  %v1973_v50 = vsel %vm922_vm0, %v1595_v5, 0.0  ;;  %v1925_v24 = vsel %vm922_vm0, %v1579_v15, 0.0  ;;  %v1672_v5 = vld [vmem:[%s8127_s2 + $0x550] sm:$0xff] }
 0x1f3   :  { %2199 = vadd.xlane.f32.xlu0 %v2198_v43  ;;  %729 = vst.msk [vmem:[#allocation2 + $0x8] sm:$0x77] %vm728_vm14, %v722_v17  ;;  %v3639_v43 = vrot.slane %v2449_v36, %v6871_v37  ;;  %v3649_v47 = vrot.slane %v2451_v1, %v6868_v19  ;;  %v2063_v17 = vsel %vm922_vm0, %v1625_v61, 0.0  ;;  %v8378_v1 = vld [vmem:[#allocation70_spill] sm:$0xff]  ;;  %vm1488_vm14 = vcmask 457728  }
 0x1f5   :  { %2061 = vadd.xlane.f32.xlu1 %v2060_v33  ;;  %v1641_v33 = vld [vmem:[%s8127_s2 + $0x458] sm:$0xff]  ;;  %v3640_v13 = vsel %vm2744_vm5, %v3639_v43, %v3635_v28  ;;  %v1596_v28 = vld [vmem:[%s8127_s2 + $0x2f0] sm:$0xff] }
 0x1f6   :  { %v3645_v16 = vsel %vm2751_vm6, %v3644_v27, %v3640_v13  ;;  %v2252_v27 = vsel %vm922_vm0, %v1688_v0, 0.0  ;;  %v1976_v13 = vsel %vm922_vm0, %v1596_v28, 0.0  ;;  %v8386_v0 = vld [vmem:[#allocation74_spill] sm:$0xff] }
 0x1f7   :  { %1821 = vadd.xlane.f32.xlu0 %v1820_v18  ;;  %v2111_v18 = vsel %vm922_vm0, %v1641_v33, 0.0  ;;  %v3650_v6 = vsel %vm2758_vm7, %v3649_v47, %v3645_v16  ;;  %v1562_v33 = vld [vmem:[%s8127_s2 + $0x1e0] sm:$0xff] }
 0x1f9   :  { %2160 = vadd.xlane.f32.xlu1 %v2159_v23  ;;  %v3655_v23 = vsel %vm2765_vm8, %v3654_v62, %v3650_v6  ;;  %v2303_v6 = vmul.f32 0.0625, %v8379_v38 }
 0x1fa   :  { %v3660_v22 = vsel %vm2772_vm9, %v3659_v52, %v3655_v23  ;;  %v1626_v52 = vld [vmem:[%s8127_s2 + $0x3e0] sm:$0xff] }
 0x1fb   :  { %1923 = vadd.xlane.f32.xlu0 %v1922_v26  ;;  %v1545_v26 = vld [vmem:[%s8127_s2 + $0x158] sm:$0xff]  ;;  %v2066_v16 = vsel %vm922_vm0, %v1626_v52, 0.0  ;;  %v2919_v15 = vrot.slane %v2303_v6, %v6856_v35  ;;  %v8390_v6 = vld [vmem:[#allocation75_spill] sm:$0xff] }
 0x1fc   :  { %v1823_v29 = vsel %vm922_vm0, %v1545_v26, 0.0 }
 0x1fd   :  { %2250 = vadd.xlane.f32.xlu1 %v2249_v34  ;;  %v7277_v34 = vsub.s32 %v2802_v41, %v8378_v1  ;;  %v1580_v41 = vld [vmem:[%s8127_s2 + $0x270] sm:$0xff] }
 0x1ff   :  { %2013 = vadd.xlane.f32.xlu0 %v2012_v31  ;;  %v2245_v45 = vpop.xlane.xlu1 %2244  ;;  %v1609_v31 = vld [vmem:[%s8127_s2 + $0x358] sm:$0xff] }
 0x200   :  { %v2454_v14 = vmul.f32 0.0625, %v2245_v45  ;;  %v2015_v47 = vsel %vm922_vm0, %v1609_v31, 0.0  ;;  %v2204_v45 = vsel %vm922_vm0, %v1672_v5, 0.0 }
 0x201   :  { %1872 = vadd.xlane.f32.xlu1 %v1871_v54  ;;  %v1642_v54 = vld [vmem:[%s8127_s2 + $0x460] sm:$0xff] }
 0x202   :  { %v3664_v7 = vrot.slane %v2454_v14, %v6924_v4  ;;  %v2114_v62 = vsel %vm922_vm0, %v1642_v54, 0.0  ;;  %v1659_v14 = vld [vmem:[%s8127_s2 + $0x4e8] sm:$0xff]  ;;  %v2436_v54 = vmul.f32 0.0625, %v7018_v3 }
 0x203   :  { %2112 = vadd.xlane.f32.xlu0 %v2111_v18  ;;  %v1867_v63 = vpop.xlane.xlu1 %1866  ;;  %v1546_v18 = vld [vmem:[%s8127_s2 + $0x160] sm:$0xff]  ;;  %v1563_v3 = vld [vmem:[%s8127_s2 + $0x1e8] sm:$0xff] }
 0x204   :  { %v7265_v9 = vsel %vm2779_vm10, %v3664_v7, %v3660_v22  ;;  %v2328_v36 = vmul.f32 0.0625, %v1867_v63  ;;  %v1826_v61 = vsel %vm922_vm0, %v1546_v18, 0.0  ;;  %v8381_v7 = vld [vmem:[#allocation21_spill] sm:$0xff]  ;;  %v8389_v18 = vld [vmem:[#allocation68_spill] sm:$0xff] }
 0x205   :  { %1974 = vadd.xlane.f32.xlu1 %v1973_v50  ;;  %v8380_v50 = vld [vmem:[#allocation52_spill] sm:$0xff]  ;;  %v2431_v22 = vmul.f32 0.0625, %v8381_v7  ;;  %v8382_v63 = vld [vmem:[#allocation45_spill] sm:$0xff] }
 0x206   :  { %v3042_v42 = vrot.slane %v2328_v36, %v6930_v44  ;;  %v2304_v23 = vmul.f32 0.0625, %v8380_v50  ;;  %v8383_v36 = vld [vmem:[#allocation62_spill] sm:$0xff]  ;;  %v2309_v50 = vmul.f32 0.0625, %v8390_v6 }
 0x207   :  { %2202 = vadd.xlane.f32.xlu0 %v2201_v10  ;;  %v1969_v40 = vpop.xlane.xlu1 %1968  ;;  %v2432_v10 = vmul.f32 0.0625, %v8382_v63  ;;  %v2433_v26 = vmul.f32 0.0625, %v8383_v36  ;;  %v3551_v31 = vrot.slane %v2431_v22, %v6856_v35  ;;  %v3575_v22 = vrot.slane %v2436_v54, %v6897_v21 }
 0x208   :  { %v7281_v60 = vsel %vm2793_vm12, %v3042_v42, %v7031_v51  ;;  %v2362_v55 = vmul.f32 0.0625, %v1969_v40  ;;  %v2305_v42 = vmul.f32 0.0625, %v8384_v11  ;;  %v8385_v40 = vld [vmem:[#allocation67_spill] sm:$0xff]  ;;  %v2310_v63 = vmul.f32 0.0625, %v7037_v39  ;;  %v1597_v39 = vld [vmem:[%s8127_s2 + $0x2f8] sm:$0xff] }
 0x209   :  { %2064 = vadd.xlane.f32.xlu1 %v2063_v17  ;;  %v2165_v17 = vsel %vm922_vm0, %v1659_v14, 0.0  ;;  %v3560_v28 = vrot.slane %v2433_v26, %v6871_v37  ;;  %v1979_v54 = vsel %vm922_vm0, %v1597_v39, 0.0 }
 0x20a   :  { %v3210_v43 = vrot.slane %v2362_v55, %v7277_v34  ;;  %v1689_v55 = vld [vmem:[%s8127_s2 + $0x5d8] sm:$0xff]  ;;  %v2928_v52 = vrot.slane %v2305_v42, %v6871_v37 }
 0x20b   :  { %1824 = vadd.xlane.f32.xlu0 %v1823_v29  ;;  %v2434_v29 = vmul.f32 0.0625, %v8385_v40 }
 0x20c   :  { %v7294_v51 = vsel %vm2807_vm1, %v3210_v43, %v7050_v57  ;;  %v1874_v57 = vsel %vm922_vm0, %v1562_v33, 0.0  ;;  %v2435_v43 = vmul.f32 0.0625, %v8386_v0  ;;  %v8387_v33 = vld [vmem:[#allocation58_spill] sm:$0xff] }
 0x20d   :  { %2163 = vadd.xlane.f32.xlu1 %v2162_v58  ;;  %v2923_v58 = vrot.slane %v2304_v23, %v6860_v48 }
 0x20e   :  { %v3570_v38 = vrot.slane %v2435_v43, %v6868_v19 }
 0x20f   :  { %1926 = vadd.xlane.f32.xlu0 %v1925_v24  ;;  %v1928_v24 = vsel %vm922_vm0, %v1580_v41, 0.0  ;;  %v2924_v14 = vsel %vm2737_vm4, %v2923_v58, %v2919_v15  ;;  %v1643_v41 = vld [vmem:[%s8127_s2 + $0x468] sm:$0xff]  ;;  %v2948_v15 = vrot.slane %v2309_v50, %v6875_v49 }
 0x210   :  { %v2929_v42 = vsel %vm2744_vm5, %v2928_v52, %v2924_v14  ;;  %v2117_v0 = vsel %vm922_vm0, %v1643_v41, 0.0  ;;  %v1547_v14 = vld [vmem:[%s8127_s2 + $0x168] sm:$0xff] }
 0x211   :  { %2253 = vadd.xlane.f32.xlu1 %v2252_v27  ;;  %v3555_v27 = vrot.slane %v2432_v10, %v6860_v48 }
 0x213   :  { %2016 = vadd.xlane.f32.xlu0 %v2015_v47  ;;  %v2306_v47 = vmul.f32 0.0625, %v8387_v33  ;;  %v1673_v33 = vld [vmem:[%s8127_s2 + $0x558] sm:$0xff] }
 0x215   :  { %1875 = vadd.xlane.f32.xlu1 %v1874_v57  ;;  %v1610_v57 = vld [vmem:[%s8127_s2 + $0x360] sm:$0xff]  ;;  %v2933_v7 = vrot.slane %v2306_v47, %v6883_v32 }
 0x216   :  { %v2018_v23 = vsel %vm922_vm0, %v1610_v57, 0.0 }
 0x217   :  { %2115 = vadd.xlane.f32.xlu0 %v2114_v62  ;;  %v8388_v62 = vld [vmem:[#allocation63_spill] sm:$0xff]  ;;  %v2934_v43 = vsel %vm2751_vm6, %v2933_v7, %v2929_v42  ;;  %v1829_v7 = vsel %vm922_vm0, %v1547_v14, 0.0 }
 0x218   :  { %v2307_v5 = vmul.f32 0.0625, %v8388_v62 }
 0x219   :  { %1977 = vadd.xlane.f32.xlu1 %v1976_v13  ;;  %v2255_v13 = vsel %vm922_vm0, %v1689_v55, 0.0 }
 0x21a   :  { %v2938_v26 = vrot.slane %v2307_v5, %v6868_v19  ;;  %v1627_v5 = vld [vmem:[%s8127_s2 + $0x3e8] sm:$0xff] }
 0x21b   :  { %2205 = vadd.xlane.f32.xlu0 %v2204_v45  ;;  %v3565_v45 = vrot.slane %v2434_v29, %v6883_v32 }
 0x21c   :  { %v2939_v47 = vsel %vm2758_vm7, %v2938_v26, %v2934_v43 }
 0x21d   :  { %2067 = vadd.xlane.f32.xlu1 %v2066_v16  ;;  %v2308_v16 = vmul.f32 0.0625, %v8389_v18  ;;  %v2207_v18 = vsel %vm922_vm0, %v1673_v33, 0.0 }
 0x21e   :  { %v2194_v10 = vpop.xlane.xlu0 %2193 }
 0x21f   :  { %1827 = vadd.xlane.f32.xlu0 %v1826_v61  ;;  %v3556_v61 = vsel %vm2737_vm4, %v3555_v27, %v3551_v31  ;;  %v2437_v11 = vmul.f32 0.0625, %v2194_v10  ;;  %v2943_v29 = vrot.slane %v2308_v16, %v6897_v21  ;;  %v2953_v31 = vrot.slane %v2310_v63, %v6924_v4  ;;  %v1581_v10 = vld [vmem:[%s8127_s2 + $0x278] sm:$0xff] }
 0x220   :  { %v3561_v36 = vsel %vm2744_vm5, %v3560_v28, %v3556_v61 }
 0x221   :  { %2166 = vadd.xlane.f32.xlu1 %v2165_v17  ;;  %v1877_v17 = vsel %vm922_vm0, %v1563_v3, 0.0  ;;  %v3566_v40 = vsel %vm2751_vm6, %v3565_v45, %v3561_v36  ;;  %v3580_v58 = vrot.slane %v2437_v11, %v6875_v49  ;;  %v2944_v62 = vsel %vm2765_vm8, %v2943_v29, %v2939_v47  ;;  %v1690_v11 = vld [vmem:[%s8127_s2 + $0x5e0] sm:$0xff]  ;;  %v1565_v47 = vld [vmem:[%s8127_s2 + $0x1f8] sm:$0xff] }
 0x222   :  { %v3571_v55 = vsel %vm2758_vm7, %v3570_v38, %v3566_v40  ;;  %v1816_v27 = vpop.xlane.xlu0 %1815  ;;  %v2949_v52 = vsel %vm2772_vm9, %v2948_v15, %v2944_v62  ;;  %v2069_v38 = vsel %vm922_vm0, %v1627_v5, 0.0  ;;  %v1931_v29 = vsel %vm922_vm0, %v1581_v10, 0.0  ;;  %v1564_v15 = vld [vmem:[%s8127_s2 + $0x1f0] sm:$0xff]  ;;  %v1629_v5 = vld [vmem:[%s8127_s2 + $0x3f8] sm:$0xff] }
 0x223   :  { %1929 = vadd.xlane.f32.xlu0 %v1928_v24  ;;  %v3576_v24 = vsel %vm2765_vm8, %v3575_v22, %v3571_v55  ;;  %v2311_v28 = vmul.f32 0.0625, %v1816_v27  ;;  %v2954_v16 = vsel %vm2779_vm10, %v2953_v31, %v2949_v52  ;;  %v2258_v55 = vsel %vm922_vm0, %v1690_v11, 0.0  ;;  %v1644_v27 = vld [vmem:[%s8127_s2 + $0x470] sm:$0xff] }
 0x224   :  { %v7395_v57 = vsel %vm2772_vm9, %v3580_v58, %v3576_v24  ;;  %v1880_v58 = vsel %vm922_vm0, %v1564_v15, 0.0  ;;  %v1691_v24 = vld [vmem:[%s8127_s2 + $0x5e8] sm:$0xff]  ;;  %v1883_v62 = vsel %vm922_vm0, %v1565_v47, 0.0  ;;  %v1548_v52 = vld [vmem:[%s8127_s2 + $0x170] sm:$0xff]  ;;  %v2463_v15 = vld [vmem:[%s8129_s4] sm:$0xff] }
 0x225   :  { %2256 = vadd.xlane.f32.xlu1 %v2255_v13  ;;  %v2958_v45 = vrot.slane %v2311_v28, %v6889_v12  ;;  %v2261_v33 = vsel %vm922_vm0, %v1691_v24, 0.0  ;;  %v1674_v28 = vld [vmem:[%s8127_s2 + $0x560] sm:$0xff]  ;;  %v2465_v24 = vld [vmem:[%s8129_s4 + $0x10] sm:$0xff] }
 0x226   :  { %v1918_v3 = vpop.xlane.xlu0 %1917 }
 0x227   :  { %2019 = vadd.xlane.f32.xlu0 %v2018_v23  ;;  %v7410_v6 = vsel %vm2786_vm11, %v2958_v45, %v2954_v16  ;;  %v2345_v50 = vmul.f32 0.0625, %v1918_v3  ;;  %v1660_v23 = vld [vmem:[%s8127_s2 + $0x4f0] sm:$0xff]  ;;  %v2075_v45 = vsel %vm922_vm0, %v1629_v5, 0.0  ;;  %v1832_v16 = vsel %vm922_vm0, %v1548_v52, 0.0  ;;  %v2467_v5 = vld [vmem:[%s8129_s4 + $0x20] sm:$0xff] }
 0x228   :  { %v2168_v41 = vsel %vm922_vm0, %v1660_v23, 0.0  ;;  %v1612_v3 = vld [vmem:[%s8127_s2 + $0x370] sm:$0xff]  ;;  %v1645_v23 = vld [vmem:[%s8127_s2 + $0x478] sm:$0xff] }
 0x229   :  { %1878 = vadd.xlane.f32.xlu1 %v1877_v17  ;;  %v3126_v61 = vrot.slane %v2345_v50, %v6903_v56  ;;  %v2024_v50 = vsel %vm922_vm0, %v1612_v3, 0.0 }
 0x22a   :  { %v1485_v63 = vpop.permute.xlu0 %1484 }
 0x22b   :  { %v1483_v13 = vpop.permute.xlu1 %1482  ;;  %2118 = vadd.xlane.f32.xlu0 %v2117_v0  ;;  %v7423_v36 = vsel %vm2800_vm13, %v3126_v61, %v7072_v25  ;;  %v1628_v25 = vld [vmem:[%s8127_s2 + $0x3f0] sm:$0xff]  ;;  %v1611_v0 = vld [vmem:[%s8127_s2 + $0x368] sm:$0xff] }
 0x22c   :  { %v1489_v26 = vsel %vm1488_vm14, %v1483_v13, %v1485_v63  ;;  %v2021_v31 = vsel %vm922_vm0, %v1611_v0, 0.0  ;;  %v2210_v13 = vsel %vm922_vm0, %v1674_v28, 0.0  ;;  %v2482_v0 = vld [vmem:[%s8129_s4 + $0x98] sm:$0xff]  ;;  %v2484_v28 = vld [vmem:[%s8129_s4 + $0xa8] sm:$0xff] }
 0x22d   :  { %1980 = vadd.xlane.f32.xlu1 %v1979_v54  ;;  %v1493_v42 = vmax.f32 %v7079_v30, %v1489_v26  ;;  %v2072_v30 = vsel %vm922_vm0, %v1628_v25, 0.0  ;;  %v2120_v54 = vsel %vm922_vm0, %v1644_v27, 0.0  ;;  %v2480_v25 = vld [vmem:[%s8129_s4 + $0x88] sm:$0xff] }
 0x22f   :  { %2208 = vadd.xlane.f32.xlu0 %v2207_v18  ;;  %v1487_v22 = vpop.permute.xlu1 %1486  ;;  %v1675_v18 = vld [vmem:[%s8127_s2 + $0x568] sm:$0xff] }
 0x230   :  { %v1490_v17 = vsel %vm1488_vm14, %v1485_v63, %v1487_v22  ;;  %v2213_v14 = vsel %vm922_vm0, %v1675_v18, 0.0  ;;  %v2123_v22 = vsel %vm922_vm0, %v1645_v23, 0.0  ;;  %v1692_v63 = vld [vmem:[%s8127_s2 + $0x5f0] sm:$0xff] }
 0x231   :  { %2070 = vadd.xlane.f32.xlu1 %v2069_v38  ;;  %v1494_v40 = vmax.f32 %v7081_v53, %v1490_v17  ;;  %v1661_v53 = vld [vmem:[%s8127_s2 + $0x4f8] sm:$0xff]  ;;  %v2264_v26 = vsel %vm922_vm0, %v1692_v63, 0.0  ;;  %v2469_v23 = vld [vmem:[%s8129_s4 + $0x30] sm:$0xff] }
 0x232   :  { %v2171_v43 = vsel %vm922_vm0, %v1661_v53, 0.0  ;;  %v1549_v38 = vld [vmem:[%s8127_s2 + $0x178] sm:$0xff] }
 0x233   :  { %1830 = vadd.xlane.f32.xlu0 %v1829_v7  ;;  %v1497_v39 = vcombine.low %v1493_v42, %v1494_v40  ;;  %v1835_v61 = vsel %vm922_vm0, %v1549_v38, 0.0  ;;  %v1676_v7 = vld [vmem:[%s8127_s2 + $0x570] sm:$0xff]  ;;  %v1613_v17 = vld [vmem:[%s8127_s2 + $0x378] sm:$0xff] }
 0x234   :  { %v2216_v10 = vsel %vm922_vm0, %v1676_v7, 0.0  ;;  %v2027_v42 = vsel %vm922_vm0, %v1613_v17, 0.0  ;;  %v1693_v40 = vld [vmem:[%s8127_s2 + $0x5f8] sm:$0xff] }
 0x235   :  { %2169 = vadd.xlane.f32.xlu1 %v2168_v41  ;;  %1501 = vst.msk [vmem:[#allocation4] sm:$0x77] %vm1500_vm2, %v1497_v39  ;;  %v1677_v41 = vld [vmem:[%s8127_s2 + $0x578] sm:$0xff]  ;;  %v2267_v39 = vsel %vm922_vm0, %v1693_v40, 0.0  ;;  %vm2821_vm2 = vcmask 917312  }
 0x236   :  { %v2219_v11 = vsel %vm922_vm0, %v1677_v41, 0.0  ;;  %v2486_v38 = vld [vmem:[%s8129_s4 + $0xb8] sm:$0xff]  ;;  %v2487_v41 = vld [vmem:[%s8129_s4 + $0xc0] sm:$0xff]  ;;  %vm2814_vm0 = vcmask 851712  }
 0x237   :  { %1932 = vadd.xlane.f32.xlu0 %v1931_v29  ;;  %v2479_v29 = vld [vmem:[%s8129_s4 + $0x80] sm:$0xff] }
 0x239   :  { %2259 = vadd.xlane.f32.xlu1 %v2258_v55  ;;  %v4050_v55 = vpack.c.bf16 %v2480_v25, %v2479_v29 }
 0x23b   :  { %2073 = vadd.xlane.f32.xlu0 %v2072_v30  ;;  %v2464_v30 = vld [vmem:[%s8129_s4 + $0x8] sm:$0xff]  ;;  %4051 = vmatprep.subr.bf16.mxu0 %v4050_v55  ;;  %v2490_v55 = vld [vmem:[%s8129_s4 + $0xd8] sm:$0xff] }
 0x23c   :  { %v4052_v53 = vpack.c.bf16 %v2464_v30, %v2463_v15  ;;  %v2473_v15 = vld [vmem:[%s8129_s4 + $0x50] sm:$0xff] }
 0x23d   :  { %1881 = vadd.xlane.f32.xlu1 %v1880_v58  ;;  %v2481_v58 = vld [vmem:[%s8129_s4 + $0x90] sm:$0xff] }
 0x23e   :  { %4053 = vmatpush3.bf16.msra.mxu0 %v4052_v53 }
 0x23f   :  { %2172 = vadd.xlane.f32.xlu0 %v2171_v43  ;;  %v4054_v43 = vpack.c.bf16 %v2482_v0, %v2481_v58  ;;  %v2474_v58 = vld [vmem:[%s8129_s4 + $0x58] sm:$0xff]  ;;  %v2491_v0 = vld [vmem:[%s8129_s4 + $0xe0] sm:$0xff] }
 0x241   :  { %2022 = vadd.xlane.f32.xlu1 %v2021_v31  ;;  %v2466_v31 = vld [vmem:[%s8129_s4 + $0x18] sm:$0xff]  ;;  %4055 = vmatprep.subr.bf16.mxu0 %v4054_v43  ;;  %v2492_v43 = vld [vmem:[%s8129_s4 + $0xe8] sm:$0xff] }
 0x242   :  { %v4056_v27 = vpack.c.bf16 %v2466_v31, %v2465_v24 }
 0x243   :  { %2262 = vadd.xlane.f32.xlu0 %v2261_v33 }
 0x244   :  { %4057 = vmatpush3.bf16.msra.mxu0 %v4056_v27 }
 0x245   :  { %2121 = vadd.xlane.f32.xlu1 %v2120_v54  ;;  %v2483_v54 = vld [vmem:[%s8129_s4 + $0xa0] sm:$0xff] }
 0x247   :  { %1884 = vadd.xlane.f32.xlu0 %v1883_v62  ;;  %v4058_v62 = vpack.c.bf16 %v2484_v28, %v2483_v54  ;;  %v2511_v54 = vld [vmem:[%s8129_s4 + $0x180] sm:$0xff] }
 0x249   :  { %2211 = vadd.xlane.f32.xlu1 %v2210_v13  ;;  %v2468_v13 = vld [vmem:[%s8129_s4 + $0x28] sm:$0xff]  ;;  %4059 = vmatprep.subr.bf16.mxu0 %v4058_v62  ;;  %v4074_v62 = vpack.c.bf16 %v2492_v43, %v2491_v0 }
 0x24a   :  { %v2500_v0 = vld [vmem:[%s8129_s4 + $0x128] sm:$0xff] }
 0x24b   :  { %2076 = vadd.xlane.f32.xlu0 %v2075_v45  ;;  %v4060_v45 = vpack.c.bf16 %v2468_v13, %v2467_v5  ;;  %v2476_v5 = vld [vmem:[%s8129_s4 + $0x68] sm:$0xff]  ;;  %v2493_v13 = vld [vmem:[%s8129_s4 + $0xf0] sm:$0xff] }
 0x24d   :  { %1833 = vadd.xlane.f32.xlu1 %v1832_v16  ;;  %4061 = vmatpush3.bf16.msra.mxu0 %v4060_v45 }
 0x24f   :  { %2214 = vadd.xlane.f32.xlu0 %v2213_v14  ;;  %v2485_v14 = vld [vmem:[%s8129_s4 + $0xb0] sm:$0xff] }
 0x251   :  { %2025 = vadd.xlane.f32.xlu1 %v2024_v50  ;;  %v4062_v50 = vpack.c.bf16 %v2486_v38, %v2485_v14  ;;  %v2494_v14 = vld [vmem:[%s8129_s4 + $0xf8] sm:$0xff]  ;;  %v2495_v38 = vld [vmem:[%s8129_s4 + $0x100] sm:$0xff] }
 0x253   :  { %1836 = vadd.xlane.f32.xlu0 %v1835_v61  ;;  %4063 = vmatprep.subr.bf16.mxu0 %v4062_v50  ;;  %v2496_v50 = vld [vmem:[%s8129_s4 + $0x108] sm:$0xff] }
 0x255   :  { %2124 = vadd.xlane.f32.xlu1 %v2123_v22 }
 0x257   :  { %2217 = vadd.xlane.f32.xlu0 %v2216_v10 }
 0x259   :  { %2265 = vadd.xlane.f32.xlu1 %v2264_v26  ;;  %v2488_v26 = vld [vmem:[%s8129_s4 + $0xc8] sm:$0xff] }
 0x25b   :  { %2220 = vadd.xlane.f32.xlu0 %v2219_v11  ;;  %v4066_v11 = vpack.c.bf16 %v2488_v26, %v2487_v41  ;;  %v2497_v26 = vld [vmem:[%s8129_s4 + $0x110] sm:$0xff] }
 0x25d   :  { %2028 = vadd.xlane.f32.xlu1 %v2027_v42  ;;  %v2471_v42 = vld [vmem:[%s8129_s4 + $0x40] sm:$0xff] }
 0x261   :  { %2268 = vadd.xlane.f32.xlu1 %v2267_v39  ;;  %v2489_v39 = vld [vmem:[%s8129_s4 + $0xd0] sm:$0xff] }
 0x262   :  { %v4070_v53 = vpack.c.bf16 %v2490_v55, %v2489_v39  ;;  %v2516_v39 = vld [vmem:[%s8129_s4 + $0x1a8] sm:$0xff] }
 0x264   :  { %v2008_v33 = vpop.xlane.xlu0 %2007 }
 0x265   :  { %v2375_v47 = vmul.f32 0.0625, %v2008_v33  ;;  %v4072_v33 = vpack.c.bf16 %v2474_v58, %v2473_v15  ;;  %v2499_v58 = vld [vmem:[%s8129_s4 + $0x120] sm:$0xff] }
 0x267   :  { %v3274_v52 = vrot.slane %v2375_v47, %v6889_v12  ;;  %v2475_v47 = vld [vmem:[%s8129_s4 + $0x60] sm:$0xff] }
 0x268   :  { %v2107_v18 = vpop.xlane.xlu0 %2106  ;;  %v4076_v41 = vpack.c.bf16 %v2476_v5, %v2475_v47  ;;  %v4092_v5 = vpack.c.bf16 %v2500_v0, %v2499_v58  ;;  %v2505_v0 = vld [vmem:[%s8129_s4 + $0x150] sm:$0xff] }
 0x269   :  { %v7548_v16 = vsel %vm2786_vm11, %v3274_v52, %v7175_v59  ;;  %v2408_v3 = vmul.f32 0.0625, %v2107_v18  ;;  %v2470_v59 = vld [vmem:[%s8129_s4 + $0x38] sm:$0xff] }
 0x26a   :  { %v4064_v7 = vpack.c.bf16 %v2470_v59, %v2469_v23  ;;  %v4084_v59 = vpack.c.bf16 %v2496_v50, %v2495_v38  ;;  %v2519_v38 = vld [vmem:[%s8129_s4 + $0x1c0] sm:$0xff] }
 0x26b   :  { %v3437_v61 = vrot.slane %v2408_v3, %v6930_v44 }
 0x26c   :  { %v2197_v22 = vpop.xlane.xlu0 %2196  ;;  %4065 = vmatpush3.bf16.msra.mxu0 %v4064_v7 }
 0x26d   :  { %v7565_v63 = vsel %vm2793_vm12, %v3437_v61, %v7190_v8  ;;  %v2438_v10 = vmul.f32 0.0625, %v2197_v22  ;;  %v2472_v8 = vld [vmem:[%s8129_s4 + $0x48] sm:$0xff]  ;;  %4067 = vmatprep.subr.bf16.mxu0 %v4066_v11  ;;  %v2514_v61 = vld [vmem:[%s8129_s4 + $0x198] sm:$0xff]  ;;  %v2515_v11 = vld [vmem:[%s8129_s4 + $0x1a0] sm:$0xff] }
 0x26e   :  { %v2059_v17 = vpop.xlane.xlu1 %2058  ;;  %v4068_v25 = vpack.c.bf16 %v2472_v8, %v2471_v42  ;;  %v2477_v8 = vld [vmem:[%s8129_s4 + $0x70] sm:$0xff] }
 0x26f   :  { %v2392_v40 = vmul.f32 0.0625, %v2059_v17  ;;  %v3585_v29 = vrot.slane %v2438_v10, %v6924_v4  ;;  %v2498_v17 = vld [vmem:[%s8129_s4 + $0x118] sm:$0xff] }
 0x270   :  { %v1819_v30 = vpop.xlane.xlu0 %1818  ;;  %4069 = vmatpush3.bf16.msra.mxu0 %v4068_v25  ;;  %v4088_v25 = vpack.c.bf16 %v2498_v17, %v2497_v26 }
 0x271   :  { %v3358_v24 = vrot.slane %v2392_v40, %v6930_v44  ;;  %v7601_v31 = vsel %vm2779_vm10, %v3585_v29, %v7395_v57  ;;  %v2312_v27 = vmul.f32 0.0625, %v1819_v30  ;;  %4071 = vmatprep.subr.bf16.mxu0 %v4070_v53  ;;  %v2512_v57 = vld [vmem:[%s8129_s4 + $0x188] sm:$0xff]  ;;  %v2478_v40 = vld [vmem:[%s8129_s4 + $0x78] sm:$0xff]  ;;  %v4090_v53 = vpack.c.bf16 %v2516_v39, %v2515_v11 }
 0x272   :  { %v2158_v28 = vpop.xlane.xlu1 %2157  ;;  %v4082_v3 = vpack.c.bf16 %v2512_v57, %v2511_v54  ;;  %v4080_v54 = vpack.c.bf16 %v2478_v40, %v2477_v8  ;;  %v2504_v11 = vld [vmem:[%s8129_s4 + $0x148] sm:$0xff] }
 0x273   :  { %v7620_v52 = vsel %vm2793_vm12, %v3358_v24, %v7065_v46  ;;  %v2425_v45 = vmul.f32 0.0625, %v2158_v28  ;;  %v2963_v18 = vrot.slane %v2312_v27, %v6930_v44  ;;  %v2513_v46 = vld [vmem:[%s8129_s4 + $0x190] sm:$0xff]  ;;  %v2809_v28 = vadd.s32 4294967200, %v8377_v20 }
 0x274   :  { %v1921_v23 = vpop.xlane.xlu0 %1920  ;;  %4073 = vmatpush3.bf16.msra.mxu0 %v4072_v33  ;;  %4083 = vmatprep.subr.bf16.mxu1 %v4082_v3  ;;  %v4086_v29 = vpack.c.bf16 %v2514_v61, %v2513_v46  ;;  %v2517_v24 = vld [vmem:[%s8129_s4 + $0x1b0] sm:$0xff]  ;;  %v2502_v3 = vld [vmem:[%s8129_s4 + $0x138] sm:$0xff] }
 0x275   :  { %v3521_v7 = vrot.slane %v2425_v45, %v6903_v56  ;;  %v7641_v22 = vsel %vm2793_vm12, %v2963_v18, %v7410_v6  ;;  %v2346_v10 = vmul.f32 0.0625, %v1921_v23  ;;  %4075 = vmatprep.subr.bf16.mxu0 %v4074_v62  ;;  %v4078_v6 = vpack.c.bf16 %v2494_v14, %v2493_v13  ;;  %4085 = vmatpush3.bf16.msra.mxu1 %v4084_v59 }
 0x276   :  { %v2248_v42 = vpop.xlane.xlu1 %2247  ;;  %4087 = vmatprep.subr.bf16.mxu1 %v4086_v29  ;;  %v7707_v46 = vsub.s32 %v2809_v28, %v8378_v1 }
 0x277   :  { %v7663_v55 = vsel %vm2800_vm13, %v3521_v7, %v7077_v2  ;;  %v2455_v15 = vmul.f32 0.0625, %v2248_v42  ;;  %v3131_v30 = vrot.slane %v2346_v10, %v7277_v34  ;;  %v2518_v2 = vld [vmem:[%s8129_s4 + $0x1b8] sm:$0xff] }
 0x278   :  { %v2011_v43 = vpop.xlane.xlu0 %2010  ;;  %4077 = vmatpush3.bf16.msra.mxu0 %v4076_v41  ;;  %v4094_v18 = vpack.c.bf16 %v2518_v2, %v2517_v24  ;;  %v2523_v24 = vld [vmem:[%s8129_s4 + $0x1e0] sm:$0xff] }
 0x279   :  { %v3669_v27 = vrot.slane %v2455_v15, %v6889_v12  ;;  %v7681_v33 = vsel %vm2807_vm1, %v3131_v30, %v7423_v36  ;;  %v2376_v47 = vmul.f32 0.0625, %v2011_v43  ;;  %4079 = vmatprep.subr.bf16.mxu0 %v4078_v6  ;;  %4089 = vmatpush3.bf16.msra.mxu1 %v4088_v25  ;;  %v2501_v36 = vld [vmem:[%s8129_s4 + $0x130] sm:$0xff] }
 0x27a   :  { %v1870_v62 = vpop.xlane.xlu1 %1869  ;;  %4091 = vmatprep.subr.bf16.mxu1 %v4090_v53  ;;  %v4096_v7 = vpack.c.bf16 %v2502_v3, %v2501_v36  ;;  %v2521_v6 = vld [vmem:[%s8129_s4 + $0x1d0] sm:$0xff] }
 0x27b   :  { %v7686_v57 = vsel %vm2786_vm11, %v3669_v27, %v7265_v9  ;;  %v2329_v13 = vmul.f32 0.0625, %v1870_v62  ;;  %v3279_v45 = vrot.slane %v2376_v47, %v6930_v44  ;;  %v2520_v9 = vld [vmem:[%s8129_s4 + $0x1c8] sm:$0xff]  ;;  %v2525_v3 = vld [vmem:[%s8129_s4 + $0x1f0] sm:$0xff] }
 0x27c   :  { %v2110_v14 = vpop.xlane.xlu0 %2109  ;;  %4081 = vmatpush3.bf16.msra.mxu0 %v4080_v54  ;;  %v4098_v17 = vpack.c.bf16 %v2520_v9, %v2519_v38 }
 0x27d   :  { %v3047_v50 = vrot.slane %v2329_v13, %v6903_v56  ;;  %v7704_v23 = vsel %vm2793_vm12, %v3279_v45, %v7548_v16  ;;  %v2409_v59 = vmul.f32 0.0625, %v2110_v14  ;;  %4093 = vmatpush3.bf16.msra.mxu1 %v4092_v5  ;;  %v2503_v16 = vld [vmem:[%s8129_s4 + $0x140] sm:$0xff] }
 0x27e   :  { %v1972_v61 = vpop.xlane.xlu1 %1971  ;;  %4095 = vmatprep.subr.bf16.mxu1 %v4094_v18  ;;  %v4100_v39 = vpack.c.bf16 %v2504_v11, %v2503_v16  ;;  %v2507_v18 = vld [vmem:[%s8129_s4 + $0x160] sm:$0xff] }
 0x27f   :  { %v7711_v10 = vsel %vm2800_vm13, %v3047_v50, %v7281_v60  ;;  %v2363_v41 = vmul.f32 0.0625, %v1972_v61  ;;  %v3442_v26 = vrot.slane %v2409_v59, %v6903_v56  ;;  %v2522_v60 = vld [vmem:[%s8129_s4 + $0x1d8] sm:$0xff] }
 0x280   :  { %v2200_v42 = vpop.xlane.xlu0 %2199  ;;  %v4102_v58 = vpack.c.bf16 %v2522_v60, %v2521_v6 }
 0x281   :  { %v3215_v8 = vrot.slane %v2363_v41, %v7707_v46  ;;  %v7729_v40 = vsel %vm2800_vm13, %v3442_v26, %v7565_v63  ;;  %v2439_v29 = vmul.f32 0.0625, %v2200_v42  ;;  %4097 = vmatpush3.bf16.msra.mxu1 %v4096_v7  ;;  %v2506_v63 = vld [vmem:[%s8129_s4 + $0x158] sm:$0xff] }
 0x282   :  { %v2062_v25 = vpop.xlane.xlu1 %2061  ;;  %4099 = vmatprep.subr.bf16.mxu1 %v4098_v17  ;;  %v4104_v28 = vpack.c.bf16 %v2506_v63, %v2505_v0  ;;  %v2509_v17 = vld [vmem:[%s8129_s4 + $0x170] sm:$0xff] }
 0x283   :  { %v7733_v15 = vsel %vm2814_vm0, %v3215_v8, %v7294_v51  ;;  %v2393_v30 = vmul.f32 0.0625, %v2062_v25  ;;  %v3590_v53 = vrot.slane %v2439_v29, %v6889_v12  ;;  %v2524_v51 = vld [vmem:[%s8129_s4 + $0x1e8] sm:$0xff] }
 0x284   :  { %v1822_v43 = vpop.xlane.xlu0 %1821  ;;  %v4106_v45 = vpack.c.bf16 %v2524_v51, %v2523_v24 }
 0x285   :  { %v3363_v2 = vrot.slane %v2393_v30, %v6903_v56  ;;  %v3591_v27 = vsel %vm2786_vm11, %v3590_v53, %v7601_v31  ;;  %v2313_v47 = vmul.f32 0.0625, %v1822_v43  ;;  %4101 = vmatpush3.bf16.msra.mxu1 %v4100_v39  ;;  %v2508_v31 = vld [vmem:[%s8129_s4 + $0x168] sm:$0xff] }
 0x286   :  { %v2161_v54 = vpop.xlane.xlu1 %2160  ;;  %4103 = vmatprep.subr.bf16.mxu1 %v4102_v58  ;;  %v4108_v59 = vpack.c.bf16 %v2508_v31, %v2507_v18 }
 0x287   :  { %v3364_v62 = vsel %vm2800_vm13, %v3363_v2, %v7620_v52  ;;  %v2426_v5 = vmul.f32 0.0625, %v2161_v54  ;;  %v2968_v13 = vrot.slane %v2313_v47, %v6903_v56  ;;  %v2526_v52 = vld [vmem:[%s8129_s4 + $0x1f8] sm:$0xff]  ;;  %v2816_v54 = vadd.s32 4294967192, %v8377_v20 }
 0x288   :  { %v1924_v36 = vpop.xlane.xlu0 %1923  ;;  %v4110_v26 = vpack.c.bf16 %v2526_v52, %v2525_v3 }
 0x289   :  { %v3526_v14 = vrot.slane %v2426_v5, %v7277_v34  ;;  %v2969_v38 = vsel %vm2800_vm13, %v2968_v13, %v7641_v22  ;;  %v2347_v9 = vmul.f32 0.0625, %v1924_v36  ;;  %4105 = vmatpush3.bf16.msra.mxu1 %v4104_v28  ;;  %v2510_v22 = vld [vmem:[%s8129_s4 + $0x178] sm:$0xff]  ;;  %v7807_v31 = vsub.s32 %v2816_v54, %v8378_v1  ;;  %s4195_s4 = smov [#allocation4]  }
 0x28a   :  { %v2251_v50 = vpop.xlane.xlu1 %2250  ;;  %4107 = vmatprep.subr.bf16.mxu1 %v4106_v45  ;;  %v4112_v60 = vpack.c.bf16 %v2510_v22, %v2509_v17  ;;  %s3876_s0 = sshll.u32 %s4195_s4, 4  ;;  %s3877_s0 = int_to_ptr.vmem [resolvable:$true] %s3876_s0 }
 0x28b   :  { %v7771_v61 = vsel %vm2807_vm1, %v3526_v14, %v7663_v55  ;;  %v2456_v7 = vmul.f32 0.0625, %v2251_v50  ;;  %v3136_v41 = vrot.slane %v2347_v9, %v7707_v46  ;;  %s4122_s11 = scalar_lea.vmem %s3877_s0, 128  ;;  %p4127_p1 = scmp.lt.s32.totalorder %s3877_s0, %s3877_s0 }
 0x28c   :  { %v2014_v16 = vpop.xlane.xlu0 %2013  ;;  %p4123_p0 = scmp.ne.s32.totalorder %s3877_s0, %s4122_s11  ;;  %p4128_p2 = scmp.lt.s32.totalorder %s4122_s11, %s4122_s11 }
 0x28d   :  { %v3674_v11 = vrot.slane %v2456_v7, %v6930_v44  ;;  %v3137_v55 = vsel %vm2814_vm0, %v3136_v41, %v7681_v33  ;;  %v2377_v42 = vmul.f32 0.0625, %v2014_v16  ;;  %4109 = vmatpush3.bf16.msra.mxu1 %v4108_v59  ;;  %v8391_v7 = vld [vmem:[#allocation23_spill] sm:$0xff] }
 0x28e   :  { %v1873_v6 = vpop.xlane.xlu1 %1872  ;;  %4111 = vmatprep.subr.bf16.mxu1 %v4110_v26  ;;  %v2287_v41 = vmul.f32 0.0625, %v8391_v7  ;;  %v8392_v26 = vld [vmem:[#allocation34_spill] sm:$0xff]  ;;  %p4129_p3 = por %p4128_p2, %p4127_p1 }
 0x28f   :  { %v3675_v8 = vsel %vm2793_vm12, %v3674_v11, %v7686_v57  ;;  %v2330_v29 = vmul.f32 0.0625, %v1873_v6  ;;  %v3284_v25 = vrot.slane %v2377_v42, %v6903_v56  ;;  %v2288_v17 = vmul.f32 0.0625, %v8392_v26  ;;  %v8393_v6 = vld [vmem:[#allocation31_spill] sm:$0xff] }
 0x290   :  { %v2113_v39 = vpop.xlane.xlu0 %2112  ;;  %p4130_p4 = pnand %p4129_p3, %p4123_p0 }
 0x291   :  { %v3052_v30 = vrot.slane %v2330_v29, %v7277_v34  ;;  %v3285_v53 = vsel %vm2800_vm13, %v3284_v25, %v7704_v23  ;;  %v2410_v58 = vmul.f32 0.0625, %v2113_v39  ;;  %4113 = vmatpush3.bf16.msra.mxu1 %v4112_v60  ;;  %v2289_v60 = vmul.f32 0.0625, %v8393_v6 }
 0x292   :  { %v7789_v0 = vpop.xlane.xlu1 %1974  ;;  %v2840_v25 = vrot.slane %v2287_v41, %v6856_v35  ;;  %v2844_v39 = vrot.slane %v2288_v17, %v6860_v48  ;;  %v8399_v17 = vld [vmem:[#allocation12_spill] sm:$0xff] }
 0x293   :  { %v3053_v33 = vsel %vm2807_vm1, %v3052_v30, %v7711_v10  ;;  %v3447_v63 = vrot.slane %v2410_v58, %v7277_v34  ;;  %v8394_v58 = vld [vmem:[#allocation13_spill] sm:$0xff] }
 0x294   :  { %v2203_v57 = vpop.xlane.xlu0 %2202 }
 0x295   :  { %v7796_v43 = vsel %vm2807_vm1, %v3447_v63, %v7729_v40  ;;  %v2440_v24 = vmul.f32 0.0625, %v2203_v57  ;;  %v2290_v63 = vmul.f32 0.0625, %v8394_v58  ;;  %v8401_v58 = vld [vmem:[#allocation18_spill] sm:$0xff] }
 0x296   :  { %v2065_v51 = vpop.xlane.xlu1 %2064 }
 0x297   :  { %v2394_v2 = vmul.f32 0.0625, %v2065_v51  ;;  %v3595_v47 = vrot.slane %v2440_v24, %v6930_v44  ;;  %v2849_v24 = vrot.slane %v2289_v60, %v6871_v37  ;;  %v8400_v60 = vld [vmem:[#allocation15_spill] sm:$0xff] }
 0x298   :  { %v1825_v23 = vpop.xlane.xlu0 %1824 }
 0x299   :  { %v3368_v28 = vrot.slane %v2394_v2, %v7277_v34  ;;  %v3596_v5 = vsel %vm2793_vm12, %v3595_v47, %v3591_v27  ;;  %v2314_v10 = vmul.f32 0.0625, %v1825_v23  ;;  %v2845_v2 = vsel %vm2737_vm4, %v2844_v39, %v2840_v25 }
 0x29a   :  { %v7802_v13 = vpop.xlane.xlu1 %2163 }
 0x29b   :  { %v3369_v45 = vsel %vm2807_vm1, %v3368_v28, %v3364_v62  ;;  %v2973_v40 = vrot.slane %v2314_v10, %v7277_v34  ;;  %v8396_v10 = vld [vmem:[#allocation28_spill] sm:$0xff] }
 0x29c   :  { %v1927_v18 = vpop.xlane.xlu0 %1926 }
 0x29d   :  { %v7810_v36 = vsel %vm2807_vm1, %v2973_v40, %v2969_v38  ;;  %v2348_v3 = vmul.f32 0.0625, %v1927_v18  ;;  %v2272_v40 = vmul.f32 0.0625, %v8396_v10  ;;  %v2854_v18 = vrot.slane %v2290_v63, %v6883_v32  ;;  %v8404_v10 = vld [vmem:[#allocation19_spill] sm:$0xff] }
 0x29e   :  { %v2254_v52 = vpop.xlane.xlu1 %2253  ;;  %v2274_v63 = vmul.f32 0.0625, %v8401_v58 }
 0x29f   :  { %v2457_v14 = vmul.f32 0.0625, %v2254_v52  ;;  %v3141_v9 = vrot.slane %v2348_v3, %v7807_v31  ;;  %v8397_v3 = vld [vmem:[#allocation10_spill] sm:$0xff]  ;;  %v2736_v6 = vrot.slane %v2272_v40, %v6860_v48  ;;  %v2295_v40 = vmul.f32 0.0625, %v8404_v10 }
 0x2a0   :  { %v2017_v27 = vpop.xlane.xlu0 %2016  ;;  %v2271_v52 = vmul.f32 0.0625, %v8397_v3  ;;  %v2830_v10 = vadd.s32 4294967176, %v8377_v20 }
 0x2a1   :  { %v3679_v50 = vrot.slane %v2457_v14, %v6903_v56  ;;  %v7815_v62 = vsel %vm2821_vm2, %v3141_v9, %v3137_v55  ;;  %v2378_v59 = vmul.f32 0.0625, %v2017_v27  ;;  %v2850_v14 = vsel %vm2744_vm5, %v2849_v24, %v2845_v2  ;;  %v8402_v24 = vld [vmem:[#allocation40_spill] sm:$0xff] }
 0x2a2   :  { %v1876_v22 = vpop.xlane.xlu1 %1875 }
 0x2a3   :  { %v7820_v38 = vsel %vm2800_vm13, %v3679_v50, %v3675_v8  ;;  %v2331_v16 = vmul.f32 0.0625, %v1876_v22  ;;  %v3289_v11 = vrot.slane %v2378_v59, %v7277_v34  ;;  %v8398_v50 = vld [vmem:[#allocation25_spill] sm:$0xff]  ;;  %v2273_v22 = vmul.f32 0.0625, %v8399_v17 }
 0x2a4   :  { %v7823_v42 = vpop.xlane.xlu0 %2115  ;;  %v2292_v59 = vmul.f32 0.0625, %v8398_v50 }
 0x2a5   :  { %v3057_v29 = vrot.slane %v2331_v16, %v7707_v46  ;;  %v7828_v55 = vsel %vm2807_vm1, %v3289_v11, %v3285_v53  ;;  %v8395_v53 = vld [vmem:[#allocation33_spill] sm:$0xff]  ;;  %v2855_v16 = vsel %vm2751_vm6, %v2854_v18, %v2850_v14 }
 0x2a6   :  { %v7832_v30 = vpop.xlane.xlu1 %1977  ;;  %v2291_v23 = vmul.f32 0.0625, %v8395_v53  ;;  %v2864_v25 = vrot.slane %v2292_v59, %v6897_v21  ;;  %v8406_v59 = vld [vmem:[#allocation43_spill] sm:$0xff] }
 0x2a7   :  { %v7835_v8 = vsel %vm2814_vm0, %v3057_v29, %v3053_v33  ;;  %v2293_v29 = vmul.f32 0.0625, %v8400_v60 }
 0x2a8   :  { %v2206_v57 = vpop.xlane.xlu0 %2205  ;;  %v2859_v41 = vrot.slane %v2291_v23, %v6868_v19 }
 0x2a9   :  { %v2441_v51 = vmul.f32 0.0625, %v2206_v57  ;;  %v2743_v57 = vrot.slane %v2273_v22, %v6871_v37 }
 0x2aa   :  { %v2068_v47 = vpop.xlane.xlu1 %2067 }
 0x2ab   :  { %v2395_v54 = vmul.f32 0.0625, %v2068_v47  ;;  %v3600_v28 = vrot.slane %v2441_v51, %v6903_v56  ;;  %v2294_v51 = vmul.f32 0.0625, %v8402_v24  ;;  %v8403_v47 = vld [vmem:[#allocation9_spill] sm:$0xff] }
 0x2ac   :  { %v7844_v33 = vpop.xlane.xlu0 %1827  ;;  %v2275_v53 = vmul.f32 0.0625, %v8403_v47 }
 0x2ad   :  { %v3373_v9 = vrot.slane %v2395_v54, %v7707_v46  ;;  %v7850_v27 = vsel %vm2800_vm13, %v3600_v28, %v3596_v5  ;;  %v2731_v5 = vrot.slane %v2271_v52, %v6856_v35  ;;  %v2869_v35 = vrot.slane %v2293_v29, %v6875_v49  ;;  %v8405_v52 = vld [vmem:[#allocation14_spill] sm:$0xff] }
 0x2ae   :  { %v7853_v7 = vpop.xlane.xlu1 %2166  ;;  %v2750_v28 = vrot.slane %v2274_v63, %v6883_v32  ;;  %v2874_v18 = vrot.slane %v2294_v51, %v6924_v4  ;;  %v2276_v14 = vmul.f32 0.0625, %v8405_v52  ;;  %v2757_v50 = vrot.slane %v2275_v53, %v6868_v19  ;;  %v8409_v51 = vld [vmem:[#allocation38_spill] sm:$0xff]  ;;  %v8410_v53 = vld [vmem:[#allocation35_spill] sm:$0xff] }
 0x2af   :  { %v7857_v26 = vsel %vm2814_vm0, %v3373_v9, %v3369_v45  ;;  %v2860_v45 = vsel %vm2758_vm7, %v2859_v41, %v2855_v16  ;;  %v2738_v48 = vsel %vm2737_vm4, %v2736_v6, %v2731_v5  ;;  %v2296_v41 = vmul.f32 0.0625, %v8406_v59  ;;  %v8407_v16 = vld [vmem:[#allocation11_spill] sm:$0xff]  ;;  %v8413_v59 = vld [vmem:[#allocation49_spill] sm:$0xff] }
 0x2b0   :  { %v7861_v11 = vpop.xlane.xlu0 %1929  ;;  %v2865_v23 = vsel %vm2765_vm8, %v2864_v25, %v2860_v45  ;;  %v2745_v37 = vsel %vm2744_vm5, %v2743_v57, %v2738_v48  ;;  %v2879_v32 = vrot.slane %v2295_v40, %v6889_v12  ;;  %v2277_v6 = vmul.f32 0.0625, %v8407_v16  ;;  %v8408_v25 = vld [vmem:[#allocation36_spill] sm:$0xff] }
 0x2b1   :  { %v2870_v9 = vsel %vm2772_vm9, %v2869_v35, %v2865_v23  ;;  %v2752_v22 = vsel %vm2751_vm6, %v2750_v28, %v2745_v37  ;;  %v2764_v29 = vrot.slane %v2276_v14, %v6897_v21  ;;  %v2297_v58 = vmul.f32 0.0625, %v8408_v25 }
 0x2b2   :  { %v7867_v39 = vpop.xlane.xlu1 %2256  ;;  %v2875_v5 = vsel %vm2779_vm10, %v2874_v18, %v2870_v9  ;;  %v2759_v63 = vsel %vm2758_vm7, %v2757_v50, %v2752_v22  ;;  %v2884_v19 = vrot.slane %v2296_v41, %v6930_v44  ;;  %v2771_v24 = vrot.slane %v2277_v6, %v6875_v49  ;;  %v8411_v18 = vld [vmem:[#allocation17_spill] sm:$0xff]  ;;  %v8412_v49 = vld [vmem:[#allocation42_spill] sm:$0xff] }
 0x2b3   :  { %v2880_v57 = vsel %vm2786_vm11, %v2879_v32, %v2875_v5  ;;  %v2298_v48 = vmul.f32 0.0625, %v8409_v51  ;;  %v2766_v47 = vsel %vm2765_vm8, %v2764_v29, %v2759_v63  ;;  %v2278_v21 = vmul.f32 0.0625, %v8410_v53  ;;  %v8416_v51 = vld [vmem:[#allocation50_spill] sm:$0xff] }
 0x2b4   :  { %v7873_v2 = vpop.xlane.xlu0 %2019  ;;  %v2889_v23 = vrot.slane %v2297_v58, %v6903_v56  ;;  %v2823_v28 = vadd.s32 4294967184, %v8377_v20  ;;  %v2885_v40 = vsel %vm2793_vm12, %v2884_v19, %v2880_v57  ;;  %v2279_v52 = vmul.f32 0.0625, %v8411_v18  ;;  %v8414_v20 = vld [vmem:[#allocation55_spill] sm:$0xff] }
 0x2b5   :  { %v2299_v14 = vmul.f32 0.0625, %v8412_v49  ;;  %v2773_v9 = vsel %vm2772_vm9, %v2771_v24, %v2766_v47  ;;  %v2894_v50 = vrot.slane %v2298_v48, %v7277_v34  ;;  %v2300_v41 = vmul.f32 0.0625, %v8413_v59 }
 0x2b6   :  { %v7879_v54 = vpop.xlane.xlu1 %1878  ;;  %v2364_v22 = vmul.f32 0.0625, %v7789_v0  ;;  %v2778_v16 = vrot.slane %v2278_v21, %v6924_v4  ;;  %v2280_v6 = vmul.f32 0.0625, %v8414_v20  ;;  %v2890_v5 = vsel %vm2800_vm13, %v2889_v23, %v2885_v40  ;;  %v8415_v4 = vld [vmem:[#allocation44_spill] sm:$0xff] }
 0x2b7   :  { %v2365_v29 = vmul.f32 0.0625, %v7832_v30  ;;  %v7927_v25 = vsub.s32 %v2823_v28, %v8378_v1  ;;  %v7930_v58 = vsub.s32 %v2830_v10, %v8378_v1  ;;  %v2427_v63 = vmul.f32 0.0625, %v7802_v13 }
 0x2b8   :  { %v7885_v3 = vpop.xlane.xlu0 %2118  ;;  %v2899_v57 = vrot.slane %v2299_v14, %v7707_v46  ;;  %v2301_v24 = vmul.f32 0.0625, %v8415_v4  ;;  %v2302_v48 = vmul.f32 0.0625, %v8416_v51  ;;  %v2428_v47 = vmul.f32 0.0625, %v7853_v7 }
 0x2b9   :  { %v2895_v30 = vsel %vm2807_vm1, %v2894_v50, %v2890_v5  ;;  %v2904_v53 = vrot.slane %v2300_v41, %v7807_v31  ;;  %v3220_v1 = vrot.slane %v2364_v22, %v7807_v31  ;;  %v2785_v13 = vrot.slane %v2279_v52, %v6889_v12  ;;  %v8418_v22 = vld [vmem:[#allocation30_spill] sm:$0xff] }
 0x2ba   :  { %v1981_v17 = vpop.xlane.xlu1 %1980  ;;  %v3225_v10 = vrot.slane %v2365_v29, %v7927_v25  ;;  %v2780_v40 = vsel %vm2779_vm10, %v2778_v16, %v2773_v9  ;;  %v2792_v18 = vrot.slane %v2280_v6, %v6930_v44  ;;  %v3531_v7 = vrot.slane %v2427_v63, %v7707_v46 }
 0x2bb   :  { %v2366_v19 = vmul.f32 0.0625, %v1981_v17  ;;  %v8417_v17 = vld [vmem:[#allocation20_spill] sm:$0xff]  ;;  %v2909_v50 = vrot.slane %v2301_v24, %v7927_v25  ;;  %v2914_v59 = vrot.slane %v2302_v48, %v7930_v58  ;;  %v3536_v12 = vrot.slane %v2428_v47, %v7807_v31  ;;  %v8419_v24 = vld [vmem:[#allocation51_spill] sm:$0xff] }
 0x2bc   :  { %v7895_v60 = vpop.xlane.xlu0 %2208  ;;  %v2281_v28 = vmul.f32 0.0625, %v8417_v17  ;;  %v3221_v9 = vsel %vm2821_vm2, %v3220_v1, %v7733_v15  ;;  %v2282_v16 = vmul.f32 0.0625, %v8418_v22  ;;  %vm2835_vm4 = vcmask 1048512   ;;  %v8421_v17 = vld [vmem:[#allocation39_spill] sm:$0xff]  ;;  %v8424_v22 = vld [vmem:[#allocation32_spill] sm:$0xff] }
 0x2bd   :  { %v3230_v49 = vrot.slane %v2366_v19, %v7930_v58  ;;  %v3226_v20 = vsel %vm2828_vm3, %v3225_v10, %v3221_v9  ;;  %v3532_v5 = vsel %vm2814_vm0, %v3531_v7, %v7771_v61  ;;  %v2283_v51 = vmul.f32 0.0625, %v8419_v24 }
 0x2be   :  { %v7901_v45 = vpop.xlane.xlu1 %2070  ;;  %v2799_v19 = vrot.slane %v2281_v28, %v6903_v56  ;;  %v3537_v15 = vsel %vm2821_vm2, %v3536_v12, %v3532_v5  ;;  %v2787_v48 = vsel %vm2786_vm11, %v2785_v13, %v2780_v40  ;;  %v2806_v56 = vrot.slane %v2282_v16, %v7277_v34  ;;  %v8423_v13 = vld [vmem:[#allocation29_spill] sm:$0xff] }
 0x2bf   :  { %v3231_v63 = vsel %vm2835_vm4, %v3230_v49, %v3226_v20  ;;  %vm8420_vm5 = vcmask 1041409   ;;  %v2284_v28 = vmul.f32 0.0625, %v8421_v17  ;;  %vm8422_vm6 = vcmask 1042434  }
 0x2c0   :  { %v7906_v35 = vpop.xlane.xlu0 %1830  ;;  %v2285_v40 = vmul.f32 0.0625, %v8423_v13  ;;  %v2332_v49 = vmul.f32 0.0625, %v7879_v54  ;;  %v2286_v16 = vmul.f32 0.0625, %v8424_v22  ;;  %v2411_v20 = vmul.f32 0.0625, %v7823_v42  ;;  %vm8425_vm7 = vmmov %vm8420_vm5 }
 0x2c1   :  { %v2412_v42 = vmul.f32 0.0625, %v7885_v3  ;;  %vm8426_vm8 = vmmov %vm8420_vm5 }
 0x2c2   :  { %v2170_v37 = vpop.xlane.xlu1 %2169  ;;  %v3062_v5 = vrot.slane %v2332_v49, %v7807_v31  ;;  %vm8427_vm9 = vmmov %vm8422_vm6 }
 0x2c3   :  { %v2429_v21 = vmul.f32 0.0625, %v2170_v37  ;;  %v2900_v37 = vsel %vm2814_vm0, %v2899_v57, %v2895_v30  ;;  %v3457_v13 = vrot.slane %v2412_v42, %v7807_v31  ;;  %vm8428_vm10 = vmmov %vm8420_vm5 }
 0x2c4   :  { %v7920_v32 = vpop.xlane.xlu0 %1932  ;;  %v2905_v52 = vsel %vm2821_vm2, %v2904_v53, %v2900_v37  ;;  %v2794_v53 = vsel %vm2793_vm12, %v2792_v18, %v2787_v48  ;;  %v2813_v18 = vrot.slane %v2283_v51, %v7707_v46  ;;  %v2834_v48 = vrot.slane %v2286_v16, %v7930_v58  ;;  %vm8429_vm11 = vmmov %vm8422_vm6 }
 0x2c5   :  { %v3541_v44 = vrot.slane %v2429_v21, %v7927_v25  ;;  %v2910_v4 = vsel %vm2828_vm3, %v2909_v50, %v2905_v52  ;;  %v2396_v50 = vmul.f32 0.0625, %v7901_v45  ;;  %v2801_v37 = vsel %vm2800_vm13, %v2799_v19, %v2794_v53  ;;  %vm8430_vm12 = vmmov %vm8422_vm6 }
 0x2c6   :  { %v7933_v0 = vpop.xlane.xlu1 %2259  ;;  %v2915_v61 = vsel %vm2835_vm4, %v2914_v59, %v2910_v4  ;;  %v2808_v9 = vsel %vm2807_vm1, %v2806_v56, %v2801_v37  ;;  %v2315_v45 = vmul.f32 0.0625, %v7844_v33  ;;  %v2349_v19 = vmul.f32 0.0625, %v7861_v11 }
 0x2c7   :  { %v3542_v30 = vsel %vm2828_vm3, %v3541_v44, %v3537_v15  ;;  %v3708_v21 = vsel %vm8420_vm5, %v3231_v63, %v2915_v61  ;;  %v2350_v4 = vmul.f32 0.0625, %v7920_v32  ;;  %v3452_v61 = vrot.slane %v2411_v20, %v7707_v46 }
 0x2c8   :  { %v2074_v23 = vpop.xlane.xlu0 %2073  ;;  %v8005_v11 = vmul.f32 0.0625, %v7867_v39  ;;  %v3063_v3 = vsel %vm2821_vm2, %v3062_v5, %v7835_v8  ;;  %v3146_v17 = vrot.slane %v2349_v19, %v7927_v25  ;;  %v2459_v20 = vmul.f32 0.0625, %v7933_v0 }
 0x2c9   :  { %v2397_v12 = vmul.f32 0.0625, %v2074_v23  ;;  %v2815_v23 = vsel %vm2814_vm0, %v2813_v18, %v2808_v9  ;;  %v3151_v39 = vrot.slane %v2350_v4, %v7930_v58  ;;  %v3453_v37 = vsel %vm2814_vm0, %v3452_v61, %v7796_v43 }
 0x2ca   :  { %v1882_v14 = vpop.xlane.xlu1 %1881  ;;  %v3684_v43 = vrot.slane %v8005_v11, %v7277_v34 }
 0x2cb   :  { %v2333_v59 = vmul.f32 0.0625, %v1882_v14  ;;  %v3378_v14 = vrot.slane %v2396_v50, %v7807_v31  ;;  %v3383_v15 = vrot.slane %v2397_v12, %v7927_v25  ;;  %v2442_v50 = vmul.f32 0.0625, %v7895_v60 }
 0x2cc   :  { %v2173_v41 = vpop.xlane.xlu0 %2172  ;;  %v3147_v12 = vsel %vm2828_vm3, %v3146_v17, %v7815_v62  ;;  %v3458_v60 = vsel %vm2821_vm2, %v3457_v13, %v3453_v37 }
 0x2cd   :  { %v2430_v6 = vmul.f32 0.0625, %v2173_v41  ;;  %v2820_v41 = vrot.slane %v2284_v28, %v7807_v31  ;;  %v3067_v63 = vrot.slane %v2333_v59, %v7927_v25  ;;  %v3379_v32 = vsel %vm2821_vm2, %v3378_v14, %v7857_v26 }
 0x2ce   :  { %v7961_v29 = vpop.xlane.xlu1 %2022  ;;  %v3384_v28 = vsel %vm2828_vm3, %v3383_v15, %v3379_v32  ;;  %v2379_v26 = vmul.f32 0.0625, %v7873_v2  ;;  %v3605_v62 = vrot.slane %v2442_v50, %v7277_v34 }
 0x2cf   :  { %v3546_v57 = vrot.slane %v2430_v6, %v7930_v58  ;;  %v2827_v6 = vrot.slane %v2285_v40, %v7927_v25  ;;  %v2822_v51 = vsel %vm2821_vm2, %v2820_v41, %v2815_v23 }
 0x2d0   :  { %v7970_v47 = vpop.xlane.xlu0 %2262  ;;  %v3294_v41 = vrot.slane %v2379_v26, %v7707_v46 }
 0x2d1   :  { %v3547_v1 = vsel %vm2835_vm4, %v3546_v57, %v3542_v30  ;;  %v2978_v30 = vrot.slane %v2315_v45, %v7707_v46 }
 0x2d2   :  { %v2122_v10 = vpop.xlane.xlu1 %2121  ;;  %v3709_v7 = vsel %vm8422_vm6, %v3547_v1, %v3708_v21  ;;  %v3068_v1 = vsel %vm2828_vm3, %v3067_v63, %v3063_v3  ;;  %v3295_v0 = vsel %vm2814_vm0, %v3294_v41, %v7828_v55 }
 0x2d3   :  { %3782 = vmatprep.mubr.f32.mxu0 %v3709_v7  ;;  %v2413_v21 = vmul.f32 0.0625, %v2122_v10  ;;  %v2316_v10 = vmul.f32 0.0625, %v7906_v35  ;;  %v2979_v2 = vsel %vm2814_vm0, %v2978_v30, %v7810_v36  ;;  %v3152_v35 = vsel %vm2835_vm4, %v3151_v39, %v3147_v12 }
 0x2d4   :  { %v1885_v52 = vpop.xlane.xlu0 %1884  ;;  %v2380_v36 = vmul.f32 0.0625, %v7961_v29 }
 0x2d5   :  { %v2334_v44 = vmul.f32 0.0625, %v1885_v52  ;;  %v3462_v59 = vrot.slane %v2413_v21, %v7927_v25  ;;  %v2829_v52 = vsel %vm2828_vm3, %v2827_v6, %v2822_v51  ;;  %v2983_v16 = vrot.slane %v2316_v10, %v7807_v31 }
 0x2d6   :  { %v2212_v54 = vpop.xlane.xlu1 %2211  ;;  %v3299_v51 = vrot.slane %v2380_v36, %v7807_v31 }
 0x2d7   :  { %v3072_v33 = vrot.slane %v2334_v44, %v7930_v58  ;;  %v2836_v44 = vsel %vm2835_vm4, %v2834_v48, %v2829_v52  ;;  %v2443_v45 = vmul.f32 0.0625, %v2212_v54  ;;  %v3463_v14 = vsel %vm2828_vm3, %v3462_v59, %v3458_v60 }
 0x2d8   :  { %v2077_v57 = vpop.xlane.xlu0 %2076  ;;  %v3706_v23 = vsel %vm8426_vm8, %v3152_v35, %v2836_v44  ;;  %v3606_v54 = vsel %vm2807_vm1, %v3605_v62, %v7850_v27  ;;  %v3300_v17 = vsel %vm2821_vm2, %v3299_v51, %v3295_v0 }
 0x2d9   :  { %v2398_v24 = vmul.f32 0.0625, %v2077_v57  ;;  %v3073_v40 = vsel %vm2835_vm4, %v3072_v33, %v3068_v1  ;;  %v2460_v57 = vmul.f32 0.0625, %v7970_v47  ;;  %v2984_v33 = vsel %vm2821_vm2, %v2983_v16, %v2979_v2 }
 0x2da   :  { %v1834_v53 = vpop.xlane.xlu1 %1833  ;;  %v3610_v48 = vrot.slane %v2443_v45, %v7707_v46 }
 0x2db   :  { %v3388_v56 = vrot.slane %v2398_v24, %v7930_v58  ;;  %v2317_v5 = vmul.f32 0.0625, %v1834_v53  ;;  %v3689_v24 = vrot.slane %v2459_v20, %v7707_v46  ;;  %v3694_v27 = vrot.slane %v2460_v57, %v7807_v31 }
 0x2dc   :  { %v2215_v7 = vpop.xlane.xlu0 %2214  ;;  %v3685_v46 = vsel %vm2807_vm1, %v3684_v43, %v7820_v38 }
 0x2dd   :  { %v3389_v8 = vsel %vm2835_vm4, %v3388_v56, %v3384_v28  ;;  %v2444_v63 = vmul.f32 0.0625, %v2215_v7  ;;  %v2988_v61 = vrot.slane %v2317_v5, %v7927_v25  ;;  %v3611_v7 = vsel %vm2814_vm0, %v3610_v48, %v3606_v54 }
 0x2de   :  { %v2026_v49 = vpop.xlane.xlu1 %2025  ;;  %v8023_v18 = vsel %vm8425_vm7, %v3389_v8, %v3073_v40 }
 0x2df   :  { %v2381_v4 = vmul.f32 0.0625, %v2026_v49  ;;  %v3615_v55 = vrot.slane %v2444_v63, %v7807_v31  ;;  %v3690_v31 = vsel %vm2814_vm0, %v3689_v24, %v3685_v46  ;;  %v2989_v8 = vsel %vm2828_vm3, %v2988_v61, %v2984_v33 }
 0x2e0   :  { %v1837_v9 = vpop.xlane.xlu0 %1836  ;;  %v3695_v49 = vsel %vm2821_vm2, %v3694_v27, %v3690_v31 }
 0x2e1   :  { %v2318_v34 = vmul.f32 0.0625, %v1837_v9  ;;  %v3304_v1 = vrot.slane %v2381_v4, %v7927_v25  ;;  %v3616_v40 = vsel %vm2821_vm2, %v3615_v55, %v3611_v7 }
 0x2e2   :  { %v2125_v22 = vpop.xlane.xlu1 %2124 }
 0x2e3   :  { %v2414_v6 = vmul.f32 0.0625, %v2125_v22  ;;  %v2993_v3 = vrot.slane %v2318_v34, %v7930_v58  ;;  %v3305_v10 = vsel %vm2828_vm3, %v3304_v1, %v3300_v17 }
 0x2e4   :  { %v2218_v19 = vpop.xlane.xlu0 %2217 }
 0x2e5   :  { %v3467_v15 = vrot.slane %v2414_v6, %v7930_v58  ;;  %v2445_v42 = vmul.f32 0.0625, %v2218_v19  ;;  %v2994_v26 = vsel %vm2835_vm4, %v2993_v3, %v2989_v8 }
 0x2e6   :  { %v2266_v29 = vpop.xlane.xlu1 %2265 }
 0x2e7   :  { %v3468_v47 = vsel %vm2835_vm4, %v3467_v15, %v3463_v14  ;;  %v2461_v30 = vmul.f32 0.0625, %v2266_v29  ;;  %v3620_v32 = vrot.slane %v2445_v42, %v7927_v25 }
 0x2e8   :  { %v3707_v53 = vsel %vm8427_vm9, %v3468_v47, %v3706_v23  ;;  %v2221_v11 = vpop.xlane.xlu0 %2220 }
 0x2e9   :  { %3783 = vmatmul.mubr.f32.vlgmr.msra.gmra.mrb[6].mxu0 %v3707_v53  ;;  %v2446_v56 = vmul.f32 0.0625, %v2221_v11  ;;  %v3699_v39 = vrot.slane %v2461_v30, %v7927_v25  ;;  %v3621_v50 = vsel %vm2828_vm3, %v3620_v32, %v3616_v40 }
 0x2ea   :  { %v2029_v21 = vpop.xlane.xlu1 %2028 }
 0x2eb   :  { %v2382_v28 = vmul.f32 0.0625, %v2029_v21  ;;  %v3625_v13 = vrot.slane %v2446_v56, %v7930_v58  ;;  %v3700_v52 = vsel %vm2828_vm3, %v3699_v39, %v3695_v49 }
 0x2ed   :  { %v3309_v38 = vrot.slane %v2382_v28, %v7930_v58  ;;  %v3626_v59 = vsel %vm2835_vm4, %v3625_v13, %v3621_v50 }
 0x2ee   :  { %v2269_v37 = vpop.xlane.xlu1 %2268 }
 0x2ef   :  { %v3310_v12 = vsel %vm2835_vm4, %v3309_v38, %v3305_v10  ;;  %v2462_v25 = vmul.f32 0.0625, %v2269_v37 }
 0x2f0   :  { %v3710_v9 = vsel %vm8428_vm10, %v3310_v12, %v2994_v26 }
 0x2f1   :  { %v3704_v2 = vrot.slane %v2462_v25, %v7930_v58  ;;  %v3711_v60 = vsel %vm8429_vm11, %v3626_v59, %v3710_v9 }
 0x2f3   :  { %v3705_v35 = vsel %vm2835_vm4, %v3704_v2, %v3700_v52 }
 0x2f4   :  { %v3713_v44 = vsel %vm8430_vm12, %v3705_v35, %v8023_v18 }
 0x2f5   :  { %3852 = vmatprep.mubr.f32.mxu1 %v3713_v44 }
 0x2f6   :  { %3853 = vmatmul.mubr.f32.vlgmr.msra.gmra.mrb[6].mxu1 %v3711_v60 }
 0x2f7   :  { %4133 = shalt.err (!%p4130_p4)
}
 0x2f8   :  { %s4134_s14 = scalar_lea.hbm %s8132_s7, 128 }
 0x2f9   :  { %p4135_p5 = scmp.ne.s32.totalorder %s8132_s7, %s4134_s14  ;;  %p4138_p6 = scmp.lt.u32.totalorder %s4134_s14, %s8132_s7 }
 0x2fb   :  { %p4140_p7 = pnand %p4138_p6, %p4135_p5 }
 0x2fd   :  { %4143 = shalt.err (!%p4140_p7)
}
 0x2fe   :  { %3879 = dma.vmem_to_hbm [thread:$0]  %s3877_s0, 128, %s8132_s7, [#allocation5]  }
 0x2ff   :  { %s4144_s19 = scalar_lea.vmem %s3867_s10, 256  ;;  %p4149_p9 = scmp.lt.s32.totalorder %s3867_s10, %s3867_s10 }
 0x300   :  { %p4145_p8 = scmp.ne.s32.totalorder %s3867_s10, %s4144_s19  ;;  %p4150_p10 = scmp.lt.s32.totalorder %s4144_s19, %s4144_s19 }
 0x302   :  { %p4151_p11 = por %p4150_p10, %p4149_p9 }
 0x304   :  { %p4152_p12 = pnand %p4151_p11, %p4145_p8 }
 0x306   :  { %4155 = shalt.err (!%p4152_p12)
}
 0x307   :  { %s4156_s22 = scalar_lea.hbm %s8131_s6, 256 }
 0x308   :  { %p4157_p13 = scmp.ne.s32.totalorder %s8131_s6, %s4156_s22  ;;  %p4160_p0 = scmp.lt.u32.totalorder %s4156_s22, %s8131_s6 }
 0x30a   :  { %p4162_p1 = pnand %p4160_p0, %p4157_p13 }
 0x30c   :  { %4165 = shalt.err (!%p4162_p1)
}
 0x30d   :  { %3869 = dma.vmem_to_hbm [thread:$0]  %s3867_s10, 256, %s8131_s6, [#allocation3]   ;;  %v3907_v41 = vld [vmem:[%s8130_s5] ss:$0 sm:$0xff]  ;;  %vm3858_vm13 = vcmask 75776  }
 0x30e   :  { %s4197_s29 = smov [#allocation6]  }
 0x30f   :  { %s3886_s30 = sshll.u32 %s4197_s29, 4  ;;  %s3887_s30 = int_to_ptr.vmem [resolvable:$true] %s3886_s30 }
 0x310   :  { %s4166_s4 = scalar_lea.vmem %s3887_s30, 64  ;;  %p4171_p3 = scmp.lt.s32.totalorder %s3887_s30, %s3887_s30 }
 0x311   :  { %p4167_p2 = scmp.ne.s32.totalorder %s3887_s30, %s4166_s4  ;;  %p4172_p4 = scmp.lt.s32.totalorder %s4166_s4, %s4166_s4 }
 0x313   :  { %p4173_p5 = por %p4172_p4, %p4171_p3 }
 0x315   :  { %p4174_p6 = pnand %p4173_p5, %p4167_p2 }
 0x3bc   :  { %v3940_v58 = vpop.f32.mrb[6].mxu0 }
 0x3bd   :  { %v3941_v18 = vpop.f32.mrb[7].mxu0 }
 0x3be   :  { %v3942_v43 = vadd.f32 %v3941_v18, %v3940_v58 }
 0x3c0   :  { %v3785_v16 = vadd.f32 %v3942_v43, %v3907_v41 }
 0x3c9   :  { %v3975_v22 = vpop.f32.mrb[6].mxu1 }
 0x3ca   :  { %v3976_v62 = vpop.f32.mrb[7].mxu1 }
 0x3cb   :  { %v3977_v20 = vadd.f32 %v3976_v62, %v3975_v22 }
 0x3cd   :  { %v3855_v36 = vadd.f32 %v3977_v20, %v3785_v16 }
 0x3cf   :  { %3859 = vst.msk [vmem:[#allocation6] sm:$0x7] %vm3858_vm13, %v3855_v36 }
 0x3d0   :  { %4177 = shalt.err (!%p4174_p6)
}
 0x3d1   :  { %s4178_s5 = scalar_lea.hbm %s8133_s8, 64 }
 0x3d2   :  { %p4179_p7 = scmp.ne.s32.totalorder %s8133_s8, %s4178_s5  ;;  %p4182_p8 = scmp.lt.u32.totalorder %s4178_s5, %s8133_s8 }
 0x3d4   :  { %p4184_p9 = pnand %p4182_p8, %p4179_p7 }
 0x3d6   :  { %4187 = shalt.err (!%p4184_p9)
}
 0x3d7   :  { %3889 = dma.vmem_to_hbm [thread:$0]  %s3887_s30, 64, %s8133_s8, [#allocation5]  }
 0x3d8   :  { %4188 = dma.done.wait [#allocation3], 256  }
 0x3d9   :  { %4189 = vsyncadd [#allocation3], 4294967040 }
 0x3da   :  { %4190 = dma.done.wait [#allocation5], 192  }
 0x3db   :  { %4191 = vsyncadd [#allocation5], 4294967104 }
 0x3dc   :  { %3899 = vsyncpa [#allocation3], 1 }
 0x3dd   :  { %3900 = vsyncpa [#allocation5], 1 }

</bundles_post_ra>
